<compile_context>
chip_gen: v5e
topology: v5e:2x2
jax: 0.10.0
libtpu: 0.0.40
codegen_flags: <defaults>
</compile_context>

<pallas_src>
import math
import functools

import jax
import jax.numpy as jnp
from jax import lax
from jax.experimental import pallas as pl
from jax.experimental.pallas import tpu as pltpu


# ----------------------------- kernel helpers ------------------------------

def _layernorm(x, w, b, eps=1e-5):
    """LayerNorm over the last axis in f32. x: (N, D); w, b: (1, D)."""
    mu = jnp.mean(x, axis=-1, keepdims=True)
    var = jnp.mean((x - mu) ** 2, axis=-1, keepdims=True)
    return (x - mu) * lax.rsqrt(var + eps) * w + b


# ----------------------------- Pallas kernel -------------------------------

def clip_layer_kernel(x_ref,
                      ln1_w, ln1_b, w_in, b_in, w_out, b_out,
                      ln2_w, ln2_b, w1, b1, w2, b2,
                      fln_w, fln_b,
                      o_ref,
                      *, n_head, seq_valid, apply_final_ln):
    """One CLIP transformer encoder layer for a block of batch elements."""
    Bblk, S, D = x_ref.shape
    H = n_head
    dh = D // H
    N = Bblk * S

    x = x_ref[...].astype(jnp.float32).reshape(N, D)           # (N, D) f32

    # ---------------- residual 1: LN -> causal self-attention ---------------
    residue = x
    h = _layernorm(x, ln1_w[...], ln1_b[...])

    # Fused QKV projection (bf16 in, f32 accumulate).  The 1/sqrt(dh) scale
    # is already folded into the Q columns of w_in / b_in.
    qkv = jnp.dot(h.astype(jnp.bfloat16), w_in[...],
                  preferred_element_type=jnp.float32) + b_in[...]   # (N, 3D)

    # Additive mask built once: strictly-upper-triangle causal + padded keys.
    row = lax.broadcasted_iota(jnp.int32, (S, S), 0)
    col = lax.broadcasted_iota(jnp.int32, (S, S), 1)
    mask_bias = jnp.where((col > row) | (col >= seq_valid),
                          jnp.float32(-1e30), jnp.float32(0.0))     # (S, S)

    # Per-head attention, batched over Bblk, accumulated lane-dense through
    # the head's slice of the out-projection (no ctx scratch / concatenate).
    acc = jnp.zeros((N, D), jnp.float32)
    for hd in range(H):
        qo, ko, vo = hd * dh, D + hd * dh, 2 * D + hd * dh
        qh = qkv[:, qo:qo + dh].astype(jnp.bfloat16).reshape(Bblk, S, dh)
        kh = qkv[:, ko:ko + dh].astype(jnp.bfloat16).reshape(Bblk, S, dh)
        vh = qkv[:, vo:vo + dh].astype(jnp.bfloat16).reshape(Bblk, S, dh)

        s = jnp.einsum('bqd,bkd->bqk', qh, kh,
                       preferred_element_type=jnp.float32)          # (B,S,S)
        s = s + mask_bias[None, :, :]
        m = jnp.max(s, axis=-1, keepdims=True)
        e = jnp.exp(s - m)
        p = e * pl.reciprocal(jnp.sum(e, axis=-1, keepdims=True), approx=True)
        ctx = jnp.einsum('bqk,bkd->bqd', p.astype(jnp.bfloat16), vh,
                         preferred_element_type=jnp.float32)        # (B,S,dh)

        acc = acc + jnp.dot(ctx.reshape(N, dh).astype(jnp.bfloat16),
                            w_out[hd * dh:(hd + 1) * dh, :],
                            preferred_element_type=jnp.float32)     # (N, D)

    x = acc + b_out[...] + residue

    # ---------------- residual 2: LN -> MLP with QuickGELU -------------------
    residue = x
    h = _layernorm(x, ln2_w[...], ln2_b[...]).astype(jnp.bfloat16)

    hidden = w1.shape[1]
    chunk = 1024 if (hidden > 1024 and hidden % 1024 == 0) else hidden
    b1v = b1[...]
    mlp = jnp.zeros((N, D), jnp.float32)
    for c0 in range(0, hidden, chunk):          # tile the 4D hidden dimension
        hc = jnp.dot(h, w1[:, c0:c0 + chunk],
                     preferred_element_type=jnp.float32) + b1v[:, c0:c0 + chunk]
        hc = hc * jax.nn.sigmoid(1.702 * hc)                       # QuickGELU
        mlp = mlp + jnp.dot(hc.astype(jnp.bfloat16), w2[c0:c0 + chunk, :],
                            preferred_element_type=jnp.float32)
    x = mlp + b2[...] + residue

    if apply_final_ln:                                     # fused final LN
        x = _layernorm(x, fln_w[...], fln_b[...])

    o_ref[...] = x.reshape(Bblk, S, D).astype(o_ref.dtype)


# ----------------------------- wrappers ------------------------------------

def _vmem_cap_bytes():
    """Generation-aware VMEM request cap (leave headroom for Mosaic scratch)."""
    try:
        info = pltpu.get_tpu_info()
        cap = int(getattr(info, "vmem_capacity_bytes", 128 << 20))
    except Exception:
        cap = 128 << 20
    # ~48 MiB on v7x (64 MiB/TC), ~96 MiB on v5e/v6e (128 MiB).
    return min((cap * 3) // 4, 100 << 20)


def _pick_bblk(B, S_pad, vmem_cap):
    """Pack batch rows per grid step (bigger MXU M) but keep enough steps
    for pipeline overlap (>= 2 per TensorCore on v7x megacore)."""
    rows_cap = 1024 if vmem_cap >= (96 << 20) else 512
    min_steps = min(B, 4)
    bblk = 1
    for cand in range(min(B, 16), 0, -1):
        if B % cand != 0:
            continue
        if cand * S_pad > rows_cap:
            continue
        if (B // cand) < min_steps:
            continue
        bblk = cand
        break
    return bblk


def _vmem_limit_bytes(bblk, S, D, cap):
    w_bytes = 12 * D * D * 2                       # bf16 weights, single-buffered
    small = 32 * D * 4                             # biases + LN params
    io = 2 * 2 * bblk * S * D * 4                  # double-buffered act in + out
    tmp = 2 * bblk * S * (3 * D + 4 * D) * 4       # rough f32 in-kernel temporaries
    total = w_bytes + small + io + tmp + (8 << 20)
    return int(min(max(total, 32 << 20), cap))


def _weight_spec(shape, single_buffer):
    """Grid-invariant param spec; request single buffering to save VMEM."""
    ndim = len(shape)
    idx = lambda *_: (0,) * ndim
    if single_buffer:
        return pl.BlockSpec(shape, idx, pipeline_mode=pl.Buffered(1))
    return pl.BlockSpec(shape, idx)


def run_clip_layer(x, layer_params, final_ln, *, n_head, seq_valid,
                   apply_final_ln, bblk, vmem_cap, single_buffer_weights):
    B, S, D = x.shape
    assert B % bblk == 0 and D % n_head == 0

    in_specs = [pl.BlockSpec((bblk, S, D), lambda b: (b, 0, 0))]
    for p in list(layer_params) + list(final_ln):          # all params are 2-D
        in_specs.append(_weight_spec(p.shape, single_buffer_weights))

    kernel = functools.partial(clip_layer_kernel, n_head=n_head,
                               seq_valid=seq_valid,
                               apply_final_ln=apply_final_ln)

    return pl.pallas_call(
        kernel,
        out_shape=jax.ShapeDtypeStruct((B, S, D), x.dtype),
        grid=(B // bblk,),
        in_specs=in_specs,
        out_specs=pl.BlockSpec((bblk, S, D), lambda b: (b, 0, 0)),
        compiler_params=pltpu.CompilerParams(
            dimension_semantics=("parallel",),
            vmem_limit_bytes=_vmem_limit_bytes(bblk, S, D, vmem_cap)),
    )(x, *layer_params, *final_ln)


# ----------------------------- parameter init ------------------------------

def init_clip_params(key, n_vocab, n_embd, n_token, n_layers, n_head):
    D = n_embd
    counter = iter(range(1 << 20))

    def nk():                                   # never runs out of keys
        return jax.random.fold_in(key, next(counter))

    params = {
        # nn.Embedding default init: N(0, 1)
        "tok_emb": jax.random.normal(nk(), (n_vocab, D), jnp.float32),
        # position_embedding = torch.zeros((n_token, n_embd))
        "pos_emb": jnp.zeros((n_token, D), jnp.float32),
        "final_ln_w": jnp.ones((1, D), jnp.float32),
        "final_ln_b": jnp.zeros((1, D), jnp.float32),
        "layers": [],
    }

    def lin_w(fan_in, fan_out):
        return 0.02 * jax.random.normal(nk(), (fan_in, fan_out), jnp.float32)

    # Fold the 1/sqrt(dh) attention scale into the Q columns of in_proj
    # (weight + bias) once, at parameter-prep time.
    dh = D // n_head
    q_scale = 1.0 / math.sqrt(dh)
    col_scale = jnp.concatenate(
        [jnp.full((D,), q_scale, jnp.float32),
         jnp.ones((2 * D,), jnp.float32)])[None, :]               # (1, 3D)

    for _ in range(n_layers):
        w_in = lin_w(D, 3 * D) * col_scale
        b_in = 0.01 * jax.random.normal(nk(), (1, 3 * D), jnp.float32) * col_scale
        lp = (
            jnp.ones((1, D), jnp.float32),                 # ln1 weight
            jnp.zeros((1, D), jnp.float32),                # ln1 bias
            w_in.astype(jnp.bfloat16),                     # in_proj weight (x @ W)
            b_in,                                          # in_proj bias (f32)
            lin_w(D, D).astype(jnp.bfloat16),              # out_proj weight
            jnp.zeros((1, D), jnp.float32),                # out_proj bias
            jnp.ones((1, D), jnp.float32),                 # ln2 weight
            jnp.zeros((1, D), jnp.float32),                # ln2 bias
            lin_w(D, 4 * D).astype(jnp.bfloat16),          # linear_1 weight
            0.01 * jax.random.normal(nk(), (1, 4 * D), jnp.float32),
            lin_w(4 * D, D).astype(jnp.bfloat16),          # linear_2 weight
            0.01 * jax.random.normal(nk(), (1, D), jnp.float32),
        )
        params["layers"].append(lp)
    return params


def clip_forward(tokens, params, n_head, single_buffer_weights=True):
    tokens = tokens.astype(jnp.int32)
    # Embedding gather + positional add: plain-JAX glue (data-dependent gather).
    state = jnp.take(params["tok_emb"], tokens, axis=0) + params["pos_emb"][None]

    B, S, D = state.shape
    S_pad = ((S + 7) // 8) * 8                     # sublane-align the sequence
    if S_pad != S:
        state = jnp.pad(state, ((0, 0), (0, S_pad - S), (0, 0)))

    vmem_cap = _vmem_cap_bytes()
    bblk = _pick_bblk(B, S_pad, vmem_cap)
    final_ln = (params["final_ln_w"], params["final_ln_b"])
    n_layers = len(params["layers"])

    # TODO(synk): P10 cross-pallas_call prefetch of layer i+1's weight bundle
    #             (or one pallas_call with a leading "arbitrary" layer axis)
    #             to hide the per-layer weight HBM DMA at small batch.
    for i, lp in enumerate(params["layers"]):
        state = run_clip_layer(state, lp, final_ln, n_head=n_head,
                               seq_valid=S,
                               apply_final_ln=(i == n_layers - 1),
                               bblk=bblk, vmem_cap=vmem_cap,
                               single_buffer_weights=single_buffer_weights)
    return state[:, :S, :]


# ----------------------------- main -----------------------------------------

if __name__ == "__main__":
    # Small shapes consistent with the module structure
    # (real CLIP: vocab=49408, D=768, seq=77, 12 layers, 12 heads).
    N_VOCAB, N_EMBD, N_TOKEN, N_LAYERS, N_HEAD = 1000, 64, 16, 2, 4
    BATCH = 2

    key = jax.random.PRNGKey(0)
    k_tok, k_par = jax.random.split(key)
    tokens = jax.random.randint(k_tok, (BATCH, N_TOKEN), 0, N_VOCAB,
                                dtype=jnp.int32)
    params = init_clip_params(k_par, N_VOCAB, N_EMBD, N_TOKEN, N_LAYERS, N_HEAD)

    def _run(single_buffer):
        fwd = jax.jit(functools.partial(clip_forward, n_head=N_HEAD,
                                        single_buffer_weights=single_buffer))
        out = fwd(tokens, params)
        jax.block_until_ready(out)
        return out

    try:
        out = _run(True)      # grid-invariant weights single-buffered
    except Exception:
        out = _run(False)     # fallback if pipeline_mode=pl.Buffered(1) unsupported

    assert out.shape == (BATCH, N_TOKEN, N_EMBD), out.shape
    assert bool(jnp.all(jnp.isfinite(out)))
    print("KERNEL_OK")
</pallas_src>

<mosaic_0001>
module attributes {stable_mosaic.version = 11 : i64} {
  func.func @clip_layer_kernel(%arg0: i32, %arg1: memref<1x16x64xf32, #tpu.memory_space<vmem>>, %arg2: memref<1x64xf32, #tpu.memory_space<vmem>>, %arg3: memref<1x64xf32, #tpu.memory_space<vmem>>, %arg4: memref<64x192xbf16, #tpu.memory_space<vmem>>, %arg5: memref<1x192xf32, #tpu.memory_space<vmem>>, %arg6: memref<64x64xbf16, #tpu.memory_space<vmem>>, %arg7: memref<1x64xf32, #tpu.memory_space<vmem>>, %arg8: memref<1x64xf32, #tpu.memory_space<vmem>>, %arg9: memref<1x64xf32, #tpu.memory_space<vmem>>, %arg10: memref<64x256xbf16, #tpu.memory_space<vmem>>, %arg11: memref<1x256xf32, #tpu.memory_space<vmem>>, %arg12: memref<256x64xbf16, #tpu.memory_space<vmem>>, %arg13: memref<1x64xf32, #tpu.memory_space<vmem>>, %arg14: memref<1x64xf32, #tpu.memory_space<vmem>>, %arg15: memref<1x64xf32, #tpu.memory_space<vmem>>, %arg16: memref<1x16x64xf32, #tpu.memory_space<vmem>>) attributes {dimension_semantics = [#tpu.dimension_semantics<parallel>], iteration_bounds = array<i64: 2>, scalar_prefetch = 0 : i64, scratch_operands = 0 : i64, tpu.core_type = #tpu.core_type<tc>, window_params = [{transform_indices = @transform_0, window_bounds = array<i64: 1, 16, 64>}, {pipeline_mode = #tpu.pipeline_mode<synchronous>, transform_indices = @transform_1, window_bounds = array<i64: 1, 64>}, {pipeline_mode = #tpu.pipeline_mode<synchronous>, transform_indices = @transform_2, window_bounds = array<i64: 1, 64>}, {pipeline_mode = #tpu.pipeline_mode<synchronous>, transform_indices = @transform_3, window_bounds = array<i64: 64, 192>}, {pipeline_mode = #tpu.pipeline_mode<synchronous>, transform_indices = @transform_4, window_bounds = array<i64: 1, 192>}, {pipeline_mode = #tpu.pipeline_mode<synchronous>, transform_indices = @transform_5, window_bounds = array<i64: 64, 64>}, {pipeline_mode = #tpu.pipeline_mode<synchronous>, transform_indices = @transform_6, window_bounds = array<i64: 1, 64>}, {pipeline_mode = #tpu.pipeline_mode<synchronous>, transform_indices = @transform_7, window_bounds = array<i64: 1, 64>}, {pipeline_mode = #tpu.pipeline_mode<synchronous>, transform_indices = @transform_8, window_bounds = array<i64: 1, 64>}, {pipeline_mode = #tpu.pipeline_mode<synchronous>, transform_indices = @transform_9, window_bounds = array<i64: 64, 256>}, {pipeline_mode = #tpu.pipeline_mode<synchronous>, transform_indices = @transform_10, window_bounds = array<i64: 1, 256>}, {pipeline_mode = #tpu.pipeline_mode<synchronous>, transform_indices = @transform_11, window_bounds = array<i64: 256, 64>}, {pipeline_mode = #tpu.pipeline_mode<synchronous>, transform_indices = @transform_12, window_bounds = array<i64: 1, 64>}, {pipeline_mode = #tpu.pipeline_mode<synchronous>, transform_indices = @transform_13, window_bounds = array<i64: 1, 64>}, {pipeline_mode = #tpu.pipeline_mode<synchronous>, transform_indices = @transform_14, window_bounds = array<i64: 1, 64>}, {transform_indices = @transform_15, window_bounds = array<i64: 1, 16, 64>}]} {
    %c0 = arith.constant 0 : index
    %c0_0 = arith.constant 0 : index
    %c0_1 = arith.constant 0 : index
    %0 = vector.load %arg1[%c0, %c0_0, %c0_1] : memref<1x16x64xf32, #tpu.memory_space<vmem>>, vector<1x16x64xf32>
    %1 = vector.shape_cast %0 : vector<1x16x64xf32> to vector<16x64xf32>
    %c0_2 = arith.constant 0 : index
    %c0_3 = arith.constant 0 : index
    %2 = vector.load %arg2[%c0_2, %c0_3] : memref<1x64xf32, #tpu.memory_space<vmem>>, vector<1x64xf32>
    %c0_4 = arith.constant 0 : index
    %c0_5 = arith.constant 0 : index
    %3 = vector.load %arg3[%c0_4, %c0_5] : memref<1x64xf32, #tpu.memory_space<vmem>>, vector<1x64xf32>
    %cst = arith.constant dense<0.000000e+00> : vector<16xf32>
    %4 = vector.multi_reduction <add>, %1, %cst [1] : vector<16x64xf32> to vector<16xf32>
    %5 = vector.shape_cast %4 : vector<16xf32> to vector<16x1xf32>
    %cst_6 = arith.constant 6.400000e+01 : f32
    %6 = vector.broadcast %cst_6 : f32 to vector<16x1xf32>
    %7 = arith.divf %5, %6 : vector<16x1xf32>
    %8 = vector.broadcast %7 : vector<16x1xf32> to vector<16x64xf32>
    %9 = arith.subf %1, %8 : vector<16x64xf32>
    %10 = arith.mulf %9, %9 : vector<16x64xf32>
    %cst_7 = arith.constant dense<0.000000e+00> : vector<16xf32>
    %11 = vector.multi_reduction <add>, %10, %cst_7 [1] : vector<16x64xf32> to vector<16xf32>
    %12 = vector.shape_cast %11 : vector<16xf32> to vector<16x1xf32>
    %cst_8 = arith.constant 6.400000e+01 : f32
    %13 = vector.broadcast %cst_8 : f32 to vector<16x1xf32>
    %14 = arith.divf %12, %13 : vector<16x1xf32>
    %15 = vector.broadcast %7 : vector<16x1xf32> to vector<16x64xf32>
    %16 = arith.subf %1, %15 : vector<16x64xf32>
    %cst_9 = arith.constant 9.99999974E-6 : f32
    %17 = vector.broadcast %cst_9 : f32 to vector<16x1xf32>
    %18 = arith.addf %14, %17 : vector<16x1xf32>
    %19 = math.rsqrt %18 : vector<16x1xf32>
    %20 = vector.broadcast %19 : vector<16x1xf32> to vector<16x64xf32>
    %21 = arith.mulf %16, %20 : vector<16x64xf32>
    %22 = vector.broadcast %2 : vector<1x64xf32> to vector<16x64xf32>
    %23 = arith.mulf %21, %22 : vector<16x64xf32>
    %24 = vector.broadcast %3 : vector<1x64xf32> to vector<16x64xf32>
    %25 = arith.addf %23, %24 : vector<16x64xf32>
    %26 = arith.truncf %25 : vector<16x64xf32> to vector<16x64xbf16>
    %c0_10 = arith.constant 0 : index
    %c0_11 = arith.constant 0 : index
    %27 = vector.load %arg4[%c0_10, %c0_11] : memref<64x192xbf16, #tpu.memory_space<vmem>>, vector<64x192xbf16>
    %cst_12 = arith.constant dense<0.000000e+00> : vector<16x192xf32>
    %28 = tpu.matmul %26, %27, %cst_12 {dimension_numbers = #tpu.dot_dimension_numbers<[1], [0], [0], [1], [0, 0, 1, 1], [], []>} : vector<16x64xbf16>, vector<64x192xbf16>, vector<16x192xf32> -> vector<16x192xf32>
    %c0_13 = arith.constant 0 : index
    %c0_14 = arith.constant 0 : index
    %29 = vector.load %arg5[%c0_13, %c0_14] : memref<1x192xf32, #tpu.memory_space<vmem>>, vector<1x192xf32>
    %30 = vector.broadcast %29 : vector<1x192xf32> to vector<16x192xf32>
    %31 = arith.addf %28, %30 : vector<16x192xf32>
    %32 = tpu.iota {dimensions = array<i32: 0>} : vector<16x16xi32>
    %33 = tpu.iota {dimensions = array<i32: 1>} : vector<16x16xi32>
    %34 = arith.cmpi sgt, %33, %32 : vector<16x16xi32>
    %c16_i32 = arith.constant 16 : i32
    %35 = vector.broadcast %c16_i32 : i32 to vector<16x16xi32>
    %36 = arith.cmpi sge, %33, %35 : vector<16x16xi32>
    %37 = arith.ori %34, %36 : vector<16x16xi1>
    %cst_15 = arith.constant -1.000000e+30 : f32
    %cst_16 = arith.constant 0.000000e+00 : f32
    %38 = vector.broadcast %cst_15 : f32 to vector<16x16xf32>
    %39 = vector.broadcast %cst_16 : f32 to vector<16x16xf32>
    %40 = arith.select %37, %38, %39 : vector<16x16xi1>, vector<16x16xf32>
    %cst_17 = arith.constant 0.000000e+00 : f32
    %41 = vector.broadcast %cst_17 : f32 to vector<16x64xf32>
    %42 = vector.extract_strided_slice %31 {offsets = [0, 0], sizes = [16, 16], strides = [1, 1]} : vector<16x192xf32> to vector<16x16xf32>
    %43 = arith.truncf %42 : vector<16x16xf32> to vector<16x16xbf16>
    %44 = vector.shape_cast %43 : vector<16x16xbf16> to vector<1x16x16xbf16>
    %45 = vector.extract_strided_slice %31 {offsets = [0, 64], sizes = [16, 16], strides = [1, 1]} : vector<16x192xf32> to vector<16x16xf32>
    %46 = arith.truncf %45 : vector<16x16xf32> to vector<16x16xbf16>
    %47 = vector.shape_cast %46 : vector<16x16xbf16> to vector<1x16x16xbf16>
    %48 = vector.extract_strided_slice %31 {offsets = [0, 128], sizes = [16, 16], strides = [1, 1]} : vector<16x192xf32> to vector<16x16xf32>
    %49 = arith.truncf %48 : vector<16x16xf32> to vector<16x16xbf16>
    %50 = vector.shape_cast %49 : vector<16x16xbf16> to vector<1x16x16xbf16>
    "tpu.trace_start"() <{level = 10 : i32, message = "bqd,bkd->bqk"}> : () -> ()
    %cst_18 = arith.constant dense<0.000000e+00> : vector<1x16x16xf32>
    %51 = tpu.matmul %44, %47, %cst_18 {dimension_numbers = #tpu.dot_dimension_numbers<[2], [2], [1], [1], [0, 0, 0, 1, 1, 1], [0], [0]>} : vector<1x16x16xbf16>, vector<1x16x16xbf16>, vector<1x16x16xf32> -> vector<1x16x16xf32>
    "tpu.trace_stop"() : () -> ()
    %52 = vector.shape_cast %40 : vector<16x16xf32> to vector<1x16x16xf32>
    %53 = arith.addf %51, %52 : vector<1x16x16xf32>
    %cst_19 = arith.constant dense<0xFF800000> : vector<1x16xf32>
    %54 = vector.multi_reduction <maximumf>, %53, %cst_19 [2] : vector<1x16x16xf32> to vector<1x16xf32>
    %55 = vector.shape_cast %54 : vector<1x16xf32> to vector<1x16x1xf32>
    %56 = vector.broadcast %55 : vector<1x16x1xf32> to vector<1x16x16xf32>
    %57 = arith.subf %53, %56 : vector<1x16x16xf32>
    %58 = math.exp %57 : vector<1x16x16xf32>
    %cst_20 = arith.constant dense<0.000000e+00> : vector<1x16xf32>
    %59 = vector.multi_reduction <add>, %58, %cst_20 [2] : vector<1x16x16xf32> to vector<1x16xf32>
    %60 = vector.shape_cast %59 : vector<1x16xf32> to vector<1x16x1xf32>
    %61 = tpu.reciprocal %60 {approx = true} : vector<1x16x1xf32> -> vector<1x16x1xf32>
    %62 = vector.broadcast %61 : vector<1x16x1xf32> to vector<1x16x16xf32>
    %63 = arith.mulf %58, %62 : vector<1x16x16xf32>
    %64 = arith.truncf %63 : vector<1x16x16xf32> to vector<1x16x16xbf16>
    "tpu.trace_start"() <{level = 10 : i32, message = "bqk,bkd->bqd"}> : () -> ()
    %cst_21 = arith.constant dense<0.000000e+00> : vector<1x16x16xf32>
    %65 = tpu.matmul %64, %50, %cst_21 {dimension_numbers = #tpu.dot_dimension_numbers<[2], [1], [1], [2], [0, 0, 0, 1, 1, 2], [0], [0]>} : vector<1x16x16xbf16>, vector<1x16x16xbf16>, vector<1x16x16xf32> -> vector<1x16x16xf32>
    "tpu.trace_stop"() : () -> ()
    %66 = vector.shape_cast %65 : vector<1x16x16xf32> to vector<16x16xf32>
    %67 = arith.truncf %66 : vector<16x16xf32> to vector<16x16xbf16>
    %c0_22 = arith.constant 0 : index
    %c0_23 = arith.constant 0 : index
    %68 = vector.load %arg6[%c0_22, %c0_23] : memref<64x64xbf16, #tpu.memory_space<vmem>>, vector<16x64xbf16>
    %cst_24 = arith.constant dense<0.000000e+00> : vector<16x64xf32>
    %69 = tpu.matmul %67, %68, %cst_24 {dimension_numbers = #tpu.dot_dimension_numbers<[1], [0], [0], [1], [0, 0, 1, 1], [], []>} : vector<16x16xbf16>, vector<16x64xbf16>, vector<16x64xf32> -> vector<16x64xf32>
    %70 = arith.addf %41, %69 : vector<16x64xf32>
    %71 = vector.extract_strided_slice %31 {offsets = [0, 16], sizes = [16, 16], strides = [1, 1]} : vector<16x192xf32> to vector<16x16xf32>
    %72 = arith.truncf %71 : vector<16x16xf32> to vector<16x16xbf16>
    %73 = vector.shape_cast %72 : vector<16x16xbf16> to vector<1x16x16xbf16>
    %74 = vector.extract_strided_slice %31 {offsets = [0, 80], sizes = [16, 16], strides = [1, 1]} : vector<16x192xf32> to vector<16x16xf32>
    %75 = arith.truncf %74 : vector<16x16xf32> to vector<16x16xbf16>
    %76 = vector.shape_cast %75 : vector<16x16xbf16> to vector<1x16x16xbf16>
    %77 = vector.extract_strided_slice %31 {offsets = [0, 144], sizes = [16, 16], strides = [1, 1]} : vector<16x192xf32> to vector<16x16xf32>
    %78 = arith.truncf %77 : vector<16x16xf32> to vector<16x16xbf16>
    %79 = vector.shape_cast %78 : vector<16x16xbf16> to vector<1x16x16xbf16>
    "tpu.trace_start"() <{level = 10 : i32, message = "bqd,bkd->bqk"}> : () -> ()
    %cst_25 = arith.constant dense<0.000000e+00> : vector<1x16x16xf32>
    %80 = tpu.matmul %73, %76, %cst_25 {dimension_numbers = #tpu.dot_dimension_numbers<[2], [2], [1], [1], [0, 0, 0, 1, 1, 1], [0], [0]>} : vector<1x16x16xbf16>, vector<1x16x16xbf16>, vector<1x16x16xf32> -> vector<1x16x16xf32>
    "tpu.trace_stop"() : () -> ()
    %81 = vector.shape_cast %40 : vector<16x16xf32> to vector<1x16x16xf32>
    %82 = arith.addf %80, %81 : vector<1x16x16xf32>
    %cst_26 = arith.constant dense<0xFF800000> : vector<1x16xf32>
    %83 = vector.multi_reduction <maximumf>, %82, %cst_26 [2] : vector<1x16x16xf32> to vector<1x16xf32>
    %84 = vector.shape_cast %83 : vector<1x16xf32> to vector<1x16x1xf32>
    %85 = vector.broadcast %84 : vector<1x16x1xf32> to vector<1x16x16xf32>
    %86 = arith.subf %82, %85 : vector<1x16x16xf32>
    %87 = math.exp %86 : vector<1x16x16xf32>
    %cst_27 = arith.constant dense<0.000000e+00> : vector<1x16xf32>
    %88 = vector.multi_reduction <add>, %87, %cst_27 [2] : vector<1x16x16xf32> to vector<1x16xf32>
    %89 = vector.shape_cast %88 : vector<1x16xf32> to vector<1x16x1xf32>
    %90 = tpu.reciprocal %89 {approx = true} : vector<1x16x1xf32> -> vector<1x16x1xf32>
    %91 = vector.broadcast %90 : vector<1x16x1xf32> to vector<1x16x16xf32>
    %92 = arith.mulf %87, %91 : vector<1x16x16xf32>
    %93 = arith.truncf %92 : vector<1x16x16xf32> to vector<1x16x16xbf16>
    "tpu.trace_start"() <{level = 10 : i32, message = "bqk,bkd->bqd"}> : () -> ()
    %cst_28 = arith.constant dense<0.000000e+00> : vector<1x16x16xf32>
    %94 = tpu.matmul %93, %79, %cst_28 {dimension_numbers = #tpu.dot_dimension_numbers<[2], [1], [1], [2], [0, 0, 0, 1, 1, 2], [0], [0]>} : vector<1x16x16xbf16>, vector<1x16x16xbf16>, vector<1x16x16xf32> -> vector<1x16x16xf32>
    "tpu.trace_stop"() : () -> ()
    %95 = vector.shape_cast %94 : vector<1x16x16xf32> to vector<16x16xf32>
    %96 = arith.truncf %95 : vector<16x16xf32> to vector<16x16xbf16>
    %c16 = arith.constant 16 : index
    %c0_29 = arith.constant 0 : index
    %97 = vector.load %arg6[%c16, %c0_29] : memref<64x64xbf16, #tpu.memory_space<vmem>>, vector<16x64xbf16>
    %cst_30 = arith.constant dense<0.000000e+00> : vector<16x64xf32>
    %98 = tpu.matmul %96, %97, %cst_30 {dimension_numbers = #tpu.dot_dimension_numbers<[1], [0], [0], [1], [0, 0, 1, 1], [], []>} : vector<16x16xbf16>, vector<16x64xbf16>, vector<16x64xf32> -> vector<16x64xf32>
    %99 = arith.addf %70, %98 : vector<16x64xf32>
    %100 = vector.extract_strided_slice %31 {offsets = [0, 32], sizes = [16, 16], strides = [1, 1]} : vector<16x192xf32> to vector<16x16xf32>
    %101 = arith.truncf %100 : vector<16x16xf32> to vector<16x16xbf16>
    %102 = vector.shape_cast %101 : vector<16x16xbf16> to vector<1x16x16xbf16>
    %103 = vector.extract_strided_slice %31 {offsets = [0, 96], sizes = [16, 16], strides = [1, 1]} : vector<16x192xf32> to vector<16x16xf32>
    %104 = arith.truncf %103 : vector<16x16xf32> to vector<16x16xbf16>
    %105 = vector.shape_cast %104 : vector<16x16xbf16> to vector<1x16x16xbf16>
    %106 = vector.extract_strided_slice %31 {offsets = [0, 160], sizes = [16, 16], strides = [1, 1]} : vector<16x192xf32> to vector<16x16xf32>
    %107 = arith.truncf %106 : vector<16x16xf32> to vector<16x16xbf16>
    %108 = vector.shape_cast %107 : vector<16x16xbf16> to vector<1x16x16xbf16>
    "tpu.trace_start"() <{level = 10 : i32, message = "bqd,bkd->bqk"}> : () -> ()
    %cst_31 = arith.constant dense<0.000000e+00> : vector<1x16x16xf32>
    %109 = tpu.matmul %102, %105, %cst_31 {dimension_numbers = #tpu.dot_dimension_numbers<[2], [2], [1], [1], [0, 0, 0, 1, 1, 1], [0], [0]>} : vector<1x16x16xbf16>, vector<1x16x16xbf16>, vector<1x16x16xf32> -> vector<1x16x16xf32>
    "tpu.trace_stop"() : () -> ()
    %110 = vector.shape_cast %40 : vector<16x16xf32> to vector<1x16x16xf32>
    %111 = arith.addf %109, %110 : vector<1x16x16xf32>
    %cst_32 = arith.constant dense<0xFF800000> : vector<1x16xf32>
    %112 = vector.multi_reduction <maximumf>, %111, %cst_32 [2] : vector<1x16x16xf32> to vector<1x16xf32>
    %113 = vector.shape_cast %112 : vector<1x16xf32> to vector<1x16x1xf32>
    %114 = vector.broadcast %113 : vector<1x16x1xf32> to vector<1x16x16xf32>
    %115 = arith.subf %111, %114 : vector<1x16x16xf32>
    %116 = math.exp %115 : vector<1x16x16xf32>
    %cst_33 = arith.constant dense<0.000000e+00> : vector<1x16xf32>
    %117 = vector.multi_reduction <add>, %116, %cst_33 [2] : vector<1x16x16xf32> to vector<1x16xf32>
    %118 = vector.shape_cast %117 : vector<1x16xf32> to vector<1x16x1xf32>
    %119 = tpu.reciprocal %118 {approx = true} : vector<1x16x1xf32> -> vector<1x16x1xf32>
    %120 = vector.broadcast %119 : vector<1x16x1xf32> to vector<1x16x16xf32>
    %121 = arith.mulf %116, %120 : vector<1x16x16xf32>
    %122 = arith.truncf %121 : vector<1x16x16xf32> to vector<1x16x16xbf16>
    "tpu.trace_start"() <{level = 10 : i32, message = "bqk,bkd->bqd"}> : () -> ()
    %cst_34 = arith.constant dense<0.000000e+00> : vector<1x16x16xf32>
    %123 = tpu.matmul %122, %108, %cst_34 {dimension_numbers = #tpu.dot_dimension_numbers<[2], [1], [1], [2], [0, 0, 0, 1, 1, 2], [0], [0]>} : vector<1x16x16xbf16>, vector<1x16x16xbf16>, vector<1x16x16xf32> -> vector<1x16x16xf32>
    "tpu.trace_stop"() : () -> ()
    %124 = vector.shape_cast %123 : vector<1x16x16xf32> to vector<16x16xf32>
    %125 = arith.truncf %124 : vector<16x16xf32> to vector<16x16xbf16>
    %c32 = arith.constant 32 : index
    %c0_35 = arith.constant 0 : index
    %126 = vector.load %arg6[%c32, %c0_35] : memref<64x64xbf16, #tpu.memory_space<vmem>>, vector<16x64xbf16>
    %cst_36 = arith.constant dense<0.000000e+00> : vector<16x64xf32>
    %127 = tpu.matmul %125, %126, %cst_36 {dimension_numbers = #tpu.dot_dimension_numbers<[1], [0], [0], [1], [0, 0, 1, 1], [], []>} : vector<16x16xbf16>, vector<16x64xbf16>, vector<16x64xf32> -> vector<16x64xf32>
    %128 = arith.addf %99, %127 : vector<16x64xf32>
    %129 = vector.extract_strided_slice %31 {offsets = [0, 48], sizes = [16, 16], strides = [1, 1]} : vector<16x192xf32> to vector<16x16xf32>
    %130 = arith.truncf %129 : vector<16x16xf32> to vector<16x16xbf16>
    %131 = vector.shape_cast %130 : vector<16x16xbf16> to vector<1x16x16xbf16>
    %132 = vector.extract_strided_slice %31 {offsets = [0, 112], sizes = [16, 16], strides = [1, 1]} : vector<16x192xf32> to vector<16x16xf32>
    %133 = arith.truncf %132 : vector<16x16xf32> to vector<16x16xbf16>
    %134 = vector.shape_cast %133 : vector<16x16xbf16> to vector<1x16x16xbf16>
    %135 = vector.extract_strided_slice %31 {offsets = [0, 176], sizes = [16, 16], strides = [1, 1]} : vector<16x192xf32> to vector<16x16xf32>
    %136 = arith.truncf %135 : vector<16x16xf32> to vector<16x16xbf16>
    %137 = vector.shape_cast %136 : vector<16x16xbf16> to vector<1x16x16xbf16>
    "tpu.trace_start"() <{level = 10 : i32, message = "bqd,bkd->bqk"}> : () -> ()
    %cst_37 = arith.constant dense<0.000000e+00> : vector<1x16x16xf32>
    %138 = tpu.matmul %131, %134, %cst_37 {dimension_numbers = #tpu.dot_dimension_numbers<[2], [2], [1], [1], [0, 0, 0, 1, 1, 1], [0], [0]>} : vector<1x16x16xbf16>, vector<1x16x16xbf16>, vector<1x16x16xf32> -> vector<1x16x16xf32>
    "tpu.trace_stop"() : () -> ()
    %139 = vector.shape_cast %40 : vector<16x16xf32> to vector<1x16x16xf32>
    %140 = arith.addf %138, %139 : vector<1x16x16xf32>
    %cst_38 = arith.constant dense<0xFF800000> : vector<1x16xf32>
    %141 = vector.multi_reduction <maximumf>, %140, %cst_38 [2] : vector<1x16x16xf32> to vector<1x16xf32>
    %142 = vector.shape_cast %141 : vector<1x16xf32> to vector<1x16x1xf32>
    %143 = vector.broadcast %142 : vector<1x16x1xf32> to vector<1x16x16xf32>
    %144 = arith.subf %140, %143 : vector<1x16x16xf32>
    %145 = math.exp %144 : vector<1x16x16xf32>
    %cst_39 = arith.constant dense<0.000000e+00> : vector<1x16xf32>
    %146 = vector.multi_reduction <add>, %145, %cst_39 [2] : vector<1x16x16xf32> to vector<1x16xf32>
    %147 = vector.shape_cast %146 : vector<1x16xf32> to vector<1x16x1xf32>
    %148 = tpu.reciprocal %147 {approx = true} : vector<1x16x1xf32> -> vector<1x16x1xf32>
    %149 = vector.broadcast %148 : vector<1x16x1xf32> to vector<1x16x16xf32>
    %150 = arith.mulf %145, %149 : vector<1x16x16xf32>
    %151 = arith.truncf %150 : vector<1x16x16xf32> to vector<1x16x16xbf16>
    "tpu.trace_start"() <{level = 10 : i32, message = "bqk,bkd->bqd"}> : () -> ()
    %cst_40 = arith.constant dense<0.000000e+00> : vector<1x16x16xf32>
    %152 = tpu.matmul %151, %137, %cst_40 {dimension_numbers = #tpu.dot_dimension_numbers<[2], [1], [1], [2], [0, 0, 0, 1, 1, 2], [0], [0]>} : vector<1x16x16xbf16>, vector<1x16x16xbf16>, vector<1x16x16xf32> -> vector<1x16x16xf32>
    "tpu.trace_stop"() : () -> ()
    %153 = vector.shape_cast %152 : vector<1x16x16xf32> to vector<16x16xf32>
    %154 = arith.truncf %153 : vector<16x16xf32> to vector<16x16xbf16>
    %c48 = arith.constant 48 : index
    %c0_41 = arith.constant 0 : index
    %155 = vector.load %arg6[%c48, %c0_41] : memref<64x64xbf16, #tpu.memory_space<vmem>>, vector<16x64xbf16>
    %cst_42 = arith.constant dense<0.000000e+00> : vector<16x64xf32>
    %156 = tpu.matmul %154, %155, %cst_42 {dimension_numbers = #tpu.dot_dimension_numbers<[1], [0], [0], [1], [0, 0, 1, 1], [], []>} : vector<16x16xbf16>, vector<16x64xbf16>, vector<16x64xf32> -> vector<16x64xf32>
    %157 = arith.addf %128, %156 : vector<16x64xf32>
    %c0_43 = arith.constant 0 : index
    %c0_44 = arith.constant 0 : index
    %158 = vector.load %arg7[%c0_43, %c0_44] : memref<1x64xf32, #tpu.memory_space<vmem>>, vector<1x64xf32>
    %159 = vector.broadcast %158 : vector<1x64xf32> to vector<16x64xf32>
    %160 = arith.addf %157, %159 : vector<16x64xf32>
    %161 = arith.addf %160, %1 : vector<16x64xf32>
    %c0_45 = arith.constant 0 : index
    %c0_46 = arith.constant 0 : index
    %162 = vector.load %arg8[%c0_45, %c0_46] : memref<1x64xf32, #tpu.memory_space<vmem>>, vector<1x64xf32>
    %c0_47 = arith.constant 0 : index
    %c0_48 = arith.constant 0 : index
    %163 = vector.load %arg9[%c0_47, %c0_48] : memref<1x64xf32, #tpu.memory_space<vmem>>, vector<1x64xf32>
    %cst_49 = arith.constant dense<0.000000e+00> : vector<16xf32>
    %164 = vector.multi_reduction <add>, %161, %cst_49 [1] : vector<16x64xf32> to vector<16xf32>
    %165 = vector.shape_cast %164 : vector<16xf32> to vector<16x1xf32>
    %cst_50 = arith.constant 6.400000e+01 : f32
    %166 = vector.broadcast %cst_50 : f32 to vector<16x1xf32>
    %167 = arith.divf %165, %166 : vector<16x1xf32>
    %168 = vector.broadcast %167 : vector<16x1xf32> to vector<16x64xf32>
    %169 = arith.subf %161, %168 : vector<16x64xf32>
    %170 = arith.mulf %169, %169 : vector<16x64xf32>
    %cst_51 = arith.constant dense<0.000000e+00> : vector<16xf32>
    %171 = vector.multi_reduction <add>, %170, %cst_51 [1] : vector<16x64xf32> to vector<16xf32>
    %172 = vector.shape_cast %171 : vector<16xf32> to vector<16x1xf32>
    %cst_52 = arith.constant 6.400000e+01 : f32
    %173 = vector.broadcast %cst_52 : f32 to vector<16x1xf32>
    %174 = arith.divf %172, %173 : vector<16x1xf32>
    %175 = vector.broadcast %167 : vector<16x1xf32> to vector<16x64xf32>
    %176 = arith.subf %161, %175 : vector<16x64xf32>
    %cst_53 = arith.constant 9.99999974E-6 : f32
    %177 = vector.broadcast %cst_53 : f32 to vector<16x1xf32>
    %178 = arith.addf %174, %177 : vector<16x1xf32>
    %179 = math.rsqrt %178 : vector<16x1xf32>
    %180 = vector.broadcast %179 : vector<16x1xf32> to vector<16x64xf32>
    %181 = arith.mulf %176, %180 : vector<16x64xf32>
    %182 = vector.broadcast %162 : vector<1x64xf32> to vector<16x64xf32>
    %183 = arith.mulf %181, %182 : vector<16x64xf32>
    %184 = vector.broadcast %163 : vector<1x64xf32> to vector<16x64xf32>
    %185 = arith.addf %183, %184 : vector<16x64xf32>
    %186 = arith.truncf %185 : vector<16x64xf32> to vector<16x64xbf16>
    %c0_54 = arith.constant 0 : index
    %c0_55 = arith.constant 0 : index
    %187 = vector.load %arg11[%c0_54, %c0_55] : memref<1x256xf32, #tpu.memory_space<vmem>>, vector<1x256xf32>
    %cst_56 = arith.constant 0.000000e+00 : f32
    %188 = vector.broadcast %cst_56 : f32 to vector<16x64xf32>
    %c0_57 = arith.constant 0 : index
    %c0_58 = arith.constant 0 : index
    %189 = vector.load %arg10[%c0_57, %c0_58] : memref<64x256xbf16, #tpu.memory_space<vmem>>, vector<64x256xbf16>
    %cst_59 = arith.constant dense<0.000000e+00> : vector<16x256xf32>
    %190 = tpu.matmul %186, %189, %cst_59 {dimension_numbers = #tpu.dot_dimension_numbers<[1], [0], [0], [1], [0, 0, 1, 1], [], []>} : vector<16x64xbf16>, vector<64x256xbf16>, vector<16x256xf32> -> vector<16x256xf32>
    %191 = vector.broadcast %187 : vector<1x256xf32> to vector<16x256xf32>
    %192 = arith.addf %190, %191 : vector<16x256xf32>
    %cst_60 = arith.constant 1.702000e+00 : f32
    %193 = vector.broadcast %cst_60 : f32 to vector<16x256xf32>
    %194 = arith.mulf %193, %192 : vector<16x256xf32>
    %195 = arith.negf %194 : vector<16x256xf32>
    %196 = math.exp %195 : vector<16x256xf32>
    %cst_61 = arith.constant 1.000000e+00 : f32
    %197 = vector.broadcast %cst_61 : f32 to vector<16x256xf32>
    %198 = arith.addf %197, %196 : vector<16x256xf32>
    %199 = arith.divf %197, %198 : vector<16x256xf32>
    %200 = arith.mulf %192, %199 : vector<16x256xf32>
    %201 = arith.truncf %200 : vector<16x256xf32> to vector<16x256xbf16>
    %c0_62 = arith.constant 0 : index
    %c0_63 = arith.constant 0 : index
    %202 = vector.load %arg12[%c0_62, %c0_63] : memref<256x64xbf16, #tpu.memory_space<vmem>>, vector<256x64xbf16>
    %cst_64 = arith.constant dense<0.000000e+00> : vector<16x64xf32>
    %203 = tpu.matmul %201, %202, %cst_64 {dimension_numbers = #tpu.dot_dimension_numbers<[1], [0], [0], [1], [0, 0, 1, 1], [], []>} : vector<16x256xbf16>, vector<256x64xbf16>, vector<16x64xf32> -> vector<16x64xf32>
    %204 = arith.addf %188, %203 : vector<16x64xf32>
    %c0_65 = arith.constant 0 : index
    %c0_66 = arith.constant 0 : index
    %205 = vector.load %arg13[%c0_65, %c0_66] : memref<1x64xf32, #tpu.memory_space<vmem>>, vector<1x64xf32>
    %206 = vector.broadcast %205 : vector<1x64xf32> to vector<16x64xf32>
    %207 = arith.addf %204, %206 : vector<16x64xf32>
    %208 = arith.addf %207, %161 : vector<16x64xf32>
    %209 = vector.shape_cast %208 : vector<16x64xf32> to vector<1x16x64xf32>
    %c0_67 = arith.constant 0 : index
    %c0_68 = arith.constant 0 : index
    %c0_69 = arith.constant 0 : index
    %210 = vector.load %arg16[%c0_67, %c0_68, %c0_69] : memref<1x16x64xf32, #tpu.memory_space<vmem>>, vector<1x16x64xf32>
    tpu.vector_store %arg16[%c0_67, %c0_68, %c0_69], %209 {strides = array<i32>} : memref<1x16x64xf32, #tpu.memory_space<vmem>>, vector<1x16x64xf32>,
    return
  }
  func.func @transform_0(%arg0: i32) -> (i32, i32, i32) {
    %c0_i32 = arith.constant 0 : i32
    %c0_i32_0 = arith.constant 0 : i32
    %c0_i32_1 = arith.constant 0 : i32
    return %arg0, %c0_i32, %c0_i32_0 : i32, i32, i32
  }
  func.func @transform_1(%arg0: i32) -> (i32, i32) {
    %c0_i32 = arith.constant 0 : i32
    %c0_i32_0 = arith.constant 0 : i32
    %c0_i32_1 = arith.constant 0 : i32
    return %c0_i32, %c0_i32_0 : i32, i32
  }
  func.func @transform_2(%arg0: i32) -> (i32, i32) {
    %c0_i32 = arith.constant 0 : i32
    %c0_i32_0 = arith.constant 0 : i32
    %c0_i32_1 = arith.constant 0 : i32
    return %c0_i32, %c0_i32_0 : i32, i32
  }
  func.func @transform_3(%arg0: i32) -> (i32, i32) {
    %c0_i32 = arith.constant 0 : i32
    %c0_i32_0 = arith.constant 0 : i32
    %c0_i32_1 = arith.constant 0 : i32
    return %c0_i32, %c0_i32_0 : i32, i32
  }
  func.func @transform_4(%arg0: i32) -> (i32, i32) {
    %c0_i32 = arith.constant 0 : i32
    %c0_i32_0 = arith.constant 0 : i32
    %c0_i32_1 = arith.constant 0 : i32
    return %c0_i32, %c0_i32_0 : i32, i32
  }
  func.func @transform_5(%arg0: i32) -> (i32, i32) {
    %c0_i32 = arith.constant 0 : i32
    %c0_i32_0 = arith.constant 0 : i32
    %c0_i32_1 = arith.constant 0 : i32
    return %c0_i32, %c0_i32_0 : i32, i32
  }
  func.func @transform_6(%arg0: i32) -> (i32, i32) {
    %c0_i32 = arith.constant 0 : i32
    %c0_i32_0 = arith.constant 0 : i32
    %c0_i32_1 = arith.constant 0 : i32
    return %c0_i32, %c0_i32_0 : i32, i32
  }
  func.func @transform_7(%arg0: i32) -> (i32, i32) {
    %c0_i32 = arith.constant 0 : i32
    %c0_i32_0 = arith.constant 0 : i32
    %c0_i32_1 = arith.constant 0 : i32
    return %c0_i32, %c0_i32_0 : i32, i32
  }
  func.func @transform_8(%arg0: i32) -> (i32, i32) {
    %c0_i32 = arith.constant 0 : i32
    %c0_i32_0 = arith.constant 0 : i32
    %c0_i32_1 = arith.constant 0 : i32
    return %c0_i32, %c0_i32_0 : i32, i32
  }
  func.func @transform_9(%arg0: i32) -> (i32, i32) {
    %c0_i32 = arith.constant 0 : i32
    %c0_i32_0 = arith.constant 0 : i32
    %c0_i32_1 = arith.constant 0 : i32
    return %c0_i32, %c0_i32_0 : i32, i32
  }
  func.func @transform_10(%arg0: i32) -> (i32, i32) {
    %c0_i32 = arith.constant 0 : i32
    %c0_i32_0 = arith.constant 0 : i32
    %c0_i32_1 = arith.constant 0 : i32
    return %c0_i32, %c0_i32_0 : i32, i32
  }
  func.func @transform_11(%arg0: i32) -> (i32, i32) {
    %c0_i32 = arith.constant 0 : i32
    %c0_i32_0 = arith.constant 0 : i32
    %c0_i32_1 = arith.constant 0 : i32
    return %c0_i32, %c0_i32_0 : i32, i32
  }
  func.func @transform_12(%arg0: i32) -> (i32, i32) {
    %c0_i32 = arith.constant 0 : i32
    %c0_i32_0 = arith.constant 0 : i32
    %c0_i32_1 = arith.constant 0 : i32
    return %c0_i32, %c0_i32_0 : i32, i32
  }
  func.func @transform_13(%arg0: i32) -> (i32, i32) {
    %c0_i32 = arith.constant 0 : i32
    %c0_i32_0 = arith.constant 0 : i32
    %c0_i32_1 = arith.constant 0 : i32
    return %c0_i32, %c0_i32_0 : i32, i32
  }
  func.func @transform_14(%arg0: i32) -> (i32, i32) {
    %c0_i32 = arith.constant 0 : i32
    %c0_i32_0 = arith.constant 0 : i32
    %c0_i32_1 = arith.constant 0 : i32
    return %c0_i32, %c0_i32_0 : i32, i32
  }
  func.func @transform_15(%arg0: i32) -> (i32, i32, i32) {
    %c0_i32 = arith.constant 0 : i32
    %c0_i32_0 = arith.constant 0 : i32
    %c0_i32_1 = arith.constant 0 : i32
    return %arg0, %c0_i32, %c0_i32_0 : i32, i32, i32
  }
}

module attributes {stable_mosaic.version = 11 : i64} {
  func.func @clip_layer_kernel(%arg0: i32, %arg1: memref<1x16x64xf32, #tpu.memory_space<vmem>>, %arg2: memref<1x64xf32, #tpu.memory_space<vmem>>, %arg3: memref<1x64xf32, #tpu.memory_space<vmem>>, %arg4: memref<64x192xbf16, #tpu.memory_space<vmem>>, %arg5: memref<1x192xf32, #tpu.memory_space<vmem>>, %arg6: memref<64x64xbf16, #tpu.memory_space<vmem>>, %arg7: memref<1x64xf32, #tpu.memory_space<vmem>>, %arg8: memref<1x64xf32, #tpu.memory_space<vmem>>, %arg9: memref<1x64xf32, #tpu.memory_space<vmem>>, %arg10: memref<64x256xbf16, #tpu.memory_space<vmem>>, %arg11: memref<1x256xf32, #tpu.memory_space<vmem>>, %arg12: memref<256x64xbf16, #tpu.memory_space<vmem>>, %arg13: memref<1x64xf32, #tpu.memory_space<vmem>>, %arg14: memref<1x64xf32, #tpu.memory_space<vmem>>, %arg15: memref<1x64xf32, #tpu.memory_space<vmem>>, %arg16: memref<1x16x64xf32, #tpu.memory_space<vmem>>) attributes {dimension_semantics = [#tpu.dimension_semantics<parallel>], iteration_bounds = array<i64: 2>, scalar_prefetch = 0 : i64, scratch_operands = 0 : i64, tpu.core_type = #tpu.core_type<tc>, window_params = [{transform_indices = @transform_0, window_bounds = array<i64: 1, 16, 64>}, {pipeline_mode = #tpu.pipeline_mode<synchronous>, transform_indices = @transform_1, window_bounds = array<i64: 1, 64>}, {pipeline_mode = #tpu.pipeline_mode<synchronous>, transform_indices = @transform_2, window_bounds = array<i64: 1, 64>}, {pipeline_mode = #tpu.pipeline_mode<synchronous>, transform_indices = @transform_3, window_bounds = array<i64: 64, 192>}, {pipeline_mode = #tpu.pipeline_mode<synchronous>, transform_indices = @transform_4, window_bounds = array<i64: 1, 192>}, {pipeline_mode = #tpu.pipeline_mode<synchronous>, transform_indices = @transform_5, window_bounds = array<i64: 64, 64>}, {pipeline_mode = #tpu.pipeline_mode<synchronous>, transform_indices = @transform_6, window_bounds = array<i64: 1, 64>}, {pipeline_mode = #tpu.pipeline_mode<synchronous>, transform_indices = @transform_7, window_bounds = array<i64: 1, 64>}, {pipeline_mode = #tpu.pipeline_mode<synchronous>, transform_indices = @transform_8, window_bounds = array<i64: 1, 64>}, {pipeline_mode = #tpu.pipeline_mode<synchronous>, transform_indices = @transform_9, window_bounds = array<i64: 64, 256>}, {pipeline_mode = #tpu.pipeline_mode<synchronous>, transform_indices = @transform_10, window_bounds = array<i64: 1, 256>}, {pipeline_mode = #tpu.pipeline_mode<synchronous>, transform_indices = @transform_11, window_bounds = array<i64: 256, 64>}, {pipeline_mode = #tpu.pipeline_mode<synchronous>, transform_indices = @transform_12, window_bounds = array<i64: 1, 64>}, {pipeline_mode = #tpu.pipeline_mode<synchronous>, transform_indices = @transform_13, window_bounds = array<i64: 1, 64>}, {pipeline_mode = #tpu.pipeline_mode<synchronous>, transform_indices = @transform_14, window_bounds = array<i64: 1, 64>}, {transform_indices = @transform_15, window_bounds = array<i64: 1, 16, 64>}]} {
    %c0 = arith.constant 0 : index
    %c0_0 = arith.constant 0 : index
    %c0_1 = arith.constant 0 : index
    %0 = vector.load %arg1[%c0, %c0_0, %c0_1] : memref<1x16x64xf32, #tpu.memory_space<vmem>>, vector<1x16x64xf32>
    %1 = vector.shape_cast %0 : vector<1x16x64xf32> to vector<16x64xf32>
    %c0_2 = arith.constant 0 : index
    %c0_3 = arith.constant 0 : index
    %2 = vector.load %arg2[%c0_2, %c0_3] : memref<1x64xf32, #tpu.memory_space<vmem>>, vector<1x64xf32>
    %c0_4 = arith.constant 0 : index
    %c0_5 = arith.constant 0 : index
    %3 = vector.load %arg3[%c0_4, %c0_5] : memref<1x64xf32, #tpu.memory_space<vmem>>, vector<1x64xf32>
    %cst = arith.constant dense<0.000000e+00> : vector<16xf32>
    %4 = vector.multi_reduction <add>, %1, %cst [1] : vector<16x64xf32> to vector<16xf32>
    %5 = vector.shape_cast %4 : vector<16xf32> to vector<16x1xf32>
    %cst_6 = arith.constant 6.400000e+01 : f32
    %6 = vector.broadcast %cst_6 : f32 to vector<16x1xf32>
    %7 = arith.divf %5, %6 : vector<16x1xf32>
    %8 = vector.broadcast %7 : vector<16x1xf32> to vector<16x64xf32>
    %9 = arith.subf %1, %8 : vector<16x64xf32>
    %10 = arith.mulf %9, %9 : vector<16x64xf32>
    %cst_7 = arith.constant dense<0.000000e+00> : vector<16xf32>
    %11 = vector.multi_reduction <add>, %10, %cst_7 [1] : vector<16x64xf32> to vector<16xf32>
    %12 = vector.shape_cast %11 : vector<16xf32> to vector<16x1xf32>
    %cst_8 = arith.constant 6.400000e+01 : f32
    %13 = vector.broadcast %cst_8 : f32 to vector<16x1xf32>
    %14 = arith.divf %12, %13 : vector<16x1xf32>
    %15 = vector.broadcast %7 : vector<16x1xf32> to vector<16x64xf32>
    %16 = arith.subf %1, %15 : vector<16x64xf32>
    %cst_9 = arith.constant 9.99999974E-6 : f32
    %17 = vector.broadcast %cst_9 : f32 to vector<16x1xf32>
    %18 = arith.addf %14, %17 : vector<16x1xf32>
    %19 = math.rsqrt %18 : vector<16x1xf32>
    %20 = vector.broadcast %19 : vector<16x1xf32> to vector<16x64xf32>
    %21 = arith.mulf %16, %20 : vector<16x64xf32>
    %22 = vector.broadcast %2 : vector<1x64xf32> to vector<16x64xf32>
    %23 = arith.mulf %21, %22 : vector<16x64xf32>
    %24 = vector.broadcast %3 : vector<1x64xf32> to vector<16x64xf32>
    %25 = arith.addf %23, %24 : vector<16x64xf32>
    %26 = arith.truncf %25 : vector<16x64xf32> to vector<16x64xbf16>
    %c0_10 = arith.constant 0 : index
    %c0_11 = arith.constant 0 : index
    %27 = vector.load %arg4[%c0_10, %c0_11] : memref<64x192xbf16, #tpu.memory_space<vmem>>, vector<64x192xbf16>
    %cst_12 = arith.constant dense<0.000000e+00> : vector<16x192xf32>
    %28 = tpu.matmul %26, %27, %cst_12 {dimension_numbers = #tpu.dot_dimension_numbers<[1], [0], [0], [1], [0, 0, 1, 1], [], []>} : vector<16x64xbf16>, vector<64x192xbf16>, vector<16x192xf32> -> vector<16x192xf32>
    %c0_13 = arith.constant 0 : index
    %c0_14 = arith.constant 0 : index
    %29 = vector.load %arg5[%c0_13, %c0_14] : memref<1x192xf32, #tpu.memory_space<vmem>>, vector<1x192xf32>
    %30 = vector.broadcast %29 : vector<1x192xf32> to vector<16x192xf32>
    %31 = arith.addf %28, %30 : vector<16x192xf32>
    %32 = tpu.iota {dimensions = array<i32: 0>} : vector<16x16xi32>
    %33 = tpu.iota {dimensions = array<i32: 1>} : vector<16x16xi32>
    %34 = arith.cmpi sgt, %33, %32 : vector<16x16xi32>
    %c16_i32 = arith.constant 16 : i32
    %35 = vector.broadcast %c16_i32 : i32 to vector<16x16xi32>
    %36 = arith.cmpi sge, %33, %35 : vector<16x16xi32>
    %37 = arith.ori %34, %36 : vector<16x16xi1>
    %cst_15 = arith.constant -1.000000e+30 : f32
    %cst_16 = arith.constant 0.000000e+00 : f32
    %38 = vector.broadcast %cst_15 : f32 to vector<16x16xf32>
    %39 = vector.broadcast %cst_16 : f32 to vector<16x16xf32>
    %40 = arith.select %37, %38, %39 : vector<16x16xi1>, vector<16x16xf32>
    %cst_17 = arith.constant 0.000000e+00 : f32
    %41 = vector.broadcast %cst_17 : f32 to vector<16x64xf32>
    %42 = vector.extract_strided_slice %31 {offsets = [0, 0], sizes = [16, 16], strides = [1, 1]} : vector<16x192xf32> to vector<16x16xf32>
    %43 = arith.truncf %42 : vector<16x16xf32> to vector<16x16xbf16>
    %44 = vector.shape_cast %43 : vector<16x16xbf16> to vector<1x16x16xbf16>
    %45 = vector.extract_strided_slice %31 {offsets = [0, 64], sizes = [16, 16], strides = [1, 1]} : vector<16x192xf32> to vector<16x16xf32>
    %46 = arith.truncf %45 : vector<16x16xf32> to vector<16x16xbf16>
    %47 = vector.shape_cast %46 : vector<16x16xbf16> to vector<1x16x16xbf16>
    %48 = vector.extract_strided_slice %31 {offsets = [0, 128], sizes = [16, 16], strides = [1, 1]} : vector<16x192xf32> to vector<16x16xf32>
    %49 = arith.truncf %48 : vector<16x16xf32> to vector<16x16xbf16>
    %50 = vector.shape_cast %49 : vector<16x16xbf16> to vector<1x16x16xbf16>
    "tpu.trace_start"() <{level = 10 : i32, message = "bqd,bkd->bqk"}> : () -> ()
    %cst_18 = arith.constant dense<0.000000e+00> : vector<1x16x16xf32>
    %51 = tpu.matmul %44, %47, %cst_18 {dimension_numbers = #tpu.dot_dimension_numbers<[2], [2], [1], [1], [0, 0, 0, 1, 1, 1], [0], [0]>} : vector<1x16x16xbf16>, vector<1x16x16xbf16>, vector<1x16x16xf32> -> vector<1x16x16xf32>
    "tpu.trace_stop"() : () -> ()
    %52 = vector.shape_cast %40 : vector<16x16xf32> to vector<1x16x16xf32>
    %53 = arith.addf %51, %52 : vector<1x16x16xf32>
    %cst_19 = arith.constant dense<0xFF800000> : vector<1x16xf32>
    %54 = vector.multi_reduction <maximumf>, %53, %cst_19 [2] : vector<1x16x16xf32> to vector<1x16xf32>
    %55 = vector.shape_cast %54 : vector<1x16xf32> to vector<1x16x1xf32>
    %56 = vector.broadcast %55 : vector<1x16x1xf32> to vector<1x16x16xf32>
    %57 = arith.subf %53, %56 : vector<1x16x16xf32>
    %58 = math.exp %57 : vector<1x16x16xf32>
    %cst_20 = arith.constant dense<0.000000e+00> : vector<1x16xf32>
    %59 = vector.multi_reduction <add>, %58, %cst_20 [2] : vector<1x16x16xf32> to vector<1x16xf32>
    %60 = vector.shape_cast %59 : vector<1x16xf32> to vector<1x16x1xf32>
    %61 = tpu.reciprocal %60 {approx = true} : vector<1x16x1xf32> -> vector<1x16x1xf32>
    %62 = vector.broadcast %61 : vector<1x16x1xf32> to vector<1x16x16xf32>
    %63 = arith.mulf %58, %62 : vector<1x16x16xf32>
    %64 = arith.truncf %63 : vector<1x16x16xf32> to vector<1x16x16xbf16>
    "tpu.trace_start"() <{level = 10 : i32, message = "bqk,bkd->bqd"}> : () -> ()
    %cst_21 = arith.constant dense<0.000000e+00> : vector<1x16x16xf32>
    %65 = tpu.matmul %64, %50, %cst_21 {dimension_numbers = #tpu.dot_dimension_numbers<[2], [1], [1], [2], [0, 0, 0, 1, 1, 2], [0], [0]>} : vector<1x16x16xbf16>, vector<1x16x16xbf16>, vector<1x16x16xf32> -> vector<1x16x16xf32>
    "tpu.trace_stop"() : () -> ()
    %66 = vector.shape_cast %65 : vector<1x16x16xf32> to vector<16x16xf32>
    %67 = arith.truncf %66 : vector<16x16xf32> to vector<16x16xbf16>
    %c0_22 = arith.constant 0 : index
    %c0_23 = arith.constant 0 : index
    %68 = vector.load %arg6[%c0_22, %c0_23] : memref<64x64xbf16, #tpu.memory_space<vmem>>, vector<16x64xbf16>
    %cst_24 = arith.constant dense<0.000000e+00> : vector<16x64xf32>
    %69 = tpu.matmul %67, %68, %cst_24 {dimension_numbers = #tpu.dot_dimension_numbers<[1], [0], [0], [1], [0, 0, 1, 1], [], []>} : vector<16x16xbf16>, vector<16x64xbf16>, vector<16x64xf32> -> vector<16x64xf32>
    %70 = arith.addf %41, %69 : vector<16x64xf32>
    %71 = vector.extract_strided_slice %31 {offsets = [0, 16], sizes = [16, 16], strides = [1, 1]} : vector<16x192xf32> to vector<16x16xf32>
    %72 = arith.truncf %71 : vector<16x16xf32> to vector<16x16xbf16>
    %73 = vector.shape_cast %72 : vector<16x16xbf16> to vector<1x16x16xbf16>
    %74 = vector.extract_strided_slice %31 {offsets = [0, 80], sizes = [16, 16], strides = [1, 1]} : vector<16x192xf32> to vector<16x16xf32>
    %75 = arith.truncf %74 : vector<16x16xf32> to vector<16x16xbf16>
    %76 = vector.shape_cast %75 : vector<16x16xbf16> to vector<1x16x16xbf16>
    %77 = vector.extract_strided_slice %31 {offsets = [0, 144], sizes = [16, 16], strides = [1, 1]} : vector<16x192xf32> to vector<16x16xf32>
    %78 = arith.truncf %77 : vector<16x16xf32> to vector<16x16xbf16>
    %79 = vector.shape_cast %78 : vector<16x16xbf16> to vector<1x16x16xbf16>
    "tpu.trace_start"() <{level = 10 : i32, message = "bqd,bkd->bqk"}> : () -> ()
    %cst_25 = arith.constant dense<0.000000e+00> : vector<1x16x16xf32>
    %80 = tpu.matmul %73, %76, %cst_25 {dimension_numbers = #tpu.dot_dimension_numbers<[2], [2], [1], [1], [0, 0, 0, 1, 1, 1], [0], [0]>} : vector<1x16x16xbf16>, vector<1x16x16xbf16>, vector<1x16x16xf32> -> vector<1x16x16xf32>
    "tpu.trace_stop"() : () -> ()
    %81 = vector.shape_cast %40 : vector<16x16xf32> to vector<1x16x16xf32>
    %82 = arith.addf %80, %81 : vector<1x16x16xf32>
    %cst_26 = arith.constant dense<0xFF800000> : vector<1x16xf32>
    %83 = vector.multi_reduction <maximumf>, %82, %cst_26 [2] : vector<1x16x16xf32> to vector<1x16xf32>
    %84 = vector.shape_cast %83 : vector<1x16xf32> to vector<1x16x1xf32>
    %85 = vector.broadcast %84 : vector<1x16x1xf32> to vector<1x16x16xf32>
    %86 = arith.subf %82, %85 : vector<1x16x16xf32>
    %87 = math.exp %86 : vector<1x16x16xf32>
    %cst_27 = arith.constant dense<0.000000e+00> : vector<1x16xf32>
    %88 = vector.multi_reduction <add>, %87, %cst_27 [2] : vector<1x16x16xf32> to vector<1x16xf32>
    %89 = vector.shape_cast %88 : vector<1x16xf32> to vector<1x16x1xf32>
    %90 = tpu.reciprocal %89 {approx = true} : vector<1x16x1xf32> -> vector<1x16x1xf32>
    %91 = vector.broadcast %90 : vector<1x16x1xf32> to vector<1x16x16xf32>
    %92 = arith.mulf %87, %91 : vector<1x16x16xf32>
    %93 = arith.truncf %92 : vector<1x16x16xf32> to vector<1x16x16xbf16>
    "tpu.trace_start"() <{level = 10 : i32, message = "bqk,bkd->bqd"}> : () -> ()
    %cst_28 = arith.constant dense<0.000000e+00> : vector<1x16x16xf32>
    %94 = tpu.matmul %93, %79, %cst_28 {dimension_numbers = #tpu.dot_dimension_numbers<[2], [1], [1], [2], [0, 0, 0, 1, 1, 2], [0], [0]>} : vector<1x16x16xbf16>, vector<1x16x16xbf16>, vector<1x16x16xf32> -> vector<1x16x16xf32>
    "tpu.trace_stop"() : () -> ()
    %95 = vector.shape_cast %94 : vector<1x16x16xf32> to vector<16x16xf32>
    %96 = arith.truncf %95 : vector<16x16xf32> to vector<16x16xbf16>
    %c16 = arith.constant 16 : index
    %c0_29 = arith.constant 0 : index
    %97 = vector.load %arg6[%c16, %c0_29] : memref<64x64xbf16, #tpu.memory_space<vmem>>, vector<16x64xbf16>
    %cst_30 = arith.constant dense<0.000000e+00> : vector<16x64xf32>
    %98 = tpu.matmul %96, %97, %cst_30 {dimension_numbers = #tpu.dot_dimension_numbers<[1], [0], [0], [1], [0, 0, 1, 1], [], []>} : vector<16x16xbf16>, vector<16x64xbf16>, vector<16x64xf32> -> vector<16x64xf32>
    %99 = arith.addf %70, %98 : vector<16x64xf32>
    %100 = vector.extract_strided_slice %31 {offsets = [0, 32], sizes = [16, 16], strides = [1, 1]} : vector<16x192xf32> to vector<16x16xf32>
    %101 = arith.truncf %100 : vector<16x16xf32> to vector<16x16xbf16>
    %102 = vector.shape_cast %101 : vector<16x16xbf16> to vector<1x16x16xbf16>
    %103 = vector.extract_strided_slice %31 {offsets = [0, 96], sizes = [16, 16], strides = [1, 1]} : vector<16x192xf32> to vector<16x16xf32>
    %104 = arith.truncf %103 : vector<16x16xf32> to vector<16x16xbf16>
    %105 = vector.shape_cast %104 : vector<16x16xbf16> to vector<1x16x16xbf16>
    %106 = vector.extract_strided_slice %31 {offsets = [0, 160], sizes = [16, 16], strides = [1, 1]} : vector<16x192xf32> to vector<16x16xf32>
    %107 = arith.truncf %106 : vector<16x16xf32> to vector<16x16xbf16>
    %108 = vector.shape_cast %107 : vector<16x16xbf16> to vector<1x16x16xbf16>
    "tpu.trace_start"() <{level = 10 : i32, message = "bqd,bkd->bqk"}> : () -> ()
    %cst_31 = arith.constant dense<0.000000e+00> : vector<1x16x16xf32>
    %109 = tpu.matmul %102, %105, %cst_31 {dimension_numbers = #tpu.dot_dimension_numbers<[2], [2], [1], [1], [0, 0, 0, 1, 1, 1], [0], [0]>} : vector<1x16x16xbf16>, vector<1x16x16xbf16>, vector<1x16x16xf32> -> vector<1x16x16xf32>
    "tpu.trace_stop"() : () -> ()
    %110 = vector.shape_cast %40 : vector<16x16xf32> to vector<1x16x16xf32>
    %111 = arith.addf %109, %110 : vector<1x16x16xf32>
    %cst_32 = arith.constant dense<0xFF800000> : vector<1x16xf32>
    %112 = vector.multi_reduction <maximumf>, %111, %cst_32 [2] : vector<1x16x16xf32> to vector<1x16xf32>
    %113 = vector.shape_cast %112 : vector<1x16xf32> to vector<1x16x1xf32>
    %114 = vector.broadcast %113 : vector<1x16x1xf32> to vector<1x16x16xf32>
    %115 = arith.subf %111, %114 : vector<1x16x16xf32>
    %116 = math.exp %115 : vector<1x16x16xf32>
    %cst_33 = arith.constant dense<0.000000e+00> : vector<1x16xf32>
    %117 = vector.multi_reduction <add>, %116, %cst_33 [2] : vector<1x16x16xf32> to vector<1x16xf32>
    %118 = vector.shape_cast %117 : vector<1x16xf32> to vector<1x16x1xf32>
    %119 = tpu.reciprocal %118 {approx = true} : vector<1x16x1xf32> -> vector<1x16x1xf32>
    %120 = vector.broadcast %119 : vector<1x16x1xf32> to vector<1x16x16xf32>
    %121 = arith.mulf %116, %120 : vector<1x16x16xf32>
    %122 = arith.truncf %121 : vector<1x16x16xf32> to vector<1x16x16xbf16>
    "tpu.trace_start"() <{level = 10 : i32, message = "bqk,bkd->bqd"}> : () -> ()
    %cst_34 = arith.constant dense<0.000000e+00> : vector<1x16x16xf32>
    %123 = tpu.matmul %122, %108, %cst_34 {dimension_numbers = #tpu.dot_dimension_numbers<[2], [1], [1], [2], [0, 0, 0, 1, 1, 2], [0], [0]>} : vector<1x16x16xbf16>, vector<1x16x16xbf16>, vector<1x16x16xf32> -> vector<1x16x16xf32>
    "tpu.trace_stop"() : () -> ()
    %124 = vector.shape_cast %123 : vector<1x16x16xf32> to vector<16x16xf32>
    %125 = arith.truncf %124 : vector<16x16xf32> to vector<16x16xbf16>
    %c32 = arith.constant 32 : index
    %c0_35 = arith.constant 0 : index
    %126 = vector.load %arg6[%c32, %c0_35] : memref<64x64xbf16, #tpu.memory_space<vmem>>, vector<16x64xbf16>
    %cst_36 = arith.constant dense<0.000000e+00> : vector<16x64xf32>
    %127 = tpu.matmul %125, %126, %cst_36 {dimension_numbers = #tpu.dot_dimension_numbers<[1], [0], [0], [1], [0, 0, 1, 1], [], []>} : vector<16x16xbf16>, vector<16x64xbf16>, vector<16x64xf32> -> vector<16x64xf32>
    %128 = arith.addf %99, %127 : vector<16x64xf32>
    %129 = vector.extract_strided_slice %31 {offsets = [0, 48], sizes = [16, 16], strides = [1, 1]} : vector<16x192xf32> to vector<16x16xf32>
    %130 = arith.truncf %129 : vector<16x16xf32> to vector<16x16xbf16>
    %131 = vector.shape_cast %130 : vector<16x16xbf16> to vector<1x16x16xbf16>
    %132 = vector.extract_strided_slice %31 {offsets = [0, 112], sizes = [16, 16], strides = [1, 1]} : vector<16x192xf32> to vector<16x16xf32>
    %133 = arith.truncf %132 : vector<16x16xf32> to vector<16x16xbf16>
    %134 = vector.shape_cast %133 : vector<16x16xbf16> to vector<1x16x16xbf16>
    %135 = vector.extract_strided_slice %31 {offsets = [0, 176], sizes = [16, 16], strides = [1, 1]} : vector<16x192xf32> to vector<16x16xf32>
    %136 = arith.truncf %135 : vector<16x16xf32> to vector<16x16xbf16>
    %137 = vector.shape_cast %136 : vector<16x16xbf16> to vector<1x16x16xbf16>
    "tpu.trace_start"() <{level = 10 : i32, message = "bqd,bkd->bqk"}> : () -> ()
    %cst_37 = arith.constant dense<0.000000e+00> : vector<1x16x16xf32>
    %138 = tpu.matmul %131, %134, %cst_37 {dimension_numbers = #tpu.dot_dimension_numbers<[2], [2], [1], [1], [0, 0, 0, 1, 1, 1], [0], [0]>} : vector<1x16x16xbf16>, vector<1x16x16xbf16>, vector<1x16x16xf32> -> vector<1x16x16xf32>
    "tpu.trace_stop"() : () -> ()
    %139 = vector.shape_cast %40 : vector<16x16xf32> to vector<1x16x16xf32>
    %140 = arith.addf %138, %139 : vector<1x16x16xf32>
    %cst_38 = arith.constant dense<0xFF800000> : vector<1x16xf32>
    %141 = vector.multi_reduction <maximumf>, %140, %cst_38 [2] : vector<1x16x16xf32> to vector<1x16xf32>
    %142 = vector.shape_cast %141 : vector<1x16xf32> to vector<1x16x1xf32>
    %143 = vector.broadcast %142 : vector<1x16x1xf32> to vector<1x16x16xf32>
    %144 = arith.subf %140, %143 : vector<1x16x16xf32>
    %145 = math.exp %144 : vector<1x16x16xf32>
    %cst_39 = arith.constant dense<0.000000e+00> : vector<1x16xf32>
    %146 = vector.multi_reduction <add>, %145, %cst_39 [2] : vector<1x16x16xf32> to vector<1x16xf32>
    %147 = vector.shape_cast %146 : vector<1x16xf32> to vector<1x16x1xf32>
    %148 = tpu.reciprocal %147 {approx = true} : vector<1x16x1xf32> -> vector<1x16x1xf32>
    %149 = vector.broadcast %148 : vector<1x16x1xf32> to vector<1x16x16xf32>
    %150 = arith.mulf %145, %149 : vector<1x16x16xf32>
    %151 = arith.truncf %150 : vector<1x16x16xf32> to vector<1x16x16xbf16>
    "tpu.trace_start"() <{level = 10 : i32, message = "bqk,bkd->bqd"}> : () -> ()
    %cst_40 = arith.constant dense<0.000000e+00> : vector<1x16x16xf32>
    %152 = tpu.matmul %151, %137, %cst_40 {dimension_numbers = #tpu.dot_dimension_numbers<[2], [1], [1], [2], [0, 0, 0, 1, 1, 2], [0], [0]>} : vector<1x16x16xbf16>, vector<1x16x16xbf16>, vector<1x16x16xf32> -> vector<1x16x16xf32>
    "tpu.trace_stop"() : () -> ()
    %153 = vector.shape_cast %152 : vector<1x16x16xf32> to vector<16x16xf32>
    %154 = arith.truncf %153 : vector<16x16xf32> to vector<16x16xbf16>
    %c48 = arith.constant 48 : index
    %c0_41 = arith.constant 0 : index
    %155 = vector.load %arg6[%c48, %c0_41] : memref<64x64xbf16, #tpu.memory_space<vmem>>, vector<16x64xbf16>
    %cst_42 = arith.constant dense<0.000000e+00> : vector<16x64xf32>
    %156 = tpu.matmul %154, %155, %cst_42 {dimension_numbers = #tpu.dot_dimension_numbers<[1], [0], [0], [1], [0, 0, 1, 1], [], []>} : vector<16x16xbf16>, vector<16x64xbf16>, vector<16x64xf32> -> vector<16x64xf32>
    %157 = arith.addf %128, %156 : vector<16x64xf32>
    %c0_43 = arith.constant 0 : index
    %c0_44 = arith.constant 0 : index
    %158 = vector.load %arg7[%c0_43, %c0_44] : memref<1x64xf32, #tpu.memory_space<vmem>>, vector<1x64xf32>
    %159 = vector.broadcast %158 : vector<1x64xf32> to vector<16x64xf32>
    %160 = arith.addf %157, %159 : vector<16x64xf32>
    %161 = arith.addf %160, %1 : vector<16x64xf32>
    %c0_45 = arith.constant 0 : index
    %c0_46 = arith.constant 0 : index
    %162 = vector.load %arg8[%c0_45, %c0_46] : memref<1x64xf32, #tpu.memory_space<vmem>>, vector<1x64xf32>
    %c0_47 = arith.constant 0 : index
    %c0_48 = arith.constant 0 : index
    %163 = vector.load %arg9[%c0_47, %c0_48] : memref<1x64xf32, #tpu.memory_space<vmem>>, vector<1x64xf32>
    %cst_49 = arith.constant dense<0.000000e+00> : vector<16xf32>
    %164 = vector.multi_reduction <add>, %161, %cst_49 [1] : vector<16x64xf32> to vector<16xf32>
    %165 = vector.shape_cast %164 : vector<16xf32> to vector<16x1xf32>
    %cst_50 = arith.constant 6.400000e+01 : f32
    %166 = vector.broadcast %cst_50 : f32 to vector<16x1xf32>
    %167 = arith.divf %165, %166 : vector<16x1xf32>
    %168 = vector.broadcast %167 : vector<16x1xf32> to vector<16x64xf32>
    %169 = arith.subf %161, %168 : vector<16x64xf32>
    %170 = arith.mulf %169, %169 : vector<16x64xf32>
    %cst_51 = arith.constant dense<0.000000e+00> : vector<16xf32>
    %171 = vector.multi_reduction <add>, %170, %cst_51 [1] : vector<16x64xf32> to vector<16xf32>
    %172 = vector.shape_cast %171 : vector<16xf32> to vector<16x1xf32>
    %cst_52 = arith.constant 6.400000e+01 : f32
    %173 = vector.broadcast %cst_52 : f32 to vector<16x1xf32>
    %174 = arith.divf %172, %173 : vector<16x1xf32>
    %175 = vector.broadcast %167 : vector<16x1xf32> to vector<16x64xf32>
    %176 = arith.subf %161, %175 : vector<16x64xf32>
    %cst_53 = arith.constant 9.99999974E-6 : f32
    %177 = vector.broadcast %cst_53 : f32 to vector<16x1xf32>
    %178 = arith.addf %174, %177 : vector<16x1xf32>
    %179 = math.rsqrt %178 : vector<16x1xf32>
    %180 = vector.broadcast %179 : vector<16x1xf32> to vector<16x64xf32>
    %181 = arith.mulf %176, %180 : vector<16x64xf32>
    %182 = vector.broadcast %162 : vector<1x64xf32> to vector<16x64xf32>
    %183 = arith.mulf %181, %182 : vector<16x64xf32>
    %184 = vector.broadcast %163 : vector<1x64xf32> to vector<16x64xf32>
    %185 = arith.addf %183, %184 : vector<16x64xf32>
    %186 = arith.truncf %185 : vector<16x64xf32> to vector<16x64xbf16>
    %c0_54 = arith.constant 0 : index
    %c0_55 = arith.constant 0 : index
    %187 = vector.load %arg11[%c0_54, %c0_55] : memref<1x256xf32, #tpu.memory_space<vmem>>, vector<1x256xf32>
    %cst_56 = arith.constant 0.000000e+00 : f32
    %188 = vector.broadcast %cst_56 : f32 to vector<16x64xf32>
    %c0_57 = arith.constant 0 : index
    %c0_58 = arith.constant 0 : index
    %189 = vector.load %arg10[%c0_57, %c0_58] : memref<64x256xbf16, #tpu.memory_space<vmem>>, vector<64x256xbf16>
    %cst_59 = arith.constant dense<0.000000e+00> : vector<16x256xf32>
    %190 = tpu.matmul %186, %189, %cst_59 {dimension_numbers = #tpu.dot_dimension_numbers<[1], [0], [0], [1], [0, 0, 1, 1], [], []>} : vector<16x64xbf16>, vector<64x256xbf16>, vector<16x256xf32> -> vector<16x256xf32>
    %191 = vector.broadcast %187 : vector<1x256xf32> to vector<16x256xf32>
    %192 = arith.addf %190, %191 : vector<16x256xf32>
    %cst_60 = arith.constant 1.702000e+00 : f32
    %193 = vector.broadcast %cst_60 : f32 to vector<16x256xf32>
    %194 = arith.mulf %193, %192 : vector<16x256xf32>
    %195 = arith.negf %194 : vector<16x256xf32>
    %196 = math.exp %195 : vector<16x256xf32>
    %cst_61 = arith.constant 1.000000e+00 : f32
    %197 = vector.broadcast %cst_61 : f32 to vector<16x256xf32>
    %198 = arith.addf %197, %196 : vector<16x256xf32>
    %199 = arith.divf %197, %198 : vector<16x256xf32>
    %200 = arith.mulf %192, %199 : vector<16x256xf32>
    %201 = arith.truncf %200 : vector<16x256xf32> to vector<16x256xbf16>
    %c0_62 = arith.constant 0 : index
    %c0_63 = arith.constant 0 : index
    %202 = vector.load %arg12[%c0_62, %c0_63] : memref<256x64xbf16, #tpu.memory_space<vmem>>, vector<256x64xbf16>
    %cst_64 = arith.constant dense<0.000000e+00> : vector<16x64xf32>
    %203 = tpu.matmul %201, %202, %cst_64 {dimension_numbers = #tpu.dot_dimension_numbers<[1], [0], [0], [1], [0, 0, 1, 1], [], []>} : vector<16x256xbf16>, vector<256x64xbf16>, vector<16x64xf32> -> vector<16x64xf32>
    %204 = arith.addf %188, %203 : vector<16x64xf32>
    %c0_65 = arith.constant 0 : index
    %c0_66 = arith.constant 0 : index
    %205 = vector.load %arg13[%c0_65, %c0_66] : memref<1x64xf32, #tpu.memory_space<vmem>>, vector<1x64xf32>
    %206 = vector.broadcast %205 : vector<1x64xf32> to vector<16x64xf32>
    %207 = arith.addf %204, %206 : vector<16x64xf32>
    %208 = arith.addf %207, %161 : vector<16x64xf32>
    %c0_67 = arith.constant 0 : index
    %c0_68 = arith.constant 0 : index
    %209 = vector.load %arg14[%c0_67, %c0_68] : memref<1x64xf32, #tpu.memory_space<vmem>>, vector<1x64xf32>
    %c0_69 = arith.constant 0 : index
    %c0_70 = arith.constant 0 : index
    %210 = vector.load %arg15[%c0_69, %c0_70] : memref<1x64xf32, #tpu.memory_space<vmem>>, vector<1x64xf32>
    %cst_71 = arith.constant dense<0.000000e+00> : vector<16xf32>
    %211 = vector.multi_reduction <add>, %208, %cst_71 [1] : vector<16x64xf32> to vector<16xf32>
    %212 = vector.shape_cast %211 : vector<16xf32> to vector<16x1xf32>
    %cst_72 = arith.constant 6.400000e+01 : f32
    %213 = vector.broadcast %cst_72 : f32 to vector<16x1xf32>
    %214 = arith.divf %212, %213 : vector<16x1xf32>
    %215 = vector.broadcast %214 : vector<16x1xf32> to vector<16x64xf32>
    %216 = arith.subf %208, %215 : vector<16x64xf32>
    %217 = arith.mulf %216, %216 : vector<16x64xf32>
    %cst_73 = arith.constant dense<0.000000e+00> : vector<16xf32>
    %218 = vector.multi_reduction <add>, %217, %cst_73 [1] : vector<16x64xf32> to vector<16xf32>
    %219 = vector.shape_cast %218 : vector<16xf32> to vector<16x1xf32>
    %cst_74 = arith.constant 6.400000e+01 : f32
    %220 = vector.broadcast %cst_74 : f32 to vector<16x1xf32>
    %221 = arith.divf %219, %220 : vector<16x1xf32>
    %222 = vector.broadcast %214 : vector<16x1xf32> to vector<16x64xf32>
    %223 = arith.subf %208, %222 : vector<16x64xf32>
    %cst_75 = arith.constant 9.99999974E-6 : f32
    %224 = vector.broadcast %cst_75 : f32 to vector<16x1xf32>
    %225 = arith.addf %221, %224 : vector<16x1xf32>
    %226 = math.rsqrt %225 : vector<16x1xf32>
    %227 = vector.broadcast %226 : vector<16x1xf32> to vector<16x64xf32>
    %228 = arith.mulf %223, %227 : vector<16x64xf32>
    %229 = vector.broadcast %209 : vector<1x64xf32> to vector<16x64xf32>
    %230 = arith.mulf %228, %229 : vector<16x64xf32>
    %231 = vector.broadcast %210 : vector<1x64xf32> to vector<16x64xf32>
    %232 = arith.addf %230, %231 : vector<16x64xf32>
    %233 = vector.shape_cast %232 : vector<16x64xf32> to vector<1x16x64xf32>
    %c0_76 = arith.constant 0 : index
    %c0_77 = arith.constant 0 : index
    %c0_78 = arith.constant 0 : index
    %234 = vector.load %arg16[%c0_76, %c0_77, %c0_78] : memref<1x16x64xf32, #tpu.memory_space<vmem>>, vector<1x16x64xf32>
    tpu.vector_store %arg16[%c0_76, %c0_77, %c0_78], %233 {strides = array<i32>} : memref<1x16x64xf32, #tpu.memory_space<vmem>>, vector<1x16x64xf32>,
    return
  }
  func.func @transform_0(%arg0: i32) -> (i32, i32, i32) {
    %c0_i32 = arith.constant 0 : i32
    %c0_i32_0 = arith.constant 0 : i32
    %c0_i32_1 = arith.constant 0 : i32
    return %arg0, %c0_i32, %c0_i32_0 : i32, i32, i32
  }
  func.func @transform_1(%arg0: i32) -> (i32, i32) {
    %c0_i32 = arith.constant 0 : i32
    %c0_i32_0 = arith.constant 0 : i32
    %c0_i32_1 = arith.constant 0 : i32
    return %c0_i32, %c0_i32_0 : i32, i32
  }
  func.func @transform_2(%arg0: i32) -> (i32, i32) {
    %c0_i32 = arith.constant 0 : i32
    %c0_i32_0 = arith.constant 0 : i32
    %c0_i32_1 = arith.constant 0 : i32
    return %c0_i32, %c0_i32_0 : i32, i32
  }
  func.func @transform_3(%arg0: i32) -> (i32, i32) {
    %c0_i32 = arith.constant 0 : i32
    %c0_i32_0 = arith.constant 0 : i32
    %c0_i32_1 = arith.constant 0 : i32
    return %c0_i32, %c0_i32_0 : i32, i32
  }
  func.func @transform_4(%arg0: i32) -> (i32, i32) {
    %c0_i32 = arith.constant 0 : i32
    %c0_i32_0 = arith.constant 0 : i32
    %c0_i32_1 = arith.constant 0 : i32
    return %c0_i32, %c0_i32_0 : i32, i32
  }
  func.func @transform_5(%arg0: i32) -> (i32, i32) {
    %c0_i32 = arith.constant 0 : i32
    %c0_i32_0 = arith.constant 0 : i32
    %c0_i32_1 = arith.constant 0 : i32
    return %c0_i32, %c0_i32_0 : i32, i32
  }
  func.func @transform_6(%arg0: i32) -> (i32, i32) {
    %c0_i32 = arith.constant 0 : i32
    %c0_i32_0 = arith.constant 0 : i32
    %c0_i32_1 = arith.constant 0 : i32
    return %c0_i32, %c0_i32_0 : i32, i32
  }
  func.func @transform_7(%arg0: i32) -> (i32, i32) {
    %c0_i32 = arith.constant 0 : i32
    %c0_i32_0 = arith.constant 0 : i32
    %c0_i32_1 = arith.constant 0 : i32
    return %c0_i32, %c0_i32_0 : i32, i32
  }
  func.func @transform_8(%arg0: i32) -> (i32, i32) {
    %c0_i32 = arith.constant 0 : i32
    %c0_i32_0 = arith.constant 0 : i32
    %c0_i32_1 = arith.constant 0 : i32
    return %c0_i32, %c0_i32_0 : i32, i32
  }
  func.func @transform_9(%arg0: i32) -> (i32, i32) {
    %c0_i32 = arith.constant 0 : i32
    %c0_i32_0 = arith.constant 0 : i32
    %c0_i32_1 = arith.constant 0 : i32
    return %c0_i32, %c0_i32_0 : i32, i32
  }
  func.func @transform_10(%arg0: i32) -> (i32, i32) {
    %c0_i32 = arith.constant 0 : i32
    %c0_i32_0 = arith.constant 0 : i32
    %c0_i32_1 = arith.constant 0 : i32
    return %c0_i32, %c0_i32_0 : i32, i32
  }
  func.func @transform_11(%arg0: i32) -> (i32, i32) {
    %c0_i32 = arith.constant 0 : i32
    %c0_i32_0 = arith.constant 0 : i32
    %c0_i32_1 = arith.constant 0 : i32
    return %c0_i32, %c0_i32_0 : i32, i32
  }
  func.func @transform_12(%arg0: i32) -> (i32, i32) {
    %c0_i32 = arith.constant 0 : i32
    %c0_i32_0 = arith.constant 0 : i32
    %c0_i32_1 = arith.constant 0 : i32
    return %c0_i32, %c0_i32_0 : i32, i32
  }
  func.func @transform_13(%arg0: i32) -> (i32, i32) {
    %c0_i32 = arith.constant 0 : i32
    %c0_i32_0 = arith.constant 0 : i32
    %c0_i32_1 = arith.constant 0 : i32
    return %c0_i32, %c0_i32_0 : i32, i32
  }
  func.func @transform_14(%arg0: i32) -> (i32, i32) {
    %c0_i32 = arith.constant 0 : i32
    %c0_i32_0 = arith.constant 0 : i32
    %c0_i32_1 = arith.constant 0 : i32
    return %c0_i32, %c0_i32_0 : i32, i32
  }
  func.func @transform_15(%arg0: i32) -> (i32, i32, i32) {
    %c0_i32 = arith.constant 0 : i32
    %c0_i32_0 = arith.constant 0 : i32
    %c0_i32_1 = arith.constant 0 : i32
    return %arg0, %c0_i32, %c0_i32_0 : i32, i32, i32
  }
}

module attributes {stable_mosaic.version = 11 : i64} {
  func.func @clip_layer_kernel(%arg0: i32, %arg1: memref<1x16x64xf32, #tpu.memory_space<vmem>>, %arg2: memref<1x64xf32, #tpu.memory_space<vmem>>, %arg3: memref<1x64xf32, #tpu.memory_space<vmem>>, %arg4: memref<64x192xbf16, #tpu.memory_space<vmem>>, %arg5: memref<1x192xf32, #tpu.memory_space<vmem>>, %arg6: memref<64x64xbf16, #tpu.memory_space<vmem>>, %arg7: memref<1x64xf32, #tpu.memory_space<vmem>>, %arg8: memref<1x64xf32, #tpu.memory_space<vmem>>, %arg9: memref<1x64xf32, #tpu.memory_space<vmem>>, %arg10: memref<64x256xbf16, #tpu.memory_space<vmem>>, %arg11: memref<1x256xf32, #tpu.memory_space<vmem>>, %arg12: memref<256x64xbf16, #tpu.memory_space<vmem>>, %arg13: memref<1x64xf32, #tpu.memory_space<vmem>>, %arg14: memref<1x64xf32, #tpu.memory_space<vmem>>, %arg15: memref<1x64xf32, #tpu.memory_space<vmem>>, %arg16: memref<1x16x64xf32, #tpu.memory_space<vmem>>) attributes {dimension_semantics = [#tpu.dimension_semantics<parallel>], iteration_bounds = array<i64: 2>, scalar_prefetch = 0 : i64, scratch_operands = 0 : i64, tpu.core_type = #tpu.core_type<tc>, window_params = [{transform_indices = @transform_0, window_bounds = array<i64: 1, 16, 64>}, {pipeline_mode = #tpu.pipeline_mode<synchronous>, transform_indices = @transform_1, window_bounds = array<i64: 1, 64>}, {pipeline_mode = #tpu.pipeline_mode<synchronous>, transform_indices = @transform_2, window_bounds = array<i64: 1, 64>}, {pipeline_mode = #tpu.pipeline_mode<synchronous>, transform_indices = @transform_3, window_bounds = array<i64: 64, 192>}, {pipeline_mode = #tpu.pipeline_mode<synchronous>, transform_indices = @transform_4, window_bounds = array<i64: 1, 192>}, {pipeline_mode = #tpu.pipeline_mode<synchronous>, transform_indices = @transform_5, window_bounds = array<i64: 64, 64>}, {pipeline_mode = #tpu.pipeline_mode<synchronous>, transform_indices = @transform_6, window_bounds = array<i64: 1, 64>}, {pipeline_mode = #tpu.pipeline_mode<synchronous>, transform_indices = @transform_7, window_bounds = array<i64: 1, 64>}, {pipeline_mode = #tpu.pipeline_mode<synchronous>, transform_indices = @transform_8, window_bounds = array<i64: 1, 64>}, {pipeline_mode = #tpu.pipeline_mode<synchronous>, transform_indices = @transform_9, window_bounds = array<i64: 64, 256>}, {pipeline_mode = #tpu.pipeline_mode<synchronous>, transform_indices = @transform_10, window_bounds = array<i64: 1, 256>}, {pipeline_mode = #tpu.pipeline_mode<synchronous>, transform_indices = @transform_11, window_bounds = array<i64: 256, 64>}, {pipeline_mode = #tpu.pipeline_mode<synchronous>, transform_indices = @transform_12, window_bounds = array<i64: 1, 64>}, {pipeline_mode = #tpu.pipeline_mode<synchronous>, transform_indices = @transform_13, window_bounds = array<i64: 1, 64>}, {pipeline_mode = #tpu.pipeline_mode<synchronous>, transform_indices = @transform_14, window_bounds = array<i64: 1, 64>}, {transform_indices = @transform_15, window_bounds = array<i64: 1, 16, 64>}]} {
    %c0 = arith.constant 0 : index
    %c0_0 = arith.constant 0 : index
    %c0_1 = arith.constant 0 : index
    %0 = vector.load %arg1[%c0, %c0_0, %c0_1] : memref<1x16x64xf32, #tpu.memory_space<vmem>>, vector<1x16x64xf32>
    %1 = vector.shape_cast %0 : vector<1x16x64xf32> to vector<16x64xf32>
    %c0_2 = arith.constant 0 : index
    %c0_3 = arith.constant 0 : index
    %2 = vector.load %arg2[%c0_2, %c0_3] : memref<1x64xf32, #tpu.memory_space<vmem>>, vector<1x64xf32>
    %c0_4 = arith.constant 0 : index
    %c0_5 = arith.constant 0 : index
    %3 = vector.load %arg3[%c0_4, %c0_5] : memref<1x64xf32, #tpu.memory_space<vmem>>, vector<1x64xf32>
    %cst = arith.constant dense<0.000000e+00> : vector<16xf32>
    %4 = vector.multi_reduction <add>, %1, %cst [1] : vector<16x64xf32> to vector<16xf32>
    %5 = vector.shape_cast %4 : vector<16xf32> to vector<16x1xf32>
    %cst_6 = arith.constant 6.400000e+01 : f32
    %6 = vector.broadcast %cst_6 : f32 to vector<16x1xf32>
    %7 = arith.divf %5, %6 : vector<16x1xf32>
    %8 = vector.broadcast %7 : vector<16x1xf32> to vector<16x64xf32>
    %9 = arith.subf %1, %8 : vector<16x64xf32>
    %10 = arith.mulf %9, %9 : vector<16x64xf32>
    %cst_7 = arith.constant dense<0.000000e+00> : vector<16xf32>
    %11 = vector.multi_reduction <add>, %10, %cst_7 [1] : vector<16x64xf32> to vector<16xf32>
    %12 = vector.shape_cast %11 : vector<16xf32> to vector<16x1xf32>
    %cst_8 = arith.constant 6.400000e+01 : f32
    %13 = vector.broadcast %cst_8 : f32 to vector<16x1xf32>
    %14 = arith.divf %12, %13 : vector<16x1xf32>
    %15 = vector.broadcast %7 : vector<16x1xf32> to vector<16x64xf32>
    %16 = arith.subf %1, %15 : vector<16x64xf32>
    %cst_9 = arith.constant 9.99999974E-6 : f32
    %17 = vector.broadcast %cst_9 : f32 to vector<16x1xf32>
    %18 = arith.addf %14, %17 : vector<16x1xf32>
    %19 = math.rsqrt %18 : vector<16x1xf32>
    %20 = vector.broadcast %19 : vector<16x1xf32> to vector<16x64xf32>
    %21 = arith.mulf %16, %20 : vector<16x64xf32>
    %22 = vector.broadcast %2 : vector<1x64xf32> to vector<16x64xf32>
    %23 = arith.mulf %21, %22 : vector<16x64xf32>
    %24 = vector.broadcast %3 : vector<1x64xf32> to vector<16x64xf32>
    %25 = arith.addf %23, %24 : vector<16x64xf32>
    %26 = arith.truncf %25 : vector<16x64xf32> to vector<16x64xbf16>
    %c0_10 = arith.constant 0 : index
    %c0_11 = arith.constant 0 : index
    %27 = vector.load %arg4[%c0_10, %c0_11] : memref<64x192xbf16, #tpu.memory_space<vmem>>, vector<64x192xbf16>
    %cst_12 = arith.constant dense<0.000000e+00> : vector<16x192xf32>
    %28 = tpu.matmul %26, %27, %cst_12 {dimension_numbers = #tpu.dot_dimension_numbers<[1], [0], [0], [1], [0, 0, 1, 1], [], []>} : vector<16x64xbf16>, vector<64x192xbf16>, vector<16x192xf32> -> vector<16x192xf32>
    %c0_13 = arith.constant 0 : index
    %c0_14 = arith.constant 0 : index
    %29 = vector.load %arg5[%c0_13, %c0_14] : memref<1x192xf32, #tpu.memory_space<vmem>>, vector<1x192xf32>
    %30 = vector.broadcast %29 : vector<1x192xf32> to vector<16x192xf32>
    %31 = arith.addf %28, %30 : vector<16x192xf32>
    %32 = tpu.iota {dimensions = array<i32: 0>} : vector<16x16xi32>
    %33 = tpu.iota {dimensions = array<i32: 1>} : vector<16x16xi32>
    %34 = arith.cmpi sgt, %33, %32 : vector<16x16xi32>
    %c16_i32 = arith.constant 16 : i32
    %35 = vector.broadcast %c16_i32 : i32 to vector<16x16xi32>
    %36 = arith.cmpi sge, %33, %35 : vector<16x16xi32>
    %37 = arith.ori %34, %36 : vector<16x16xi1>
    %cst_15 = arith.constant -1.000000e+30 : f32
    %cst_16 = arith.constant 0.000000e+00 : f32
    %38 = vector.broadcast %cst_15 : f32 to vector<16x16xf32>
    %39 = vector.broadcast %cst_16 : f32 to vector<16x16xf32>
    %40 = arith.select %37, %38, %39 : vector<16x16xi1>, vector<16x16xf32>
    %cst_17 = arith.constant 0.000000e+00 : f32
    %41 = vector.broadcast %cst_17 : f32 to vector<16x64xf32>
    %42 = vector.extract_strided_slice %31 {offsets = [0, 0], sizes = [16, 16], strides = [1, 1]} : vector<16x192xf32> to vector<16x16xf32>
    %43 = arith.truncf %42 : vector<16x16xf32> to vector<16x16xbf16>
    %44 = vector.shape_cast %43 : vector<16x16xbf16> to vector<1x16x16xbf16>
    %45 = vector.extract_strided_slice %31 {offsets = [0, 64], sizes = [16, 16], strides = [1, 1]} : vector<16x192xf32> to vector<16x16xf32>
    %46 = arith.truncf %45 : vector<16x16xf32> to vector<16x16xbf16>
    %47 = vector.shape_cast %46 : vector<16x16xbf16> to vector<1x16x16xbf16>
    %48 = vector.extract_strided_slice %31 {offsets = [0, 128], sizes = [16, 16], strides = [1, 1]} : vector<16x192xf32> to vector<16x16xf32>
    %49 = arith.truncf %48 : vector<16x16xf32> to vector<16x16xbf16>
    %50 = vector.shape_cast %49 : vector<16x16xbf16> to vector<1x16x16xbf16>
    "tpu.trace_start"() <{level = 10 : i32, message = "bqd,bkd->bqk"}> : () -> ()
    %cst_18 = arith.constant dense<0.000000e+00> : vector<1x16x16xf32>
    %51 = tpu.matmul %44, %47, %cst_18 {dimension_numbers = #tpu.dot_dimension_numbers<[2], [2], [1], [1], [0, 0, 0, 1, 1, 1], [0], [0]>} : vector<1x16x16xbf16>, vector<1x16x16xbf16>, vector<1x16x16xf32> -> vector<1x16x16xf32>
    "tpu.trace_stop"() : () -> ()
    %52 = vector.shape_cast %40 : vector<16x16xf32> to vector<1x16x16xf32>
    %53 = arith.addf %51, %52 : vector<1x16x16xf32>
    %cst_19 = arith.constant dense<0xFF800000> : vector<1x16xf32>
    %54 = vector.multi_reduction <maximumf>, %53, %cst_19 [2] : vector<1x16x16xf32> to vector<1x16xf32>
    %55 = vector.shape_cast %54 : vector<1x16xf32> to vector<1x16x1xf32>
    %56 = vector.broadcast %55 : vector<1x16x1xf32> to vector<1x16x16xf32>
    %57 = arith.subf %53, %56 : vector<1x16x16xf32>
    %58 = math.exp %57 : vector<1x16x16xf32>
    %cst_20 = arith.constant dense<0.000000e+00> : vector<1x16xf32>
    %59 = vector.multi_reduction <add>, %58, %cst_20 [2] : vector<1x16x16xf32> to vector<1x16xf32>
    %60 = vector.shape_cast %59 : vector<1x16xf32> to vector<1x16x1xf32>
    %61 = tpu.reciprocal %60 {approx = true} : vector<1x16x1xf32> -> vector<1x16x1xf32>
    %62 = vector.broadcast %61 : vector<1x16x1xf32> to vector<1x16x16xf32>
    %63 = arith.mulf %58, %62 : vector<1x16x16xf32>
    %64 = arith.truncf %63 : vector<1x16x16xf32> to vector<1x16x16xbf16>
    "tpu.trace_start"() <{level = 10 : i32, message = "bqk,bkd->bqd"}> : () -> ()
    %cst_21 = arith.constant dense<0.000000e+00> : vector<1x16x16xf32>
    %65 = tpu.matmul %64, %50, %cst_21 {dimension_numbers = #tpu.dot_dimension_numbers<[2], [1], [1], [2], [0, 0, 0, 1, 1, 2], [0], [0]>} : vector<1x16x16xbf16>, vector<1x16x16xbf16>, vector<1x16x16xf32> -> vector<1x16x16xf32>
    "tpu.trace_stop"() : () -> ()
    %66 = vector.shape_cast %65 : vector<1x16x16xf32> to vector<16x16xf32>
    %67 = arith.truncf %66 : vector<16x16xf32> to vector<16x16xbf16>
    %c0_22 = arith.constant 0 : index
    %c0_23 = arith.constant 0 : index
    %68 = vector.load %arg6[%c0_22, %c0_23] : memref<64x64xbf16, #tpu.memory_space<vmem>>, vector<16x64xbf16>
    %cst_24 = arith.constant dense<0.000000e+00> : vector<16x64xf32>
    %69 = tpu.matmul %67, %68, %cst_24 {dimension_numbers = #tpu.dot_dimension_numbers<[1], [0], [0], [1], [0, 0, 1, 1], [], []>} : vector<16x16xbf16>, vector<16x64xbf16>, vector<16x64xf32> -> vector<16x64xf32>
    %70 = arith.addf %41, %69 : vector<16x64xf32>
    %71 = vector.extract_strided_slice %31 {offsets = [0, 16], sizes = [16, 16], strides = [1, 1]} : vector<16x192xf32> to vector<16x16xf32>
    %72 = arith.truncf %71 : vector<16x16xf32> to vector<16x16xbf16>
    %73 = vector.shape_cast %72 : vector<16x16xbf16> to vector<1x16x16xbf16>
    %74 = vector.extract_strided_slice %31 {offsets = [0, 80], sizes = [16, 16], strides = [1, 1]} : vector<16x192xf32> to vector<16x16xf32>
    %75 = arith.truncf %74 : vector<16x16xf32> to vector<16x16xbf16>
    %76 = vector.shape_cast %75 : vector<16x16xbf16> to vector<1x16x16xbf16>
    %77 = vector.extract_strided_slice %31 {offsets = [0, 144], sizes = [16, 16], strides = [1, 1]} : vector<16x192xf32> to vector<16x16xf32>
    %78 = arith.truncf %77 : vector<16x16xf32> to vector<16x16xbf16>
    %79 = vector.shape_cast %78 : vector<16x16xbf16> to vector<1x16x16xbf16>
    "tpu.trace_start"() <{level = 10 : i32, message = "bqd,bkd->bqk"}> : () -> ()
    %cst_25 = arith.constant dense<0.000000e+00> : vector<1x16x16xf32>
    %80 = tpu.matmul %73, %76, %cst_25 {dimension_numbers = #tpu.dot_dimension_numbers<[2], [2], [1], [1], [0, 0, 0, 1, 1, 1], [0], [0]>} : vector<1x16x16xbf16>, vector<1x16x16xbf16>, vector<1x16x16xf32> -> vector<1x16x16xf32>
    "tpu.trace_stop"() : () -> ()
    %81 = vector.shape_cast %40 : vector<16x16xf32> to vector<1x16x16xf32>
    %82 = arith.addf %80, %81 : vector<1x16x16xf32>
    %cst_26 = arith.constant dense<0xFF800000> : vector<1x16xf32>
    %83 = vector.multi_reduction <maximumf>, %82, %cst_26 [2] : vector<1x16x16xf32> to vector<1x16xf32>
    %84 = vector.shape_cast %83 : vector<1x16xf32> to vector<1x16x1xf32>
    %85 = vector.broadcast %84 : vector<1x16x1xf32> to vector<1x16x16xf32>
    %86 = arith.subf %82, %85 : vector<1x16x16xf32>
    %87 = math.exp %86 : vector<1x16x16xf32>
    %cst_27 = arith.constant dense<0.000000e+00> : vector<1x16xf32>
    %88 = vector.multi_reduction <add>, %87, %cst_27 [2] : vector<1x16x16xf32> to vector<1x16xf32>
    %89 = vector.shape_cast %88 : vector<1x16xf32> to vector<1x16x1xf32>
    %90 = tpu.reciprocal %89 {approx = true} : vector<1x16x1xf32> -> vector<1x16x1xf32>
    %91 = vector.broadcast %90 : vector<1x16x1xf32> to vector<1x16x16xf32>
    %92 = arith.mulf %87, %91 : vector<1x16x16xf32>
    %93 = arith.truncf %92 : vector<1x16x16xf32> to vector<1x16x16xbf16>
    "tpu.trace_start"() <{level = 10 : i32, message = "bqk,bkd->bqd"}> : () -> ()
    %cst_28 = arith.constant dense<0.000000e+00> : vector<1x16x16xf32>
    %94 = tpu.matmul %93, %79, %cst_28 {dimension_numbers = #tpu.dot_dimension_numbers<[2], [1], [1], [2], [0, 0, 0, 1, 1, 2], [0], [0]>} : vector<1x16x16xbf16>, vector<1x16x16xbf16>, vector<1x16x16xf32> -> vector<1x16x16xf32>
    "tpu.trace_stop"() : () -> ()
    %95 = vector.shape_cast %94 : vector<1x16x16xf32> to vector<16x16xf32>
    %96 = arith.truncf %95 : vector<16x16xf32> to vector<16x16xbf16>
    %c16 = arith.constant 16 : index
    %c0_29 = arith.constant 0 : index
    %97 = vector.load %arg6[%c16, %c0_29] : memref<64x64xbf16, #tpu.memory_space<vmem>>, vector<16x64xbf16>
    %cst_30 = arith.constant dense<0.000000e+00> : vector<16x64xf32>
    %98 = tpu.matmul %96, %97, %cst_30 {dimension_numbers = #tpu.dot_dimension_numbers<[1], [0], [0], [1], [0, 0, 1, 1], [], []>} : vector<16x16xbf16>, vector<16x64xbf16>, vector<16x64xf32> -> vector<16x64xf32>
    %99 = arith.addf %70, %98 : vector<16x64xf32>
    %100 = vector.extract_strided_slice %31 {offsets = [0, 32], sizes = [16, 16], strides = [1, 1]} : vector<16x192xf32> to vector<16x16xf32>
    %101 = arith.truncf %100 : vector<16x16xf32> to vector<16x16xbf16>
    %102 = vector.shape_cast %101 : vector<16x16xbf16> to vector<1x16x16xbf16>
    %103 = vector.extract_strided_slice %31 {offsets = [0, 96], sizes = [16, 16], strides = [1, 1]} : vector<16x192xf32> to vector<16x16xf32>
    %104 = arith.truncf %103 : vector<16x16xf32> to vector<16x16xbf16>
    %105 = vector.shape_cast %104 : vector<16x16xbf16> to vector<1x16x16xbf16>
    %106 = vector.extract_strided_slice %31 {offsets = [0, 160], sizes = [16, 16], strides = [1, 1]} : vector<16x192xf32> to vector<16x16xf32>
    %107 = arith.truncf %106 : vector<16x16xf32> to vector<16x16xbf16>
    %108 = vector.shape_cast %107 : vector<16x16xbf16> to vector<1x16x16xbf16>
    "tpu.trace_start"() <{level = 10 : i32, message = "bqd,bkd->bqk"}> : () -> ()
    %cst_31 = arith.constant dense<0.000000e+00> : vector<1x16x16xf32>
    %109 = tpu.matmul %102, %105, %cst_31 {dimension_numbers = #tpu.dot_dimension_numbers<[2], [2], [1], [1], [0, 0, 0, 1, 1, 1], [0], [0]>} : vector<1x16x16xbf16>, vector<1x16x16xbf16>, vector<1x16x16xf32> -> vector<1x16x16xf32>
    "tpu.trace_stop"() : () -> ()
    %110 = vector.shape_cast %40 : vector<16x16xf32> to vector<1x16x16xf32>
    %111 = arith.addf %109, %110 : vector<1x16x16xf32>
    %cst_32 = arith.constant dense<0xFF800000> : vector<1x16xf32>
    %112 = vector.multi_reduction <maximumf>, %111, %cst_32 [2] : vector<1x16x16xf32> to vector<1x16xf32>
    %113 = vector.shape_cast %112 : vector<1x16xf32> to vector<1x16x1xf32>
    %114 = vector.broadcast %113 : vector<1x16x1xf32> to vector<1x16x16xf32>
    %115 = arith.subf %111, %114 : vector<1x16x16xf32>
    %116 = math.exp %115 : vector<1x16x16xf32>
    %cst_33 = arith.constant dense<0.000000e+00> : vector<1x16xf32>
    %117 = vector.multi_reduction <add>, %116, %cst_33 [2] : vector<1x16x16xf32> to vector<1x16xf32>
    %118 = vector.shape_cast %117 : vector<1x16xf32> to vector<1x16x1xf32>
    %119 = tpu.reciprocal %118 {approx = true} : vector<1x16x1xf32> -> vector<1x16x1xf32>
    %120 = vector.broadcast %119 : vector<1x16x1xf32> to vector<1x16x16xf32>
    %121 = arith.mulf %116, %120 : vector<1x16x16xf32>
    %122 = arith.truncf %121 : vector<1x16x16xf32> to vector<1x16x16xbf16>
    "tpu.trace_start"() <{level = 10 : i32, message = "bqk,bkd->bqd"}> : () -> ()
    %cst_34 = arith.constant dense<0.000000e+00> : vector<1x16x16xf32>
    %123 = tpu.matmul %122, %108, %cst_34 {dimension_numbers = #tpu.dot_dimension_numbers<[2], [1], [1], [2], [0, 0, 0, 1, 1, 2], [0], [0]>} : vector<1x16x16xbf16>, vector<1x16x16xbf16>, vector<1x16x16xf32> -> vector<1x16x16xf32>
    "tpu.trace_stop"() : () -> ()
    %124 = vector.shape_cast %123 : vector<1x16x16xf32> to vector<16x16xf32>
    %125 = arith.truncf %124 : vector<16x16xf32> to vector<16x16xbf16>
    %c32 = arith.constant 32 : index
    %c0_35 = arith.constant 0 : index
    %126 = vector.load %arg6[%c32, %c0_35] : memref<64x64xbf16, #tpu.memory_space<vmem>>, vector<16x64xbf16>
    %cst_36 = arith.constant dense<0.000000e+00> : vector<16x64xf32>
    %127 = tpu.matmul %125, %126, %cst_36 {dimension_numbers = #tpu.dot_dimension_numbers<[1], [0], [0], [1], [0, 0, 1, 1], [], []>} : vector<16x16xbf16>, vector<16x64xbf16>, vector<16x64xf32> -> vector<16x64xf32>
    %128 = arith.addf %99, %127 : vector<16x64xf32>
    %129 = vector.extract_strided_slice %31 {offsets = [0, 48], sizes = [16, 16], strides = [1, 1]} : vector<16x192xf32> to vector<16x16xf32>
    %130 = arith.truncf %129 : vector<16x16xf32> to vector<16x16xbf16>
    %131 = vector.shape_cast %130 : vector<16x16xbf16> to vector<1x16x16xbf16>
    %132 = vector.extract_strided_slice %31 {offsets = [0, 112], sizes = [16, 16], strides = [1, 1]} : vector<16x192xf32> to vector<16x16xf32>
    %133 = arith.truncf %132 : vector<16x16xf32> to vector<16x16xbf16>
    %134 = vector.shape_cast %133 : vector<16x16xbf16> to vector<1x16x16xbf16>
    %135 = vector.extract_strided_slice %31 {offsets = [0, 176], sizes = [16, 16], strides = [1, 1]} : vector<16x192xf32> to vector<16x16xf32>
    %136 = arith.truncf %135 : vector<16x16xf32> to vector<16x16xbf16>
    %137 = vector.shape_cast %136 : vector<16x16xbf16> to vector<1x16x16xbf16>
    "tpu.trace_start"() <{level = 10 : i32, message = "bqd,bkd->bqk"}> : () -> ()
    %cst_37 = arith.constant dense<0.000000e+00> : vector<1x16x16xf32>
    %138 = tpu.matmul %131, %134, %cst_37 {dimension_numbers = #tpu.dot_dimension_numbers<[2], [2], [1], [1], [0, 0, 0, 1, 1, 1], [0], [0]>} : vector<1x16x16xbf16>, vector<1x16x16xbf16>, vector<1x16x16xf32> -> vector<1x16x16xf32>
    "tpu.trace_stop"() : () -> ()
    %139 = vector.shape_cast %40 : vector<16x16xf32> to vector<1x16x16xf32>
    %140 = arith.addf %138, %139 : vector<1x16x16xf32>
    %cst_38 = arith.constant dense<0xFF800000> : vector<1x16xf32>
    %141 = vector.multi_reduction <maximumf>, %140, %cst_38 [2] : vector<1x16x16xf32> to vector<1x16xf32>
    %142 = vector.shape_cast %141 : vector<1x16xf32> to vector<1x16x1xf32>
    %143 = vector.broadcast %142 : vector<1x16x1xf32> to vector<1x16x16xf32>
    %144 = arith.subf %140, %143 : vector<1x16x16xf32>
    %145 = math.exp %144 : vector<1x16x16xf32>
    %cst_39 = arith.constant dense<0.000000e+00> : vector<1x16xf32>
    %146 = vector.multi_reduction <add>, %145, %cst_39 [2] : vector<1x16x16xf32> to vector<1x16xf32>
    %147 = vector.shape_cast %146 : vector<1x16xf32> to vector<1x16x1xf32>
    %148 = tpu.reciprocal %147 {approx = true} : vector<1x16x1xf32> -> vector<1x16x1xf32>
    %149 = vector.broadcast %148 : vector<1x16x1xf32> to vector<1x16x16xf32>
    %150 = arith.mulf %145, %149 : vector<1x16x16xf32>
    %151 = arith.truncf %150 : vector<1x16x16xf32> to vector<1x16x16xbf16>
    "tpu.trace_start"() <{level = 10 : i32, message = "bqk,bkd->bqd"}> : () -> ()
    %cst_40 = arith.constant dense<0.000000e+00> : vector<1x16x16xf32>
    %152 = tpu.matmul %151, %137, %cst_40 {dimension_numbers = #tpu.dot_dimension_numbers<[2], [1], [1], [2], [0, 0, 0, 1, 1, 2], [0], [0]>} : vector<1x16x16xbf16>, vector<1x16x16xbf16>, vector<1x16x16xf32> -> vector<1x16x16xf32>
    "tpu.trace_stop"() : () -> ()
    %153 = vector.shape_cast %152 : vector<1x16x16xf32> to vector<16x16xf32>
    %154 = arith.truncf %153 : vector<16x16xf32> to vector<16x16xbf16>
    %c48 = arith.constant 48 : index
    %c0_41 = arith.constant 0 : index
    %155 = vector.load %arg6[%c48, %c0_41] : memref<64x64xbf16, #tpu.memory_space<vmem>>, vector<16x64xbf16>
    %cst_42 = arith.constant dense<0.000000e+00> : vector<16x64xf32>
    %156 = tpu.matmul %154, %155, %cst_42 {dimension_numbers = #tpu.dot_dimension_numbers<[1], [0], [0], [1], [0, 0, 1, 1], [], []>} : vector<16x16xbf16>, vector<16x64xbf16>, vector<16x64xf32> -> vector<16x64xf32>
    %157 = arith.addf %128, %156 : vector<16x64xf32>
    %c0_43 = arith.constant 0 : index
    %c0_44 = arith.constant 0 : index
    %158 = vector.load %arg7[%c0_43, %c0_44] : memref<1x64xf32, #tpu.memory_space<vmem>>, vector<1x64xf32>
    %159 = vector.broadcast %158 : vector<1x64xf32> to vector<16x64xf32>
    %160 = arith.addf %157, %159 : vector<16x64xf32>
    %161 = arith.addf %160, %1 : vector<16x64xf32>
    %c0_45 = arith.constant 0 : index
    %c0_46 = arith.constant 0 : index
    %162 = vector.load %arg8[%c0_45, %c0_46] : memref<1x64xf32, #tpu.memory_space<vmem>>, vector<1x64xf32>
    %c0_47 = arith.constant 0 : index
    %c0_48 = arith.constant 0 : index
    %163 = vector.load %arg9[%c0_47, %c0_48] : memref<1x64xf32, #tpu.memory_space<vmem>>, vector<1x64xf32>
    %cst_49 = arith.constant dense<0.000000e+00> : vector<16xf32>
    %164 = vector.multi_reduction <add>, %161, %cst_49 [1] : vector<16x64xf32> to vector<16xf32>
    %165 = vector.shape_cast %164 : vector<16xf32> to vector<16x1xf32>
    %cst_50 = arith.constant 6.400000e+01 : f32
    %166 = vector.broadcast %cst_50 : f32 to vector<16x1xf32>
    %167 = arith.divf %165, %166 : vector<16x1xf32>
    %168 = vector.broadcast %167 : vector<16x1xf32> to vector<16x64xf32>
    %169 = arith.subf %161, %168 : vector<16x64xf32>
    %170 = arith.mulf %169, %169 : vector<16x64xf32>
    %cst_51 = arith.constant dense<0.000000e+00> : vector<16xf32>
    %171 = vector.multi_reduction <add>, %170, %cst_51 [1] : vector<16x64xf32> to vector<16xf32>
    %172 = vector.shape_cast %171 : vector<16xf32> to vector<16x1xf32>
    %cst_52 = arith.constant 6.400000e+01 : f32
    %173 = vector.broadcast %cst_52 : f32 to vector<16x1xf32>
    %174 = arith.divf %172, %173 : vector<16x1xf32>
    %175 = vector.broadcast %167 : vector<16x1xf32> to vector<16x64xf32>
    %176 = arith.subf %161, %175 : vector<16x64xf32>
    %cst_53 = arith.constant 9.99999974E-6 : f32
    %177 = vector.broadcast %cst_53 : f32 to vector<16x1xf32>
    %178 = arith.addf %174, %177 : vector<16x1xf32>
    %179 = math.rsqrt %178 : vector<16x1xf32>
    %180 = vector.broadcast %179 : vector<16x1xf32> to vector<16x64xf32>
    %181 = arith.mulf %176, %180 : vector<16x64xf32>
    %182 = vector.broadcast %162 : vector<1x64xf32> to vector<16x64xf32>
    %183 = arith.mulf %181, %182 : vector<16x64xf32>
    %184 = vector.broadcast %163 : vector<1x64xf32> to vector<16x64xf32>
    %185 = arith.addf %183, %184 : vector<16x64xf32>
    %186 = arith.truncf %185 : vector<16x64xf32> to vector<16x64xbf16>
    %c0_54 = arith.constant 0 : index
    %c0_55 = arith.constant 0 : index
    %187 = vector.load %arg11[%c0_54, %c0_55] : memref<1x256xf32, #tpu.memory_space<vmem>>, vector<1x256xf32>
    %cst_56 = arith.constant 0.000000e+00 : f32
    %188 = vector.broadcast %cst_56 : f32 to vector<16x64xf32>
    %c0_57 = arith.constant 0 : index
    %c0_58 = arith.constant 0 : index
    %189 = vector.load %arg10[%c0_57, %c0_58] : memref<64x256xbf16, #tpu.memory_space<vmem>>, vector<64x256xbf16>
    %cst_59 = arith.constant dense<0.000000e+00> : vector<16x256xf32>
    %190 = tpu.matmul %186, %189, %cst_59 {dimension_numbers = #tpu.dot_dimension_numbers<[1], [0], [0], [1], [0, 0, 1, 1], [], []>} : vector<16x64xbf16>, vector<64x256xbf16>, vector<16x256xf32> -> vector<16x256xf32>
    %191 = vector.broadcast %187 : vector<1x256xf32> to vector<16x256xf32>
    %192 = arith.addf %190, %191 : vector<16x256xf32>
    %cst_60 = arith.constant 1.702000e+00 : f32
    %193 = vector.broadcast %cst_60 : f32 to vector<16x256xf32>
    %194 = arith.mulf %193, %192 : vector<16x256xf32>
    %195 = arith.negf %194 : vector<16x256xf32>
    %196 = math.exp %195 : vector<16x256xf32>
    %cst_61 = arith.constant 1.000000e+00 : f32
    %197 = vector.broadcast %cst_61 : f32 to vector<16x256xf32>
    %198 = arith.addf %197, %196 : vector<16x256xf32>
    %199 = arith.divf %197, %198 : vector<16x256xf32>
    %200 = arith.mulf %192, %199 : vector<16x256xf32>
    %201 = arith.truncf %200 : vector<16x256xf32> to vector<16x256xbf16>
    %c0_62 = arith.constant 0 : index
    %c0_63 = arith.constant 0 : index
    %202 = vector.load %arg12[%c0_62, %c0_63] : memref<256x64xbf16, #tpu.memory_space<vmem>>, vector<256x64xbf16>
    %cst_64 = arith.constant dense<0.000000e+00> : vector<16x64xf32>
    %203 = tpu.matmul %201, %202, %cst_64 {dimension_numbers = #tpu.dot_dimension_numbers<[1], [0], [0], [1], [0, 0, 1, 1], [], []>} : vector<16x256xbf16>, vector<256x64xbf16>, vector<16x64xf32> -> vector<16x64xf32>
    %204 = arith.addf %188, %203 : vector<16x64xf32>
    %c0_65 = arith.constant 0 : index
    %c0_66 = arith.constant 0 : index
    %205 = vector.load %arg13[%c0_65, %c0_66] : memref<1x64xf32, #tpu.memory_space<vmem>>, vector<1x64xf32>
    %206 = vector.broadcast %205 : vector<1x64xf32> to vector<16x64xf32>
    %207 = arith.addf %204, %206 : vector<16x64xf32>
    %208 = arith.addf %207, %161 : vector<16x64xf32>
    %209 = vector.shape_cast %208 : vector<16x64xf32> to vector<1x16x64xf32>
    %c0_67 = arith.constant 0 : index
    %c0_68 = arith.constant 0 : index
    %c0_69 = arith.constant 0 : index
    %210 = vector.load %arg16[%c0_67, %c0_68, %c0_69] : memref<1x16x64xf32, #tpu.memory_space<vmem>>, vector<1x16x64xf32>
    tpu.vector_store %arg16[%c0_67, %c0_68, %c0_69], %209 {strides = array<i32>} : memref<1x16x64xf32, #tpu.memory_space<vmem>>, vector<1x16x64xf32>,
    return
  }
  func.func @transform_0(%arg0: i32) -> (i32, i32, i32) {
    %c0_i32 = arith.constant 0 : i32
    %c0_i32_0 = arith.constant 0 : i32
    %c0_i32_1 = arith.constant 0 : i32
    return %arg0, %c0_i32, %c0_i32_0 : i32, i32, i32
  }
  func.func @transform_1(%arg0: i32) -> (i32, i32) {
    %c0_i32 = arith.constant 0 : i32
    %c0_i32_0 = arith.constant 0 : i32
    %c0_i32_1 = arith.constant 0 : i32
    return %c0_i32, %c0_i32_0 : i32, i32
  }
  func.func @transform_2(%arg0: i32) -> (i32, i32) {
    %c0_i32 = arith.constant 0 : i32
    %c0_i32_0 = arith.constant 0 : i32
    %c0_i32_1 = arith.constant 0 : i32
    return %c0_i32, %c0_i32_0 : i32, i32
  }
  func.func @transform_3(%arg0: i32) -> (i32, i32) {
    %c0_i32 = arith.constant 0 : i32
    %c0_i32_0 = arith.constant 0 : i32
    %c0_i32_1 = arith.constant 0 : i32
    return %c0_i32, %c0_i32_0 : i32, i32
  }
  func.func @transform_4(%arg0: i32) -> (i32, i32) {
    %c0_i32 = arith.constant 0 : i32
    %c0_i32_0 = arith.constant 0 : i32
    %c0_i32_1 = arith.constant 0 : i32
    return %c0_i32, %c0_i32_0 : i32, i32
  }
  func.func @transform_5(%arg0: i32) -> (i32, i32) {
    %c0_i32 = arith.constant 0 : i32
    %c0_i32_0 = arith.constant 0 : i32
    %c0_i32_1 = arith.constant 0 : i32
    return %c0_i32, %c0_i32_0 : i32, i32
  }
  func.func @transform_6(%arg0: i32) -> (i32, i32) {
    %c0_i32 = arith.constant 0 : i32
    %c0_i32_0 = arith.constant 0 : i32
    %c0_i32_1 = arith.constant 0 : i32
    return %c0_i32, %c0_i32_0 : i32, i32
  }
  func.func @transform_7(%arg0: i32) -> (i32, i32) {
    %c0_i32 = arith.constant 0 : i32
    %c0_i32_0 = arith.constant 0 : i32
    %c0_i32_1 = arith.constant 0 : i32
    return %c0_i32, %c0_i32_0 : i32, i32
  }
  func.func @transform_8(%arg0: i32) -> (i32, i32) {
    %c0_i32 = arith.constant 0 : i32
    %c0_i32_0 = arith.constant 0 : i32
    %c0_i32_1 = arith.constant 0 : i32
    return %c0_i32, %c0_i32_0 : i32, i32
  }
  func.func @transform_9(%arg0: i32) -> (i32, i32) {
    %c0_i32 = arith.constant 0 : i32
    %c0_i32_0 = arith.constant 0 : i32
    %c0_i32_1 = arith.constant 0 : i32
    return %c0_i32, %c0_i32_0 : i32, i32
  }
  func.func @transform_10(%arg0: i32) -> (i32, i32) {
    %c0_i32 = arith.constant 0 : i32
    %c0_i32_0 = arith.constant 0 : i32
    %c0_i32_1 = arith.constant 0 : i32
    return %c0_i32, %c0_i32_0 : i32, i32
  }
  func.func @transform_11(%arg0: i32) -> (i32, i32) {
    %c0_i32 = arith.constant 0 : i32
    %c0_i32_0 = arith.constant 0 : i32
    %c0_i32_1 = arith.constant 0 : i32
    return %c0_i32, %c0_i32_0 : i32, i32
  }
  func.func @transform_12(%arg0: i32) -> (i32, i32) {
    %c0_i32 = arith.constant 0 : i32
    %c0_i32_0 = arith.constant 0 : i32
    %c0_i32_1 = arith.constant 0 : i32
    return %c0_i32, %c0_i32_0 : i32, i32
  }
  func.func @transform_13(%arg0: i32) -> (i32, i32) {
    %c0_i32 = arith.constant 0 : i32
    %c0_i32_0 = arith.constant 0 : i32
    %c0_i32_1 = arith.constant 0 : i32
    return %c0_i32, %c0_i32_0 : i32, i32
  }
  func.func @transform_14(%arg0: i32) -> (i32, i32) {
    %c0_i32 = arith.constant 0 : i32
    %c0_i32_0 = arith.constant 0 : i32
    %c0_i32_1 = arith.constant 0 : i32
    return %c0_i32, %c0_i32_0 : i32, i32
  }
  func.func @transform_15(%arg0: i32) -> (i32, i32, i32) {
    %c0_i32 = arith.constant 0 : i32
    %c0_i32_0 = arith.constant 0 : i32
    %c0_i32_1 = arith.constant 0 : i32
    return %arg0, %c0_i32, %c0_i32_0 : i32, i32, i32
  }
}

module attributes {stable_mosaic.version = 11 : i64} {
  func.func @clip_layer_kernel(%arg0: i32, %arg1: memref<1x16x64xf32, #tpu.memory_space<vmem>>, %arg2: memref<1x64xf32, #tpu.memory_space<vmem>>, %arg3: memref<1x64xf32, #tpu.memory_space<vmem>>, %arg4: memref<64x192xbf16, #tpu.memory_space<vmem>>, %arg5: memref<1x192xf32, #tpu.memory_space<vmem>>, %arg6: memref<64x64xbf16, #tpu.memory_space<vmem>>, %arg7: memref<1x64xf32, #tpu.memory_space<vmem>>, %arg8: memref<1x64xf32, #tpu.memory_space<vmem>>, %arg9: memref<1x64xf32, #tpu.memory_space<vmem>>, %arg10: memref<64x256xbf16, #tpu.memory_space<vmem>>, %arg11: memref<1x256xf32, #tpu.memory_space<vmem>>, %arg12: memref<256x64xbf16, #tpu.memory_space<vmem>>, %arg13: memref<1x64xf32, #tpu.memory_space<vmem>>, %arg14: memref<1x64xf32, #tpu.memory_space<vmem>>, %arg15: memref<1x64xf32, #tpu.memory_space<vmem>>, %arg16: memref<1x16x64xf32, #tpu.memory_space<vmem>>) attributes {dimension_semantics = [#tpu.dimension_semantics<parallel>], iteration_bounds = array<i64: 2>, scalar_prefetch = 0 : i64, scratch_operands = 0 : i64, tpu.core_type = #tpu.core_type<tc>, window_params = [{transform_indices = @transform_0, window_bounds = array<i64: 1, 16, 64>}, {pipeline_mode = #tpu.pipeline_mode<synchronous>, transform_indices = @transform_1, window_bounds = array<i64: 1, 64>}, {pipeline_mode = #tpu.pipeline_mode<synchronous>, transform_indices = @transform_2, window_bounds = array<i64: 1, 64>}, {pipeline_mode = #tpu.pipeline_mode<synchronous>, transform_indices = @transform_3, window_bounds = array<i64: 64, 192>}, {pipeline_mode = #tpu.pipeline_mode<synchronous>, transform_indices = @transform_4, window_bounds = array<i64: 1, 192>}, {pipeline_mode = #tpu.pipeline_mode<synchronous>, transform_indices = @transform_5, window_bounds = array<i64: 64, 64>}, {pipeline_mode = #tpu.pipeline_mode<synchronous>, transform_indices = @transform_6, window_bounds = array<i64: 1, 64>}, {pipeline_mode = #tpu.pipeline_mode<synchronous>, transform_indices = @transform_7, window_bounds = array<i64: 1, 64>}, {pipeline_mode = #tpu.pipeline_mode<synchronous>, transform_indices = @transform_8, window_bounds = array<i64: 1, 64>}, {pipeline_mode = #tpu.pipeline_mode<synchronous>, transform_indices = @transform_9, window_bounds = array<i64: 64, 256>}, {pipeline_mode = #tpu.pipeline_mode<synchronous>, transform_indices = @transform_10, window_bounds = array<i64: 1, 256>}, {pipeline_mode = #tpu.pipeline_mode<synchronous>, transform_indices = @transform_11, window_bounds = array<i64: 256, 64>}, {pipeline_mode = #tpu.pipeline_mode<synchronous>, transform_indices = @transform_12, window_bounds = array<i64: 1, 64>}, {pipeline_mode = #tpu.pipeline_mode<synchronous>, transform_indices = @transform_13, window_bounds = array<i64: 1, 64>}, {pipeline_mode = #tpu.pipeline_mode<synchronous>, transform_indices = @transform_14, window_bounds = array<i64: 1, 64>}, {transform_indices = @transform_15, window_bounds = array<i64: 1, 16, 64>}]} {
    %c0 = arith.constant 0 : index
    %c0_0 = arith.constant 0 : index
    %c0_1 = arith.constant 0 : index
    %0 = vector.load %arg1[%c0, %c0_0, %c0_1] : memref<1x16x64xf32, #tpu.memory_space<vmem>>, vector<1x16x64xf32>
    %1 = vector.shape_cast %0 : vector<1x16x64xf32> to vector<16x64xf32>
    %c0_2 = arith.constant 0 : index
    %c0_3 = arith.constant 0 : index
    %2 = vector.load %arg2[%c0_2, %c0_3] : memref<1x64xf32, #tpu.memory_space<vmem>>, vector<1x64xf32>
    %c0_4 = arith.constant 0 : index
    %c0_5 = arith.constant 0 : index
    %3 = vector.load %arg3[%c0_4, %c0_5] : memref<1x64xf32, #tpu.memory_space<vmem>>, vector<1x64xf32>
    %cst = arith.constant dense<0.000000e+00> : vector<16xf32>
    %4 = vector.multi_reduction <add>, %1, %cst [1] : vector<16x64xf32> to vector<16xf32>
    %5 = vector.shape_cast %4 : vector<16xf32> to vector<16x1xf32>
    %cst_6 = arith.constant 6.400000e+01 : f32
    %6 = vector.broadcast %cst_6 : f32 to vector<16x1xf32>
    %7 = arith.divf %5, %6 : vector<16x1xf32>
    %8 = vector.broadcast %7 : vector<16x1xf32> to vector<16x64xf32>
    %9 = arith.subf %1, %8 : vector<16x64xf32>
    %10 = arith.mulf %9, %9 : vector<16x64xf32>
    %cst_7 = arith.constant dense<0.000000e+00> : vector<16xf32>
    %11 = vector.multi_reduction <add>, %10, %cst_7 [1] : vector<16x64xf32> to vector<16xf32>
    %12 = vector.shape_cast %11 : vector<16xf32> to vector<16x1xf32>
    %cst_8 = arith.constant 6.400000e+01 : f32
    %13 = vector.broadcast %cst_8 : f32 to vector<16x1xf32>
    %14 = arith.divf %12, %13 : vector<16x1xf32>
    %15 = vector.broadcast %7 : vector<16x1xf32> to vector<16x64xf32>
    %16 = arith.subf %1, %15 : vector<16x64xf32>
    %cst_9 = arith.constant 9.99999974E-6 : f32
    %17 = vector.broadcast %cst_9 : f32 to vector<16x1xf32>
    %18 = arith.addf %14, %17 : vector<16x1xf32>
    %19 = math.rsqrt %18 : vector<16x1xf32>
    %20 = vector.broadcast %19 : vector<16x1xf32> to vector<16x64xf32>
    %21 = arith.mulf %16, %20 : vector<16x64xf32>
    %22 = vector.broadcast %2 : vector<1x64xf32> to vector<16x64xf32>
    %23 = arith.mulf %21, %22 : vector<16x64xf32>
    %24 = vector.broadcast %3 : vector<1x64xf32> to vector<16x64xf32>
    %25 = arith.addf %23, %24 : vector<16x64xf32>
    %26 = arith.truncf %25 : vector<16x64xf32> to vector<16x64xbf16>
    %c0_10 = arith.constant 0 : index
    %c0_11 = arith.constant 0 : index
    %27 = vector.load %arg4[%c0_10, %c0_11] : memref<64x192xbf16, #tpu.memory_space<vmem>>, vector<64x192xbf16>
    %cst_12 = arith.constant dense<0.000000e+00> : vector<16x192xf32>
    %28 = tpu.matmul %26, %27, %cst_12 {dimension_numbers = #tpu.dot_dimension_numbers<[1], [0], [0], [1], [0, 0, 1, 1], [], []>} : vector<16x64xbf16>, vector<64x192xbf16>, vector<16x192xf32> -> vector<16x192xf32>
    %c0_13 = arith.constant 0 : index
    %c0_14 = arith.constant 0 : index
    %29 = vector.load %arg5[%c0_13, %c0_14] : memref<1x192xf32, #tpu.memory_space<vmem>>, vector<1x192xf32>
    %30 = vector.broadcast %29 : vector<1x192xf32> to vector<16x192xf32>
    %31 = arith.addf %28, %30 : vector<16x192xf32>
    %32 = tpu.iota {dimensions = array<i32: 0>} : vector<16x16xi32>
    %33 = tpu.iota {dimensions = array<i32: 1>} : vector<16x16xi32>
    %34 = arith.cmpi sgt, %33, %32 : vector<16x16xi32>
    %c16_i32 = arith.constant 16 : i32
    %35 = vector.broadcast %c16_i32 : i32 to vector<16x16xi32>
    %36 = arith.cmpi sge, %33, %35 : vector<16x16xi32>
    %37 = arith.ori %34, %36 : vector<16x16xi1>
    %cst_15 = arith.constant -1.000000e+30 : f32
    %cst_16 = arith.constant 0.000000e+00 : f32
    %38 = vector.broadcast %cst_15 : f32 to vector<16x16xf32>
    %39 = vector.broadcast %cst_16 : f32 to vector<16x16xf32>
    %40 = arith.select %37, %38, %39 : vector<16x16xi1>, vector<16x16xf32>
    %cst_17 = arith.constant 0.000000e+00 : f32
    %41 = vector.broadcast %cst_17 : f32 to vector<16x64xf32>
    %42 = vector.extract_strided_slice %31 {offsets = [0, 0], sizes = [16, 16], strides = [1, 1]} : vector<16x192xf32> to vector<16x16xf32>
    %43 = arith.truncf %42 : vector<16x16xf32> to vector<16x16xbf16>
    %44 = vector.shape_cast %43 : vector<16x16xbf16> to vector<1x16x16xbf16>
    %45 = vector.extract_strided_slice %31 {offsets = [0, 64], sizes = [16, 16], strides = [1, 1]} : vector<16x192xf32> to vector<16x16xf32>
    %46 = arith.truncf %45 : vector<16x16xf32> to vector<16x16xbf16>
    %47 = vector.shape_cast %46 : vector<16x16xbf16> to vector<1x16x16xbf16>
    %48 = vector.extract_strided_slice %31 {offsets = [0, 128], sizes = [16, 16], strides = [1, 1]} : vector<16x192xf32> to vector<16x16xf32>
    %49 = arith.truncf %48 : vector<16x16xf32> to vector<16x16xbf16>
    %50 = vector.shape_cast %49 : vector<16x16xbf16> to vector<1x16x16xbf16>
    "tpu.trace_start"() <{level = 10 : i32, message = "bqd,bkd->bqk"}> : () -> ()
    %cst_18 = arith.constant dense<0.000000e+00> : vector<1x16x16xf32>
    %51 = tpu.matmul %44, %47, %cst_18 {dimension_numbers = #tpu.dot_dimension_numbers<[2], [2], [1], [1], [0, 0, 0, 1, 1, 1], [0], [0]>} : vector<1x16x16xbf16>, vector<1x16x16xbf16>, vector<1x16x16xf32> -> vector<1x16x16xf32>
    "tpu.trace_stop"() : () -> ()
    %52 = vector.shape_cast %40 : vector<16x16xf32> to vector<1x16x16xf32>
    %53 = arith.addf %51, %52 : vector<1x16x16xf32>
    %cst_19 = arith.constant dense<0xFF800000> : vector<1x16xf32>
    %54 = vector.multi_reduction <maximumf>, %53, %cst_19 [2] : vector<1x16x16xf32> to vector<1x16xf32>
    %55 = vector.shape_cast %54 : vector<1x16xf32> to vector<1x16x1xf32>
    %56 = vector.broadcast %55 : vector<1x16x1xf32> to vector<1x16x16xf32>
    %57 = arith.subf %53, %56 : vector<1x16x16xf32>
    %58 = math.exp %57 : vector<1x16x16xf32>
    %cst_20 = arith.constant dense<0.000000e+00> : vector<1x16xf32>
    %59 = vector.multi_reduction <add>, %58, %cst_20 [2] : vector<1x16x16xf32> to vector<1x16xf32>
    %60 = vector.shape_cast %59 : vector<1x16xf32> to vector<1x16x1xf32>
    %61 = tpu.reciprocal %60 {approx = true} : vector<1x16x1xf32> -> vector<1x16x1xf32>
    %62 = vector.broadcast %61 : vector<1x16x1xf32> to vector<1x16x16xf32>
    %63 = arith.mulf %58, %62 : vector<1x16x16xf32>
    %64 = arith.truncf %63 : vector<1x16x16xf32> to vector<1x16x16xbf16>
    "tpu.trace_start"() <{level = 10 : i32, message = "bqk,bkd->bqd"}> : () -> ()
    %cst_21 = arith.constant dense<0.000000e+00> : vector<1x16x16xf32>
    %65 = tpu.matmul %64, %50, %cst_21 {dimension_numbers = #tpu.dot_dimension_numbers<[2], [1], [1], [2], [0, 0, 0, 1, 1, 2], [0], [0]>} : vector<1x16x16xbf16>, vector<1x16x16xbf16>, vector<1x16x16xf32> -> vector<1x16x16xf32>
    "tpu.trace_stop"() : () -> ()
    %66 = vector.shape_cast %65 : vector<1x16x16xf32> to vector<16x16xf32>
    %67 = arith.truncf %66 : vector<16x16xf32> to vector<16x16xbf16>
    %c0_22 = arith.constant 0 : index
    %c0_23 = arith.constant 0 : index
    %68 = vector.load %arg6[%c0_22, %c0_23] : memref<64x64xbf16, #tpu.memory_space<vmem>>, vector<16x64xbf16>
    %cst_24 = arith.constant dense<0.000000e+00> : vector<16x64xf32>
    %69 = tpu.matmul %67, %68, %cst_24 {dimension_numbers = #tpu.dot_dimension_numbers<[1], [0], [0], [1], [0, 0, 1, 1], [], []>} : vector<16x16xbf16>, vector<16x64xbf16>, vector<16x64xf32> -> vector<16x64xf32>
    %70 = arith.addf %41, %69 : vector<16x64xf32>
    %71 = vector.extract_strided_slice %31 {offsets = [0, 16], sizes = [16, 16], strides = [1, 1]} : vector<16x192xf32> to vector<16x16xf32>
    %72 = arith.truncf %71 : vector<16x16xf32> to vector<16x16xbf16>
    %73 = vector.shape_cast %72 : vector<16x16xbf16> to vector<1x16x16xbf16>
    %74 = vector.extract_strided_slice %31 {offsets = [0, 80], sizes = [16, 16], strides = [1, 1]} : vector<16x192xf32> to vector<16x16xf32>
    %75 = arith.truncf %74 : vector<16x16xf32> to vector<16x16xbf16>
    %76 = vector.shape_cast %75 : vector<16x16xbf16> to vector<1x16x16xbf16>
    %77 = vector.extract_strided_slice %31 {offsets = [0, 144], sizes = [16, 16], strides = [1, 1]} : vector<16x192xf32> to vector<16x16xf32>
    %78 = arith.truncf %77 : vector<16x16xf32> to vector<16x16xbf16>
    %79 = vector.shape_cast %78 : vector<16x16xbf16> to vector<1x16x16xbf16>
    "tpu.trace_start"() <{level = 10 : i32, message = "bqd,bkd->bqk"}> : () -> ()
    %cst_25 = arith.constant dense<0.000000e+00> : vector<1x16x16xf32>
    %80 = tpu.matmul %73, %76, %cst_25 {dimension_numbers = #tpu.dot_dimension_numbers<[2], [2], [1], [1], [0, 0, 0, 1, 1, 1], [0], [0]>} : vector<1x16x16xbf16>, vector<1x16x16xbf16>, vector<1x16x16xf32> -> vector<1x16x16xf32>
    "tpu.trace_stop"() : () -> ()
    %81 = vector.shape_cast %40 : vector<16x16xf32> to vector<1x16x16xf32>
    %82 = arith.addf %80, %81 : vector<1x16x16xf32>
    %cst_26 = arith.constant dense<0xFF800000> : vector<1x16xf32>
    %83 = vector.multi_reduction <maximumf>, %82, %cst_26 [2] : vector<1x16x16xf32> to vector<1x16xf32>
    %84 = vector.shape_cast %83 : vector<1x16xf32> to vector<1x16x1xf32>
    %85 = vector.broadcast %84 : vector<1x16x1xf32> to vector<1x16x16xf32>
    %86 = arith.subf %82, %85 : vector<1x16x16xf32>
    %87 = math.exp %86 : vector<1x16x16xf32>
    %cst_27 = arith.constant dense<0.000000e+00> : vector<1x16xf32>
    %88 = vector.multi_reduction <add>, %87, %cst_27 [2] : vector<1x16x16xf32> to vector<1x16xf32>
    %89 = vector.shape_cast %88 : vector<1x16xf32> to vector<1x16x1xf32>
    %90 = tpu.reciprocal %89 {approx = true} : vector<1x16x1xf32> -> vector<1x16x1xf32>
    %91 = vector.broadcast %90 : vector<1x16x1xf32> to vector<1x16x16xf32>
    %92 = arith.mulf %87, %91 : vector<1x16x16xf32>
    %93 = arith.truncf %92 : vector<1x16x16xf32> to vector<1x16x16xbf16>
    "tpu.trace_start"() <{level = 10 : i32, message = "bqk,bkd->bqd"}> : () -> ()
    %cst_28 = arith.constant dense<0.000000e+00> : vector<1x16x16xf32>
    %94 = tpu.matmul %93, %79, %cst_28 {dimension_numbers = #tpu.dot_dimension_numbers<[2], [1], [1], [2], [0, 0, 0, 1, 1, 2], [0], [0]>} : vector<1x16x16xbf16>, vector<1x16x16xbf16>, vector<1x16x16xf32> -> vector<1x16x16xf32>
    "tpu.trace_stop"() : () -> ()
    %95 = vector.shape_cast %94 : vector<1x16x16xf32> to vector<16x16xf32>
    %96 = arith.truncf %95 : vector<16x16xf32> to vector<16x16xbf16>
    %c16 = arith.constant 16 : index
    %c0_29 = arith.constant 0 : index
    %97 = vector.load %arg6[%c16, %c0_29] : memref<64x64xbf16, #tpu.memory_space<vmem>>, vector<16x64xbf16>
    %cst_30 = arith.constant dense<0.000000e+00> : vector<16x64xf32>
    %98 = tpu.matmul %96, %97, %cst_30 {dimension_numbers = #tpu.dot_dimension_numbers<[1], [0], [0], [1], [0, 0, 1, 1], [], []>} : vector<16x16xbf16>, vector<16x64xbf16>, vector<16x64xf32> -> vector<16x64xf32>
    %99 = arith.addf %70, %98 : vector<16x64xf32>
    %100 = vector.extract_strided_slice %31 {offsets = [0, 32], sizes = [16, 16], strides = [1, 1]} : vector<16x192xf32> to vector<16x16xf32>
    %101 = arith.truncf %100 : vector<16x16xf32> to vector<16x16xbf16>
    %102 = vector.shape_cast %101 : vector<16x16xbf16> to vector<1x16x16xbf16>
    %103 = vector.extract_strided_slice %31 {offsets = [0, 96], sizes = [16, 16], strides = [1, 1]} : vector<16x192xf32> to vector<16x16xf32>
    %104 = arith.truncf %103 : vector<16x16xf32> to vector<16x16xbf16>
    %105 = vector.shape_cast %104 : vector<16x16xbf16> to vector<1x16x16xbf16>
    %106 = vector.extract_strided_slice %31 {offsets = [0, 160], sizes = [16, 16], strides = [1, 1]} : vector<16x192xf32> to vector<16x16xf32>
    %107 = arith.truncf %106 : vector<16x16xf32> to vector<16x16xbf16>
    %108 = vector.shape_cast %107 : vector<16x16xbf16> to vector<1x16x16xbf16>
    "tpu.trace_start"() <{level = 10 : i32, message = "bqd,bkd->bqk"}> : () -> ()
    %cst_31 = arith.constant dense<0.000000e+00> : vector<1x16x16xf32>
    %109 = tpu.matmul %102, %105, %cst_31 {dimension_numbers = #tpu.dot_dimension_numbers<[2], [2], [1], [1], [0, 0, 0, 1, 1, 1], [0], [0]>} : vector<1x16x16xbf16>, vector<1x16x16xbf16>, vector<1x16x16xf32> -> vector<1x16x16xf32>
    "tpu.trace_stop"() : () -> ()
    %110 = vector.shape_cast %40 : vector<16x16xf32> to vector<1x16x16xf32>
    %111 = arith.addf %109, %110 : vector<1x16x16xf32>
    %cst_32 = arith.constant dense<0xFF800000> : vector<1x16xf32>
    %112 = vector.multi_reduction <maximumf>, %111, %cst_32 [2] : vector<1x16x16xf32> to vector<1x16xf32>
    %113 = vector.shape_cast %112 : vector<1x16xf32> to vector<1x16x1xf32>
    %114 = vector.broadcast %113 : vector<1x16x1xf32> to vector<1x16x16xf32>
    %115 = arith.subf %111, %114 : vector<1x16x16xf32>
    %116 = math.exp %115 : vector<1x16x16xf32>
    %cst_33 = arith.constant dense<0.000000e+00> : vector<1x16xf32>
    %117 = vector.multi_reduction <add>, %116, %cst_33 [2] : vector<1x16x16xf32> to vector<1x16xf32>
    %118 = vector.shape_cast %117 : vector<1x16xf32> to vector<1x16x1xf32>
    %119 = tpu.reciprocal %118 {approx = true} : vector<1x16x1xf32> -> vector<1x16x1xf32>
    %120 = vector.broadcast %119 : vector<1x16x1xf32> to vector<1x16x16xf32>
    %121 = arith.mulf %116, %120 : vector<1x16x16xf32>
    %122 = arith.truncf %121 : vector<1x16x16xf32> to vector<1x16x16xbf16>
    "tpu.trace_start"() <{level = 10 : i32, message = "bqk,bkd->bqd"}> : () -> ()
    %cst_34 = arith.constant dense<0.000000e+00> : vector<1x16x16xf32>
    %123 = tpu.matmul %122, %108, %cst_34 {dimension_numbers = #tpu.dot_dimension_numbers<[2], [1], [1], [2], [0, 0, 0, 1, 1, 2], [0], [0]>} : vector<1x16x16xbf16>, vector<1x16x16xbf16>, vector<1x16x16xf32> -> vector<1x16x16xf32>
    "tpu.trace_stop"() : () -> ()
    %124 = vector.shape_cast %123 : vector<1x16x16xf32> to vector<16x16xf32>
    %125 = arith.truncf %124 : vector<16x16xf32> to vector<16x16xbf16>
    %c32 = arith.constant 32 : index
    %c0_35 = arith.constant 0 : index
    %126 = vector.load %arg6[%c32, %c0_35] : memref<64x64xbf16, #tpu.memory_space<vmem>>, vector<16x64xbf16>
    %cst_36 = arith.constant dense<0.000000e+00> : vector<16x64xf32>
    %127 = tpu.matmul %125, %126, %cst_36 {dimension_numbers = #tpu.dot_dimension_numbers<[1], [0], [0], [1], [0, 0, 1, 1], [], []>} : vector<16x16xbf16>, vector<16x64xbf16>, vector<16x64xf32> -> vector<16x64xf32>
    %128 = arith.addf %99, %127 : vector<16x64xf32>
    %129 = vector.extract_strided_slice %31 {offsets = [0, 48], sizes = [16, 16], strides = [1, 1]} : vector<16x192xf32> to vector<16x16xf32>
    %130 = arith.truncf %129 : vector<16x16xf32> to vector<16x16xbf16>
    %131 = vector.shape_cast %130 : vector<16x16xbf16> to vector<1x16x16xbf16>
    %132 = vector.extract_strided_slice %31 {offsets = [0, 112], sizes = [16, 16], strides = [1, 1]} : vector<16x192xf32> to vector<16x16xf32>
    %133 = arith.truncf %132 : vector<16x16xf32> to vector<16x16xbf16>
    %134 = vector.shape_cast %133 : vector<16x16xbf16> to vector<1x16x16xbf16>
    %135 = vector.extract_strided_slice %31 {offsets = [0, 176], sizes = [16, 16], strides = [1, 1]} : vector<16x192xf32> to vector<16x16xf32>
    %136 = arith.truncf %135 : vector<16x16xf32> to vector<16x16xbf16>
    %137 = vector.shape_cast %136 : vector<16x16xbf16> to vector<1x16x16xbf16>
    "tpu.trace_start"() <{level = 10 : i32, message = "bqd,bkd->bqk"}> : () -> ()
    %cst_37 = arith.constant dense<0.000000e+00> : vector<1x16x16xf32>
    %138 = tpu.matmul %131, %134, %cst_37 {dimension_numbers = #tpu.dot_dimension_numbers<[2], [2], [1], [1], [0, 0, 0, 1, 1, 1], [0], [0]>} : vector<1x16x16xbf16>, vector<1x16x16xbf16>, vector<1x16x16xf32> -> vector<1x16x16xf32>
    "tpu.trace_stop"() : () -> ()
    %139 = vector.shape_cast %40 : vector<16x16xf32> to vector<1x16x16xf32>
    %140 = arith.addf %138, %139 : vector<1x16x16xf32>
    %cst_38 = arith.constant dense<0xFF800000> : vector<1x16xf32>
    %141 = vector.multi_reduction <maximumf>, %140, %cst_38 [2] : vector<1x16x16xf32> to vector<1x16xf32>
    %142 = vector.shape_cast %141 : vector<1x16xf32> to vector<1x16x1xf32>
    %143 = vector.broadcast %142 : vector<1x16x1xf32> to vector<1x16x16xf32>
    %144 = arith.subf %140, %143 : vector<1x16x16xf32>
    %145 = math.exp %144 : vector<1x16x16xf32>
    %cst_39 = arith.constant dense<0.000000e+00> : vector<1x16xf32>
    %146 = vector.multi_reduction <add>, %145, %cst_39 [2] : vector<1x16x16xf32> to vector<1x16xf32>
    %147 = vector.shape_cast %146 : vector<1x16xf32> to vector<1x16x1xf32>
    %148 = tpu.reciprocal %147 {approx = true} : vector<1x16x1xf32> -> vector<1x16x1xf32>
    %149 = vector.broadcast %148 : vector<1x16x1xf32> to vector<1x16x16xf32>
    %150 = arith.mulf %145, %149 : vector<1x16x16xf32>
    %151 = arith.truncf %150 : vector<1x16x16xf32> to vector<1x16x16xbf16>
    "tpu.trace_start"() <{level = 10 : i32, message = "bqk,bkd->bqd"}> : () -> ()
    %cst_40 = arith.constant dense<0.000000e+00> : vector<1x16x16xf32>
    %152 = tpu.matmul %151, %137, %cst_40 {dimension_numbers = #tpu.dot_dimension_numbers<[2], [1], [1], [2], [0, 0, 0, 1, 1, 2], [0], [0]>} : vector<1x16x16xbf16>, vector<1x16x16xbf16>, vector<1x16x16xf32> -> vector<1x16x16xf32>
    "tpu.trace_stop"() : () -> ()
    %153 = vector.shape_cast %152 : vector<1x16x16xf32> to vector<16x16xf32>
    %154 = arith.truncf %153 : vector<16x16xf32> to vector<16x16xbf16>
    %c48 = arith.constant 48 : index
    %c0_41 = arith.constant 0 : index
    %155 = vector.load %arg6[%c48, %c0_41] : memref<64x64xbf16, #tpu.memory_space<vmem>>, vector<16x64xbf16>
    %cst_42 = arith.constant dense<0.000000e+00> : vector<16x64xf32>
    %156 = tpu.matmul %154, %155, %cst_42 {dimension_numbers = #tpu.dot_dimension_numbers<[1], [0], [0], [1], [0, 0, 1, 1], [], []>} : vector<16x16xbf16>, vector<16x64xbf16>, vector<16x64xf32> -> vector<16x64xf32>
    %157 = arith.addf %128, %156 : vector<16x64xf32>
    %c0_43 = arith.constant 0 : index
    %c0_44 = arith.constant 0 : index
    %158 = vector.load %arg7[%c0_43, %c0_44] : memref<1x64xf32, #tpu.memory_space<vmem>>, vector<1x64xf32>
    %159 = vector.broadcast %158 : vector<1x64xf32> to vector<16x64xf32>
    %160 = arith.addf %157, %159 : vector<16x64xf32>
    %161 = arith.addf %160, %1 : vector<16x64xf32>
    %c0_45 = arith.constant 0 : index
    %c0_46 = arith.constant 0 : index
    %162 = vector.load %arg8[%c0_45, %c0_46] : memref<1x64xf32, #tpu.memory_space<vmem>>, vector<1x64xf32>
    %c0_47 = arith.constant 0 : index
    %c0_48 = arith.constant 0 : index
    %163 = vector.load %arg9[%c0_47, %c0_48] : memref<1x64xf32, #tpu.memory_space<vmem>>, vector<1x64xf32>
    %cst_49 = arith.constant dense<0.000000e+00> : vector<16xf32>
    %164 = vector.multi_reduction <add>, %161, %cst_49 [1] : vector<16x64xf32> to vector<16xf32>
    %165 = vector.shape_cast %164 : vector<16xf32> to vector<16x1xf32>
    %cst_50 = arith.constant 6.400000e+01 : f32
    %166 = vector.broadcast %cst_50 : f32 to vector<16x1xf32>
    %167 = arith.divf %165, %166 : vector<16x1xf32>
    %168 = vector.broadcast %167 : vector<16x1xf32> to vector<16x64xf32>
    %169 = arith.subf %161, %168 : vector<16x64xf32>
    %170 = arith.mulf %169, %169 : vector<16x64xf32>
    %cst_51 = arith.constant dense<0.000000e+00> : vector<16xf32>
    %171 = vector.multi_reduction <add>, %170, %cst_51 [1] : vector<16x64xf32> to vector<16xf32>
    %172 = vector.shape_cast %171 : vector<16xf32> to vector<16x1xf32>
    %cst_52 = arith.constant 6.400000e+01 : f32
    %173 = vector.broadcast %cst_52 : f32 to vector<16x1xf32>
    %174 = arith.divf %172, %173 : vector<16x1xf32>
    %175 = vector.broadcast %167 : vector<16x1xf32> to vector<16x64xf32>
    %176 = arith.subf %161, %175 : vector<16x64xf32>
    %cst_53 = arith.constant 9.99999974E-6 : f32
    %177 = vector.broadcast %cst_53 : f32 to vector<16x1xf32>
    %178 = arith.addf %174, %177 : vector<16x1xf32>
    %179 = math.rsqrt %178 : vector<16x1xf32>
    %180 = vector.broadcast %179 : vector<16x1xf32> to vector<16x64xf32>
    %181 = arith.mulf %176, %180 : vector<16x64xf32>
    %182 = vector.broadcast %162 : vector<1x64xf32> to vector<16x64xf32>
    %183 = arith.mulf %181, %182 : vector<16x64xf32>
    %184 = vector.broadcast %163 : vector<1x64xf32> to vector<16x64xf32>
    %185 = arith.addf %183, %184 : vector<16x64xf32>
    %186 = arith.truncf %185 : vector<16x64xf32> to vector<16x64xbf16>
    %c0_54 = arith.constant 0 : index
    %c0_55 = arith.constant 0 : index
    %187 = vector.load %arg11[%c0_54, %c0_55] : memref<1x256xf32, #tpu.memory_space<vmem>>, vector<1x256xf32>
    %cst_56 = arith.constant 0.000000e+00 : f32
    %188 = vector.broadcast %cst_56 : f32 to vector<16x64xf32>
    %c0_57 = arith.constant 0 : index
    %c0_58 = arith.constant 0 : index
    %189 = vector.load %arg10[%c0_57, %c0_58] : memref<64x256xbf16, #tpu.memory_space<vmem>>, vector<64x256xbf16>
    %cst_59 = arith.constant dense<0.000000e+00> : vector<16x256xf32>
    %190 = tpu.matmul %186, %189, %cst_59 {dimension_numbers = #tpu.dot_dimension_numbers<[1], [0], [0], [1], [0, 0, 1, 1], [], []>} : vector<16x64xbf16>, vector<64x256xbf16>, vector<16x256xf32> -> vector<16x256xf32>
    %191 = vector.broadcast %187 : vector<1x256xf32> to vector<16x256xf32>
    %192 = arith.addf %190, %191 : vector<16x256xf32>
    %cst_60 = arith.constant 1.702000e+00 : f32
    %193 = vector.broadcast %cst_60 : f32 to vector<16x256xf32>
    %194 = arith.mulf %193, %192 : vector<16x256xf32>
    %195 = arith.negf %194 : vector<16x256xf32>
    %196 = math.exp %195 : vector<16x256xf32>
    %cst_61 = arith.constant 1.000000e+00 : f32
    %197 = vector.broadcast %cst_61 : f32 to vector<16x256xf32>
    %198 = arith.addf %197, %196 : vector<16x256xf32>
    %199 = arith.divf %197, %198 : vector<16x256xf32>
    %200 = arith.mulf %192, %199 : vector<16x256xf32>
    %201 = arith.truncf %200 : vector<16x256xf32> to vector<16x256xbf16>
    %c0_62 = arith.constant 0 : index
    %c0_63 = arith.constant 0 : index
    %202 = vector.load %arg12[%c0_62, %c0_63] : memref<256x64xbf16, #tpu.memory_space<vmem>>, vector<256x64xbf16>
    %cst_64 = arith.constant dense<0.000000e+00> : vector<16x64xf32>
    %203 = tpu.matmul %201, %202, %cst_64 {dimension_numbers = #tpu.dot_dimension_numbers<[1], [0], [0], [1], [0, 0, 1, 1], [], []>} : vector<16x256xbf16>, vector<256x64xbf16>, vector<16x64xf32> -> vector<16x64xf32>
    %204 = arith.addf %188, %203 : vector<16x64xf32>
    %c0_65 = arith.constant 0 : index
    %c0_66 = arith.constant 0 : index
    %205 = vector.load %arg13[%c0_65, %c0_66] : memref<1x64xf32, #tpu.memory_space<vmem>>, vector<1x64xf32>
    %206 = vector.broadcast %205 : vector<1x64xf32> to vector<16x64xf32>
    %207 = arith.addf %204, %206 : vector<16x64xf32>
    %208 = arith.addf %207, %161 : vector<16x64xf32>
    %c0_67 = arith.constant 0 : index
    %c0_68 = arith.constant 0 : index
    %209 = vector.load %arg14[%c0_67, %c0_68] : memref<1x64xf32, #tpu.memory_space<vmem>>, vector<1x64xf32>
    %c0_69 = arith.constant 0 : index
    %c0_70 = arith.constant 0 : index
    %210 = vector.load %arg15[%c0_69, %c0_70] : memref<1x64xf32, #tpu.memory_space<vmem>>, vector<1x64xf32>
    %cst_71 = arith.constant dense<0.000000e+00> : vector<16xf32>
    %211 = vector.multi_reduction <add>, %208, %cst_71 [1] : vector<16x64xf32> to vector<16xf32>
    %212 = vector.shape_cast %211 : vector<16xf32> to vector<16x1xf32>
    %cst_72 = arith.constant 6.400000e+01 : f32
    %213 = vector.broadcast %cst_72 : f32 to vector<16x1xf32>
    %214 = arith.divf %212, %213 : vector<16x1xf32>
    %215 = vector.broadcast %214 : vector<16x1xf32> to vector<16x64xf32>
    %216 = arith.subf %208, %215 : vector<16x64xf32>
    %217 = arith.mulf %216, %216 : vector<16x64xf32>
    %cst_73 = arith.constant dense<0.000000e+00> : vector<16xf32>
    %218 = vector.multi_reduction <add>, %217, %cst_73 [1] : vector<16x64xf32> to vector<16xf32>
    %219 = vector.shape_cast %218 : vector<16xf32> to vector<16x1xf32>
    %cst_74 = arith.constant 6.400000e+01 : f32
    %220 = vector.broadcast %cst_74 : f32 to vector<16x1xf32>
    %221 = arith.divf %219, %220 : vector<16x1xf32>
    %222 = vector.broadcast %214 : vector<16x1xf32> to vector<16x64xf32>
    %223 = arith.subf %208, %222 : vector<16x64xf32>
    %cst_75 = arith.constant 9.99999974E-6 : f32
    %224 = vector.broadcast %cst_75 : f32 to vector<16x1xf32>
    %225 = arith.addf %221, %224 : vector<16x1xf32>
    %226 = math.rsqrt %225 : vector<16x1xf32>
    %227 = vector.broadcast %226 : vector<16x1xf32> to vector<16x64xf32>
    %228 = arith.mulf %223, %227 : vector<16x64xf32>
    %229 = vector.broadcast %209 : vector<1x64xf32> to vector<16x64xf32>
    %230 = arith.mulf %228, %229 : vector<16x64xf32>
    %231 = vector.broadcast %210 : vector<1x64xf32> to vector<16x64xf32>
    %232 = arith.addf %230, %231 : vector<16x64xf32>
    %233 = vector.shape_cast %232 : vector<16x64xf32> to vector<1x16x64xf32>
    %c0_76 = arith.constant 0 : index
    %c0_77 = arith.constant 0 : index
    %c0_78 = arith.constant 0 : index
    %234 = vector.load %arg16[%c0_76, %c0_77, %c0_78] : memref<1x16x64xf32, #tpu.memory_space<vmem>>, vector<1x16x64xf32>
    tpu.vector_store %arg16[%c0_76, %c0_77, %c0_78], %233 {strides = array<i32>} : memref<1x16x64xf32, #tpu.memory_space<vmem>>, vector<1x16x64xf32>,
    return
  }
  func.func @transform_0(%arg0: i32) -> (i32, i32, i32) {
    %c0_i32 = arith.constant 0 : i32
    %c0_i32_0 = arith.constant 0 : i32
    %c0_i32_1 = arith.constant 0 : i32
    return %arg0, %c0_i32, %c0_i32_0 : i32, i32, i32
  }
  func.func @transform_1(%arg0: i32) -> (i32, i32) {
    %c0_i32 = arith.constant 0 : i32
    %c0_i32_0 = arith.constant 0 : i32
    %c0_i32_1 = arith.constant 0 : i32
    return %c0_i32, %c0_i32_0 : i32, i32
  }
  func.func @transform_2(%arg0: i32) -> (i32, i32) {
    %c0_i32 = arith.constant 0 : i32
    %c0_i32_0 = arith.constant 0 : i32
    %c0_i32_1 = arith.constant 0 : i32
    return %c0_i32, %c0_i32_0 : i32, i32
  }
  func.func @transform_3(%arg0: i32) -> (i32, i32) {
    %c0_i32 = arith.constant 0 : i32
    %c0_i32_0 = arith.constant 0 : i32
    %c0_i32_1 = arith.constant 0 : i32
    return %c0_i32, %c0_i32_0 : i32, i32
  }
  func.func @transform_4(%arg0: i32) -> (i32, i32) {
    %c0_i32 = arith.constant 0 : i32
    %c0_i32_0 = arith.constant 0 : i32
    %c0_i32_1 = arith.constant 0 : i32
    return %c0_i32, %c0_i32_0 : i32, i32
  }
  func.func @transform_5(%arg0: i32) -> (i32, i32) {
    %c0_i32 = arith.constant 0 : i32
    %c0_i32_0 = arith.constant 0 : i32
    %c0_i32_1 = arith.constant 0 : i32
    return %c0_i32, %c0_i32_0 : i32, i32
  }
  func.func @transform_6(%arg0: i32) -> (i32, i32) {
    %c0_i32 = arith.constant 0 : i32
    %c0_i32_0 = arith.constant 0 : i32
    %c0_i32_1 = arith.constant 0 : i32
    return %c0_i32, %c0_i32_0 : i32, i32
  }
  func.func @transform_7(%arg0: i32) -> (i32, i32) {
    %c0_i32 = arith.constant 0 : i32
    %c0_i32_0 = arith.constant 0 : i32
    %c0_i32_1 = arith.constant 0 : i32
    return %c0_i32, %c0_i32_0 : i32, i32
  }
  func.func @transform_8(%arg0: i32) -> (i32, i32) {
    %c0_i32 = arith.constant 0 : i32
    %c0_i32_0 = arith.constant 0 : i32
    %c0_i32_1 = arith.constant 0 : i32
    return %c0_i32, %c0_i32_0 : i32, i32
  }
  func.func @transform_9(%arg0: i32) -> (i32, i32) {
    %c0_i32 = arith.constant 0 : i32
    %c0_i32_0 = arith.constant 0 : i32
    %c0_i32_1 = arith.constant 0 : i32
    return %c0_i32, %c0_i32_0 : i32, i32
  }
  func.func @transform_10(%arg0: i32) -> (i32, i32) {
    %c0_i32 = arith.constant 0 : i32
    %c0_i32_0 = arith.constant 0 : i32
    %c0_i32_1 = arith.constant 0 : i32
    return %c0_i32, %c0_i32_0 : i32, i32
  }
  func.func @transform_11(%arg0: i32) -> (i32, i32) {
    %c0_i32 = arith.constant 0 : i32
    %c0_i32_0 = arith.constant 0 : i32
    %c0_i32_1 = arith.constant 0 : i32
    return %c0_i32, %c0_i32_0 : i32, i32
  }
  func.func @transform_12(%arg0: i32) -> (i32, i32) {
    %c0_i32 = arith.constant 0 : i32
    %c0_i32_0 = arith.constant 0 : i32
    %c0_i32_1 = arith.constant 0 : i32
    return %c0_i32, %c0_i32_0 : i32, i32
  }
  func.func @transform_13(%arg0: i32) -> (i32, i32) {
    %c0_i32 = arith.constant 0 : i32
    %c0_i32_0 = arith.constant 0 : i32
    %c0_i32_1 = arith.constant 0 : i32
    return %c0_i32, %c0_i32_0 : i32, i32
  }
  func.func @transform_14(%arg0: i32) -> (i32, i32) {
    %c0_i32 = arith.constant 0 : i32
    %c0_i32_0 = arith.constant 0 : i32
    %c0_i32_1 = arith.constant 0 : i32
    return %c0_i32, %c0_i32_0 : i32, i32
  }
  func.func @transform_15(%arg0: i32) -> (i32, i32, i32) {
    %c0_i32 = arith.constant 0 : i32
    %c0_i32_0 = arith.constant 0 : i32
    %c0_i32_1 = arith.constant 0 : i32
    return %arg0, %c0_i32, %c0_i32_0 : i32, i32, i32
  }
}

</mosaic_0001>

<bundles_post_ra>
// kernel: clip_forward.3
= control target key start
LH: loop header
LB: loop body
LE: loop exit
PB: predicated region body
PF: predicated region fallthrough
CT: control target
= control target key end

     0   :  { %s2526_s0 = inlined_call_operand.vmem [shape: f32[2,16,64], index: 0, kind: input, shape index: {}]   ;;  %s2527_s1 = inlined_call_operand.vmem [shape: f32[1,64], index: 1, kind: input, shape index: {}]   ;;  %s2528_s2 = inlined_call_operand.vmem [shape: f32[1,64], index: 2, kind: input, shape index: {}]   ;;  %s2529_s3 = inlined_call_operand.vmem [shape: bf16[64,192], index: 3, kind: input, shape index: {}]   ;;  %s2530_s4 = inlined_call_operand.vmem [shape: f32[1,192], index: 4, kind: input, shape index: {}]   ;;  %s2531_s5 = inlined_call_operand.vmem [shape: bf16[64,64], index: 5, kind: input, shape index: {}]   ;;  %s2532_s6 = inlined_call_operand.vmem [shape: f32[1,64], index: 6, kind: input, shape index: {}]   ;;  %s2533_s7 = inlined_call_operand.vmem [shape: f32[1,64], index: 7, kind: input, shape index: {}]   ;;  %s2534_s8 = inlined_call_operand.vmem [shape: f32[1,64], index: 8, kind: input, shape index: {}]   ;;  %s2535_s9 = inlined_call_operand.vmem [shape: bf16[64,256], index: 9, kind: input, shape index: {}]   ;;  %s2536_s10 = inlined_call_operand.vmem [shape: f32[1,256], index: 10, kind: input, shape index: {}]   ;;  %s2537_s11 = inlined_call_operand.vmem [shape: bf16[256,64], index: 11, kind: input, shape index: {}]   ;;  %s2538_s12 = inlined_call_operand.vmem [shape: f32[1,64], index: 12, kind: input, shape index: {}]   ;;  %s2539_s13 = inlined_call_operand.vmem [shape: f32[1,64], index: 13, kind: input, shape index: {}]   ;;  %s2540_s14 = inlined_call_operand.vmem [shape: f32[1,64], index: 14, kind: input, shape index: {}]   ;;  %s2541_s15 = inlined_call_operand.hbm [shape: f32[2,16,64], index: 15, kind: output, shape index: {}]  }
   0x1   :  { %2545 = sst [smem:[#allocation8_spill]] %s2526_s0 }
   0x2   :  { %2546 = sst [smem:[#allocation9_spill]] %s2527_s1 }
   0x3   :  { %20 = vsyncpa [#allocation3], 0 }
   0x4   :  { %22 = vsyncpa [#allocation3 + $0x1], 0  ;;  %s2092_s18 = smov 0   ;;  %s2094_s19 = smov 0  }
   0x5   :  { %s2096_s20 = smov 0   ;;  %s2098_s21 = smov 0  }
   0x6 LB: > { %2547 = sst [smem:[#allocation5_spill]] %s1995_s20  ;;  %s2113_s22 = sadd.s32 4294967295, %s1999_s21   ;;  %s1999_s21 = sphi %s2098_s21, %s2558_s21   ;;  %s1995_s20 = sphi %s2096_s20, %s2560_s20   ;;  %s1991_s19 = sphi %s2094_s19, %s2562_s19   ;;  %s1987_s18 = sphi %s2092_s18, %s2561_s18  }
   0x7   : > { %s1603_s23 = sadd.s32 4294967294, %s1999_s21   ;;  %s2117_s24 = sadd.s32 1, %s1999_s21  }
   0x8   : > { %2548 = sst [smem:[#allocation6_spill]] %s2117_s24  ;;  %s355_s25 = sadd.s32 1, %s1995_s20 }
   0x9   : > { %s352_s26 = ssub.s32 %s1999_s21, %s2117_s24  ;;  %p365_p0 = scmp.ne.s32.totalorder %s1995_s20, %s1991_s19 }
   0xa   : > { %p353_p1 = scmp.eq.s32.totalorder %s352_s26, 0  ;;  %p366_p2 = scmp.eq.s32.totalorder %s2113_s22, 1 }
   0xb   : > { %p371_p3 = scmp.ne.s32.totalorder %s1991_s19, %s1987_s18  ;;  %p372_p4 = scmp.eq.s32.totalorder %s1603_s23, 1 }
   0xc   : > { %s2128_s27 = scalar_select %p353_p1, %s1995_s20, %s355_s25  }
   0xd   : > { %p2130_p5 = por %p366_p2, %p365_p0  ;;  %p2134_p6 = por %p372_p4, %p371_p3 }
   0xe   : > { %2549 = sst [smem:[#allocation7_spill]] %s2128_s27  ;;  %p1606_p7 = scmp.ge.s32.totalorder %s1999_s21, 1 }
   0xf   : > { %p440_p8 = scmp.lt.s32.totalorder %s1999_s21, 3 }
  0x11   : > { %p441_p9 = pnand %p1606_p7, %p440_p8 }
  0x12   : > { %p488_p10 = scmp.lt.s32.totalorder (!%p441_p9), %s2113_s22, 1  ;;  %s2552_s0 = sld [smem:[#allocation8_spill]] (!%p441_p9) }
  0x13   : > { %444 = sbr.rel (%p441_p9) target bundleno = 2655 (0xa5f), region = 80  ;;  %s2553_s1 = sld [smem:[#allocation9_spill]] (!%p441_p9) }
  0x14   : > { %s2002_s20 = smov (!%p441_p9), 64   ;;  %s2004_s24 = smov (!%p441_p9), 16  }
  0x15   : > { %s2005_s26 = smov (!%p441_p9), 48   ;;  %s2008_s17 = smov (!%p441_p9), 96  }
  0x16   : > { %s2009_s23 = smov (!%p441_p9), 80   ;;  %s485_s27 = sand.u32 (!%p441_p9), 1, %s1991_s19  }
  0x18   : > { %s489_s30 = scalar_select %p488_p10, %s2113_s22, 1  ;;  %vm498_vm0 = vcmask 523264   ;;  %v2001_v4 = vmov 64.0   ;;  %v1636_v21 = vld [vmem:[%s2529_s3 + $0x30] sm:$0xf]  ;;  %vm669_vm8 = vcmask 130048  }
  0x19   : > { %1875 = vrcp.f32 %v2001_v4  ;;  %v1787_v22 = vld [vmem:[%s2529_s3 + $0x34] sm:$0xf0]  ;;  %v1786_v23 = vld [vmem:[%s2529_s3 + $0x34] sm:$0xf]  ;;  %v1638_v25 = vld [vmem:[%s2529_s3 + $0x38] sm:$0xf0] }
  0x1a   : > { %s1779_s16 = sshll.u32 %s489_s30, 4  ;;  %v1637_v24 = vor.u32 %v1787_v22, %v1636_v21  ;;  %v1641_v26 = vor.u32 %v1786_v23, %v1638_v25  ;;  %v1628_v27 = vld [vmem:[%s2529_s3 + $0x20] sm:$0xf]  ;;  %v1785_v28 = vld [vmem:[%s2529_s3 + $0x24] sm:$0xf0]  ;;  %s2006_s30 = smov 112  }
  0x1b   : > { %s492_s25 = scalar_lea.vmem %s2552_s0, %s1779_s16  ;;  %v1784_v29 = vld [vmem:[%s2529_s3 + $0x24] sm:$0xf]  ;;  %v1629_v30 = vor.u32 %v1785_v28, %v1628_v27  ;;  %v1630_v31 = vld [vmem:[%s2529_s3 + $0x28] sm:$0xf0]  ;;  %v1620_v33 = vld [vmem:[%s2529_s3 + $0x10] sm:$0xf] }
  0x1c   : > { %v2145_v0 = vld [vmem:[%s492_s25] sm:$0xff]  ;;  %v2149_v2 = vld [vmem:[%s492_s25 + $0x8] sm:$0xff]  ;;  %622 = vmatpush.bf16.msra.mxu0 %v1637_v24  ;;  %636 = vmatpush.bf16.msra.mxu1 %v1641_v26  ;;  %v1633_v32 = vor.u32 %v1784_v29, %v1630_v31  ;;  %v1783_v34 = vld [vmem:[%s2529_s3 + $0x14] sm:$0xf0]  ;;  %s2007_s16 = smov 32   ;;  %s1957_s25 = scalar_lea.hbm %s2541_s15, 32 }
  0x1d   : > { %v499_v1 = vsel %vm498_vm0, %v2145_v0, 0.0  ;;  %v502_v3 = vsel %vm498_vm0, %v2149_v2, 0.0  ;;  %v1782_v35 = vld [vmem:[%s2529_s3 + $0x14] sm:$0xf]  ;;  %v1621_v36 = vor.u32 %v1783_v34, %v1620_v33  ;;  %v1622_v37 = vld [vmem:[%s2529_s3 + $0x18] sm:$0xf0] }
  0x1e   : > { %500 = vadd.xlane.f32.xlu0 %v499_v1  ;;  %v1625_v38 = vor.u32 %v1782_v35, %v1622_v37  ;;  %v1612_v39 = vld [vmem:[%s2529_s3] sm:$0xf]  ;;  %v1781_v40 = vld [vmem:[%s2529_s3 + $0x4] sm:$0xf0]  ;;  %v1780_v41 = vld [vmem:[%s2529_s3 + $0x4] sm:$0xf] }
  0x1f   : > { %v1876_v5 = vpop.eup %1875  ;;  %v1613_v43 = vor.u32 %v1781_v40, %v1612_v39  ;;  %v1614_v44 = vld [vmem:[%s2529_s3 + $0x8] sm:$0xf0]  ;;  %v1867_v1 = vld [vmem:[%s2553_s1] ss:$0 sm:$0xff]  ;;  %v2003_v40 = vmov 0.0  }
  0x20   : > { %v506_v6 = vmul.f32 64.0, %v1876_v5  ;;  %vm510_vm1 = vweird.f32 %v1876_v5  ;;  %623 = vmatpush.bf16.msra.mxu0 %v1629_v30  ;;  %637 = vmatpush.bf16.msra.mxu1 %v1633_v32  ;;  %v1617_v46 = vor.u32 %v1780_v41, %v1614_v44 }
  0x22   : > { %v507_v7 = vsub.f32 1.0, %v506_v6 }
  0x24   : > { %v508_v8 = vmul.f32 %v1876_v5, %v507_v7  ;;  %624 = vmatpush.bf16.msra.mxu0 %v1621_v36  ;;  %638 = vmatpush.bf16.msra.mxu1 %v1625_v38  ;;  %v1868_v7 = vld [vmem:[%s2528_s2] ss:$0 sm:$0xff]  ;;  %v646_v36 = vlaneseq }
  0x26   : > { %503 = vadd.xlane.f32.xlu0 %v502_v3  ;;  %v509_v9 = vadd.f32 %v1876_v5, %v508_v8  ;;  %v647_v37 = vshrl.u32 %v646_v36, 7  ;;  %v650_v38 = vand.u32 127, %v646_v36 }
  0x28   : > { %v2153_v10 = vsel %vm510_vm1, %v1876_v5, %v509_v9  ;;  %625 = vmatpush.bf16.msra.mxu0 %v1613_v43  ;;  %639 = vmatpush.bf16.msra.mxu1 %v1617_v46  ;;  %vm651_vm9 = vcmp.gt.s32.totalorder %v650_v38, %v647_v37  ;;  %vm653_vm10 = vcmp.ge.s32.totalorder %v650_v38, 16  ;;  %v648_v39 = vadd.s32 8, %v647_v37 }
  0x29   : > { %vm654_vm11 = vmor %vm651_vm9, %vm653_vm10 }
  0x2a   : > { %v2237_v41 = vsel %vm654_vm11, -1e+30, %v2003_v40  ;;  %vm652_vm12 = vcmp.gt.s32.totalorder %v650_v38, %v648_v39 }
  0x2b   : > { %vm655_vm13 = vmor %vm652_vm12, %vm653_vm10 }
  0x91   : > { %v501_v11 = vpop.xlane.xlu0 %500 }
  0x92   : > { %v512_v12 = vmul.f32 %v2153_v10, %v501_v11 }
  0x94   : > { %v2157_v13 = vsub.f32 %v2145_v0, %v512_v12 }
  0x96   : > { %v516_v14 = vmul.f32 %v2157_v13, %v2157_v13 }
  0x98   : > { %v518_v15 = vsel %vm498_vm0, %v516_v14, 0.0 }
  0x99   : > { %519 = vadd.xlane.f32.xlu1 %v518_v15  ;;  %v504_v16 = vpop.xlane.xlu0 %503 }
  0x9a   : > { %v513_v17 = vmul.f32 %v2153_v10, %v504_v16 }
  0x9c   : > { %v2164_v18 = vsub.f32 %v2149_v2, %v513_v17 }
  0x9e   : > { %v517_v19 = vmul.f32 %v2164_v18, %v2164_v18 }
  0xa0   : > { %v521_v20 = vsel %vm498_vm0, %v517_v19, 0.0 }
  0xa1   : > { %522 = vadd.xlane.f32.xlu1 %v521_v20 }
 0x10c   : > { %v520_v42 = vpop.xlane.xlu1 %519 }
 0x10d   : > { %v524_v45 = vmul.f32 %v520_v42, %v2153_v10 }
 0x10f   : > { %v526_v47 = vadd.f32 1e-05, %v524_v45  ;;  %v2241_v45 = vsel %vm655_vm13, -1e+30, %v2003_v40 }
 0x111   : > { %1877 = vrsqrt.f32 %v526_v47  ;;  %vm534_vm3 = vweird.f32 %v526_v47 }
 0x114   : > { %v523_v48 = vpop.xlane.xlu1 %522 }
 0x115   : > { %v525_v49 = vmul.f32 %v523_v48, %v2153_v10 }
 0x117   : > { %v1878_v50 = vpop.eup %1877  ;;  %v527_v51 = vadd.f32 1e-05, %v525_v49 }
 0x118   : > { %v529_v52 = vmul.f32 %v1878_v50, %v526_v47  ;;  %vm535_vm2 = vweird.f32 %v1878_v50 }
 0x119   : > { %1879 = vrsqrt.f32 %v527_v51  ;;  %vm536_vm4 = vmor %vm534_vm3, %vm535_vm2  ;;  %vm544_vm6 = vweird.f32 %v527_v51 }
 0x11a   : > { %v530_v53 = vmul.f32 %v1878_v50, %v529_v52 }
 0x11c   : > { %v531_v54 = vmul.f32 0.5, %v530_v53 }
 0x11e   : > { %v532_v55 = vsub.f32 1.5, %v531_v54 }
 0x11f   : > { %v1880_v56 = vpop.eup %1879 }
 0x120   : > { %v533_v57 = vmul.f32 %v1878_v50, %v532_v55  ;;  %v539_v58 = vmul.f32 %v1880_v56, %v527_v51  ;;  %vm545_vm5 = vweird.f32 %v1880_v56 }
 0x121   : > { %vm546_vm7 = vmor %vm544_vm6, %vm545_vm5 }
 0x122   : > { %v540_v59 = vmul.f32 %v1880_v56, %v539_v58  ;;  %v537_v60 = vsel %vm536_vm4, %v1878_v50, %v533_v57 }
 0x123   : > { %v548_v63 = vmul.f32 %v537_v60, %v2157_v13  ;;  %v569_v13 = vld [vmem:[%s2530_s4] sm:$0x3] }
 0x124   : > { %v541_v61 = vmul.f32 0.5, %v540_v59  ;;  %v571_v16 = vperm.slane %v569_v13, 0  ;;  %v572_v17 = vperm.slane %v569_v13, 1  ;;  %v1788_v59 = vld [vmem:[%s2531_s5] sm:$0xff] }
 0x125   : > { %v553_v6 = vmul.f32 %v1867_v1, %v548_v63 }
 0x126   : > { %v542_v62 = vsub.f32 1.5, %v541_v61 }
 0x127   : > { %v558_v9 = vadd.f32 %v1868_v7, %v553_v6 }
 0x128   : > { %v543_v3 = vmul.f32 %v1880_v56, %v542_v62 }
 0x12a   : > { %v547_v4 = vsel %vm546_vm7, %v1880_v56, %v543_v3 }
 0x12b   : > { %v549_v5 = vmul.f32 %v547_v4, %v2164_v18 }
 0x12d   : > { %v554_v8 = vmul.f32 %v1867_v1, %v549_v5 }
 0x12f   : > { %v559_v11 = vadd.f32 %v1868_v7, %v554_v8 }
 0x131   : > { %v560_v12 = vpack.c.bf16 %v559_v11, %v558_v9 }
 0x133   : > { %1642 = vmatmul.msk.bf16.vlgmr.msra.gmra.mxu0 %vm498_vm0, %v560_v12  ;;  %1643 = vmatmul.msk.bf16.vlgmr.msra.gmra.mxu1 %vm498_vm0, %v560_v12 }
 0x1b0   : > { %v627_v14 = vpop.f32.mrf.mxu0  ;;  %v641_v15 = vpop.f32.mrf.mxu1 }
 0x1b1   : > { %v628_v18 = vadd.f32 %v627_v14, %v571_v16  ;;  %v642_v19 = vadd.f32 %v641_v15, %v572_v17 }
 0x1b3   : > { %v658_v22 = vpack.c.bf16 %v628_v18, %v628_v18  ;;  %v660_v23 = vpack.c.bf16 %v642_v19, %v642_v19 }
 0x1b5   : > { %v664_v28 = vunpack.c.l.b16 %v658_v22  ;;  %v721_v29 = vunpack.c.l.b16 %v660_v23 }
 0x1b8   : > { %v629_v20 = vpop.f32.mrf.mxu0  ;;  %v643_v21 = vpop.f32.mrf.mxu1 }
 0x1b9   : > { %v630_v24 = vadd.f32 %v629_v20, %v571_v16  ;;  %v644_v25 = vadd.f32 %v643_v21, %v572_v17 }
 0x1bb   : > { %v659_v26 = vpack.c.bf16 %v630_v24, %v630_v24  ;;  %v661_v27 = vpack.c.bf16 %v644_v25, %v644_v25 }
 0x1bd   : > { %v665_v30 = vunpack.c.l.b16 %v659_v26  ;;  %v722_v31 = vunpack.c.l.b16 %v661_v27 }
 0x1bf   : > { %v666_v32 = vpack.c.b16 %v665_v30, %v664_v28  ;;  %v2232_v33 = vpack.c.b16 %v722_v31, %v721_v29 }
 0x1c1   : > { %735 = vmatpush.bf16.msrb.mxu1 %v2232_v33  ;;  %667 = vrot.lane.b32.xlu2 %v666_v32, %s2002_s20 }
 0x1c5   : > { %860 = vmatpush.bf16.msra.mxu1 %v1788_v59 }
 0x21b   : > { %v668_v34 = vpop.permute.xlu2 %667 }
 0x21c   : > { %v674_v35 = vsel %vm669_vm8, %v668_v34, 0 }
 0x21d   : > { %683 = vmatpush.bf16.xpose.msrb.mxu0 %v674_v35 }
 0x224   : > { %1644 = vmatmul.msk.bf16.vlgmr.msrb.gmra.mxu0 %vm669_vm8, %v666_v32 }
 0x2a1   : > { %v685_v42 = vpop.f32.mrf.mxu0 }
 0x2a2   : > { %v686_v43 = vadd.f32 %v685_v42, %v2237_v41 }
 0x2a4   : > { %v690_v44 = vsel %vm669_vm8, %v686_v43, -inf }
 0x2a5   : > { %691 = vmax.xlane.f32.xlu2 %v690_v44 }
 0x2a9   : > { %v687_v46 = vpop.f32.mrf.mxu0 }
 0x2aa   : > { %v688_v47 = vadd.f32 %v687_v46, %v2241_v45 }
 0x2ac   : > { %v693_v48 = vsel %vm669_vm8, %v688_v47, -inf }
 0x2ad   : > { %694 = vmax.xlane.f32.xlu0 %v693_v48 }
 0x2bd   : > { %970 = vrot.lane.b32.xlu2 %v666_v32, %s2004_s24 }
 0x318   : > { %v692_v49 = vpop.xlane.xlu2 %691 }
 0x319   : > { %v696_v50 = vsub.f32 %v686_v43, %v692_v49 }
 0x31b   : > { %v698_v51 = vmul.f32 1.442695, %v696_v50 }
 0x31d   : > { %1881 = vpow2.f32 %v698_v51 }
 0x320   : > { %v695_v52 = vpop.xlane.xlu0 %694  ;;  %v971_v8 = vpop.permute.xlu2 %970 }
 0x321   : > { %v697_v53 = vsub.f32 %v688_v47, %v695_v52  ;;  %v976_v11 = vsel %vm669_vm8, %v971_v8, 0 }
 0x323   : > { %v1882_v54 = vpop.eup %1881  ;;  %v700_v55 = vmul.f32 1.442695, %v697_v53 }
 0x324   : > { %v702_v56 = vsel %vm669_vm8, %v1882_v54, 0.0 }
 0x325   : > { %1883 = vpow2.f32 %v700_v55  ;;  %703 = vadd.xlane.f32.xlu1 %v702_v56 }
 0x32b   : > { %v1884_v57 = vpop.eup %1883 }
 0x32c   : > { %v705_v58 = vsel %vm669_vm8, %v1884_v57, 0.0 }
 0x32d   : > { %706 = vadd.xlane.f32.xlu0 %v705_v58 }
 0x33e   : > { %747 = vrot.lane.b32.xlu1 %v666_v32, %s2005_s26 }
 0x341   : > { %745 = vrot.lane.b32.xlu0 %v666_v32, %s2006_s30 }
 0x346   : > { %869 = vrot.lane.b32.xlu1 %v666_v32, %s2007_s16  ;;  %s1607_s16 = sshll.u32 %s485_s27, 4 }
 0x347   : > { %s487_s20 = scalar_lea.vmem [#allocation2], %s1607_s16 }
 0x348   : > { %s1538_s24 = sshll.u32 %s487_s20, 4  ;;  %s1539_s24 = int_to_ptr.vmem [resolvable:$true] %s1538_s24 }
 0x349   : > { %867 = vrot.lane.b32.xlu0 %v666_v32, %s2008_s17 }
 0x34e   : > { %968 = vrot.lane.b32.xlu1 %v666_v32, %s2009_s23 }
 0x398   : > { %v704_v60 = vpop.xlane.xlu1 %703 }
 0x399   : > { %1885 = vrcp.f32 %v704_v60 }
 0x39f   : > { %v1886_v62 = vpop.eup %1885 }
 0x3a0   : > { %v707_v61 = vpop.xlane.xlu0 %706  ;;  %v710_v63 = vmul.f32 %v1886_v62, %v1882_v54 }
 0x3a1   : > { %1887 = vrcp.f32 %v707_v61 }
 0x3a2   : > { %v712_v3 = vpack.c.bf16 %v710_v63, %v710_v63 }
 0x3a4   : > { %v716_v6 = vunpack.c.l.b16 %v712_v3 }
 0x3a7   : > { %v1888_v1 = vpop.eup %1887 }
 0x3a8   : > { %v711_v4 = vmul.f32 %v1888_v1, %v1884_v57 }
 0x3aa   : > { %v713_v5 = vpack.c.bf16 %v711_v4, %v711_v4 }
 0x3ac   : > { %v717_v7 = vunpack.c.l.b16 %v713_v5 }
 0x3ae   : > { %v718_v9 = vpack.c.b16 %v717_v7, %v716_v6 }
 0x3b0   : > { %1645 = vmatmul.msk.bf16.vlgmr.msrb.gmra.mxu1 %vm669_vm8, %v718_v9  ;;  %v748_v12 = vpop.permute.xlu1 %747 }
 0x3b1   : > { %985 = vmatpush.bf16.xpose.msrb.mxu1 %v976_v11  ;;  %v753_v13 = vsel %vm669_vm8, %v748_v12, 0 }
 0x3b2   : > { %762 = vmatpush.bf16.xpose.msra.mxu3 %v753_v13 }
 0x3b3   : > { %v746_v14 = vpop.permute.xlu0 %745 }
 0x3b8   : > { %v870_v15 = vpop.permute.xlu1 %869 }
 0x3b9   : > { %1646 = vmatmul.msk.bf16.vlgmr.msra.gmra.mxu3 %vm669_vm8, %v746_v14  ;;  %v875_v16 = vsel %vm669_vm8, %v870_v15, 0 }
 0x3ba   : > { %884 = vmatpush.bf16.xpose.msrb.mxu3 %v875_v16 }
 0x3bb   : > { %v868_v17 = vpop.permute.xlu0 %867 }
 0x3c0   : > { %v969_v26 = vpop.permute.xlu1 %968 }
 0x3c9   : > { %1658 = vmatmul.msk.bf16.vlgmr.msrb.gmra.mxu3 %vm669_vm8, %v868_v17 }
 0x42d   : > { %v737_v18 = vpop.f32.mrf.mxu1 }
 0x435   : > { %v739_v19 = vpop.f32.mrf.mxu1 }
 0x436   : > { %v742_v20 = vpack.c.bf16 %v739_v19, %v737_v18 }
 0x438   : > { %1657 = vmatmul.msk.bf16.vlgmr.msra.gmra.mxu1 %vm669_vm8, %v742_v20 }
 0x43c   : > { %v764_v21 = vpop.f32.mrf.mxu3 }
 0x43d   : > { %v765_v22 = vadd.f32 %v764_v21, %v2237_v41 }
 0x43f   : > { %v769_v23 = vsel %vm669_vm8, %v765_v22, -inf }
 0x440   : > { %770 = vmax.xlane.f32.xlu0 %v769_v23 }
 0x444   : > { %v766_v24 = vpop.f32.mrf.mxu3 }
 0x445   : > { %v767_v25 = vadd.f32 %v766_v24, %v2241_v45 }
 0x447   : > { %v772_v27 = vsel %vm669_vm8, %v767_v25, -inf }
 0x448   : > { %773 = vmax.xlane.f32.xlu1 %v772_v27  ;;  %1665 = vmatmul.msk.bf16.vlgmr.msrb.gmra.mxu1 %vm669_vm8, %v969_v26 }
 0x44c   : > { %v886_v28 = vpop.f32.mrf.mxu3 }
 0x44d   : > { %v887_v29 = vadd.f32 %v886_v28, %v2237_v41 }
 0x44f   : > { %v891_v30 = vsel %vm669_vm8, %v887_v29, -inf }
 0x450   : > { %892 = vmax.xlane.f32.xlu1 %v891_v30 }
 0x454   : > { %v888_v54 = vpop.f32.mrf.mxu3 }
 0x455   : > { %v889_v55 = vadd.f32 %v888_v54, %v2241_v45 }
 0x457   : > { %v894_v56 = vsel %vm669_vm8, %v889_v55, -inf }
 0x4b3   : > { %v771_v34 = vpop.xlane.xlu0 %770 }
 0x4b4   : > { %v775_v38 = vsub.f32 %v765_v22, %v771_v34 }
 0x4b5   : > { %v2267_v31 = vpop.f32.mrf.mxu1 }
 0x4b6   : > { %v777_v39 = vmul.f32 1.442695, %v775_v38 }
 0x4bb   : > { %v774_v32 = vpop.xlane.xlu1 %773 }
 0x4bc   : > { %v776_v35 = vsub.f32 %v767_v25, %v774_v32  ;;  %v1789_v25 = vld [vmem:[%s2531_s5 + $0x8] sm:$0xff] }
 0x4bd   : > { %v2269_v36 = vpop.f32.mrf.mxu1  ;;  %837 = vmatpush.bf16.msra.mxu0 %v1789_v25 }
 0x4be   : > { %v779_v37 = vmul.f32 1.442695, %v776_v35 }
 0x4c0   : > { %1889 = vpow2.f32 %v779_v37 }
 0x4c1   : > { %1891 = vpow2.f32 %v777_v39 }
 0x4c3   : > { %v893_v47 = vpop.xlane.xlu1 %892 }
 0x4c4   : > { %v897_v51 = vsub.f32 %v887_v29, %v893_v47 }
 0x4c5   : > { %v987_v40 = vpop.f32.mrf.mxu1 }
 0x4c6   : > { %v1890_v42 = vpop.eup %1889  ;;  %v988_v43 = vadd.f32 %v987_v40, %v2237_v41  ;;  %v899_v41 = vmul.f32 1.442695, %v897_v51 }
 0x4c7   : > { %v784_v44 = vsel %vm669_vm8, %v1890_v42, 0.0  ;;  %v1892_v48 = vpop.eup %1891 }
 0x4c8   : > { %785 = vadd.xlane.f32.xlu1 %v784_v44  ;;  %v992_v46 = vsel %vm669_vm8, %v988_v43, -inf  ;;  %v781_v53 = vsel %vm669_vm8, %v1892_v48, 0.0  ;;  %1893 = vpow2.f32 %v899_v41 }
 0x4c9   : > { %993 = vmax.xlane.f32.xlu2 %v992_v46 }
 0x4cd   : > { %v989_v49 = vpop.f32.mrf.mxu1 }
 0x4ce   : > { %v990_v50 = vadd.f32 %v989_v49, %v2241_v45  ;;  %v1894_v57 = vpop.eup %1893 }
 0x4cf   : > { %v903_v58 = vsel %vm669_vm8, %v1894_v57, 0.0 }
 0x4d0   : > { %v995_v52 = vsel %vm669_vm8, %v990_v50, -inf }
 0x4d1   : > { %996 = vmax.xlane.f32.xlu0 %v995_v52  ;;  %782 = vadd.xlane.f32.xlu2 %v781_v53 }
 0x4d9   : > { %895 = vmax.xlane.f32.xlu0 %v894_v56  ;;  %v1791_v56 = vld [vmem:[%s2531_s5 + $0x18] sm:$0xff] }
 0x4e1   : > { %798 = vrot.lane.b32.xlu1 %v2232_v33, %s2006_s30  ;;  %904 = vadd.xlane.f32.xlu0 %v903_v58 }
 0x53b   : > { %v786_v61 = vpop.xlane.xlu1 %785 }
 0x53c   : > { %v994_v59 = vpop.xlane.xlu2 %993 }
 0x53d   : > { %v998_v60 = vsub.f32 %v988_v43, %v994_v59 }
 0x53f   : > { %v1000_v62 = vmul.f32 1.442695, %v998_v60 }
 0x541   : > { %1895 = vpow2.f32 %v1000_v62 }
 0x542   : > { %1897 = vrcp.f32 %v786_v61 }
 0x544   : > { %v997_v63 = vpop.xlane.xlu0 %996  ;;  %v783_v1 = vpop.xlane.xlu2 %782 }
 0x545   : > { %1899 = vrcp.f32 %v783_v1  ;;  %v999_v12 = vsub.f32 %v990_v50, %v997_v63 }
 0x547   : > { %v1896_v45 = vpop.eup %1895  ;;  %v1002_v16 = vmul.f32 1.442695, %v999_v12 }
 0x548   : > { %v1898_v3 = vpop.eup %1897  ;;  %v1004_v4 = vsel %vm669_vm8, %v1896_v45, 0.0 }
 0x549   : > { %1005 = vadd.xlane.f32.xlu0 %v1004_v4  ;;  %v790_v6 = vmul.f32 %v1898_v3, %v1890_v42 }
 0x54b   : > { %v1900_v5 = vpop.eup %1899  ;;  %v792_v14 = vpack.c.bf16 %v790_v6, %v790_v6 }
 0x54c   : > { %v896_v7 = vpop.xlane.xlu0 %895  ;;  %v789_v8 = vmul.f32 %v1900_v5, %v1892_v48  ;;  %v1869_v5 = vld [vmem:[%s2532_s6] ss:$0 sm:$0xff] }
 0x54d   : > { %v898_v9 = vsub.f32 %v889_v55, %v896_v7  ;;  %v796_v18 = vunpack.c.l.b16 %v792_v14  ;;  %v1790_v55 = vld [vmem:[%s2531_s5 + $0x10] sm:$0xff] }
 0x54e   : > { %v791_v11 = vpack.c.bf16 %v789_v8, %v789_v8  ;;  %959 = vmatpush.bf16.msrb.mxu0 %v1790_v55 }
 0x54f   : > { %v901_v13 = vmul.f32 1.442695, %v898_v9 }
 0x550   : > { %v795_v15 = vunpack.c.l.b16 %v791_v11 }
 0x551   : > { %1901 = vpow2.f32 %v901_v13 }
 0x552   : > { %v797_v19 = vpack.c.b16 %v796_v18, %v795_v15  ;;  %1903 = vpow2.f32 %v1002_v16 }
 0x553   : > { %v799_v17 = vpop.permute.xlu1 %798 }
 0x554   : > { %811 = vmatpush.bf16.msra.mxu2 %v799_v17  ;;  %v905_v24 = vpop.xlane.xlu0 %904 }
 0x555   : > { %1905 = vrcp.f32 %v905_v24 }
 0x557   : > { %v1902_v20 = vpop.eup %1901  ;;  %1647 = vmatmul.msk.bf16.vlgmr.msra.gmra.mxu2 %vm669_vm8, %v797_v19 }
 0x558   : > { %v906_v21 = vsel %vm669_vm8, %v1902_v20, 0.0  ;;  %v1904_v22 = vpop.eup %1903 }
 0x559   : > { %907 = vadd.xlane.f32.xlu2 %v906_v21  ;;  %v1007_v23 = vsel %vm669_vm8, %v1904_v22, 0.0 }
 0x55b   : > { %v1906_v29 = vpop.eup %1905 }
 0x55c   : > { %v911_v32 = vmul.f32 %v1906_v29, %v1894_v57 }
 0x55d   : > { %1021 = vrot.lane.b32.xlu0 %v2232_v33, %s2009_s23 }
 0x55e   : > { %v913_v38 = vpack.c.bf16 %v911_v32, %v911_v32 }
 0x560   : > { %v917_v44 = vunpack.c.l.b16 %v913_v38  ;;  %v1692_v38 = vld [vmem:[%s2535_s9 + $0x28] sm:$0xf0] }
 0x561   : > { %1008 = vadd.xlane.f32.xlu2 %v1007_v23 }
 0x579   : > { %920 = vrot.lane.b32.xlu2 %v2232_v33, %s2008_s17  ;;  %s1816_s17 = sshll.u32 %s2113_s22, 4  ;;  %s1526_s22 = scalar_lea.sflag [#allocation3], %s485_s27 }
 0x57a   : > { %s1537_s0 = scalar_lea.hbm %s2541_s15, %s1816_s17 }
 0x57b   : > { %s1540_s26 = sshll.u32 %s1537_s0, 4  ;;  %s1541_s26 = int_to_ptr.hbm [resolvable:$true] %s1540_s26 }
 0x57c   : > { %s1951_s30 = sshra.s32 %s1541_s26, 4  ;;  %s1952_s30 = int_to_ptr.hbm [resolvable:$true] %s1951_s30 }
 0x57d   : > { %s1953_s23 = scalar_lea.hbm %s1952_s30, 16  ;;  %p1958_p0 = scmp.lt.s32.totalorder %s1952_s30, %s2541_s15 }
 0x57e   : > { %p1954_p11 = scmp.ne.s32.totalorder %s1952_s30, %s1953_s23  ;;  %p1959_p1 = scmp.lt.s32.totalorder %s1957_s25, %s1953_s23 }
 0x580   : > { %p1955_p12 = pnand %p1954_p11, %p2130_p5  ;;  %p1960_p2 = por %p1959_p1, %p1958_p0 }
 0x582   : > { %p1956_p13 = pneg %p1955_p12 }
 0x584   : > { %p1961_p3 = pnand %p1960_p2, %p1956_p13 }
 0x5bc   : > { %v1006_v26 = vpop.xlane.xlu0 %1005 }
 0x5cc   : > { %v908_v27 = vpop.xlane.xlu2 %907 }
 0x5cd   : > { %1907 = vrcp.f32 %v908_v27  ;;  %v1799_v27 = vld [vmem:[%s2535_s9 + $0x34] sm:$0xf0] }
 0x5ce   : > { %1909 = vrcp.f32 %v1006_v26  ;;  %v1698_v26 = vld [vmem:[%s2535_s9 + $0x30] sm:$0xf] }
 0x5cf   : > { %v1022_v28 = vpop.permute.xlu0 %1021  ;;  %v1699_v29 = vor.u32 %v1799_v27, %v1698_v26  ;;  %v1812_v26 = vld [vmem:[%s2537_s11 + $0x60] sm:$0xff] }
 0x5d0   : > { %1034 = vmatpush.bf16.msra.mxu3 %v1022_v28  ;;  %v1798_v28 = vld [vmem:[%s2535_s9 + $0x34] sm:$0xf] }
 0x5d3   : > { %v1908_v30 = vpop.eup %1907 }
 0x5d4   : > { %v912_v34 = vmul.f32 %v1908_v30, %v1902_v20  ;;  %v1009_v35 = vpop.xlane.xlu2 %1008  ;;  %v1910_v37 = vpop.eup %1909  ;;  %v1700_v30 = vld [vmem:[%s2535_s9 + $0x38] sm:$0xf0] }
 0x5d5   : > { %1911 = vrcp.f32 %v1009_v35  ;;  %v1012_v39 = vmul.f32 %v1910_v37, %v1896_v45  ;;  %v1703_v32 = vor.u32 %v1798_v28, %v1700_v30  ;;  %v1797_v35 = vld [vmem:[%s2535_s9 + $0x24] sm:$0xf0]  ;;  %v1796_v37 = vld [vmem:[%s2535_s9 + $0x24] sm:$0xf] }
 0x5d6   : > { %v914_v33 = vpack.c.bf16 %v912_v34, %v912_v34  ;;  %v1690_v34 = vld [vmem:[%s2535_s9 + $0x20] sm:$0xf] }
 0x5d7   : > { %v1014_v46 = vpack.c.bf16 %v1012_v39, %v1012_v39  ;;  %1209 = vmatpush.bf16.msra.mxu1 %v1703_v32  ;;  %v1695_v39 = vor.u32 %v1796_v37, %v1692_v38  ;;  %v1803_v32 = vld [vmem:[%s2537_s11 + $0x18] sm:$0xff] }
 0x5d8   : > { %v918_v40 = vunpack.c.l.b16 %v914_v33  ;;  %v1691_v33 = vor.u32 %v1797_v35, %v1690_v34  ;;  %v1811_v34 = vld [vmem:[%s2537_s11 + $0x58] sm:$0xff] }
 0x5d9   : > { %v1018_v51 = vunpack.c.l.b16 %v1014_v46  ;;  %v1684_v46 = vld [vmem:[%s2535_s9 + $0x18] sm:$0xf0] }
 0x5da   : > { %v813_v42 = vpop.f32.mrf.mxu2  ;;  %v919_v50 = vpack.c.b16 %v918_v40, %v917_v44  ;;  %v1682_v40 = vld [vmem:[%s2535_s9 + $0x10] sm:$0xf] }
 0x5db   : > { %v1912_v43 = vpop.eup %1911  ;;  %1210 = vmatpush.bf16.msra.mxu1 %v1695_v39  ;;  %v1802_v39 = vld [vmem:[%s2537_s11 + $0x10] sm:$0xff] }
 0x5dc   : > { %v1013_v47 = vmul.f32 %v1912_v43, %v1904_v22  ;;  %v921_v48 = vpop.permute.xlu2 %920  ;;  %v1794_v43 = vld [vmem:[%s2535_s9 + $0x14] sm:$0xf] }
 0x5dd   : > { %933 = vmatpush.bf16.msrb.mxu2 %v921_v48  ;;  %v1687_v48 = vor.u32 %v1794_v43, %v1684_v46 }
 0x5de   : > { %v1015_v49 = vpack.c.bf16 %v1013_v47, %v1013_v47 }
 0x5df   : > { %1211 = vmatpush.bf16.msra.mxu1 %v1687_v48  ;;  %v1809_v48 = vld [vmem:[%s2537_s11 + $0x48] sm:$0xff] }
 0x5e0   : > { %v1019_v52 = vunpack.c.l.b16 %v1015_v49  ;;  %1659 = vmatmul.msk.bf16.vlgmr.msrb.gmra.mxu2 %vm669_vm8, %v919_v50  ;;  %v1674_v50 = vld [vmem:[%s2535_s9] sm:$0xf] }
 0x5e1   : > { %1060 = vmatpush.bf16.msra.mxu2 %v1791_v56 }
 0x5e2   : > { %v1020_v53 = vpack.c.b16 %v1019_v52, %v1018_v51  ;;  %v815_v54 = vpop.f32.mrf.mxu2  ;;  %v1793_v51 = vld [vmem:[%s2535_s9 + $0x4] sm:$0xf0]  ;;  %v1792_v52 = vld [vmem:[%s2535_s9 + $0x4] sm:$0xf] }
 0x5e3   : > { %v818_v41 = vpack.c.bf16 %v815_v54, %v813_v42  ;;  %v1795_v42 = vld [vmem:[%s2535_s9 + $0x14] sm:$0xf0]  ;;  %v1675_v54 = vor.u32 %v1793_v51, %v1674_v50 }
 0x5e4   : > { %1666 = vmatmul.msk.bf16.vlgmr.msra.gmra.mxu3 %vm669_vm8, %v1020_v53  ;;  %v1683_v44 = vor.u32 %v1795_v42, %v1682_v40  ;;  %v1810_v40 = vld [vmem:[%s2537_s11 + $0x50] sm:$0xff] }
 0x5e5   : > { %1652 = vmatmul.msk.bf16.vlgmr.msra.gmra.mxu0 %vm669_vm8, %v818_v41  ;;  %v1676_v41 = vld [vmem:[%s2535_s9 + $0x8] sm:$0xf0] }
 0x5e6   : > { %1195 = vmatpush.bf16.msra.mxu0 %v1699_v29  ;;  %v1679_v55 = vor.u32 %v1792_v52, %v1676_v41 }
 0x5e8   : > { %1212 = vmatpush.bf16.msra.mxu1 %v1679_v55 }
 0x5ea   : > { %1196 = vmatpush.bf16.msra.mxu0 %v1691_v33 }
 0x5ee   : > { %1197 = vmatpush.bf16.msra.mxu0 %v1683_v44 }
 0x5f2   : > { %1198 = vmatpush.bf16.msra.mxu0 %v1675_v54  ;;  %v1808_v54 = vld [vmem:[%s2537_s11 + $0x40] sm:$0xff] }
 0x662   : > { %v839_v63 = vpop.f32.mrf.mxu0 }
 0x663   : > { %v935_v57 = vpop.f32.mrf.mxu2  ;;  %v863_v3 = vadd.f32 %v2267_v31, %v839_v63 }
 0x667   : > { %v1036_v58 = vpop.f32.mrf.mxu3 }
 0x66a   : > { %v841_v1 = vpop.f32.mrf.mxu0 }
 0x66b   : > { %v937_v59 = vpop.f32.mrf.mxu2  ;;  %v865_v11 = vadd.f32 %v2269_v36, %v841_v1 }
 0x66c   : > { %v940_v60 = vpack.c.bf16 %v937_v59, %v935_v57 }
 0x66e   : > { %1664 = vmatmul.msk.bf16.vlgmr.msrb.gmra.mxu0 %vm669_vm8, %v940_v60 }
 0x66f   : > { %v1038_v61 = vpop.f32.mrf.mxu3 }
 0x670   : > { %v1041_v62 = vpack.c.bf16 %v1038_v61, %v1036_v58 }
 0x672   : > { %1671 = vmatmul.msk.bf16.vlgmr.msra.gmra.mxu2 %vm669_vm8, %v1041_v62 }
 0x6eb   : > { %v961_v45 = vpop.f32.mrf.mxu0 }
 0x6ec   : > { %v966_v4 = vadd.f32 %v961_v45, %v863_v3 }
 0x6f3   : > { %v963_v9 = vpop.f32.mrf.mxu0 }
 0x6f4   : > { %v967_v13 = vadd.f32 %v963_v9, %v865_v11 }
 0x6f5   : > { %v1062_v6 = vpop.f32.mrf.mxu2 }
 0x6f6   : > { %v1067_v7 = vadd.f32 %v1062_v6, %v966_v4 }
 0x6f8   : > { %v1073_v8 = vadd.f32 %v1869_v5, %v1067_v7 }
 0x6fa   : > { %v2310_v12 = vadd.f32 %v1073_v8, %v2145_v0  ;;  %v1870_v8 = vld [vmem:[%s2533_s7] ss:$0 sm:$0xff] }
 0x6fc   : > { %v1079_v14 = vsel %vm498_vm0, %v2310_v12, 0.0 }
 0x6fd   : > { %v1064_v15 = vpop.f32.mrf.mxu2  ;;  %1080 = vadd.xlane.f32.xlu1 %v1079_v14  ;;  %v1871_v14 = vld [vmem:[%s2534_s8] ss:$0 sm:$0xff] }
 0x6fe   : > { %v1068_v31 = vadd.f32 %v1064_v15, %v967_v13 }
 0x700   : > { %v1074_v16 = vadd.f32 %v1869_v5, %v1068_v31 }
 0x702   : > { %v2315_v17 = vadd.f32 %v1074_v16, %v2149_v2 }
 0x704   : > { %v1082_v18 = vsel %vm498_vm0, %v2315_v17, 0.0 }
 0x705   : > { %1083 = vadd.xlane.f32.xlu0 %v1082_v18 }
 0x770   : > { %v1081_v19 = vpop.xlane.xlu1 %1080 }
 0x771   : > { %v1085_v36 = vmul.f32 %v1081_v19, %v2153_v10 }
 0x773   : > { %v2321_v0 = vsub.f32 %v2310_v12, %v1085_v36 }
 0x775   : > { %v1089_v20 = vmul.f32 %v2321_v0, %v2321_v0 }
 0x777   : > { %v1091_v21 = vsel %vm498_vm0, %v1089_v20, 0.0  ;;  %v1815_v20 = vld [vmem:[%s2537_s11 + $0x78] sm:$0xff] }
 0x778   : > { %1092 = vadd.xlane.f32.xlu2 %v1091_v21  ;;  %v1084_v22 = vpop.xlane.xlu0 %1083  ;;  %1451 = vmatpush.bf16.msrb.mxu2 %v1815_v20  ;;  %v1806_v21 = vld [vmem:[%s2537_s11 + $0x30] sm:$0xff] }
 0x779   : > { %v1086_v2 = vmul.f32 %v1084_v22, %v2153_v10  ;;  %v1814_v22 = vld [vmem:[%s2537_s11 + $0x70] sm:$0xff] }
 0x77b   : > { %v2328_v23 = vsub.f32 %v2315_v17, %v1086_v2  ;;  %v1805_v2 = vld [vmem:[%s2537_s11 + $0x28] sm:$0xff] }
 0x77c   : > { %1452 = vmatpush.bf16.msrb.mxu2 %v1814_v22 }
 0x77d   : > { %v1090_v24 = vmul.f32 %v2328_v23, %v2328_v23 }
 0x77f   : > { %v1094_v25 = vsel %vm498_vm0, %v1090_v24, 0.0  ;;  %v1134_v24 = vld [vmem:[%s2536_s10] sm:$0x3] }
 0x780   : > { %1095 = vadd.xlane.f32.xlu1 %v1094_v25  ;;  %v1804_v25 = vld [vmem:[%s2537_s11 + $0x20] sm:$0xff]  ;;  %v1144_v27 = vperm.slane %v1134_v24, 0  ;;  %v1145_v28 = vperm.slane %v1134_v24, 1 }
 0x7eb   : > { %v1093_v47 = vpop.xlane.xlu2 %1092 }
 0x7ec   : > { %v1097_v49 = vmul.f32 %v1093_v47, %v2153_v10  ;;  %v1801_v47 = vld [vmem:[%s2537_s11 + $0x8] sm:$0xff] }
 0x7ee   : > { %v1099_v53 = vadd.f32 1e-05, %v1097_v49 }
 0x7f0   : > { %1913 = vrsqrt.f32 %v1099_v53  ;;  %vm1107_vm15 = vweird.f32 %v1099_v53 }
 0x7f3   : > { %v1096_v56 = vpop.xlane.xlu1 %1095 }
 0x7f4   : > { %v1098_v57 = vmul.f32 %v1096_v56, %v2153_v10 }
 0x7f6   : > { %v1914_v58 = vpop.eup %1913  ;;  %v1100_v59 = vadd.f32 1e-05, %v1098_v57 }
 0x7f7   : > { %v1102_v60 = vmul.f32 %v1914_v58, %v1099_v53  ;;  %vm1108_vm14 = vweird.f32 %v1914_v58  ;;  %v1800_v53 = vld [vmem:[%s2537_s11] sm:$0xff] }
 0x7f8   : > { %1915 = vrsqrt.f32 %v1100_v59  ;;  %vm1109_vm1 = vmor %vm1107_vm15, %vm1108_vm14  ;;  %vm1117_vm3 = vweird.f32 %v1100_v59 }
 0x7f9   : > { %v1103_v61 = vmul.f32 %v1914_v58, %v1102_v60 }
 0x7fb   : > { %v1104_v62 = vmul.f32 0.5, %v1103_v61 }
 0x7fd   : > { %v1105_v63 = vsub.f32 1.5, %v1104_v62 }
 0x7fe   : > { %v1916_v1 = vpop.eup %1915 }
 0x7ff   : > { %v1106_v45 = vmul.f32 %v1914_v58, %v1105_v63  ;;  %v1112_v3 = vmul.f32 %v1916_v1, %v1100_v59  ;;  %vm1118_vm2 = vweird.f32 %v1916_v1 }
 0x800   : > { %vm1119_vm4 = vmor %vm1117_vm3, %vm1118_vm2 }
 0x801   : > { %v1113_v4 = vmul.f32 %v1916_v1, %v1112_v3  ;;  %v1110_v5 = vsel %vm1109_vm1, %v1914_v58, %v1106_v45 }
 0x802   : > { %v1121_v9 = vmul.f32 %v1110_v5, %v2321_v0  ;;  %v1807_v0 = vld [vmem:[%s2537_s11 + $0x38] sm:$0xff] }
 0x803   : > { %v1114_v6 = vmul.f32 0.5, %v1113_v4  ;;  %1437 = vmatpush.bf16.msrb.mxu3 %v1807_v0 }
 0x804   : > { %v1126_v15 = vmul.f32 %v1870_v8, %v1121_v9 }
 0x805   : > { %v1115_v7 = vsub.f32 1.5, %v1114_v6 }
 0x806   : > { %v1131_v18 = vadd.f32 %v1871_v14, %v1126_v15 }
 0x807   : > { %v1116_v11 = vmul.f32 %v1916_v1, %v1115_v7  ;;  %1438 = vmatpush.bf16.msrb.mxu3 %v1806_v21 }
 0x809   : > { %v1120_v13 = vsel %vm1119_vm4, %v1916_v1, %v1116_v11 }
 0x80a   : > { %v1122_v31 = vmul.f32 %v1120_v13, %v2328_v23  ;;  %v1813_v23 = vld [vmem:[%s2537_s11 + $0x68] sm:$0xff] }
 0x80b   : > { %1439 = vmatpush.bf16.msrb.mxu3 %v1805_v2  ;;  %1453 = vmatpush.bf16.msrb.mxu2 %v1813_v23 }
 0x80c   : > { %v1127_v16 = vmul.f32 %v1870_v8, %v1122_v31 }
 0x80e   : > { %v1132_v19 = vadd.f32 %v1871_v14, %v1127_v16 }
 0x80f   : > { %1440 = vmatpush.bf16.msrb.mxu3 %v1804_v25  ;;  %1454 = vmatpush.bf16.msrb.mxu2 %v1812_v26 }
 0x810   : > { %v1133_v36 = vpack.c.bf16 %v1132_v19, %v1131_v18 }
 0x812   : > { %1704 = vmatmul.msk.bf16.vlgmr.msra.gmra.mxu0 %vm498_vm0, %v1133_v36  ;;  %1705 = vmatmul.msk.bf16.vlgmr.msra.gmra.mxu1 %vm498_vm0, %v1133_v36 }
 0x813   : > { %1441 = vmatpush.bf16.msrb.mxu3 %v1803_v32  ;;  %1455 = vmatpush.bf16.msrb.mxu2 %v1811_v34 }
 0x817   : > { %1442 = vmatpush.bf16.msrb.mxu3 %v1802_v39  ;;  %1456 = vmatpush.bf16.msrb.mxu2 %v1810_v40 }
 0x81b   : > { %1443 = vmatpush.bf16.msrb.mxu3 %v1801_v47  ;;  %1457 = vmatpush.bf16.msrb.mxu2 %v1809_v48 }
 0x81f   : > { %1444 = vmatpush.bf16.msrb.mxu3 %v1800_v53  ;;  %1458 = vmatpush.bf16.msrb.mxu2 %v1808_v54 }
 0x88f   : > { %v1200_v29 = vpop.f32.mrf.mxu0  ;;  %v1214_v30 = vpop.f32.mrf.mxu1 }
 0x890   : > { %v2426_v35 = vadd.f32 %v1200_v29, %v1144_v27  ;;  %v2428_v37 = vadd.f32 %v1214_v30, %v1145_v28 }
 0x892   : > { %v1706_v33 = vmul.f32 -1.702, %v2426_v35  ;;  %v1707_v38 = vmul.f32 -1.702, %v2428_v37 }
 0x894   : > { %v1227_v42 = vmul.f32 1.442695, %v1706_v33  ;;  %v1229_v43 = vmul.f32 1.442695, %v1707_v38 }
 0x896   : > { %1917 = vpow2.f32 %v1227_v42 }
 0x897   : > { %1919 = vpow2.f32 %v1229_v43  ;;  %v1202_v44 = vpop.f32.mrf.mxu0  ;;  %v1216_v46 = vpop.f32.mrf.mxu1 }
 0x898   : > { %v2444_v49 = vadd.f32 %v1202_v44, %v1144_v27  ;;  %v2446_v50 = vadd.f32 %v1216_v46, %v1145_v28 }
 0x89a   : > { %v1708_v51 = vmul.f32 -1.702, %v2444_v49  ;;  %v1709_v52 = vmul.f32 -1.702, %v2446_v50 }
 0x89c   : > { %v1918_v41 = vpop.eup %1917  ;;  %v1231_v55 = vmul.f32 1.442695, %v1708_v51  ;;  %v1233_v58 = vmul.f32 1.442695, %v1709_v52 }
 0x89d   : > { %v1920_v56 = vpop.eup %1919  ;;  %v1235_v57 = vadd.f32 1.0, %v1918_v41 }
 0x89e   : > { %v1236_v59 = vadd.f32 1.0, %v1920_v56  ;;  %1921 = vpow2.f32 %v1231_v55 }
 0x89f   : > { %1923 = vrcp.f32 %v1235_v57  ;;  %vm1244_vm6 = vweird.f32 %v1235_v57  ;;  %v1248_v14 = vand.u32 2147483647, %v1235_v57  ;;  %v1250_v15 = vand.u32 2147483648, %v1235_v57 }
 0x8a0   : > { %1925 = vrcp.f32 %v1236_v59  ;;  %vm1259_vm7 = vweird.f32 %v1236_v59  ;;  %v1263_v16 = vand.u32 2147483647, %v1236_v59  ;;  %v1265_v20 = vand.u32 2147483648, %v1236_v59 }
 0x8a1   : > { %1927 = vpow2.f32 %v1233_v58  ;;  %vm1249_vm11 = vcmp.eq.f32.partialorder %v1248_v14, 8.507059e+37  ;;  %v1251_v24 = vor.u32 1.1754944e-38, %v1250_v15 }
 0x8a2   : > { %v1266_v38 = vor.u32 1.1754944e-38, %v1265_v20  ;;  %vm1264_vm2 = vcmp.eq.f32.partialorder %v1263_v16, 8.507059e+37 }
 0x8a4   : > { %v1922_v60 = vpop.eup %1921 }
 0x8a5   : > { %v1924_v61 = vpop.eup %1923  ;;  %v1237_v62 = vadd.f32 1.0, %v1922_v60 }
 0x8a6   : > { %v1926_v63 = vpop.eup %1925  ;;  %v1240_v1 = vmul.f32 %v1924_v61, %v1235_v57  ;;  %vm1245_vm5 = vweird.f32 %v1924_v61 }
 0x8a7   : > { %v1928_v45 = vpop.eup %1927  ;;  %v1255_v3 = vmul.f32 %v1926_v63, %v1236_v59  ;;  %1929 = vrcp.f32 %v1237_v62  ;;  %v1280_v19 = vand.u32 2147483648, %v1237_v62  ;;  %vm2456_vm8 = vmor %vm1244_vm6, %vm1245_vm5  ;;  %vm1260_vm9 = vweird.f32 %v1926_v63 }
 0x8a8   : > { %v1241_v4 = vsub.f32 1.0, %v1240_v1  ;;  %v1238_v5 = vadd.f32 1.0, %v1928_v45  ;;  %v1278_v23 = vand.u32 2147483647, %v1237_v62  ;;  %vm1274_vm12 = vweird.f32 %v1237_v62  ;;  %vm2463_vm13 = vmor %vm1259_vm7, %vm1260_vm9 }
 0x8a9   : > { %v1256_v6 = vsub.f32 1.0, %v1255_v3  ;;  %v1281_v28 = vor.u32 1.1754944e-38, %v1280_v19 }
 0x8aa   : > { %v1242_v7 = vmul.f32 %v1924_v61, %v1241_v4  ;;  %1931 = vrcp.f32 %v1238_v5  ;;  %v1293_v29 = vand.u32 2147483647, %v1238_v5  ;;  %v1295_v30 = vand.u32 2147483648, %v1238_v5 }
 0x8ab   : > { %v1257_v9 = vmul.f32 %v1926_v63, %v1256_v6  ;;  %vm1279_vm1 = vcmp.eq.f32.partialorder %v1278_v23, 8.507059e+37  ;;  %vm1289_vm3 = vweird.f32 %v1238_v5 }
 0x8ac   : > { %v1243_v11 = vadd.f32 %v1924_v61, %v1242_v7  ;;  %v1296_v47 = vor.u32 1.1754944e-38, %v1295_v30  ;;  %vm1294_vm5 = vcmp.eq.f32.partialorder %v1293_v29, 8.507059e+37 }
 0x8ad   : > { %v1930_v8 = vpop.eup %1929  ;;  %v1258_v0 = vadd.f32 %v1926_v63, %v1257_v9 }
 0x8ae   : > { %v1270_v13 = vmul.f32 %v1930_v8, %v1237_v62  ;;  %v1247_v22 = vsel %vm2456_vm8, %v1924_v61, %v1243_v11  ;;  %vm1275_vm10 = vweird.f32 %v1930_v8 }
 0x8af   : > { %v1252_v32 = vsel %vm1249_vm11, %v1251_v24, %v1247_v22  ;;  %v1262_v34 = vsel %vm2463_vm13, %v1926_v63, %v1258_v0  ;;  %vm1276_vm14 = vmor %vm1274_vm12, %vm1275_vm10  ;;  %v1874_v24 = vld [vmem:[%s2540_s14] ss:$0 sm:$0xff] }
 0x8b0   : > { %v1932_v31 = vpop.eup %1931  ;;  %v1271_v18 = vsub.f32 1.0, %v1270_v13  ;;  %v1299_v43 = vmul.f32 %v1252_v32, %v2426_v35  ;;  %v1267_v44 = vsel %vm1264_vm2, %v1266_v38, %v1262_v34  ;;  %v1872_v35 = vld [vmem:[%s2538_s12] ss:$0 sm:$0xff] }
 0x8b1   : > { %v1285_v21 = vmul.f32 %v1932_v31, %v1238_v5  ;;  %vm1290_vm15 = vweird.f32 %v1932_v31  ;;  %v1300_v53 = vmul.f32 %v1267_v44, %v2428_v37 }
 0x8b2   : > { %v1272_v2 = vmul.f32 %v1930_v8, %v1271_v18  ;;  %vm1291_vm4 = vmor %vm1289_vm3, %vm1290_vm15 }
 0x8b3   : > { %v1286_v25 = vsub.f32 1.0, %v1285_v21 }
 0x8b4   : > { %v1273_v27 = vadd.f32 %v1930_v8, %v1272_v2  ;;  %v1873_v2 = vld [vmem:[%s2539_s13] ss:$0 sm:$0xff] }
 0x8b5   : > { %v1287_v33 = vmul.f32 %v1932_v31, %v1286_v25 }
 0x8b6   : > { %v1277_v39 = vsel %vm1276_vm14, %v1930_v8, %v1273_v27 }
 0x8b7   : > { %v1282_v40 = vsel %vm1279_vm1, %v1281_v28, %v1277_v39  ;;  %v1288_v42 = vadd.f32 %v1932_v31, %v1287_v33 }
 0x8b8   : > { %v1301_v46 = vmul.f32 %v1282_v40, %v2444_v49 }
 0x8b9   : > { %v1292_v48 = vsel %vm1291_vm4, %v1932_v31, %v1288_v42 }
 0x8ba   : > { %v1303_v51 = vpack.c.bf16 %v1301_v46, %v1299_v43  ;;  %v1297_v52 = vsel %vm1294_vm5, %v1296_v47, %v1292_v48 }
 0x8bb   : > { %v1302_v54 = vmul.f32 %v1297_v52, %v2446_v50 }
 0x8bc   : > { %1445 = vmatmul.bf16.vlgmr.msrb.gmra.mxu3 %v1303_v51 }
 0x8bd   : > { %v1304_v41 = vpack.c.bf16 %v1302_v54, %v1300_v53 }
 0x8bf   : > { %1459 = vmatmul.bf16.vlgmr.msrb.gmra.mxu2 %v1304_v41 }
 0x93f   : > { %v1446_v55 = vpop.f32.mrf.mxu3 }
 0x940   : > { %v1447_v56 = vadd.f32 %v1872_v35, %v1446_v55 }
 0x942   : > { %v1460_v49 = vpop.f32.mrf.mxu2 }
 0x943   : > { %v1461_v57 = vadd.f32 %v1460_v49, %v1447_v56 }
 0x945   : > { %v1465_v58 = vadd.f32 %v1461_v57, %v2310_v12 }
 0x947   : > { %v1448_v59 = vpop.f32.mrf.mxu3  ;;  %v1469_v60 = vsel %vm498_vm0, %v1465_v58, 0.0 }
 0x948   : > { %v1449_v61 = vadd.f32 %v1872_v35, %v1448_v59  ;;  %1470 = vadd.xlane.f32.xlu0 %v1469_v60 }
 0x94a   : > { %v1462_v37 = vpop.f32.mrf.mxu2 }
 0x94b   : > { %v1463_v50 = vadd.f32 %v1462_v37, %v1449_v61 }
 0x94d   : > { %v1466_v62 = vadd.f32 %v1463_v50, %v2315_v17 }
 0x94f   : > { %v1472_v63 = vsel %vm498_vm0, %v1466_v62, 0.0 }
 0x950   : > { %1473 = vadd.xlane.f32.xlu1 %v1472_v63 }
 0x9bb   : > { %v1471_v1 = vpop.xlane.xlu0 %1470 }
 0x9bc   : > { %v1475_v45 = vmul.f32 %v1471_v1, %v2153_v10 }
 0x9be   : > { %v1477_v3 = vsub.f32 %v1465_v58, %v1475_v45 }
 0x9c0   : > { %v1479_v4 = vmul.f32 %v1477_v3, %v1477_v3 }
 0x9c2   : > { %v1481_v5 = vsel %vm498_vm0, %v1479_v4, 0.0 }
 0x9c3   : > { %v1474_v12 = vpop.xlane.xlu1 %1473  ;;  %1482 = vadd.xlane.f32.xlu2 %v1481_v5 }
 0x9c4   : > { %v1476_v6 = vmul.f32 %v1474_v12, %v2153_v10 }
 0x9c6   : > { %v1478_v7 = vsub.f32 %v1466_v62, %v1476_v6 }
 0x9c8   : > { %v1480_v8 = vmul.f32 %v1478_v7, %v1478_v7 }
 0x9ca   : > { %v1484_v9 = vsel %vm498_vm0, %v1480_v8, 0.0 }
 0x9cb   : > { %1485 = vadd.xlane.f32.xlu0 %v1484_v9 }
 0xa36   : > { %v1483_v17 = vpop.xlane.xlu2 %1482 }
 0xa37   : > { %v1487_v11 = vmul.f32 %v1483_v17, %v2153_v10 }
 0xa39   : > { %v1489_v13 = vadd.f32 1e-05, %v1487_v11 }
 0xa3b   : > { %1933 = vrsqrt.f32 %v1489_v13  ;;  %vm1497_vm7 = vweird.f32 %v1489_v13 }
 0xa3e   : > { %v1486_v14 = vpop.xlane.xlu0 %1485 }
 0xa3f   : > { %v1488_v15 = vmul.f32 %v1486_v14, %v2153_v10 }
 0xa41   : > { %v1934_v31 = vpop.eup %1933  ;;  %v1490_v16 = vadd.f32 1e-05, %v1488_v15 }
 0xa42   : > { %v1492_v18 = vmul.f32 %v1934_v31, %v1489_v13  ;;  %vm1498_vm6 = vweird.f32 %v1934_v31 }
 0xa43   : > { %1935 = vrsqrt.f32 %v1490_v16  ;;  %vm1499_vm8 = vmor %vm1497_vm7, %vm1498_vm6  ;;  %vm1507_vm10 = vweird.f32 %v1490_v16 }
 0xa44   : > { %v1493_v19 = vmul.f32 %v1934_v31, %v1492_v18 }
 0xa46   : > { %v1494_v36 = vmul.f32 0.5, %v1493_v19 }
 0xa48   : > { %v1495_v0 = vsub.f32 1.5, %v1494_v36 }
 0xa49   : > { %v1936_v20 = vpop.eup %1935 }
 0xa4a   : > { %v1496_v21 = vmul.f32 %v1934_v31, %v1495_v0  ;;  %v1502_v22 = vmul.f32 %v1936_v20, %v1490_v16  ;;  %vm1508_vm9 = vweird.f32 %v1936_v20 }
 0xa4b   : > { %vm1509_vm11 = vmor %vm1507_vm10, %vm1508_vm9 }
 0xa4c   : > { %v1500_v10 = vsel %vm1499_vm8, %v1934_v31, %v1496_v21  ;;  %v1503_v23 = vmul.f32 %v1936_v20, %v1502_v22 }
 0xa4d   : > { %v1511_v25 = vmul.f32 %v1500_v10, %v1477_v3 }
 0xa4e   : > { %v1504_v26 = vmul.f32 0.5, %v1503_v23 }
 0xa4f   : > { %v1516_v27 = vmul.f32 %v1873_v2, %v1511_v25 }
 0xa50   : > { %v1505_v28 = vsub.f32 1.5, %v1504_v26 }
 0xa51   : > { %v1521_v29 = vadd.f32 %v1874_v24, %v1516_v27 }
 0xa52   : > { %v1506_v30 = vmul.f32 %v1936_v20, %v1505_v28 }
 0xa53   : > { %1523 = vst.msk [vmem:[%s487_s20] sm:$0xff] %vm498_vm0, %v1521_v29 }
 0xa54   : > { %v1510_v32 = vsel %vm1509_vm11, %v1936_v20, %v1506_v30 }
 0xa55   : > { %v1512_v34 = vmul.f32 %v1510_v32, %v1478_v7 }
 0xa57   : > { %v1517_v33 = vmul.f32 %v1873_v2, %v1512_v34 }
 0xa59   : > { %v1522_v38 = vadd.f32 %v1874_v24, %v1517_v33 }
 0xa5b   : > { %1524 = vst.msk [vmem:[%s487_s20 + $0x8] sm:$0xff] %vm498_vm0, %v1522_v38 }
 0xa5c   : > { %1964 = shalt.err (!%p1961_p3)
}
 0xa5d   : > { %s2010_s27 = smov 128   ;;  %s2011_s20 = smov 8  }
 0xa5e   : > { %1817 = dma.vmem_to_hbm [thread:$0]  (%p2130_p5), %s1539_s24, 256, %s1541_s26, %s1526_s22, %s2010_s27, %s2010_s27, %s2011_s20  }
 0xa5f PF: > { %p1823_p4 = scmp.ge.s32.totalorder %s1999_s21, 2  ;;  %s1555_s16 = sand.u32 1, %s1987_s18  }
 0xa60   : > { %s1556_s1 = scalar_lea.sflag [#allocation3], %s1555_s16 }
 0xa61   : > { %p1820_p7 = pnand %p1823_p4, %p2134_p6 }
 0xa63   : > { %p1821_p8 = pneg %p1820_p7 }
 0xa65   : > { %1982 = dma.done.wait (%p1821_p8), %s1556_s1, 256  }
 0xa66   : > { %1984 = vsyncadd (%p1821_p8), %s1556_s1, 4294967040  ;;  %s2558_s21 = sld [smem:[#allocation6_spill]]  ;;  %s2561_s18 = smov %s1991_s19 }
 0xa67   : > { %s2559_s30 = sld [smem:[#allocation5_spill]] }
 0xa68   : > { %s2560_s20 = sld [smem:[#allocation7_spill]] }
 0xa6c   : > { %p25_p9 = scmp.ge.s32.totalorder %s2558_s21, 4  }
 0xa6d   : > { %s2562_s19 = smov %s2559_s30 }
 0xa6e   :  { %27 = sbr.rel (!%p25_p9) target bundleno = 6 (0x6), region = 115 }
 0xa73   :  { %1562 = vsyncpa [#allocation3], 1 }
 0xa74   :  { %1564 = vsyncpa [#allocation3 + $0x1], 1 }

// kernel: clip_forward.2
= control target key start
LH: loop header
LB: loop body
LE: loop exit
PB: predicated region body
PF: predicated region fallthrough
CT: control target
= control target key end

     0   :  { %s1917_s18 = smov 0   ;;  %s2276_s0 = inlined_call_operand.vmem [shape: f32[2,16,64], index: 0, kind: input, shape index: {}]   ;;  %s2277_s1 = inlined_call_operand.vmem [shape: f32[1,64], index: 1, kind: input, shape index: {}]   ;;  %s2278_s2 = inlined_call_operand.vmem [shape: f32[1,64], index: 2, kind: input, shape index: {}]   ;;  %s2279_s3 = inlined_call_operand.vmem [shape: bf16[64,192], index: 3, kind: input, shape index: {}]   ;;  %s2280_s4 = inlined_call_operand.vmem [shape: f32[1,192], index: 4, kind: input, shape index: {}]   ;;  %s2281_s5 = inlined_call_operand.vmem [shape: bf16[64,64], index: 5, kind: input, shape index: {}]   ;;  %s2282_s6 = inlined_call_operand.vmem [shape: f32[1,64], index: 6, kind: input, shape index: {}]   ;;  %s2283_s7 = inlined_call_operand.vmem [shape: f32[1,64], index: 7, kind: input, shape index: {}]   ;;  %s2284_s8 = inlined_call_operand.vmem [shape: f32[1,64], index: 8, kind: input, shape index: {}]   ;;  %s2285_s9 = inlined_call_operand.vmem [shape: bf16[64,256], index: 9, kind: input, shape index: {}]   ;;  %s2286_s10 = inlined_call_operand.vmem [shape: f32[1,256], index: 10, kind: input, shape index: {}]   ;;  %s2287_s11 = inlined_call_operand.vmem [shape: bf16[256,64], index: 11, kind: input, shape index: {}]   ;;  %s2288_s12 = inlined_call_operand.vmem [shape: f32[1,64], index: 12, kind: input, shape index: {}]   ;;  %s2289_s13 = inlined_call_operand.vmem [shape: f32[1,64], index: 13, kind: input, shape index: {}]   ;;  %s2290_s14 = inlined_call_operand.vmem [shape: f32[1,64], index: 14, kind: input, shape index: {}]   ;;  %s2291_s15 = inlined_call_operand.vmem [shape: f32[2,16,64], index: 15, kind: output, shape index: {}]  }
   0x1 LB: > { %s1526_s19 = sadd.s32 4294967295, %s1826_s18   ;;  %p1530_p0 = scmp.ge.s32.totalorder %s1826_s18, 1  ;;  %s1826_s18 = sphi %s1917_s18, %s25_s18  }
   0x2   : > { %p437_p1 = scmp.lt.s32.totalorder %s1826_s18, 3 }
   0x4   : > { %p438_p2 = pnand %p1530_p0, %p437_p1 }
   0x5   : > { %p485_p3 = scmp.lt.s32.totalorder (!%p438_p2), %s1526_s19, 1  ;;  %s1829_s17 = smov (!%p438_p2), 64  }
   0x6   : > { %441 = sbr.rel (%p438_p2) target bundleno = 2370 (0x942), region = 80  ;;  %s1831_s14 = smov (!%p438_p2), 16  }
   0x7   : > { %s1832_s20 = smov (!%p438_p2), 48   ;;  %s1834_s22 = smov (!%p438_p2), 32  }
   0x8   : > { %s1835_s23 = smov (!%p438_p2), 96   ;;  %s1836_s24 = smov (!%p438_p2), 80  }
   0xb   : > { %s2297_s19 = smov (!%p485_p3, %s1526_s19), 1  ;;  %vm500_vm0 = vcmask 523264   ;;  %v1828_v4 = vmov 64.0   ;;  %v1561_v21 = vld [vmem:[%s2279_s3 + $0x30] sm:$0xf]  ;;  %vm671_vm8 = vcmask 130048  }
   0xc   : > { %s1701_s13 = sshll.u32 %s2297_s19, 4  ;;  %1762 = vrcp.f32 %v1828_v4  ;;  %v1710_v22 = vld [vmem:[%s2279_s3 + $0x34] sm:$0xf0]  ;;  %v1709_v23 = vld [vmem:[%s2279_s3 + $0x34] sm:$0xf] }
   0xd   : > { %s489_s21 = scalar_lea.vmem %s2276_s0, %s1701_s13  ;;  %v1562_v24 = vor.u32 %v1710_v22, %v1561_v21  ;;  %v1563_v25 = vld [vmem:[%s2279_s3 + $0x38] sm:$0xf0]  ;;  %v1553_v27 = vld [vmem:[%s2279_s3 + $0x20] sm:$0xf]  ;;  %v1708_v28 = vld [vmem:[%s2279_s3 + $0x24] sm:$0xf0]  ;;  %s494_s25 = scalar_lea.vmem %s2291_s15, %s1701_s13 }
   0xe   : > { %v1933_v0 = vld [vmem:[%s489_s21] sm:$0xff]  ;;  %v1937_v2 = vld [vmem:[%s489_s21 + $0x8] sm:$0xff]  ;;  %v1566_v26 = vor.u32 %v1709_v23, %v1563_v25  ;;  %v1554_v30 = vor.u32 %v1708_v28, %v1553_v27  ;;  %v1545_v33 = vld [vmem:[%s2279_s3 + $0x10] sm:$0xf]  ;;  %s1833_s21 = smov 112  }
   0xf   : > { %v501_v1 = vsel %vm500_vm0, %v1933_v0, 0.0  ;;  %v504_v3 = vsel %vm500_vm0, %v1937_v2, 0.0  ;;  %624 = vmatpush.bf16.msra.mxu0 %v1562_v24  ;;  %v1707_v29 = vld [vmem:[%s2279_s3 + $0x24] sm:$0xf]  ;;  %v1555_v31 = vld [vmem:[%s2279_s3 + $0x28] sm:$0xf0] }
  0x10   : > { %502 = vadd.xlane.f32.xlu0 %v501_v1  ;;  %638 = vmatpush.bf16.msra.mxu1 %v1566_v26  ;;  %v1558_v32 = vor.u32 %v1707_v29, %v1555_v31  ;;  %v1706_v34 = vld [vmem:[%s2279_s3 + $0x14] sm:$0xf0]  ;;  %v1705_v35 = vld [vmem:[%s2279_s3 + $0x14] sm:$0xf]  ;;  %v1547_v37 = vld [vmem:[%s2279_s3 + $0x18] sm:$0xf0] }
  0x11   : > { %v1546_v36 = vor.u32 %v1706_v34, %v1545_v33  ;;  %v1550_v38 = vor.u32 %v1705_v35, %v1547_v37  ;;  %v1537_v39 = vld [vmem:[%s2279_s3] sm:$0xf]  ;;  %v1704_v40 = vld [vmem:[%s2279_s3 + $0x4] sm:$0xf0]  ;;  %v1703_v41 = vld [vmem:[%s2279_s3 + $0x4] sm:$0xf] }
  0x12   : > { %v1763_v5 = vpop.eup %1762  ;;  %v1538_v43 = vor.u32 %v1704_v40, %v1537_v39  ;;  %v1539_v44 = vld [vmem:[%s2279_s3 + $0x8] sm:$0xf0]  ;;  %v1756_v1 = vld [vmem:[%s2277_s1] ss:$0 sm:$0xff]  ;;  %v1830_v40 = vmov 0.0  }
  0x13   : > { %v508_v6 = vmul.f32 64.0, %v1763_v5  ;;  %vm512_vm1 = vweird.f32 %v1763_v5  ;;  %625 = vmatpush.bf16.msra.mxu0 %v1554_v30  ;;  %v1542_v46 = vor.u32 %v1703_v41, %v1539_v44 }
  0x14   : > { %639 = vmatpush.bf16.msra.mxu1 %v1558_v32 }
  0x15   : > { %v509_v7 = vsub.f32 1.0, %v508_v6 }
  0x17   : > { %v510_v8 = vmul.f32 %v1763_v5, %v509_v7  ;;  %626 = vmatpush.bf16.msra.mxu0 %v1546_v36  ;;  %v1757_v7 = vld [vmem:[%s2278_s2] ss:$0 sm:$0xff]  ;;  %v648_v36 = vlaneseq }
  0x18   : > { %505 = vadd.xlane.f32.xlu0 %v504_v3  ;;  %640 = vmatpush.bf16.msra.mxu1 %v1550_v38 }
  0x19   : > { %v511_v9 = vadd.f32 %v1763_v5, %v510_v8  ;;  %v649_v37 = vshrl.u32 %v648_v36, 7  ;;  %v652_v38 = vand.u32 127, %v648_v36 }
  0x1b   : > { %v1941_v10 = vsel %vm512_vm1, %v1763_v5, %v511_v9  ;;  %627 = vmatpush.bf16.msra.mxu0 %v1538_v43  ;;  %vm653_vm9 = vcmp.gt.s32.totalorder %v652_v38, %v649_v37  ;;  %vm655_vm10 = vcmp.ge.s32.totalorder %v652_v38, 16  ;;  %v650_v39 = vadd.s32 8, %v649_v37 }
  0x1c   : > { %641 = vmatpush.bf16.msra.mxu1 %v1542_v46  ;;  %vm656_vm11 = vmor %vm653_vm9, %vm655_vm10 }
  0x1d   : > { %v2025_v41 = vsel %vm656_vm11, -1e+30, %v1830_v40  ;;  %vm654_vm12 = vcmp.gt.s32.totalorder %v652_v38, %v650_v39 }
  0x1e   : > { %vm657_vm13 = vmor %vm654_vm12, %vm655_vm10 }
  0x83   : > { %v503_v11 = vpop.xlane.xlu0 %502 }
  0x84   : > { %v514_v12 = vmul.f32 %v1941_v10, %v503_v11 }
  0x86   : > { %v1945_v13 = vsub.f32 %v1933_v0, %v514_v12 }
  0x88   : > { %v518_v14 = vmul.f32 %v1945_v13, %v1945_v13 }
  0x8a   : > { %v520_v15 = vsel %vm500_vm0, %v518_v14, 0.0 }
  0x8b   : > { %521 = vadd.xlane.f32.xlu1 %v520_v15  ;;  %v506_v16 = vpop.xlane.xlu0 %505 }
  0x8c   : > { %v515_v17 = vmul.f32 %v1941_v10, %v506_v16 }
  0x8e   : > { %v1952_v18 = vsub.f32 %v1937_v2, %v515_v17 }
  0x90   : > { %v519_v19 = vmul.f32 %v1952_v18, %v1952_v18 }
  0x92   : > { %v523_v20 = vsel %vm500_vm0, %v519_v19, 0.0 }
  0x93   : > { %524 = vadd.xlane.f32.xlu1 %v523_v20 }
  0xfe   : > { %v522_v42 = vpop.xlane.xlu1 %521 }
  0xff   : > { %v526_v45 = vmul.f32 %v522_v42, %v1941_v10 }
 0x101   : > { %v528_v47 = vadd.f32 1e-05, %v526_v45  ;;  %v2029_v45 = vsel %vm657_vm13, -1e+30, %v1830_v40 }
 0x103   : > { %1764 = vrsqrt.f32 %v528_v47  ;;  %vm536_vm3 = vweird.f32 %v528_v47 }
 0x106   : > { %v525_v48 = vpop.xlane.xlu1 %524 }
 0x107   : > { %v527_v49 = vmul.f32 %v525_v48, %v1941_v10 }
 0x109   : > { %v1765_v50 = vpop.eup %1764  ;;  %v529_v51 = vadd.f32 1e-05, %v527_v49 }
 0x10a   : > { %v531_v52 = vmul.f32 %v1765_v50, %v528_v47  ;;  %vm537_vm2 = vweird.f32 %v1765_v50 }
 0x10b   : > { %1766 = vrsqrt.f32 %v529_v51  ;;  %vm538_vm4 = vmor %vm536_vm3, %vm537_vm2  ;;  %vm546_vm6 = vweird.f32 %v529_v51 }
 0x10c   : > { %v532_v53 = vmul.f32 %v1765_v50, %v531_v52 }
 0x10e   : > { %v533_v54 = vmul.f32 0.5, %v532_v53 }
 0x110   : > { %v534_v55 = vsub.f32 1.5, %v533_v54 }
 0x111   : > { %v1767_v56 = vpop.eup %1766 }
 0x112   : > { %v535_v57 = vmul.f32 %v1765_v50, %v534_v55  ;;  %v541_v58 = vmul.f32 %v1767_v56, %v529_v51  ;;  %vm547_vm5 = vweird.f32 %v1767_v56 }
 0x113   : > { %vm548_vm7 = vmor %vm546_vm6, %vm547_vm5 }
 0x114   : > { %v542_v59 = vmul.f32 %v1767_v56, %v541_v58  ;;  %v539_v60 = vsel %vm538_vm4, %v1765_v50, %v535_v57 }
 0x115   : > { %v550_v63 = vmul.f32 %v539_v60, %v1945_v13  ;;  %v571_v13 = vld [vmem:[%s2280_s4] sm:$0x3] }
 0x116   : > { %v543_v61 = vmul.f32 0.5, %v542_v59  ;;  %v573_v16 = vperm.slane %v571_v13, 0  ;;  %v574_v17 = vperm.slane %v571_v13, 1  ;;  %v1711_v59 = vld [vmem:[%s2281_s5] sm:$0xff] }
 0x117   : > { %v555_v6 = vmul.f32 %v1756_v1, %v550_v63 }
 0x118   : > { %v544_v62 = vsub.f32 1.5, %v543_v61 }
 0x119   : > { %v560_v9 = vadd.f32 %v1757_v7, %v555_v6 }
 0x11a   : > { %v545_v3 = vmul.f32 %v1767_v56, %v544_v62 }
 0x11c   : > { %v549_v4 = vsel %vm548_vm7, %v1767_v56, %v545_v3 }
 0x11d   : > { %v551_v5 = vmul.f32 %v549_v4, %v1952_v18 }
 0x11f   : > { %v556_v8 = vmul.f32 %v1756_v1, %v551_v5 }
 0x121   : > { %v561_v11 = vadd.f32 %v1757_v7, %v556_v8 }
 0x123   : > { %v562_v12 = vpack.c.bf16 %v561_v11, %v560_v9 }
 0x125   : > { %1567 = vmatmul.msk.bf16.vlgmr.msra.gmra.mxu0 %vm500_vm0, %v562_v12  ;;  %1568 = vmatmul.msk.bf16.vlgmr.msra.gmra.mxu1 %vm500_vm0, %v562_v12 }
 0x1a2   : > { %v629_v14 = vpop.f32.mrf.mxu0  ;;  %v643_v15 = vpop.f32.mrf.mxu1 }
 0x1a3   : > { %v630_v18 = vadd.f32 %v629_v14, %v573_v16  ;;  %v644_v19 = vadd.f32 %v643_v15, %v574_v17 }
 0x1a5   : > { %v660_v22 = vpack.c.bf16 %v630_v18, %v630_v18  ;;  %v662_v23 = vpack.c.bf16 %v644_v19, %v644_v19 }
 0x1a7   : > { %v666_v28 = vunpack.c.l.b16 %v660_v22  ;;  %v723_v29 = vunpack.c.l.b16 %v662_v23 }
 0x1aa   : > { %v631_v20 = vpop.f32.mrf.mxu0  ;;  %v645_v21 = vpop.f32.mrf.mxu1 }
 0x1ab   : > { %v632_v24 = vadd.f32 %v631_v20, %v573_v16  ;;  %v646_v25 = vadd.f32 %v645_v21, %v574_v17 }
 0x1ad   : > { %v661_v26 = vpack.c.bf16 %v632_v24, %v632_v24  ;;  %v663_v27 = vpack.c.bf16 %v646_v25, %v646_v25 }
 0x1af   : > { %v667_v30 = vunpack.c.l.b16 %v661_v26  ;;  %v724_v31 = vunpack.c.l.b16 %v663_v27 }
 0x1b1   : > { %v668_v32 = vpack.c.b16 %v667_v30, %v666_v28  ;;  %v2020_v33 = vpack.c.b16 %v724_v31, %v723_v29 }
 0x1b3   : > { %737 = vmatpush.bf16.msrb.mxu1 %v2020_v33  ;;  %669 = vrot.lane.b32.xlu2 %v668_v32, %s1829_s17 }
 0x1b7   : > { %862 = vmatpush.bf16.msra.mxu1 %v1711_v59 }
 0x20d   : > { %v670_v34 = vpop.permute.xlu2 %669 }
 0x20e   : > { %v676_v35 = vsel %vm671_vm8, %v670_v34, 0 }
 0x20f   : > { %685 = vmatpush.bf16.xpose.msrb.mxu0 %v676_v35 }
 0x216   : > { %1569 = vmatmul.msk.bf16.vlgmr.msrb.gmra.mxu0 %vm671_vm8, %v668_v32 }
 0x293   : > { %v687_v42 = vpop.f32.mrf.mxu0 }
 0x294   : > { %v688_v43 = vadd.f32 %v687_v42, %v2025_v41 }
 0x296   : > { %v692_v44 = vsel %vm671_vm8, %v688_v43, -inf }
 0x297   : > { %693 = vmax.xlane.f32.xlu2 %v692_v44 }
 0x29b   : > { %v689_v46 = vpop.f32.mrf.mxu0 }
 0x29c   : > { %v690_v47 = vadd.f32 %v689_v46, %v2029_v45 }
 0x29e   : > { %v695_v48 = vsel %vm671_vm8, %v690_v47, -inf }
 0x29f   : > { %696 = vmax.xlane.f32.xlu0 %v695_v48 }
 0x2af   : > { %972 = vrot.lane.b32.xlu2 %v668_v32, %s1831_s14 }
 0x30a   : > { %v694_v49 = vpop.xlane.xlu2 %693 }
 0x30b   : > { %v698_v50 = vsub.f32 %v688_v43, %v694_v49 }
 0x30d   : > { %v700_v51 = vmul.f32 1.442695, %v698_v50 }
 0x30f   : > { %1768 = vpow2.f32 %v700_v51 }
 0x312   : > { %v697_v52 = vpop.xlane.xlu0 %696  ;;  %v973_v8 = vpop.permute.xlu2 %972 }
 0x313   : > { %v699_v53 = vsub.f32 %v690_v47, %v697_v52  ;;  %v978_v11 = vsel %vm671_vm8, %v973_v8, 0 }
 0x315   : > { %v1769_v54 = vpop.eup %1768  ;;  %v702_v55 = vmul.f32 1.442695, %v699_v53 }
 0x316   : > { %v704_v56 = vsel %vm671_vm8, %v1769_v54, 0.0 }
 0x317   : > { %1770 = vpow2.f32 %v702_v55  ;;  %705 = vadd.xlane.f32.xlu1 %v704_v56 }
 0x31d   : > { %v1771_v57 = vpop.eup %1770 }
 0x31e   : > { %v707_v58 = vsel %vm671_vm8, %v1771_v57, 0.0 }
 0x31f   : > { %708 = vadd.xlane.f32.xlu0 %v707_v58 }
 0x330   : > { %749 = vrot.lane.b32.xlu1 %v668_v32, %s1832_s20 }
 0x333   : > { %747 = vrot.lane.b32.xlu0 %v668_v32, %s1833_s21 }
 0x338   : > { %871 = vrot.lane.b32.xlu1 %v668_v32, %s1834_s22 }
 0x33b   : > { %869 = vrot.lane.b32.xlu0 %v668_v32, %s1835_s23 }
 0x340   : > { %970 = vrot.lane.b32.xlu1 %v668_v32, %s1836_s24 }
 0x38a   : > { %v706_v60 = vpop.xlane.xlu1 %705 }
 0x38b   : > { %1772 = vrcp.f32 %v706_v60 }
 0x391   : > { %v1773_v62 = vpop.eup %1772 }
 0x392   : > { %v709_v61 = vpop.xlane.xlu0 %708  ;;  %v712_v63 = vmul.f32 %v1773_v62, %v1769_v54 }
 0x393   : > { %1774 = vrcp.f32 %v709_v61 }
 0x394   : > { %v714_v3 = vpack.c.bf16 %v712_v63, %v712_v63 }
 0x396   : > { %v718_v6 = vunpack.c.l.b16 %v714_v3 }
 0x399   : > { %v1775_v1 = vpop.eup %1774 }
 0x39a   : > { %v713_v4 = vmul.f32 %v1775_v1, %v1771_v57 }
 0x39c   : > { %v715_v5 = vpack.c.bf16 %v713_v4, %v713_v4 }
 0x39e   : > { %v719_v7 = vunpack.c.l.b16 %v715_v5 }
 0x3a0   : > { %v720_v9 = vpack.c.b16 %v719_v7, %v718_v6 }
 0x3a2   : > { %1570 = vmatmul.msk.bf16.vlgmr.msrb.gmra.mxu1 %vm671_vm8, %v720_v9  ;;  %v750_v12 = vpop.permute.xlu1 %749 }
 0x3a3   : > { %987 = vmatpush.bf16.xpose.msrb.mxu1 %v978_v11  ;;  %v755_v13 = vsel %vm671_vm8, %v750_v12, 0 }
 0x3a4   : > { %764 = vmatpush.bf16.xpose.msra.mxu3 %v755_v13 }
 0x3a5   : > { %v748_v14 = vpop.permute.xlu0 %747 }
 0x3aa   : > { %v872_v15 = vpop.permute.xlu1 %871 }
 0x3ab   : > { %1571 = vmatmul.msk.bf16.vlgmr.msra.gmra.mxu3 %vm671_vm8, %v748_v14  ;;  %v877_v16 = vsel %vm671_vm8, %v872_v15, 0 }
 0x3ac   : > { %886 = vmatpush.bf16.xpose.msrb.mxu3 %v877_v16 }
 0x3ad   : > { %v870_v17 = vpop.permute.xlu0 %869 }
 0x3b2   : > { %v971_v26 = vpop.permute.xlu1 %970 }
 0x3bb   : > { %1583 = vmatmul.msk.bf16.vlgmr.msrb.gmra.mxu3 %vm671_vm8, %v870_v17 }
 0x41f   : > { %v739_v18 = vpop.f32.mrf.mxu1 }
 0x427   : > { %v741_v19 = vpop.f32.mrf.mxu1 }
 0x428   : > { %v744_v20 = vpack.c.bf16 %v741_v19, %v739_v18 }
 0x42a   : > { %1582 = vmatmul.msk.bf16.vlgmr.msra.gmra.mxu1 %vm671_vm8, %v744_v20 }
 0x42e   : > { %v766_v21 = vpop.f32.mrf.mxu3 }
 0x42f   : > { %v767_v22 = vadd.f32 %v766_v21, %v2025_v41 }
 0x431   : > { %v771_v23 = vsel %vm671_vm8, %v767_v22, -inf }
 0x432   : > { %772 = vmax.xlane.f32.xlu0 %v771_v23 }
 0x436   : > { %v768_v24 = vpop.f32.mrf.mxu3 }
 0x437   : > { %v769_v25 = vadd.f32 %v768_v24, %v2029_v45 }
 0x439   : > { %v774_v27 = vsel %vm671_vm8, %v769_v25, -inf }
 0x43a   : > { %775 = vmax.xlane.f32.xlu1 %v774_v27  ;;  %1590 = vmatmul.msk.bf16.vlgmr.msrb.gmra.mxu1 %vm671_vm8, %v971_v26 }
 0x43e   : > { %v888_v28 = vpop.f32.mrf.mxu3 }
 0x43f   : > { %v889_v29 = vadd.f32 %v888_v28, %v2025_v41 }
 0x441   : > { %v893_v30 = vsel %vm671_vm8, %v889_v29, -inf }
 0x442   : > { %894 = vmax.xlane.f32.xlu1 %v893_v30 }
 0x446   : > { %v890_v54 = vpop.f32.mrf.mxu3 }
 0x447   : > { %v891_v55 = vadd.f32 %v890_v54, %v2029_v45 }
 0x449   : > { %v896_v56 = vsel %vm671_vm8, %v891_v55, -inf }
 0x4a5   : > { %v773_v34 = vpop.xlane.xlu0 %772 }
 0x4a6   : > { %v777_v38 = vsub.f32 %v767_v22, %v773_v34 }
 0x4a7   : > { %v2055_v31 = vpop.f32.mrf.mxu1 }
 0x4a8   : > { %v779_v39 = vmul.f32 1.442695, %v777_v38 }
 0x4ad   : > { %v776_v32 = vpop.xlane.xlu1 %775 }
 0x4ae   : > { %v778_v35 = vsub.f32 %v769_v25, %v776_v32  ;;  %v1712_v25 = vld [vmem:[%s2281_s5 + $0x8] sm:$0xff] }
 0x4af   : > { %v2057_v36 = vpop.f32.mrf.mxu1  ;;  %839 = vmatpush.bf16.msra.mxu0 %v1712_v25 }
 0x4b0   : > { %v781_v37 = vmul.f32 1.442695, %v778_v35 }
 0x4b2   : > { %1776 = vpow2.f32 %v781_v37 }
 0x4b3   : > { %1778 = vpow2.f32 %v779_v39 }
 0x4b5   : > { %v895_v47 = vpop.xlane.xlu1 %894 }
 0x4b6   : > { %v899_v51 = vsub.f32 %v889_v29, %v895_v47 }
 0x4b7   : > { %v989_v40 = vpop.f32.mrf.mxu1 }
 0x4b8   : > { %v1777_v42 = vpop.eup %1776  ;;  %v990_v43 = vadd.f32 %v989_v40, %v2025_v41  ;;  %v901_v41 = vmul.f32 1.442695, %v899_v51 }
 0x4b9   : > { %v786_v44 = vsel %vm671_vm8, %v1777_v42, 0.0  ;;  %v1779_v48 = vpop.eup %1778 }
 0x4ba   : > { %787 = vadd.xlane.f32.xlu1 %v786_v44  ;;  %v994_v46 = vsel %vm671_vm8, %v990_v43, -inf  ;;  %v783_v53 = vsel %vm671_vm8, %v1779_v48, 0.0  ;;  %1780 = vpow2.f32 %v901_v41 }
 0x4bb   : > { %995 = vmax.xlane.f32.xlu2 %v994_v46 }
 0x4bf   : > { %v991_v49 = vpop.f32.mrf.mxu1 }
 0x4c0   : > { %v992_v50 = vadd.f32 %v991_v49, %v2029_v45  ;;  %v1781_v57 = vpop.eup %1780 }
 0x4c1   : > { %v905_v58 = vsel %vm671_vm8, %v1781_v57, 0.0 }
 0x4c2   : > { %v997_v52 = vsel %vm671_vm8, %v992_v50, -inf }
 0x4c3   : > { %998 = vmax.xlane.f32.xlu0 %v997_v52  ;;  %784 = vadd.xlane.f32.xlu2 %v783_v53 }
 0x4cb   : > { %897 = vmax.xlane.f32.xlu0 %v896_v56  ;;  %v1714_v56 = vld [vmem:[%s2281_s5 + $0x18] sm:$0xff] }
 0x4d3   : > { %800 = vrot.lane.b32.xlu1 %v2020_v33, %s1833_s21  ;;  %906 = vadd.xlane.f32.xlu0 %v905_v58 }
 0x52d   : > { %v788_v61 = vpop.xlane.xlu1 %787 }
 0x52e   : > { %v996_v59 = vpop.xlane.xlu2 %995 }
 0x52f   : > { %v1000_v60 = vsub.f32 %v990_v43, %v996_v59 }
 0x531   : > { %v1002_v62 = vmul.f32 1.442695, %v1000_v60 }
 0x533   : > { %1782 = vpow2.f32 %v1002_v62 }
 0x534   : > { %1784 = vrcp.f32 %v788_v61 }
 0x536   : > { %v999_v63 = vpop.xlane.xlu0 %998  ;;  %v785_v1 = vpop.xlane.xlu2 %784 }
 0x537   : > { %1786 = vrcp.f32 %v785_v1  ;;  %v1001_v12 = vsub.f32 %v992_v50, %v999_v63 }
 0x539   : > { %v1783_v45 = vpop.eup %1782  ;;  %v1004_v16 = vmul.f32 1.442695, %v1001_v12 }
 0x53a   : > { %v1785_v3 = vpop.eup %1784  ;;  %v1006_v4 = vsel %vm671_vm8, %v1783_v45, 0.0 }
 0x53b   : > { %1007 = vadd.xlane.f32.xlu0 %v1006_v4  ;;  %v792_v6 = vmul.f32 %v1785_v3, %v1777_v42 }
 0x53d   : > { %v1787_v5 = vpop.eup %1786  ;;  %v794_v14 = vpack.c.bf16 %v792_v6, %v792_v6 }
 0x53e   : > { %v898_v7 = vpop.xlane.xlu0 %897  ;;  %v791_v8 = vmul.f32 %v1787_v5, %v1779_v48  ;;  %v1758_v5 = vld [vmem:[%s2282_s6] ss:$0 sm:$0xff] }
 0x53f   : > { %v900_v9 = vsub.f32 %v891_v55, %v898_v7  ;;  %v798_v18 = vunpack.c.l.b16 %v794_v14  ;;  %v1713_v55 = vld [vmem:[%s2281_s5 + $0x10] sm:$0xff] }
 0x540   : > { %v793_v11 = vpack.c.bf16 %v791_v8, %v791_v8  ;;  %961 = vmatpush.bf16.msrb.mxu0 %v1713_v55 }
 0x541   : > { %v903_v13 = vmul.f32 1.442695, %v900_v9 }
 0x542   : > { %v797_v15 = vunpack.c.l.b16 %v793_v11 }
 0x543   : > { %1788 = vpow2.f32 %v903_v13 }
 0x544   : > { %v799_v19 = vpack.c.b16 %v798_v18, %v797_v15  ;;  %1790 = vpow2.f32 %v1004_v16 }
 0x545   : > { %v801_v17 = vpop.permute.xlu1 %800 }
 0x546   : > { %813 = vmatpush.bf16.msra.mxu2 %v801_v17  ;;  %v907_v24 = vpop.xlane.xlu0 %906 }
 0x547   : > { %1792 = vrcp.f32 %v907_v24 }
 0x549   : > { %v1789_v20 = vpop.eup %1788  ;;  %1572 = vmatmul.msk.bf16.vlgmr.msra.gmra.mxu2 %vm671_vm8, %v799_v19 }
 0x54a   : > { %v908_v21 = vsel %vm671_vm8, %v1789_v20, 0.0  ;;  %v1791_v22 = vpop.eup %1790 }
 0x54b   : > { %909 = vadd.xlane.f32.xlu2 %v908_v21  ;;  %v1009_v23 = vsel %vm671_vm8, %v1791_v22, 0.0 }
 0x54d   : > { %v1793_v29 = vpop.eup %1792 }
 0x54e   : > { %v913_v32 = vmul.f32 %v1793_v29, %v1781_v57 }
 0x54f   : > { %1023 = vrot.lane.b32.xlu0 %v2020_v33, %s1836_s24 }
 0x550   : > { %v915_v38 = vpack.c.bf16 %v913_v32, %v913_v32 }
 0x552   : > { %v919_v44 = vunpack.c.l.b16 %v915_v38  ;;  %v1617_v38 = vld [vmem:[%s2285_s9 + $0x28] sm:$0xf0] }
 0x553   : > { %1010 = vadd.xlane.f32.xlu2 %v1009_v23 }
 0x56b   : > { %922 = vrot.lane.b32.xlu2 %v2020_v33, %s1835_s23 }
 0x5ae   : > { %v1008_v26 = vpop.xlane.xlu0 %1007 }
 0x5be   : > { %v910_v27 = vpop.xlane.xlu2 %909 }
 0x5bf   : > { %1794 = vrcp.f32 %v910_v27  ;;  %v1722_v27 = vld [vmem:[%s2285_s9 + $0x34] sm:$0xf0] }
 0x5c0   : > { %1796 = vrcp.f32 %v1008_v26  ;;  %v1623_v26 = vld [vmem:[%s2285_s9 + $0x30] sm:$0xf] }
 0x5c1   : > { %v1024_v28 = vpop.permute.xlu0 %1023  ;;  %v1624_v29 = vor.u32 %v1722_v27, %v1623_v26 }
 0x5c2   : > { %1036 = vmatpush.bf16.msra.mxu3 %v1024_v28  ;;  %v1721_v28 = vld [vmem:[%s2285_s9 + $0x34] sm:$0xf] }
 0x5c5   : > { %v1795_v30 = vpop.eup %1794 }
 0x5c6   : > { %v914_v34 = vmul.f32 %v1795_v30, %v1789_v20  ;;  %v1011_v35 = vpop.xlane.xlu2 %1010  ;;  %v1797_v37 = vpop.eup %1796  ;;  %v1625_v30 = vld [vmem:[%s2285_s9 + $0x38] sm:$0xf0] }
 0x5c7   : > { %1798 = vrcp.f32 %v1011_v35  ;;  %v1014_v39 = vmul.f32 %v1797_v37, %v1783_v45  ;;  %v1628_v32 = vor.u32 %v1721_v28, %v1625_v30  ;;  %v1720_v35 = vld [vmem:[%s2285_s9 + $0x24] sm:$0xf0]  ;;  %v1719_v37 = vld [vmem:[%s2285_s9 + $0x24] sm:$0xf]  ;;  %v1726_v30 = vld [vmem:[%s2287_s11 + $0x18] sm:$0xff] }
 0x5c8   : > { %v916_v33 = vpack.c.bf16 %v914_v34, %v914_v34  ;;  %v1615_v34 = vld [vmem:[%s2285_s9 + $0x20] sm:$0xf] }
 0x5c9   : > { %v1016_v46 = vpack.c.bf16 %v1014_v39, %v1014_v39  ;;  %1211 = vmatpush.bf16.msra.mxu1 %v1628_v32  ;;  %v1620_v39 = vor.u32 %v1719_v37, %v1617_v38  ;;  %v1734_v32 = vld [vmem:[%s2287_s11 + $0x58] sm:$0xff]  ;;  %v1725_v38 = vld [vmem:[%s2287_s11 + $0x10] sm:$0xff] }
 0x5ca   : > { %v920_v40 = vunpack.c.l.b16 %v916_v33  ;;  %v1616_v33 = vor.u32 %v1720_v35, %v1615_v34 }
 0x5cb   : > { %v1020_v51 = vunpack.c.l.b16 %v1016_v46  ;;  %v1609_v46 = vld [vmem:[%s2285_s9 + $0x18] sm:$0xf0] }
 0x5cc   : > { %v815_v42 = vpop.f32.mrf.mxu2  ;;  %v921_v50 = vpack.c.b16 %v920_v40, %v919_v44  ;;  %v1607_v40 = vld [vmem:[%s2285_s9 + $0x10] sm:$0xf] }
 0x5cd   : > { %v1799_v43 = vpop.eup %1798  ;;  %1212 = vmatpush.bf16.msra.mxu1 %v1620_v39  ;;  %v1733_v39 = vld [vmem:[%s2287_s11 + $0x50] sm:$0xff] }
 0x5ce   : > { %v1015_v47 = vmul.f32 %v1799_v43, %v1791_v22  ;;  %v923_v48 = vpop.permute.xlu2 %922  ;;  %v1717_v43 = vld [vmem:[%s2285_s9 + $0x14] sm:$0xf] }
 0x5cf   : > { %935 = vmatpush.bf16.msrb.mxu2 %v923_v48  ;;  %v1612_v48 = vor.u32 %v1717_v43, %v1609_v46  ;;  %v1724_v46 = vld [vmem:[%s2287_s11 + $0x8] sm:$0xff] }
 0x5d0   : > { %v1017_v49 = vpack.c.bf16 %v1015_v47, %v1015_v47 }
 0x5d1   : > { %1213 = vmatpush.bf16.msra.mxu1 %v1612_v48 }
 0x5d2   : > { %v1021_v52 = vunpack.c.l.b16 %v1017_v49  ;;  %1584 = vmatmul.msk.bf16.vlgmr.msrb.gmra.mxu2 %vm671_vm8, %v921_v50  ;;  %v1599_v50 = vld [vmem:[%s2285_s9] sm:$0xf] }
 0x5d3   : > { %1062 = vmatpush.bf16.msra.mxu2 %v1714_v56 }
 0x5d4   : > { %v1022_v53 = vpack.c.b16 %v1021_v52, %v1020_v51  ;;  %v817_v54 = vpop.f32.mrf.mxu2  ;;  %v1716_v51 = vld [vmem:[%s2285_s9 + $0x4] sm:$0xf0]  ;;  %v1715_v52 = vld [vmem:[%s2285_s9 + $0x4] sm:$0xf] }
 0x5d5   : > { %v820_v41 = vpack.c.bf16 %v817_v54, %v815_v42  ;;  %v1718_v42 = vld [vmem:[%s2285_s9 + $0x14] sm:$0xf0]  ;;  %v1600_v54 = vor.u32 %v1716_v51, %v1599_v50 }
 0x5d6   : > { %1591 = vmatmul.msk.bf16.vlgmr.msra.gmra.mxu3 %vm671_vm8, %v1022_v53  ;;  %v1608_v44 = vor.u32 %v1718_v42, %v1607_v40 }
 0x5d7   : > { %1577 = vmatmul.msk.bf16.vlgmr.msra.gmra.mxu0 %vm671_vm8, %v820_v41  ;;  %v1601_v41 = vld [vmem:[%s2285_s9 + $0x8] sm:$0xf0] }
 0x5d8   : > { %1197 = vmatpush.bf16.msra.mxu0 %v1624_v29  ;;  %v1604_v55 = vor.u32 %v1715_v52, %v1601_v41  ;;  %v1723_v52 = vld [vmem:[%s2287_s11] sm:$0xff] }
 0x5da   : > { %1214 = vmatpush.bf16.msra.mxu1 %v1604_v55 }
 0x5dc   : > { %1198 = vmatpush.bf16.msra.mxu0 %v1616_v33 }
 0x5e0   : > { %1199 = vmatpush.bf16.msra.mxu0 %v1608_v44 }
 0x5e4   : > { %1200 = vmatpush.bf16.msra.mxu0 %v1600_v54 }
 0x654   : > { %v841_v63 = vpop.f32.mrf.mxu0 }
 0x655   : > { %v937_v57 = vpop.f32.mrf.mxu2  ;;  %v865_v3 = vadd.f32 %v2055_v31, %v841_v63 }
 0x659   : > { %v1038_v58 = vpop.f32.mrf.mxu3 }
 0x65c   : > { %v843_v1 = vpop.f32.mrf.mxu0 }
 0x65d   : > { %v939_v59 = vpop.f32.mrf.mxu2  ;;  %v867_v11 = vadd.f32 %v2057_v36, %v843_v1 }
 0x65e   : > { %v942_v60 = vpack.c.bf16 %v939_v59, %v937_v57 }
 0x660   : > { %1589 = vmatmul.msk.bf16.vlgmr.msrb.gmra.mxu0 %vm671_vm8, %v942_v60 }
 0x661   : > { %v1040_v61 = vpop.f32.mrf.mxu3 }
 0x662   : > { %v1043_v62 = vpack.c.bf16 %v1040_v61, %v1038_v58 }
 0x664   : > { %1596 = vmatmul.msk.bf16.vlgmr.msra.gmra.mxu2 %vm671_vm8, %v1043_v62 }
 0x6dd   : > { %v963_v45 = vpop.f32.mrf.mxu0 }
 0x6de   : > { %v968_v4 = vadd.f32 %v963_v45, %v865_v3 }
 0x6e5   : > { %v965_v9 = vpop.f32.mrf.mxu0 }
 0x6e6   : > { %v969_v13 = vadd.f32 %v965_v9, %v867_v11 }
 0x6e7   : > { %v1064_v6 = vpop.f32.mrf.mxu2 }
 0x6e8   : > { %v1069_v7 = vadd.f32 %v1064_v6, %v968_v4 }
 0x6ea   : > { %v1075_v8 = vadd.f32 %v1758_v5, %v1069_v7 }
 0x6ec   : > { %v2098_v12 = vadd.f32 %v1075_v8, %v1933_v0 }
 0x6ee   : > { %v1081_v14 = vsel %vm500_vm0, %v2098_v12, 0.0 }
 0x6ef   : > { %v1066_v15 = vpop.f32.mrf.mxu2  ;;  %1082 = vadd.xlane.f32.xlu1 %v1081_v14 }
 0x6f0   : > { %v1070_v31 = vadd.f32 %v1066_v15, %v969_v13  ;;  %v1760_v13 = vld [vmem:[%s2284_s8] ss:$0 sm:$0xff] }
 0x6f2   : > { %v1076_v16 = vadd.f32 %v1758_v5, %v1070_v31 }
 0x6f4   : > { %v2103_v17 = vadd.f32 %v1076_v16, %v1937_v2 }
 0x6f6   : > { %v1084_v18 = vsel %vm500_vm0, %v2103_v17, 0.0 }
 0x6f7   : > { %1085 = vadd.xlane.f32.xlu0 %v1084_v18 }
 0x762   : > { %v1083_v19 = vpop.xlane.xlu1 %1082 }
 0x763   : > { %v1087_v36 = vmul.f32 %v1083_v19, %v1941_v10 }
 0x765   : > { %v2109_v0 = vsub.f32 %v2098_v12, %v1087_v36  ;;  %v1730_v36 = vld [vmem:[%s2287_s11 + $0x38] sm:$0xff] }
 0x766   : > { %1439 = vmatpush.bf16.msrb.mxu3 %v1730_v36 }
 0x767   : > { %v1091_v20 = vmul.f32 %v2109_v0, %v2109_v0 }
 0x769   : > { %v1093_v21 = vsel %vm500_vm0, %v1091_v20, 0.0  ;;  %v1729_v20 = vld [vmem:[%s2287_s11 + $0x30] sm:$0xff] }
 0x76a   : > { %1094 = vadd.xlane.f32.xlu2 %v1093_v21  ;;  %v1086_v22 = vpop.xlane.xlu0 %1085  ;;  %v1737_v21 = vld [vmem:[%s2287_s11 + $0x70] sm:$0xff]  ;;  %1440 = vmatpush.bf16.msrb.mxu3 %v1729_v20 }
 0x76b   : > { %v1088_v2 = vmul.f32 %v1086_v22, %v1941_v10  ;;  %v1728_v22 = vld [vmem:[%s2287_s11 + $0x28] sm:$0xff] }
 0x76d   : > { %v2116_v23 = vsub.f32 %v2103_v17, %v1088_v2  ;;  %v1736_v2 = vld [vmem:[%s2287_s11 + $0x68] sm:$0xff] }
 0x76e   : > { %1441 = vmatpush.bf16.msrb.mxu3 %v1728_v22 }
 0x76f   : > { %v1092_v24 = vmul.f32 %v2116_v23, %v2116_v23 }
 0x771   : > { %v1096_v25 = vsel %vm500_vm0, %v1092_v24, 0.0  ;;  %v1727_v24 = vld [vmem:[%s2287_s11 + $0x20] sm:$0xff] }
 0x772   : > { %1097 = vadd.xlane.f32.xlu1 %v1096_v25  ;;  %v1735_v25 = vld [vmem:[%s2287_s11 + $0x60] sm:$0xff]  ;;  %1442 = vmatpush.bf16.msrb.mxu3 %v1727_v24 }
 0x776   : > { %1443 = vmatpush.bf16.msrb.mxu3 %v1726_v30 }
 0x77a   : > { %1444 = vmatpush.bf16.msrb.mxu3 %v1725_v38 }
 0x77e   : > { %1445 = vmatpush.bf16.msrb.mxu3 %v1724_v46 }
 0x782   : > { %1446 = vmatpush.bf16.msrb.mxu3 %v1723_v52 }
 0x7dd   : > { %v1095_v47 = vpop.xlane.xlu2 %1094 }
 0x7de   : > { %v1099_v49 = vmul.f32 %v1095_v47, %v1941_v10  ;;  %v1732_v47 = vld [vmem:[%s2287_s11 + $0x48] sm:$0xff] }
 0x7e0   : > { %v1101_v53 = vadd.f32 1e-05, %v1099_v49 }
 0x7e2   : > { %1800 = vrsqrt.f32 %v1101_v53  ;;  %vm1109_vm15 = vweird.f32 %v1101_v53 }
 0x7e5   : > { %v1098_v56 = vpop.xlane.xlu1 %1097 }
 0x7e6   : > { %v1100_v57 = vmul.f32 %v1098_v56, %v1941_v10  ;;  %v1759_v10 = vld [vmem:[%s2283_s7] ss:$0 sm:$0xff] }
 0x7e8   : > { %v1801_v58 = vpop.eup %1800  ;;  %v1102_v59 = vadd.f32 1e-05, %v1100_v57 }
 0x7e9   : > { %v1104_v60 = vmul.f32 %v1801_v58, %v1101_v53  ;;  %vm1110_vm14 = vweird.f32 %v1801_v58  ;;  %v1731_v53 = vld [vmem:[%s2287_s11 + $0x40] sm:$0xff] }
 0x7ea   : > { %1802 = vrsqrt.f32 %v1102_v59  ;;  %vm1111_vm1 = vmor %vm1109_vm15, %vm1110_vm14  ;;  %vm1119_vm3 = vweird.f32 %v1102_v59 }
 0x7eb   : > { %v1105_v61 = vmul.f32 %v1801_v58, %v1104_v60 }
 0x7ed   : > { %v1106_v62 = vmul.f32 0.5, %v1105_v61 }
 0x7ef   : > { %v1107_v63 = vsub.f32 1.5, %v1106_v62 }
 0x7f0   : > { %v1803_v1 = vpop.eup %1802 }
 0x7f1   : > { %v1108_v45 = vmul.f32 %v1801_v58, %v1107_v63  ;;  %v1114_v3 = vmul.f32 %v1803_v1, %v1102_v59  ;;  %vm1120_vm2 = vweird.f32 %v1803_v1 }
 0x7f2   : > { %vm1121_vm4 = vmor %vm1119_vm3, %vm1120_vm2 }
 0x7f3   : > { %v1115_v4 = vmul.f32 %v1803_v1, %v1114_v3  ;;  %v1112_v5 = vsel %vm1111_vm1, %v1801_v58, %v1108_v45 }
 0x7f4   : > { %v1123_v8 = vmul.f32 %v1112_v5, %v2109_v0  ;;  %v1738_v0 = vld [vmem:[%s2287_s11 + $0x78] sm:$0xff] }
 0x7f5   : > { %v1116_v6 = vmul.f32 0.5, %v1115_v4  ;;  %1453 = vmatpush.bf16.msrb.mxu2 %v1738_v0 }
 0x7f6   : > { %v1128_v14 = vmul.f32 %v1759_v10, %v1123_v8 }
 0x7f7   : > { %v1117_v7 = vsub.f32 1.5, %v1116_v6 }
 0x7f8   : > { %v1133_v16 = vadd.f32 %v1760_v13, %v1128_v14 }
 0x7f9   : > { %v1118_v9 = vmul.f32 %v1803_v1, %v1117_v7  ;;  %1454 = vmatpush.bf16.msrb.mxu2 %v1737_v21 }
 0x7fb   : > { %v1122_v11 = vsel %vm1121_vm4, %v1803_v1, %v1118_v9 }
 0x7fc   : > { %v1124_v15 = vmul.f32 %v1122_v11, %v2116_v23  ;;  %v1136_v23 = vld [vmem:[%s2286_s10] sm:$0x3] }
 0x7fd   : > { %1455 = vmatpush.bf16.msrb.mxu2 %v1736_v2  ;;  %v1146_v26 = vperm.slane %v1136_v23, 0  ;;  %v1147_v27 = vperm.slane %v1136_v23, 1 }
 0x7fe   : > { %v1129_v31 = vmul.f32 %v1759_v10, %v1124_v15 }
 0x800   : > { %v1134_v18 = vadd.f32 %v1760_v13, %v1129_v31 }
 0x801   : > { %1456 = vmatpush.bf16.msrb.mxu2 %v1735_v25 }
 0x802   : > { %v1135_v19 = vpack.c.bf16 %v1134_v18, %v1133_v16 }
 0x804   : > { %1629 = vmatmul.msk.bf16.vlgmr.msra.gmra.mxu0 %vm500_vm0, %v1135_v19  ;;  %1630 = vmatmul.msk.bf16.vlgmr.msra.gmra.mxu1 %vm500_vm0, %v1135_v19 }
 0x805   : > { %1457 = vmatpush.bf16.msrb.mxu2 %v1734_v32 }
 0x809   : > { %1458 = vmatpush.bf16.msrb.mxu2 %v1733_v39 }
 0x80d   : > { %1459 = vmatpush.bf16.msrb.mxu2 %v1732_v47 }
 0x811   : > { %1460 = vmatpush.bf16.msrb.mxu2 %v1731_v53 }
 0x881   : > { %v1202_v28 = vpop.f32.mrf.mxu0  ;;  %v1216_v29 = vpop.f32.mrf.mxu1 }
 0x882   : > { %v2214_v34 = vadd.f32 %v1202_v28, %v1146_v26  ;;  %v2216_v35 = vadd.f32 %v1216_v29, %v1147_v27 }
 0x884   : > { %v1631_v37 = vmul.f32 -1.702, %v2214_v34  ;;  %v1632_v33 = vmul.f32 -1.702, %v2216_v35 }
 0x886   : > { %v1229_v40 = vmul.f32 1.442695, %v1631_v37  ;;  %v1231_v42 = vmul.f32 1.442695, %v1632_v33 }
 0x888   : > { %1804 = vpow2.f32 %v1229_v40 }
 0x889   : > { %1806 = vpow2.f32 %v1231_v42  ;;  %v1204_v43 = vpop.f32.mrf.mxu0  ;;  %v1218_v44 = vpop.f32.mrf.mxu1 }
 0x88a   : > { %v2232_v48 = vadd.f32 %v1204_v43, %v1146_v26  ;;  %v2234_v49 = vadd.f32 %v1218_v44, %v1147_v27 }
 0x88c   : > { %v1633_v50 = vmul.f32 -1.702, %v2232_v48  ;;  %v1634_v51 = vmul.f32 -1.702, %v2234_v49 }
 0x88e   : > { %v1805_v54 = vpop.eup %1804  ;;  %v1233_v41 = vmul.f32 1.442695, %v1633_v50  ;;  %v1235_v57 = vmul.f32 1.442695, %v1634_v51 }
 0x88f   : > { %v1807_v55 = vpop.eup %1806  ;;  %v1237_v56 = vadd.f32 1.0, %v1805_v54 }
 0x890   : > { %v1238_v58 = vadd.f32 1.0, %v1807_v55  ;;  %1808 = vpow2.f32 %v1233_v41 }
 0x891   : > { %1810 = vrcp.f32 %v1237_v56  ;;  %vm1246_vm6 = vweird.f32 %v1237_v56  ;;  %v1250_v11 = vand.u32 2147483647, %v1237_v56  ;;  %v1252_v13 = vand.u32 2147483648, %v1237_v56 }
 0x892   : > { %1812 = vrcp.f32 %v1238_v58  ;;  %vm1261_vm7 = vweird.f32 %v1238_v58  ;;  %v1265_v15 = vand.u32 2147483647, %v1238_v58  ;;  %v1267_v36 = vand.u32 2147483648, %v1238_v58 }
 0x893   : > { %1814 = vpow2.f32 %v1235_v57  ;;  %vm1251_vm11 = vcmp.eq.f32.partialorder %v1250_v11, 8.507059e+37  ;;  %v1253_v2 = vor.u32 1.1754944e-38, %v1252_v13 }
 0x894   : > { %v1268_v37 = vor.u32 1.1754944e-38, %v1267_v36  ;;  %vm1266_vm2 = vcmp.eq.f32.partialorder %v1265_v15, 8.507059e+37 }
 0x896   : > { %v1809_v59 = vpop.eup %1808 }
 0x897   : > { %v1811_v60 = vpop.eup %1810  ;;  %v1239_v61 = vadd.f32 1.0, %v1809_v59 }
 0x898   : > { %v1813_v62 = vpop.eup %1812  ;;  %v1242_v63 = vmul.f32 %v1811_v60, %v1237_v56  ;;  %vm1247_vm5 = vweird.f32 %v1811_v60 }
 0x899   : > { %v1815_v1 = vpop.eup %1814  ;;  %v1257_v45 = vmul.f32 %v1813_v62, %v1238_v58  ;;  %1816 = vrcp.f32 %v1239_v61  ;;  %v1282_v16 = vand.u32 2147483648, %v1239_v61  ;;  %vm2244_vm8 = vmor %vm1246_vm6, %vm1247_vm5  ;;  %vm1262_vm9 = vweird.f32 %v1813_v62 }
 0x89a   : > { %v1243_v3 = vsub.f32 1.0, %v1242_v63  ;;  %v1240_v4 = vadd.f32 1.0, %v1815_v1  ;;  %v1280_v22 = vand.u32 2147483647, %v1239_v61  ;;  %vm1276_vm12 = vweird.f32 %v1239_v61  ;;  %vm2251_vm13 = vmor %vm1261_vm7, %vm1262_vm9 }
 0x89b   : > { %v1258_v5 = vsub.f32 1.0, %v1257_v45  ;;  %v1283_v26 = vor.u32 1.1754944e-38, %v1282_v16 }
 0x89c   : > { %v1244_v6 = vmul.f32 %v1811_v60, %v1243_v3  ;;  %1818 = vrcp.f32 %v1240_v4  ;;  %v1295_v27 = vand.u32 2147483647, %v1240_v4  ;;  %v1297_v28 = vand.u32 2147483648, %v1240_v4 }
 0x89d   : > { %v1259_v10 = vmul.f32 %v1813_v62, %v1258_v5  ;;  %vm1281_vm1 = vcmp.eq.f32.partialorder %v1280_v22, 8.507059e+37  ;;  %vm1291_vm3 = vweird.f32 %v1240_v4 }
 0x89e   : > { %v1245_v8 = vadd.f32 %v1811_v60, %v1244_v6  ;;  %v1298_v44 = vor.u32 1.1754944e-38, %v1297_v28  ;;  %vm1296_vm5 = vcmp.eq.f32.partialorder %v1295_v27, 8.507059e+37 }
 0x89f   : > { %v1817_v7 = vpop.eup %1816  ;;  %v1260_v19 = vadd.f32 %v1813_v62, %v1259_v10 }
 0x8a0   : > { %v1272_v9 = vmul.f32 %v1817_v7, %v1239_v61  ;;  %v1249_v20 = vsel %vm2244_vm8, %v1811_v60, %v1245_v8  ;;  %vm1277_vm10 = vweird.f32 %v1817_v7 }
 0x8a1   : > { %v1254_v29 = vsel %vm1251_vm11, %v1253_v2, %v1249_v20  ;;  %v1264_v30 = vsel %vm2251_vm13, %v1813_v62, %v1260_v19  ;;  %vm1278_vm14 = vmor %vm1276_vm12, %vm1277_vm10 }
 0x8a2   : > { %v1819_v14 = vpop.eup %1818  ;;  %v1273_v31 = vsub.f32 1.0, %v1272_v9  ;;  %v1301_v40 = vmul.f32 %v1254_v29, %v2214_v34  ;;  %v1269_v42 = vsel %vm1266_vm2, %v1268_v37, %v1264_v30  ;;  %v1761_v34 = vld [vmem:[%s2288_s12] ss:$0 sm:$0xff] }
 0x8a3   : > { %v1287_v0 = vmul.f32 %v1819_v14, %v1240_v4  ;;  %vm1292_vm15 = vweird.f32 %v1819_v14  ;;  %v1302_v51 = vmul.f32 %v1269_v42, %v2216_v35 }
 0x8a4   : > { %v1274_v21 = vmul.f32 %v1817_v7, %v1273_v31  ;;  %vm1293_vm4 = vmor %vm1291_vm3, %vm1292_vm15 }
 0x8a5   : > { %v1288_v23 = vsub.f32 1.0, %v1287_v0 }
 0x8a6   : > { %v1275_v25 = vadd.f32 %v1817_v7, %v1274_v21 }
 0x8a7   : > { %v1289_v32 = vmul.f32 %v1819_v14, %v1288_v23 }
 0x8a8   : > { %v1279_v33 = vsel %vm1278_vm14, %v1817_v7, %v1275_v25 }
 0x8a9   : > { %v1284_v38 = vsel %vm1281_vm1, %v1283_v26, %v1279_v33  ;;  %v1290_v39 = vadd.f32 %v1819_v14, %v1289_v32 }
 0x8aa   : > { %v1303_v43 = vmul.f32 %v1284_v38, %v2232_v48 }
 0x8ab   : > { %v1294_v46 = vsel %vm1293_vm4, %v1819_v14, %v1290_v39 }
 0x8ac   : > { %v1305_v47 = vpack.c.bf16 %v1303_v43, %v1301_v40  ;;  %v1299_v50 = vsel %vm1296_vm5, %v1298_v44, %v1294_v46 }
 0x8ad   : > { %v1304_v52 = vmul.f32 %v1299_v50, %v2234_v49 }
 0x8ae   : > { %1447 = vmatmul.bf16.vlgmr.msrb.gmra.mxu3 %v1305_v47 }
 0x8af   : > { %v1306_v53 = vpack.c.bf16 %v1304_v52, %v1302_v51 }
 0x8b1   : > { %1461 = vmatmul.bf16.vlgmr.msrb.gmra.mxu2 %v1306_v53 }
 0x931   : > { %v1448_v54 = vpop.f32.mrf.mxu3 }
 0x932   : > { %v1449_v48 = vadd.f32 %v1761_v34, %v1448_v54 }
 0x934   : > { %v1462_v41 = vpop.f32.mrf.mxu2 }
 0x935   : > { %v1463_v55 = vadd.f32 %v1462_v41, %v1449_v48 }
 0x937   : > { %v1467_v35 = vadd.f32 %v1463_v55, %v2098_v12 }
 0x939   : > { %1469 = vst.msk [vmem:[%s494_s25] sm:$0xff] %vm500_vm0, %v1467_v35  ;;  %v1450_v49 = vpop.f32.mrf.mxu3 }
 0x93a   : > { %v1451_v56 = vadd.f32 %v1761_v34, %v1450_v49 }
 0x93c   : > { %v1464_v57 = vpop.f32.mrf.mxu2 }
 0x93d   : > { %v1465_v58 = vadd.f32 %v1464_v57, %v1451_v56 }
 0x93f   : > { %v1468_v59 = vadd.f32 %v1465_v58, %v2103_v17 }
 0x941   : > { %1470 = vst.msk [vmem:[%s494_s25 + $0x8] sm:$0xff] %vm500_vm0, %v1468_v59 }
 0x942 PF: > { %s25_s18 = sadd.s32 1, %s1826_s18  }
 0x943   : > { %p22_p4 = scmp.ge.s32.totalorder %s25_s18, 4  }
 0x945   :  { %24 = sbr.rel (!%p22_p4) target bundleno = 1 (0x1), region = 110 }

// kernel: clip_forward.2
= control target key start
LH: loop header
LB: loop body
LE: loop exit
PB: predicated region body
PF: predicated region fallthrough
CT: control target
= control target key end

     0   :  { %s1917_s18 = smov 0   ;;  %s2276_s0 = inlined_call_operand.vmem [shape: f32[2,16,64], index: 0, kind: input, shape index: {}]   ;;  %s2277_s1 = inlined_call_operand.vmem [shape: f32[1,64], index: 1, kind: input, shape index: {}]   ;;  %s2278_s2 = inlined_call_operand.vmem [shape: f32[1,64], index: 2, kind: input, shape index: {}]   ;;  %s2279_s3 = inlined_call_operand.vmem [shape: bf16[64,192], index: 3, kind: input, shape index: {}]   ;;  %s2280_s4 = inlined_call_operand.vmem [shape: f32[1,192], index: 4, kind: input, shape index: {}]   ;;  %s2281_s5 = inlined_call_operand.vmem [shape: bf16[64,64], index: 5, kind: input, shape index: {}]   ;;  %s2282_s6 = inlined_call_operand.vmem [shape: f32[1,64], index: 6, kind: input, shape index: {}]   ;;  %s2283_s7 = inlined_call_operand.vmem [shape: f32[1,64], index: 7, kind: input, shape index: {}]   ;;  %s2284_s8 = inlined_call_operand.vmem [shape: f32[1,64], index: 8, kind: input, shape index: {}]   ;;  %s2285_s9 = inlined_call_operand.vmem [shape: bf16[64,256], index: 9, kind: input, shape index: {}]   ;;  %s2286_s10 = inlined_call_operand.vmem [shape: f32[1,256], index: 10, kind: input, shape index: {}]   ;;  %s2287_s11 = inlined_call_operand.vmem [shape: bf16[256,64], index: 11, kind: input, shape index: {}]   ;;  %s2288_s12 = inlined_call_operand.vmem [shape: f32[1,64], index: 12, kind: input, shape index: {}]   ;;  %s2289_s13 = inlined_call_operand.vmem [shape: f32[1,64], index: 13, kind: input, shape index: {}]   ;;  %s2290_s14 = inlined_call_operand.vmem [shape: f32[1,64], index: 14, kind: input, shape index: {}]   ;;  %s2291_s15 = inlined_call_operand.vmem [shape: f32[2,16,64], index: 15, kind: output, shape index: {}]  }
   0x1 LB: > { %s1526_s19 = sadd.s32 4294967295, %s1826_s18   ;;  %p1530_p0 = scmp.ge.s32.totalorder %s1826_s18, 1  ;;  %s1826_s18 = sphi %s1917_s18, %s25_s18  }
   0x2   : > { %p437_p1 = scmp.lt.s32.totalorder %s1826_s18, 3 }
   0x4   : > { %p438_p2 = pnand %p1530_p0, %p437_p1 }
   0x5   : > { %p485_p3 = scmp.lt.s32.totalorder (!%p438_p2), %s1526_s19, 1  ;;  %s1829_s17 = smov (!%p438_p2), 64  }
   0x6   : > { %441 = sbr.rel (%p438_p2) target bundleno = 2370 (0x942), region = 80  ;;  %s1831_s14 = smov (!%p438_p2), 16  }
   0x7   : > { %s1832_s20 = smov (!%p438_p2), 48   ;;  %s1834_s22 = smov (!%p438_p2), 32  }
   0x8   : > { %s1835_s23 = smov (!%p438_p2), 96   ;;  %s1836_s24 = smov (!%p438_p2), 80  }
   0xb   : > { %s2297_s19 = smov (!%p485_p3, %s1526_s19), 1  ;;  %vm500_vm0 = vcmask 523264   ;;  %v1828_v4 = vmov 64.0   ;;  %v1561_v21 = vld [vmem:[%s2279_s3 + $0x30] sm:$0xf]  ;;  %vm671_vm8 = vcmask 130048  }
   0xc   : > { %s1701_s13 = sshll.u32 %s2297_s19, 4  ;;  %1762 = vrcp.f32 %v1828_v4  ;;  %v1710_v22 = vld [vmem:[%s2279_s3 + $0x34] sm:$0xf0]  ;;  %v1709_v23 = vld [vmem:[%s2279_s3 + $0x34] sm:$0xf] }
   0xd   : > { %s489_s21 = scalar_lea.vmem %s2276_s0, %s1701_s13  ;;  %v1562_v24 = vor.u32 %v1710_v22, %v1561_v21  ;;  %v1563_v25 = vld [vmem:[%s2279_s3 + $0x38] sm:$0xf0]  ;;  %v1553_v27 = vld [vmem:[%s2279_s3 + $0x20] sm:$0xf]  ;;  %v1708_v28 = vld [vmem:[%s2279_s3 + $0x24] sm:$0xf0]  ;;  %s494_s25 = scalar_lea.vmem %s2291_s15, %s1701_s13 }
   0xe   : > { %v1933_v0 = vld [vmem:[%s489_s21] sm:$0xff]  ;;  %v1937_v2 = vld [vmem:[%s489_s21 + $0x8] sm:$0xff]  ;;  %v1566_v26 = vor.u32 %v1709_v23, %v1563_v25  ;;  %v1554_v30 = vor.u32 %v1708_v28, %v1553_v27  ;;  %v1545_v33 = vld [vmem:[%s2279_s3 + $0x10] sm:$0xf]  ;;  %s1833_s21 = smov 112  }
   0xf   : > { %v501_v1 = vsel %vm500_vm0, %v1933_v0, 0.0  ;;  %v504_v3 = vsel %vm500_vm0, %v1937_v2, 0.0  ;;  %624 = vmatpush.bf16.msra.mxu0 %v1562_v24  ;;  %v1707_v29 = vld [vmem:[%s2279_s3 + $0x24] sm:$0xf]  ;;  %v1555_v31 = vld [vmem:[%s2279_s3 + $0x28] sm:$0xf0] }
  0x10   : > { %502 = vadd.xlane.f32.xlu0 %v501_v1  ;;  %638 = vmatpush.bf16.msra.mxu1 %v1566_v26  ;;  %v1558_v32 = vor.u32 %v1707_v29, %v1555_v31  ;;  %v1706_v34 = vld [vmem:[%s2279_s3 + $0x14] sm:$0xf0]  ;;  %v1705_v35 = vld [vmem:[%s2279_s3 + $0x14] sm:$0xf]  ;;  %v1547_v37 = vld [vmem:[%s2279_s3 + $0x18] sm:$0xf0] }
  0x11   : > { %v1546_v36 = vor.u32 %v1706_v34, %v1545_v33  ;;  %v1550_v38 = vor.u32 %v1705_v35, %v1547_v37  ;;  %v1537_v39 = vld [vmem:[%s2279_s3] sm:$0xf]  ;;  %v1704_v40 = vld [vmem:[%s2279_s3 + $0x4] sm:$0xf0]  ;;  %v1703_v41 = vld [vmem:[%s2279_s3 + $0x4] sm:$0xf] }
  0x12   : > { %v1763_v5 = vpop.eup %1762  ;;  %v1538_v43 = vor.u32 %v1704_v40, %v1537_v39  ;;  %v1539_v44 = vld [vmem:[%s2279_s3 + $0x8] sm:$0xf0]  ;;  %v1756_v1 = vld [vmem:[%s2277_s1] ss:$0 sm:$0xff]  ;;  %v1830_v40 = vmov 0.0  }
  0x13   : > { %v508_v6 = vmul.f32 64.0, %v1763_v5  ;;  %vm512_vm1 = vweird.f32 %v1763_v5  ;;  %625 = vmatpush.bf16.msra.mxu0 %v1554_v30  ;;  %v1542_v46 = vor.u32 %v1703_v41, %v1539_v44 }
  0x14   : > { %639 = vmatpush.bf16.msra.mxu1 %v1558_v32 }
  0x15   : > { %v509_v7 = vsub.f32 1.0, %v508_v6 }
  0x17   : > { %v510_v8 = vmul.f32 %v1763_v5, %v509_v7  ;;  %626 = vmatpush.bf16.msra.mxu0 %v1546_v36  ;;  %v1757_v7 = vld [vmem:[%s2278_s2] ss:$0 sm:$0xff]  ;;  %v648_v36 = vlaneseq }
  0x18   : > { %505 = vadd.xlane.f32.xlu0 %v504_v3  ;;  %640 = vmatpush.bf16.msra.mxu1 %v1550_v38 }
  0x19   : > { %v511_v9 = vadd.f32 %v1763_v5, %v510_v8  ;;  %v649_v37 = vshrl.u32 %v648_v36, 7  ;;  %v652_v38 = vand.u32 127, %v648_v36 }
  0x1b   : > { %v1941_v10 = vsel %vm512_vm1, %v1763_v5, %v511_v9  ;;  %627 = vmatpush.bf16.msra.mxu0 %v1538_v43  ;;  %vm653_vm9 = vcmp.gt.s32.totalorder %v652_v38, %v649_v37  ;;  %vm655_vm10 = vcmp.ge.s32.totalorder %v652_v38, 16  ;;  %v650_v39 = vadd.s32 8, %v649_v37 }
  0x1c   : > { %641 = vmatpush.bf16.msra.mxu1 %v1542_v46  ;;  %vm656_vm11 = vmor %vm653_vm9, %vm655_vm10 }
  0x1d   : > { %v2025_v41 = vsel %vm656_vm11, -1e+30, %v1830_v40  ;;  %vm654_vm12 = vcmp.gt.s32.totalorder %v652_v38, %v650_v39 }
  0x1e   : > { %vm657_vm13 = vmor %vm654_vm12, %vm655_vm10 }
  0x83   : > { %v503_v11 = vpop.xlane.xlu0 %502 }
  0x84   : > { %v514_v12 = vmul.f32 %v1941_v10, %v503_v11 }
  0x86   : > { %v1945_v13 = vsub.f32 %v1933_v0, %v514_v12 }
  0x88   : > { %v518_v14 = vmul.f32 %v1945_v13, %v1945_v13 }
  0x8a   : > { %v520_v15 = vsel %vm500_vm0, %v518_v14, 0.0 }
  0x8b   : > { %521 = vadd.xlane.f32.xlu1 %v520_v15  ;;  %v506_v16 = vpop.xlane.xlu0 %505 }
  0x8c   : > { %v515_v17 = vmul.f32 %v1941_v10, %v506_v16 }
  0x8e   : > { %v1952_v18 = vsub.f32 %v1937_v2, %v515_v17 }
  0x90   : > { %v519_v19 = vmul.f32 %v1952_v18, %v1952_v18 }
  0x92   : > { %v523_v20 = vsel %vm500_vm0, %v519_v19, 0.0 }
  0x93   : > { %524 = vadd.xlane.f32.xlu1 %v523_v20 }
  0xfe   : > { %v522_v42 = vpop.xlane.xlu1 %521 }
  0xff   : > { %v526_v45 = vmul.f32 %v522_v42, %v1941_v10 }
 0x101   : > { %v528_v47 = vadd.f32 1e-05, %v526_v45  ;;  %v2029_v45 = vsel %vm657_vm13, -1e+30, %v1830_v40 }
 0x103   : > { %1764 = vrsqrt.f32 %v528_v47  ;;  %vm536_vm3 = vweird.f32 %v528_v47 }
 0x106   : > { %v525_v48 = vpop.xlane.xlu1 %524 }
 0x107   : > { %v527_v49 = vmul.f32 %v525_v48, %v1941_v10 }
 0x109   : > { %v1765_v50 = vpop.eup %1764  ;;  %v529_v51 = vadd.f32 1e-05, %v527_v49 }
 0x10a   : > { %v531_v52 = vmul.f32 %v1765_v50, %v528_v47  ;;  %vm537_vm2 = vweird.f32 %v1765_v50 }
 0x10b   : > { %1766 = vrsqrt.f32 %v529_v51  ;;  %vm538_vm4 = vmor %vm536_vm3, %vm537_vm2  ;;  %vm546_vm6 = vweird.f32 %v529_v51 }
 0x10c   : > { %v532_v53 = vmul.f32 %v1765_v50, %v531_v52 }
 0x10e   : > { %v533_v54 = vmul.f32 0.5, %v532_v53 }
 0x110   : > { %v534_v55 = vsub.f32 1.5, %v533_v54 }
 0x111   : > { %v1767_v56 = vpop.eup %1766 }
 0x112   : > { %v535_v57 = vmul.f32 %v1765_v50, %v534_v55  ;;  %v541_v58 = vmul.f32 %v1767_v56, %v529_v51  ;;  %vm547_vm5 = vweird.f32 %v1767_v56 }
 0x113   : > { %vm548_vm7 = vmor %vm546_vm6, %vm547_vm5 }
 0x114   : > { %v542_v59 = vmul.f32 %v1767_v56, %v541_v58  ;;  %v539_v60 = vsel %vm538_vm4, %v1765_v50, %v535_v57 }
 0x115   : > { %v550_v63 = vmul.f32 %v539_v60, %v1945_v13  ;;  %v571_v13 = vld [vmem:[%s2280_s4] sm:$0x3] }
 0x116   : > { %v543_v61 = vmul.f32 0.5, %v542_v59  ;;  %v573_v16 = vperm.slane %v571_v13, 0  ;;  %v574_v17 = vperm.slane %v571_v13, 1  ;;  %v1711_v59 = vld [vmem:[%s2281_s5] sm:$0xff] }
 0x117   : > { %v555_v6 = vmul.f32 %v1756_v1, %v550_v63 }
 0x118   : > { %v544_v62 = vsub.f32 1.5, %v543_v61 }
 0x119   : > { %v560_v9 = vadd.f32 %v1757_v7, %v555_v6 }
 0x11a   : > { %v545_v3 = vmul.f32 %v1767_v56, %v544_v62 }
 0x11c   : > { %v549_v4 = vsel %vm548_vm7, %v1767_v56, %v545_v3 }
 0x11d   : > { %v551_v5 = vmul.f32 %v549_v4, %v1952_v18 }
 0x11f   : > { %v556_v8 = vmul.f32 %v1756_v1, %v551_v5 }
 0x121   : > { %v561_v11 = vadd.f32 %v1757_v7, %v556_v8 }
 0x123   : > { %v562_v12 = vpack.c.bf16 %v561_v11, %v560_v9 }
 0x125   : > { %1567 = vmatmul.msk.bf16.vlgmr.msra.gmra.mxu0 %vm500_vm0, %v562_v12  ;;  %1568 = vmatmul.msk.bf16.vlgmr.msra.gmra.mxu1 %vm500_vm0, %v562_v12 }
 0x1a2   : > { %v629_v14 = vpop.f32.mrf.mxu0  ;;  %v643_v15 = vpop.f32.mrf.mxu1 }
 0x1a3   : > { %v630_v18 = vadd.f32 %v629_v14, %v573_v16  ;;  %v644_v19 = vadd.f32 %v643_v15, %v574_v17 }
 0x1a5   : > { %v660_v22 = vpack.c.bf16 %v630_v18, %v630_v18  ;;  %v662_v23 = vpack.c.bf16 %v644_v19, %v644_v19 }
 0x1a7   : > { %v666_v28 = vunpack.c.l.b16 %v660_v22  ;;  %v723_v29 = vunpack.c.l.b16 %v662_v23 }
 0x1aa   : > { %v631_v20 = vpop.f32.mrf.mxu0  ;;  %v645_v21 = vpop.f32.mrf.mxu1 }
 0x1ab   : > { %v632_v24 = vadd.f32 %v631_v20, %v573_v16  ;;  %v646_v25 = vadd.f32 %v645_v21, %v574_v17 }
 0x1ad   : > { %v661_v26 = vpack.c.bf16 %v632_v24, %v632_v24  ;;  %v663_v27 = vpack.c.bf16 %v646_v25, %v646_v25 }
 0x1af   : > { %v667_v30 = vunpack.c.l.b16 %v661_v26  ;;  %v724_v31 = vunpack.c.l.b16 %v663_v27 }
 0x1b1   : > { %v668_v32 = vpack.c.b16 %v667_v30, %v666_v28  ;;  %v2020_v33 = vpack.c.b16 %v724_v31, %v723_v29 }
 0x1b3   : > { %737 = vmatpush.bf16.msrb.mxu1 %v2020_v33  ;;  %669 = vrot.lane.b32.xlu2 %v668_v32, %s1829_s17 }
 0x1b7   : > { %862 = vmatpush.bf16.msra.mxu1 %v1711_v59 }
 0x20d   : > { %v670_v34 = vpop.permute.xlu2 %669 }
 0x20e   : > { %v676_v35 = vsel %vm671_vm8, %v670_v34, 0 }
 0x20f   : > { %685 = vmatpush.bf16.xpose.msrb.mxu0 %v676_v35 }
 0x216   : > { %1569 = vmatmul.msk.bf16.vlgmr.msrb.gmra.mxu0 %vm671_vm8, %v668_v32 }
 0x293   : > { %v687_v42 = vpop.f32.mrf.mxu0 }
 0x294   : > { %v688_v43 = vadd.f32 %v687_v42, %v2025_v41 }
 0x296   : > { %v692_v44 = vsel %vm671_vm8, %v688_v43, -inf }
 0x297   : > { %693 = vmax.xlane.f32.xlu2 %v692_v44 }
 0x29b   : > { %v689_v46 = vpop.f32.mrf.mxu0 }
 0x29c   : > { %v690_v47 = vadd.f32 %v689_v46, %v2029_v45 }
 0x29e   : > { %v695_v48 = vsel %vm671_vm8, %v690_v47, -inf }
 0x29f   : > { %696 = vmax.xlane.f32.xlu0 %v695_v48 }
 0x2af   : > { %972 = vrot.lane.b32.xlu2 %v668_v32, %s1831_s14 }
 0x30a   : > { %v694_v49 = vpop.xlane.xlu2 %693 }
 0x30b   : > { %v698_v50 = vsub.f32 %v688_v43, %v694_v49 }
 0x30d   : > { %v700_v51 = vmul.f32 1.442695, %v698_v50 }
 0x30f   : > { %1768 = vpow2.f32 %v700_v51 }
 0x312   : > { %v697_v52 = vpop.xlane.xlu0 %696  ;;  %v973_v8 = vpop.permute.xlu2 %972 }
 0x313   : > { %v699_v53 = vsub.f32 %v690_v47, %v697_v52  ;;  %v978_v11 = vsel %vm671_vm8, %v973_v8, 0 }
 0x315   : > { %v1769_v54 = vpop.eup %1768  ;;  %v702_v55 = vmul.f32 1.442695, %v699_v53 }
 0x316   : > { %v704_v56 = vsel %vm671_vm8, %v1769_v54, 0.0 }
 0x317   : > { %1770 = vpow2.f32 %v702_v55  ;;  %705 = vadd.xlane.f32.xlu1 %v704_v56 }
 0x31d   : > { %v1771_v57 = vpop.eup %1770 }
 0x31e   : > { %v707_v58 = vsel %vm671_vm8, %v1771_v57, 0.0 }
 0x31f   : > { %708 = vadd.xlane.f32.xlu0 %v707_v58 }
 0x330   : > { %749 = vrot.lane.b32.xlu1 %v668_v32, %s1832_s20 }
 0x333   : > { %747 = vrot.lane.b32.xlu0 %v668_v32, %s1833_s21 }
 0x338   : > { %871 = vrot.lane.b32.xlu1 %v668_v32, %s1834_s22 }
 0x33b   : > { %869 = vrot.lane.b32.xlu0 %v668_v32, %s1835_s23 }
 0x340   : > { %970 = vrot.lane.b32.xlu1 %v668_v32, %s1836_s24 }
 0x38a   : > { %v706_v60 = vpop.xlane.xlu1 %705 }
 0x38b   : > { %1772 = vrcp.f32 %v706_v60 }
 0x391   : > { %v1773_v62 = vpop.eup %1772 }
 0x392   : > { %v709_v61 = vpop.xlane.xlu0 %708  ;;  %v712_v63 = vmul.f32 %v1773_v62, %v1769_v54 }
 0x393   : > { %1774 = vrcp.f32 %v709_v61 }
 0x394   : > { %v714_v3 = vpack.c.bf16 %v712_v63, %v712_v63 }
 0x396   : > { %v718_v6 = vunpack.c.l.b16 %v714_v3 }
 0x399   : > { %v1775_v1 = vpop.eup %1774 }
 0x39a   : > { %v713_v4 = vmul.f32 %v1775_v1, %v1771_v57 }
 0x39c   : > { %v715_v5 = vpack.c.bf16 %v713_v4, %v713_v4 }
 0x39e   : > { %v719_v7 = vunpack.c.l.b16 %v715_v5 }
 0x3a0   : > { %v720_v9 = vpack.c.b16 %v719_v7, %v718_v6 }
 0x3a2   : > { %1570 = vmatmul.msk.bf16.vlgmr.msrb.gmra.mxu1 %vm671_vm8, %v720_v9  ;;  %v750_v12 = vpop.permute.xlu1 %749 }
 0x3a3   : > { %987 = vmatpush.bf16.xpose.msrb.mxu1 %v978_v11  ;;  %v755_v13 = vsel %vm671_vm8, %v750_v12, 0 }
 0x3a4   : > { %764 = vmatpush.bf16.xpose.msra.mxu3 %v755_v13 }
 0x3a5   : > { %v748_v14 = vpop.permute.xlu0 %747 }
 0x3aa   : > { %v872_v15 = vpop.permute.xlu1 %871 }
 0x3ab   : > { %1571 = vmatmul.msk.bf16.vlgmr.msra.gmra.mxu3 %vm671_vm8, %v748_v14  ;;  %v877_v16 = vsel %vm671_vm8, %v872_v15, 0 }
 0x3ac   : > { %886 = vmatpush.bf16.xpose.msrb.mxu3 %v877_v16 }
 0x3ad   : > { %v870_v17 = vpop.permute.xlu0 %869 }
 0x3b2   : > { %v971_v26 = vpop.permute.xlu1 %970 }
 0x3bb   : > { %1583 = vmatmul.msk.bf16.vlgmr.msrb.gmra.mxu3 %vm671_vm8, %v870_v17 }
 0x41f   : > { %v739_v18 = vpop.f32.mrf.mxu1 }
 0x427   : > { %v741_v19 = vpop.f32.mrf.mxu1 }
 0x428   : > { %v744_v20 = vpack.c.bf16 %v741_v19, %v739_v18 }
 0x42a   : > { %1582 = vmatmul.msk.bf16.vlgmr.msra.gmra.mxu1 %vm671_vm8, %v744_v20 }
 0x42e   : > { %v766_v21 = vpop.f32.mrf.mxu3 }
 0x42f   : > { %v767_v22 = vadd.f32 %v766_v21, %v2025_v41 }
 0x431   : > { %v771_v23 = vsel %vm671_vm8, %v767_v22, -inf }
 0x432   : > { %772 = vmax.xlane.f32.xlu0 %v771_v23 }
 0x436   : > { %v768_v24 = vpop.f32.mrf.mxu3 }
 0x437   : > { %v769_v25 = vadd.f32 %v768_v24, %v2029_v45 }
 0x439   : > { %v774_v27 = vsel %vm671_vm8, %v769_v25, -inf }
 0x43a   : > { %775 = vmax.xlane.f32.xlu1 %v774_v27  ;;  %1590 = vmatmul.msk.bf16.vlgmr.msrb.gmra.mxu1 %vm671_vm8, %v971_v26 }
 0x43e   : > { %v888_v28 = vpop.f32.mrf.mxu3 }
 0x43f   : > { %v889_v29 = vadd.f32 %v888_v28, %v2025_v41 }
 0x441   : > { %v893_v30 = vsel %vm671_vm8, %v889_v29, -inf }
 0x442   : > { %894 = vmax.xlane.f32.xlu1 %v893_v30 }
 0x446   : > { %v890_v54 = vpop.f32.mrf.mxu3 }
 0x447   : > { %v891_v55 = vadd.f32 %v890_v54, %v2029_v45 }
 0x449   : > { %v896_v56 = vsel %vm671_vm8, %v891_v55, -inf }
 0x4a5   : > { %v773_v34 = vpop.xlane.xlu0 %772 }
 0x4a6   : > { %v777_v38 = vsub.f32 %v767_v22, %v773_v34 }
 0x4a7   : > { %v2055_v31 = vpop.f32.mrf.mxu1 }
 0x4a8   : > { %v779_v39 = vmul.f32 1.442695, %v777_v38 }
 0x4ad   : > { %v776_v32 = vpop.xlane.xlu1 %775 }
 0x4ae   : > { %v778_v35 = vsub.f32 %v769_v25, %v776_v32  ;;  %v1712_v25 = vld [vmem:[%s2281_s5 + $0x8] sm:$0xff] }
 0x4af   : > { %v2057_v36 = vpop.f32.mrf.mxu1  ;;  %839 = vmatpush.bf16.msra.mxu0 %v1712_v25 }
 0x4b0   : > { %v781_v37 = vmul.f32 1.442695, %v778_v35 }
 0x4b2   : > { %1776 = vpow2.f32 %v781_v37 }
 0x4b3   : > { %1778 = vpow2.f32 %v779_v39 }
 0x4b5   : > { %v895_v47 = vpop.xlane.xlu1 %894 }
 0x4b6   : > { %v899_v51 = vsub.f32 %v889_v29, %v895_v47 }
 0x4b7   : > { %v989_v40 = vpop.f32.mrf.mxu1 }
 0x4b8   : > { %v1777_v42 = vpop.eup %1776  ;;  %v990_v43 = vadd.f32 %v989_v40, %v2025_v41  ;;  %v901_v41 = vmul.f32 1.442695, %v899_v51 }
 0x4b9   : > { %v786_v44 = vsel %vm671_vm8, %v1777_v42, 0.0  ;;  %v1779_v48 = vpop.eup %1778 }
 0x4ba   : > { %787 = vadd.xlane.f32.xlu1 %v786_v44  ;;  %v994_v46 = vsel %vm671_vm8, %v990_v43, -inf  ;;  %v783_v53 = vsel %vm671_vm8, %v1779_v48, 0.0  ;;  %1780 = vpow2.f32 %v901_v41 }
 0x4bb   : > { %995 = vmax.xlane.f32.xlu2 %v994_v46 }
 0x4bf   : > { %v991_v49 = vpop.f32.mrf.mxu1 }
 0x4c0   : > { %v992_v50 = vadd.f32 %v991_v49, %v2029_v45  ;;  %v1781_v57 = vpop.eup %1780 }
 0x4c1   : > { %v905_v58 = vsel %vm671_vm8, %v1781_v57, 0.0 }
 0x4c2   : > { %v997_v52 = vsel %vm671_vm8, %v992_v50, -inf }
 0x4c3   : > { %998 = vmax.xlane.f32.xlu0 %v997_v52  ;;  %784 = vadd.xlane.f32.xlu2 %v783_v53 }
 0x4cb   : > { %897 = vmax.xlane.f32.xlu0 %v896_v56  ;;  %v1714_v56 = vld [vmem:[%s2281_s5 + $0x18] sm:$0xff] }
 0x4d3   : > { %800 = vrot.lane.b32.xlu1 %v2020_v33, %s1833_s21  ;;  %906 = vadd.xlane.f32.xlu0 %v905_v58 }
 0x52d   : > { %v788_v61 = vpop.xlane.xlu1 %787 }
 0x52e   : > { %v996_v59 = vpop.xlane.xlu2 %995 }
 0x52f   : > { %v1000_v60 = vsub.f32 %v990_v43, %v996_v59 }
 0x531   : > { %v1002_v62 = vmul.f32 1.442695, %v1000_v60 }
 0x533   : > { %1782 = vpow2.f32 %v1002_v62 }
 0x534   : > { %1784 = vrcp.f32 %v788_v61 }
 0x536   : > { %v999_v63 = vpop.xlane.xlu0 %998  ;;  %v785_v1 = vpop.xlane.xlu2 %784 }
 0x537   : > { %1786 = vrcp.f32 %v785_v1  ;;  %v1001_v12 = vsub.f32 %v992_v50, %v999_v63 }
 0x539   : > { %v1783_v45 = vpop.eup %1782  ;;  %v1004_v16 = vmul.f32 1.442695, %v1001_v12 }
 0x53a   : > { %v1785_v3 = vpop.eup %1784  ;;  %v1006_v4 = vsel %vm671_vm8, %v1783_v45, 0.0 }
 0x53b   : > { %1007 = vadd.xlane.f32.xlu0 %v1006_v4  ;;  %v792_v6 = vmul.f32 %v1785_v3, %v1777_v42 }
 0x53d   : > { %v1787_v5 = vpop.eup %1786  ;;  %v794_v14 = vpack.c.bf16 %v792_v6, %v792_v6 }
 0x53e   : > { %v898_v7 = vpop.xlane.xlu0 %897  ;;  %v791_v8 = vmul.f32 %v1787_v5, %v1779_v48  ;;  %v1758_v5 = vld [vmem:[%s2282_s6] ss:$0 sm:$0xff] }
 0x53f   : > { %v900_v9 = vsub.f32 %v891_v55, %v898_v7  ;;  %v798_v18 = vunpack.c.l.b16 %v794_v14  ;;  %v1713_v55 = vld [vmem:[%s2281_s5 + $0x10] sm:$0xff] }
 0x540   : > { %v793_v11 = vpack.c.bf16 %v791_v8, %v791_v8  ;;  %961 = vmatpush.bf16.msrb.mxu0 %v1713_v55 }
 0x541   : > { %v903_v13 = vmul.f32 1.442695, %v900_v9 }
 0x542   : > { %v797_v15 = vunpack.c.l.b16 %v793_v11 }
 0x543   : > { %1788 = vpow2.f32 %v903_v13 }
 0x544   : > { %v799_v19 = vpack.c.b16 %v798_v18, %v797_v15  ;;  %1790 = vpow2.f32 %v1004_v16 }
 0x545   : > { %v801_v17 = vpop.permute.xlu1 %800 }
 0x546   : > { %813 = vmatpush.bf16.msra.mxu2 %v801_v17  ;;  %v907_v24 = vpop.xlane.xlu0 %906 }
 0x547   : > { %1792 = vrcp.f32 %v907_v24 }
 0x549   : > { %v1789_v20 = vpop.eup %1788  ;;  %1572 = vmatmul.msk.bf16.vlgmr.msra.gmra.mxu2 %vm671_vm8, %v799_v19 }
 0x54a   : > { %v908_v21 = vsel %vm671_vm8, %v1789_v20, 0.0  ;;  %v1791_v22 = vpop.eup %1790 }
 0x54b   : > { %909 = vadd.xlane.f32.xlu2 %v908_v21  ;;  %v1009_v23 = vsel %vm671_vm8, %v1791_v22, 0.0 }
 0x54d   : > { %v1793_v29 = vpop.eup %1792 }
 0x54e   : > { %v913_v32 = vmul.f32 %v1793_v29, %v1781_v57 }
 0x54f   : > { %1023 = vrot.lane.b32.xlu0 %v2020_v33, %s1836_s24 }
 0x550   : > { %v915_v38 = vpack.c.bf16 %v913_v32, %v913_v32 }
 0x552   : > { %v919_v44 = vunpack.c.l.b16 %v915_v38  ;;  %v1617_v38 = vld [vmem:[%s2285_s9 + $0x28] sm:$0xf0] }
 0x553   : > { %1010 = vadd.xlane.f32.xlu2 %v1009_v23 }
 0x56b   : > { %922 = vrot.lane.b32.xlu2 %v2020_v33, %s1835_s23 }
 0x5ae   : > { %v1008_v26 = vpop.xlane.xlu0 %1007 }
 0x5be   : > { %v910_v27 = vpop.xlane.xlu2 %909 }
 0x5bf   : > { %1794 = vrcp.f32 %v910_v27  ;;  %v1722_v27 = vld [vmem:[%s2285_s9 + $0x34] sm:$0xf0] }
 0x5c0   : > { %1796 = vrcp.f32 %v1008_v26  ;;  %v1623_v26 = vld [vmem:[%s2285_s9 + $0x30] sm:$0xf] }
 0x5c1   : > { %v1024_v28 = vpop.permute.xlu0 %1023  ;;  %v1624_v29 = vor.u32 %v1722_v27, %v1623_v26 }
 0x5c2   : > { %1036 = vmatpush.bf16.msra.mxu3 %v1024_v28  ;;  %v1721_v28 = vld [vmem:[%s2285_s9 + $0x34] sm:$0xf] }
 0x5c5   : > { %v1795_v30 = vpop.eup %1794 }
 0x5c6   : > { %v914_v34 = vmul.f32 %v1795_v30, %v1789_v20  ;;  %v1011_v35 = vpop.xlane.xlu2 %1010  ;;  %v1797_v37 = vpop.eup %1796  ;;  %v1625_v30 = vld [vmem:[%s2285_s9 + $0x38] sm:$0xf0] }
 0x5c7   : > { %1798 = vrcp.f32 %v1011_v35  ;;  %v1014_v39 = vmul.f32 %v1797_v37, %v1783_v45  ;;  %v1628_v32 = vor.u32 %v1721_v28, %v1625_v30  ;;  %v1720_v35 = vld [vmem:[%s2285_s9 + $0x24] sm:$0xf0]  ;;  %v1719_v37 = vld [vmem:[%s2285_s9 + $0x24] sm:$0xf]  ;;  %v1726_v30 = vld [vmem:[%s2287_s11 + $0x18] sm:$0xff] }
 0x5c8   : > { %v916_v33 = vpack.c.bf16 %v914_v34, %v914_v34  ;;  %v1615_v34 = vld [vmem:[%s2285_s9 + $0x20] sm:$0xf] }
 0x5c9   : > { %v1016_v46 = vpack.c.bf16 %v1014_v39, %v1014_v39  ;;  %1211 = vmatpush.bf16.msra.mxu1 %v1628_v32  ;;  %v1620_v39 = vor.u32 %v1719_v37, %v1617_v38  ;;  %v1734_v32 = vld [vmem:[%s2287_s11 + $0x58] sm:$0xff]  ;;  %v1725_v38 = vld [vmem:[%s2287_s11 + $0x10] sm:$0xff] }
 0x5ca   : > { %v920_v40 = vunpack.c.l.b16 %v916_v33  ;;  %v1616_v33 = vor.u32 %v1720_v35, %v1615_v34 }
 0x5cb   : > { %v1020_v51 = vunpack.c.l.b16 %v1016_v46  ;;  %v1609_v46 = vld [vmem:[%s2285_s9 + $0x18] sm:$0xf0] }
 0x5cc   : > { %v815_v42 = vpop.f32.mrf.mxu2  ;;  %v921_v50 = vpack.c.b16 %v920_v40, %v919_v44  ;;  %v1607_v40 = vld [vmem:[%s2285_s9 + $0x10] sm:$0xf] }
 0x5cd   : > { %v1799_v43 = vpop.eup %1798  ;;  %1212 = vmatpush.bf16.msra.mxu1 %v1620_v39  ;;  %v1733_v39 = vld [vmem:[%s2287_s11 + $0x50] sm:$0xff] }
 0x5ce   : > { %v1015_v47 = vmul.f32 %v1799_v43, %v1791_v22  ;;  %v923_v48 = vpop.permute.xlu2 %922  ;;  %v1717_v43 = vld [vmem:[%s2285_s9 + $0x14] sm:$0xf] }
 0x5cf   : > { %935 = vmatpush.bf16.msrb.mxu2 %v923_v48  ;;  %v1612_v48 = vor.u32 %v1717_v43, %v1609_v46  ;;  %v1724_v46 = vld [vmem:[%s2287_s11 + $0x8] sm:$0xff] }
 0x5d0   : > { %v1017_v49 = vpack.c.bf16 %v1015_v47, %v1015_v47 }
 0x5d1   : > { %1213 = vmatpush.bf16.msra.mxu1 %v1612_v48 }
 0x5d2   : > { %v1021_v52 = vunpack.c.l.b16 %v1017_v49  ;;  %1584 = vmatmul.msk.bf16.vlgmr.msrb.gmra.mxu2 %vm671_vm8, %v921_v50  ;;  %v1599_v50 = vld [vmem:[%s2285_s9] sm:$0xf] }
 0x5d3   : > { %1062 = vmatpush.bf16.msra.mxu2 %v1714_v56 }
 0x5d4   : > { %v1022_v53 = vpack.c.b16 %v1021_v52, %v1020_v51  ;;  %v817_v54 = vpop.f32.mrf.mxu2  ;;  %v1716_v51 = vld [vmem:[%s2285_s9 + $0x4] sm:$0xf0]  ;;  %v1715_v52 = vld [vmem:[%s2285_s9 + $0x4] sm:$0xf] }
 0x5d5   : > { %v820_v41 = vpack.c.bf16 %v817_v54, %v815_v42  ;;  %v1718_v42 = vld [vmem:[%s2285_s9 + $0x14] sm:$0xf0]  ;;  %v1600_v54 = vor.u32 %v1716_v51, %v1599_v50 }
 0x5d6   : > { %1591 = vmatmul.msk.bf16.vlgmr.msra.gmra.mxu3 %vm671_vm8, %v1022_v53  ;;  %v1608_v44 = vor.u32 %v1718_v42, %v1607_v40 }
 0x5d7   : > { %1577 = vmatmul.msk.bf16.vlgmr.msra.gmra.mxu0 %vm671_vm8, %v820_v41  ;;  %v1601_v41 = vld [vmem:[%s2285_s9 + $0x8] sm:$0xf0] }
 0x5d8   : > { %1197 = vmatpush.bf16.msra.mxu0 %v1624_v29  ;;  %v1604_v55 = vor.u32 %v1715_v52, %v1601_v41  ;;  %v1723_v52 = vld [vmem:[%s2287_s11] sm:$0xff] }
 0x5da   : > { %1214 = vmatpush.bf16.msra.mxu1 %v1604_v55 }
 0x5dc   : > { %1198 = vmatpush.bf16.msra.mxu0 %v1616_v33 }
 0x5e0   : > { %1199 = vmatpush.bf16.msra.mxu0 %v1608_v44 }
 0x5e4   : > { %1200 = vmatpush.bf16.msra.mxu0 %v1600_v54 }
 0x654   : > { %v841_v63 = vpop.f32.mrf.mxu0 }
 0x655   : > { %v937_v57 = vpop.f32.mrf.mxu2  ;;  %v865_v3 = vadd.f32 %v2055_v31, %v841_v63 }
 0x659   : > { %v1038_v58 = vpop.f32.mrf.mxu3 }
 0x65c   : > { %v843_v1 = vpop.f32.mrf.mxu0 }
 0x65d   : > { %v939_v59 = vpop.f32.mrf.mxu2  ;;  %v867_v11 = vadd.f32 %v2057_v36, %v843_v1 }
 0x65e   : > { %v942_v60 = vpack.c.bf16 %v939_v59, %v937_v57 }
 0x660   : > { %1589 = vmatmul.msk.bf16.vlgmr.msrb.gmra.mxu0 %vm671_vm8, %v942_v60 }
 0x661   : > { %v1040_v61 = vpop.f32.mrf.mxu3 }
 0x662   : > { %v1043_v62 = vpack.c.bf16 %v1040_v61, %v1038_v58 }
 0x664   : > { %1596 = vmatmul.msk.bf16.vlgmr.msra.gmra.mxu2 %vm671_vm8, %v1043_v62 }
 0x6dd   : > { %v963_v45 = vpop.f32.mrf.mxu0 }
 0x6de   : > { %v968_v4 = vadd.f32 %v963_v45, %v865_v3 }
 0x6e5   : > { %v965_v9 = vpop.f32.mrf.mxu0 }
 0x6e6   : > { %v969_v13 = vadd.f32 %v965_v9, %v867_v11 }
 0x6e7   : > { %v1064_v6 = vpop.f32.mrf.mxu2 }
 0x6e8   : > { %v1069_v7 = vadd.f32 %v1064_v6, %v968_v4 }
 0x6ea   : > { %v1075_v8 = vadd.f32 %v1758_v5, %v1069_v7 }
 0x6ec   : > { %v2098_v12 = vadd.f32 %v1075_v8, %v1933_v0 }
 0x6ee   : > { %v1081_v14 = vsel %vm500_vm0, %v2098_v12, 0.0 }
 0x6ef   : > { %v1066_v15 = vpop.f32.mrf.mxu2  ;;  %1082 = vadd.xlane.f32.xlu1 %v1081_v14 }
 0x6f0   : > { %v1070_v31 = vadd.f32 %v1066_v15, %v969_v13  ;;  %v1760_v13 = vld [vmem:[%s2284_s8] ss:$0 sm:$0xff] }
 0x6f2   : > { %v1076_v16 = vadd.f32 %v1758_v5, %v1070_v31 }
 0x6f4   : > { %v2103_v17 = vadd.f32 %v1076_v16, %v1937_v2 }
 0x6f6   : > { %v1084_v18 = vsel %vm500_vm0, %v2103_v17, 0.0 }
 0x6f7   : > { %1085 = vadd.xlane.f32.xlu0 %v1084_v18 }
 0x762   : > { %v1083_v19 = vpop.xlane.xlu1 %1082 }
 0x763   : > { %v1087_v36 = vmul.f32 %v1083_v19, %v1941_v10 }
 0x765   : > { %v2109_v0 = vsub.f32 %v2098_v12, %v1087_v36  ;;  %v1730_v36 = vld [vmem:[%s2287_s11 + $0x38] sm:$0xff] }
 0x766   : > { %1439 = vmatpush.bf16.msrb.mxu3 %v1730_v36 }
 0x767   : > { %v1091_v20 = vmul.f32 %v2109_v0, %v2109_v0 }
 0x769   : > { %v1093_v21 = vsel %vm500_vm0, %v1091_v20, 0.0  ;;  %v1729_v20 = vld [vmem:[%s2287_s11 + $0x30] sm:$0xff] }
 0x76a   : > { %1094 = vadd.xlane.f32.xlu2 %v1093_v21  ;;  %v1086_v22 = vpop.xlane.xlu0 %1085  ;;  %v1737_v21 = vld [vmem:[%s2287_s11 + $0x70] sm:$0xff]  ;;  %1440 = vmatpush.bf16.msrb.mxu3 %v1729_v20 }
 0x76b   : > { %v1088_v2 = vmul.f32 %v1086_v22, %v1941_v10  ;;  %v1728_v22 = vld [vmem:[%s2287_s11 + $0x28] sm:$0xff] }
 0x76d   : > { %v2116_v23 = vsub.f32 %v2103_v17, %v1088_v2  ;;  %v1736_v2 = vld [vmem:[%s2287_s11 + $0x68] sm:$0xff] }
 0x76e   : > { %1441 = vmatpush.bf16.msrb.mxu3 %v1728_v22 }
 0x76f   : > { %v1092_v24 = vmul.f32 %v2116_v23, %v2116_v23 }
 0x771   : > { %v1096_v25 = vsel %vm500_vm0, %v1092_v24, 0.0  ;;  %v1727_v24 = vld [vmem:[%s2287_s11 + $0x20] sm:$0xff] }
 0x772   : > { %1097 = vadd.xlane.f32.xlu1 %v1096_v25  ;;  %v1735_v25 = vld [vmem:[%s2287_s11 + $0x60] sm:$0xff]  ;;  %1442 = vmatpush.bf16.msrb.mxu3 %v1727_v24 }
 0x776   : > { %1443 = vmatpush.bf16.msrb.mxu3 %v1726_v30 }
 0x77a   : > { %1444 = vmatpush.bf16.msrb.mxu3 %v1725_v38 }
 0x77e   : > { %1445 = vmatpush.bf16.msrb.mxu3 %v1724_v46 }
 0x782   : > { %1446 = vmatpush.bf16.msrb.mxu3 %v1723_v52 }
 0x7dd   : > { %v1095_v47 = vpop.xlane.xlu2 %1094 }
 0x7de   : > { %v1099_v49 = vmul.f32 %v1095_v47, %v1941_v10  ;;  %v1732_v47 = vld [vmem:[%s2287_s11 + $0x48] sm:$0xff] }
 0x7e0   : > { %v1101_v53 = vadd.f32 1e-05, %v1099_v49 }
 0x7e2   : > { %1800 = vrsqrt.f32 %v1101_v53  ;;  %vm1109_vm15 = vweird.f32 %v1101_v53 }
 0x7e5   : > { %v1098_v56 = vpop.xlane.xlu1 %1097 }
 0x7e6   : > { %v1100_v57 = vmul.f32 %v1098_v56, %v1941_v10  ;;  %v1759_v10 = vld [vmem:[%s2283_s7] ss:$0 sm:$0xff] }
 0x7e8   : > { %v1801_v58 = vpop.eup %1800  ;;  %v1102_v59 = vadd.f32 1e-05, %v1100_v57 }
 0x7e9   : > { %v1104_v60 = vmul.f32 %v1801_v58, %v1101_v53  ;;  %vm1110_vm14 = vweird.f32 %v1801_v58  ;;  %v1731_v53 = vld [vmem:[%s2287_s11 + $0x40] sm:$0xff] }
 0x7ea   : > { %1802 = vrsqrt.f32 %v1102_v59  ;;  %vm1111_vm1 = vmor %vm1109_vm15, %vm1110_vm14  ;;  %vm1119_vm3 = vweird.f32 %v1102_v59 }
 0x7eb   : > { %v1105_v61 = vmul.f32 %v1801_v58, %v1104_v60 }
 0x7ed   : > { %v1106_v62 = vmul.f32 0.5, %v1105_v61 }
 0x7ef   : > { %v1107_v63 = vsub.f32 1.5, %v1106_v62 }
 0x7f0   : > { %v1803_v1 = vpop.eup %1802 }
 0x7f1   : > { %v1108_v45 = vmul.f32 %v1801_v58, %v1107_v63  ;;  %v1114_v3 = vmul.f32 %v1803_v1, %v1102_v59  ;;  %vm1120_vm2 = vweird.f32 %v1803_v1 }
 0x7f2   : > { %vm1121_vm4 = vmor %vm1119_vm3, %vm1120_vm2 }
 0x7f3   : > { %v1115_v4 = vmul.f32 %v1803_v1, %v1114_v3  ;;  %v1112_v5 = vsel %vm1111_vm1, %v1801_v58, %v1108_v45 }
 0x7f4   : > { %v1123_v8 = vmul.f32 %v1112_v5, %v2109_v0  ;;  %v1738_v0 = vld [vmem:[%s2287_s11 + $0x78] sm:$0xff] }
 0x7f5   : > { %v1116_v6 = vmul.f32 0.5, %v1115_v4  ;;  %1453 = vmatpush.bf16.msrb.mxu2 %v1738_v0 }
 0x7f6   : > { %v1128_v14 = vmul.f32 %v1759_v10, %v1123_v8 }
 0x7f7   : > { %v1117_v7 = vsub.f32 1.5, %v1116_v6 }
 0x7f8   : > { %v1133_v16 = vadd.f32 %v1760_v13, %v1128_v14 }
 0x7f9   : > { %v1118_v9 = vmul.f32 %v1803_v1, %v1117_v7  ;;  %1454 = vmatpush.bf16.msrb.mxu2 %v1737_v21 }
 0x7fb   : > { %v1122_v11 = vsel %vm1121_vm4, %v1803_v1, %v1118_v9 }
 0x7fc   : > { %v1124_v15 = vmul.f32 %v1122_v11, %v2116_v23  ;;  %v1136_v23 = vld [vmem:[%s2286_s10] sm:$0x3] }
 0x7fd   : > { %1455 = vmatpush.bf16.msrb.mxu2 %v1736_v2  ;;  %v1146_v26 = vperm.slane %v1136_v23, 0  ;;  %v1147_v27 = vperm.slane %v1136_v23, 1 }
 0x7fe   : > { %v1129_v31 = vmul.f32 %v1759_v10, %v1124_v15 }
 0x800   : > { %v1134_v18 = vadd.f32 %v1760_v13, %v1129_v31 }
 0x801   : > { %1456 = vmatpush.bf16.msrb.mxu2 %v1735_v25 }
 0x802   : > { %v1135_v19 = vpack.c.bf16 %v1134_v18, %v1133_v16 }
 0x804   : > { %1629 = vmatmul.msk.bf16.vlgmr.msra.gmra.mxu0 %vm500_vm0, %v1135_v19  ;;  %1630 = vmatmul.msk.bf16.vlgmr.msra.gmra.mxu1 %vm500_vm0, %v1135_v19 }
 0x805   : > { %1457 = vmatpush.bf16.msrb.mxu2 %v1734_v32 }
 0x809   : > { %1458 = vmatpush.bf16.msrb.mxu2 %v1733_v39 }
 0x80d   : > { %1459 = vmatpush.bf16.msrb.mxu2 %v1732_v47 }
 0x811   : > { %1460 = vmatpush.bf16.msrb.mxu2 %v1731_v53 }
 0x881   : > { %v1202_v28 = vpop.f32.mrf.mxu0  ;;  %v1216_v29 = vpop.f32.mrf.mxu1 }
 0x882   : > { %v2214_v34 = vadd.f32 %v1202_v28, %v1146_v26  ;;  %v2216_v35 = vadd.f32 %v1216_v29, %v1147_v27 }
 0x884   : > { %v1631_v37 = vmul.f32 -1.702, %v2214_v34  ;;  %v1632_v33 = vmul.f32 -1.702, %v2216_v35 }
 0x886   : > { %v1229_v40 = vmul.f32 1.442695, %v1631_v37  ;;  %v1231_v42 = vmul.f32 1.442695, %v1632_v33 }
 0x888   : > { %1804 = vpow2.f32 %v1229_v40 }
 0x889   : > { %1806 = vpow2.f32 %v1231_v42  ;;  %v1204_v43 = vpop.f32.mrf.mxu0  ;;  %v1218_v44 = vpop.f32.mrf.mxu1 }
 0x88a   : > { %v2232_v48 = vadd.f32 %v1204_v43, %v1146_v26  ;;  %v2234_v49 = vadd.f32 %v1218_v44, %v1147_v27 }
 0x88c   : > { %v1633_v50 = vmul.f32 -1.702, %v2232_v48  ;;  %v1634_v51 = vmul.f32 -1.702, %v2234_v49 }
 0x88e   : > { %v1805_v54 = vpop.eup %1804  ;;  %v1233_v41 = vmul.f32 1.442695, %v1633_v50  ;;  %v1235_v57 = vmul.f32 1.442695, %v1634_v51 }
 0x88f   : > { %v1807_v55 = vpop.eup %1806  ;;  %v1237_v56 = vadd.f32 1.0, %v1805_v54 }
 0x890   : > { %v1238_v58 = vadd.f32 1.0, %v1807_v55  ;;  %1808 = vpow2.f32 %v1233_v41 }
 0x891   : > { %1810 = vrcp.f32 %v1237_v56  ;;  %vm1246_vm6 = vweird.f32 %v1237_v56  ;;  %v1250_v11 = vand.u32 2147483647, %v1237_v56  ;;  %v1252_v13 = vand.u32 2147483648, %v1237_v56 }
 0x892   : > { %1812 = vrcp.f32 %v1238_v58  ;;  %vm1261_vm7 = vweird.f32 %v1238_v58  ;;  %v1265_v15 = vand.u32 2147483647, %v1238_v58  ;;  %v1267_v36 = vand.u32 2147483648, %v1238_v58 }
 0x893   : > { %1814 = vpow2.f32 %v1235_v57  ;;  %vm1251_vm11 = vcmp.eq.f32.partialorder %v1250_v11, 8.507059e+37  ;;  %v1253_v2 = vor.u32 1.1754944e-38, %v1252_v13 }
 0x894   : > { %v1268_v37 = vor.u32 1.1754944e-38, %v1267_v36  ;;  %vm1266_vm2 = vcmp.eq.f32.partialorder %v1265_v15, 8.507059e+37 }
 0x896   : > { %v1809_v59 = vpop.eup %1808 }
 0x897   : > { %v1811_v60 = vpop.eup %1810  ;;  %v1239_v61 = vadd.f32 1.0, %v1809_v59 }
 0x898   : > { %v1813_v62 = vpop.eup %1812  ;;  %v1242_v63 = vmul.f32 %v1811_v60, %v1237_v56  ;;  %vm1247_vm5 = vweird.f32 %v1811_v60 }
 0x899   : > { %v1815_v1 = vpop.eup %1814  ;;  %v1257_v45 = vmul.f32 %v1813_v62, %v1238_v58  ;;  %1816 = vrcp.f32 %v1239_v61  ;;  %v1282_v16 = vand.u32 2147483648, %v1239_v61  ;;  %vm2244_vm8 = vmor %vm1246_vm6, %vm1247_vm5  ;;  %vm1262_vm9 = vweird.f32 %v1813_v62 }
 0x89a   : > { %v1243_v3 = vsub.f32 1.0, %v1242_v63  ;;  %v1240_v4 = vadd.f32 1.0, %v1815_v1  ;;  %v1280_v22 = vand.u32 2147483647, %v1239_v61  ;;  %vm1276_vm12 = vweird.f32 %v1239_v61  ;;  %vm2251_vm13 = vmor %vm1261_vm7, %vm1262_vm9 }
 0x89b   : > { %v1258_v5 = vsub.f32 1.0, %v1257_v45  ;;  %v1283_v26 = vor.u32 1.1754944e-38, %v1282_v16 }
 0x89c   : > { %v1244_v6 = vmul.f32 %v1811_v60, %v1243_v3  ;;  %1818 = vrcp.f32 %v1240_v4  ;;  %v1295_v27 = vand.u32 2147483647, %v1240_v4  ;;  %v1297_v28 = vand.u32 2147483648, %v1240_v4 }
 0x89d   : > { %v1259_v10 = vmul.f32 %v1813_v62, %v1258_v5  ;;  %vm1281_vm1 = vcmp.eq.f32.partialorder %v1280_v22, 8.507059e+37  ;;  %vm1291_vm3 = vweird.f32 %v1240_v4 }
 0x89e   : > { %v1245_v8 = vadd.f32 %v1811_v60, %v1244_v6  ;;  %v1298_v44 = vor.u32 1.1754944e-38, %v1297_v28  ;;  %vm1296_vm5 = vcmp.eq.f32.partialorder %v1295_v27, 8.507059e+37 }
 0x89f   : > { %v1817_v7 = vpop.eup %1816  ;;  %v1260_v19 = vadd.f32 %v1813_v62, %v1259_v10 }
 0x8a0   : > { %v1272_v9 = vmul.f32 %v1817_v7, %v1239_v61  ;;  %v1249_v20 = vsel %vm2244_vm8, %v1811_v60, %v1245_v8  ;;  %vm1277_vm10 = vweird.f32 %v1817_v7 }
 0x8a1   : > { %v1254_v29 = vsel %vm1251_vm11, %v1253_v2, %v1249_v20  ;;  %v1264_v30 = vsel %vm2251_vm13, %v1813_v62, %v1260_v19  ;;  %vm1278_vm14 = vmor %vm1276_vm12, %vm1277_vm10 }
 0x8a2   : > { %v1819_v14 = vpop.eup %1818  ;;  %v1273_v31 = vsub.f32 1.0, %v1272_v9  ;;  %v1301_v40 = vmul.f32 %v1254_v29, %v2214_v34  ;;  %v1269_v42 = vsel %vm1266_vm2, %v1268_v37, %v1264_v30  ;;  %v1761_v34 = vld [vmem:[%s2288_s12] ss:$0 sm:$0xff] }
 0x8a3   : > { %v1287_v0 = vmul.f32 %v1819_v14, %v1240_v4  ;;  %vm1292_vm15 = vweird.f32 %v1819_v14  ;;  %v1302_v51 = vmul.f32 %v1269_v42, %v2216_v35 }
 0x8a4   : > { %v1274_v21 = vmul.f32 %v1817_v7, %v1273_v31  ;;  %vm1293_vm4 = vmor %vm1291_vm3, %vm1292_vm15 }
 0x8a5   : > { %v1288_v23 = vsub.f32 1.0, %v1287_v0 }
 0x8a6   : > { %v1275_v25 = vadd.f32 %v1817_v7, %v1274_v21 }
 0x8a7   : > { %v1289_v32 = vmul.f32 %v1819_v14, %v1288_v23 }
 0x8a8   : > { %v1279_v33 = vsel %vm1278_vm14, %v1817_v7, %v1275_v25 }
 0x8a9   : > { %v1284_v38 = vsel %vm1281_vm1, %v1283_v26, %v1279_v33  ;;  %v1290_v39 = vadd.f32 %v1819_v14, %v1289_v32 }
 0x8aa   : > { %v1303_v43 = vmul.f32 %v1284_v38, %v2232_v48 }
 0x8ab   : > { %v1294_v46 = vsel %vm1293_vm4, %v1819_v14, %v1290_v39 }
 0x8ac   : > { %v1305_v47 = vpack.c.bf16 %v1303_v43, %v1301_v40  ;;  %v1299_v50 = vsel %vm1296_vm5, %v1298_v44, %v1294_v46 }
 0x8ad   : > { %v1304_v52 = vmul.f32 %v1299_v50, %v2234_v49 }
 0x8ae   : > { %1447 = vmatmul.bf16.vlgmr.msrb.gmra.mxu3 %v1305_v47 }
 0x8af   : > { %v1306_v53 = vpack.c.bf16 %v1304_v52, %v1302_v51 }
 0x8b1   : > { %1461 = vmatmul.bf16.vlgmr.msrb.gmra.mxu2 %v1306_v53 }
 0x931   : > { %v1448_v54 = vpop.f32.mrf.mxu3 }
 0x932   : > { %v1449_v48 = vadd.f32 %v1761_v34, %v1448_v54 }
 0x934   : > { %v1462_v41 = vpop.f32.mrf.mxu2 }
 0x935   : > { %v1463_v55 = vadd.f32 %v1462_v41, %v1449_v48 }
 0x937   : > { %v1467_v35 = vadd.f32 %v1463_v55, %v2098_v12 }
 0x939   : > { %1469 = vst.msk [vmem:[%s494_s25] sm:$0xff] %vm500_vm0, %v1467_v35  ;;  %v1450_v49 = vpop.f32.mrf.mxu3 }
 0x93a   : > { %v1451_v56 = vadd.f32 %v1761_v34, %v1450_v49 }
 0x93c   : > { %v1464_v57 = vpop.f32.mrf.mxu2 }
 0x93d   : > { %v1465_v58 = vadd.f32 %v1464_v57, %v1451_v56 }
 0x93f   : > { %v1468_v59 = vadd.f32 %v1465_v58, %v2103_v17 }
 0x941   : > { %1470 = vst.msk [vmem:[%s494_s25 + $0x8] sm:$0xff] %vm500_vm0, %v1468_v59 }
 0x942 PF: > { %s25_s18 = sadd.s32 1, %s1826_s18  }
 0x943   : > { %p22_p4 = scmp.ge.s32.totalorder %s25_s18, 4  }
 0x945   :  { %24 = sbr.rel (!%p22_p4) target bundleno = 1 (0x1), region = 110 }

// kernel: clip_forward.3
= control target key start
LH: loop header
LB: loop body
LE: loop exit
PB: predicated region body
PF: predicated region fallthrough
CT: control target
= control target key end

     0   :  { %s2526_s0 = inlined_call_operand.vmem [shape: f32[2,16,64], index: 0, kind: input, shape index: {}]   ;;  %s2527_s1 = inlined_call_operand.vmem [shape: f32[1,64], index: 1, kind: input, shape index: {}]   ;;  %s2528_s2 = inlined_call_operand.vmem [shape: f32[1,64], index: 2, kind: input, shape index: {}]   ;;  %s2529_s3 = inlined_call_operand.vmem [shape: bf16[64,192], index: 3, kind: input, shape index: {}]   ;;  %s2530_s4 = inlined_call_operand.vmem [shape: f32[1,192], index: 4, kind: input, shape index: {}]   ;;  %s2531_s5 = inlined_call_operand.vmem [shape: bf16[64,64], index: 5, kind: input, shape index: {}]   ;;  %s2532_s6 = inlined_call_operand.vmem [shape: f32[1,64], index: 6, kind: input, shape index: {}]   ;;  %s2533_s7 = inlined_call_operand.vmem [shape: f32[1,64], index: 7, kind: input, shape index: {}]   ;;  %s2534_s8 = inlined_call_operand.vmem [shape: f32[1,64], index: 8, kind: input, shape index: {}]   ;;  %s2535_s9 = inlined_call_operand.vmem [shape: bf16[64,256], index: 9, kind: input, shape index: {}]   ;;  %s2536_s10 = inlined_call_operand.vmem [shape: f32[1,256], index: 10, kind: input, shape index: {}]   ;;  %s2537_s11 = inlined_call_operand.vmem [shape: bf16[256,64], index: 11, kind: input, shape index: {}]   ;;  %s2538_s12 = inlined_call_operand.vmem [shape: f32[1,64], index: 12, kind: input, shape index: {}]   ;;  %s2539_s13 = inlined_call_operand.vmem [shape: f32[1,64], index: 13, kind: input, shape index: {}]   ;;  %s2540_s14 = inlined_call_operand.vmem [shape: f32[1,64], index: 14, kind: input, shape index: {}]   ;;  %s2541_s15 = inlined_call_operand.hbm [shape: f32[2,16,64], index: 15, kind: output, shape index: {}]  }
   0x1   :  { %2545 = sst [smem:[#allocation8_spill]] %s2526_s0 }
   0x2   :  { %2546 = sst [smem:[#allocation9_spill]] %s2527_s1 }
   0x3   :  { %20 = vsyncpa [#allocation3], 0 }
   0x4   :  { %22 = vsyncpa [#allocation3 + $0x1], 0  ;;  %s2092_s18 = smov 0   ;;  %s2094_s19 = smov 0  }
   0x5   :  { %s2096_s20 = smov 0   ;;  %s2098_s21 = smov 0  }
   0x6 LB: > { %2547 = sst [smem:[#allocation5_spill]] %s1995_s20  ;;  %s2113_s22 = sadd.s32 4294967295, %s1999_s21   ;;  %s1999_s21 = sphi %s2098_s21, %s2558_s21   ;;  %s1995_s20 = sphi %s2096_s20, %s2560_s20   ;;  %s1991_s19 = sphi %s2094_s19, %s2562_s19   ;;  %s1987_s18 = sphi %s2092_s18, %s2561_s18  }
   0x7   : > { %s1603_s23 = sadd.s32 4294967294, %s1999_s21   ;;  %s2117_s24 = sadd.s32 1, %s1999_s21  }
   0x8   : > { %2548 = sst [smem:[#allocation6_spill]] %s2117_s24  ;;  %s355_s25 = sadd.s32 1, %s1995_s20 }
   0x9   : > { %s352_s26 = ssub.s32 %s1999_s21, %s2117_s24  ;;  %p365_p0 = scmp.ne.s32.totalorder %s1995_s20, %s1991_s19 }
   0xa   : > { %p353_p1 = scmp.eq.s32.totalorder %s352_s26, 0  ;;  %p366_p2 = scmp.eq.s32.totalorder %s2113_s22, 1 }
   0xb   : > { %p371_p3 = scmp.ne.s32.totalorder %s1991_s19, %s1987_s18  ;;  %p372_p4 = scmp.eq.s32.totalorder %s1603_s23, 1 }
   0xc   : > { %s2128_s27 = scalar_select %p353_p1, %s1995_s20, %s355_s25  }
   0xd   : > { %p2130_p5 = por %p366_p2, %p365_p0  ;;  %p2134_p6 = por %p372_p4, %p371_p3 }
   0xe   : > { %2549 = sst [smem:[#allocation7_spill]] %s2128_s27  ;;  %p1606_p7 = scmp.ge.s32.totalorder %s1999_s21, 1 }
   0xf   : > { %p440_p8 = scmp.lt.s32.totalorder %s1999_s21, 3 }
  0x11   : > { %p441_p9 = pnand %p1606_p7, %p440_p8 }
  0x12   : > { %p488_p10 = scmp.lt.s32.totalorder (!%p441_p9), %s2113_s22, 1  ;;  %s2552_s0 = sld [smem:[#allocation8_spill]] (!%p441_p9) }
  0x13   : > { %444 = sbr.rel (%p441_p9) target bundleno = 2655 (0xa5f), region = 80  ;;  %s2553_s1 = sld [smem:[#allocation9_spill]] (!%p441_p9) }
  0x14   : > { %s2002_s20 = smov (!%p441_p9), 64   ;;  %s2004_s24 = smov (!%p441_p9), 16  }
  0x15   : > { %s2005_s26 = smov (!%p441_p9), 48   ;;  %s2008_s17 = smov (!%p441_p9), 96  }
  0x16   : > { %s2009_s23 = smov (!%p441_p9), 80   ;;  %s485_s27 = sand.u32 (!%p441_p9), 1, %s1991_s19  }
  0x18   : > { %s489_s30 = scalar_select %p488_p10, %s2113_s22, 1  ;;  %vm498_vm0 = vcmask 523264   ;;  %v2001_v4 = vmov 64.0   ;;  %v1636_v21 = vld [vmem:[%s2529_s3 + $0x30] sm:$0xf]  ;;  %vm669_vm8 = vcmask 130048  }
  0x19   : > { %1875 = vrcp.f32 %v2001_v4  ;;  %v1787_v22 = vld [vmem:[%s2529_s3 + $0x34] sm:$0xf0]  ;;  %v1786_v23 = vld [vmem:[%s2529_s3 + $0x34] sm:$0xf]  ;;  %v1638_v25 = vld [vmem:[%s2529_s3 + $0x38] sm:$0xf0] }
  0x1a   : > { %s1779_s16 = sshll.u32 %s489_s30, 4  ;;  %v1637_v24 = vor.u32 %v1787_v22, %v1636_v21  ;;  %v1641_v26 = vor.u32 %v1786_v23, %v1638_v25  ;;  %v1628_v27 = vld [vmem:[%s2529_s3 + $0x20] sm:$0xf]  ;;  %v1785_v28 = vld [vmem:[%s2529_s3 + $0x24] sm:$0xf0]  ;;  %s2006_s30 = smov 112  }
  0x1b   : > { %s492_s25 = scalar_lea.vmem %s2552_s0, %s1779_s16  ;;  %v1784_v29 = vld [vmem:[%s2529_s3 + $0x24] sm:$0xf]  ;;  %v1629_v30 = vor.u32 %v1785_v28, %v1628_v27  ;;  %v1630_v31 = vld [vmem:[%s2529_s3 + $0x28] sm:$0xf0]  ;;  %v1620_v33 = vld [vmem:[%s2529_s3 + $0x10] sm:$0xf] }
  0x1c   : > { %v2145_v0 = vld [vmem:[%s492_s25] sm:$0xff]  ;;  %v2149_v2 = vld [vmem:[%s492_s25 + $0x8] sm:$0xff]  ;;  %622 = vmatpush.bf16.msra.mxu0 %v1637_v24  ;;  %636 = vmatpush.bf16.msra.mxu1 %v1641_v26  ;;  %v1633_v32 = vor.u32 %v1784_v29, %v1630_v31  ;;  %v1783_v34 = vld [vmem:[%s2529_s3 + $0x14] sm:$0xf0]  ;;  %s2007_s16 = smov 32   ;;  %s1957_s25 = scalar_lea.hbm %s2541_s15, 32 }
  0x1d   : > { %v499_v1 = vsel %vm498_vm0, %v2145_v0, 0.0  ;;  %v502_v3 = vsel %vm498_vm0, %v2149_v2, 0.0  ;;  %v1782_v35 = vld [vmem:[%s2529_s3 + $0x14] sm:$0xf]  ;;  %v1621_v36 = vor.u32 %v1783_v34, %v1620_v33  ;;  %v1622_v37 = vld [vmem:[%s2529_s3 + $0x18] sm:$0xf0] }
  0x1e   : > { %500 = vadd.xlane.f32.xlu0 %v499_v1  ;;  %v1625_v38 = vor.u32 %v1782_v35, %v1622_v37  ;;  %v1612_v39 = vld [vmem:[%s2529_s3] sm:$0xf]  ;;  %v1781_v40 = vld [vmem:[%s2529_s3 + $0x4] sm:$0xf0]  ;;  %v1780_v41 = vld [vmem:[%s2529_s3 + $0x4] sm:$0xf] }
  0x1f   : > { %v1876_v5 = vpop.eup %1875  ;;  %v1613_v43 = vor.u32 %v1781_v40, %v1612_v39  ;;  %v1614_v44 = vld [vmem:[%s2529_s3 + $0x8] sm:$0xf0]  ;;  %v1867_v1 = vld [vmem:[%s2553_s1] ss:$0 sm:$0xff]  ;;  %v2003_v40 = vmov 0.0  }
  0x20   : > { %v506_v6 = vmul.f32 64.0, %v1876_v5  ;;  %vm510_vm1 = vweird.f32 %v1876_v5  ;;  %623 = vmatpush.bf16.msra.mxu0 %v1629_v30  ;;  %637 = vmatpush.bf16.msra.mxu1 %v1633_v32  ;;  %v1617_v46 = vor.u32 %v1780_v41, %v1614_v44 }
  0x22   : > { %v507_v7 = vsub.f32 1.0, %v506_v6 }
  0x24   : > { %v508_v8 = vmul.f32 %v1876_v5, %v507_v7  ;;  %624 = vmatpush.bf16.msra.mxu0 %v1621_v36  ;;  %638 = vmatpush.bf16.msra.mxu1 %v1625_v38  ;;  %v1868_v7 = vld [vmem:[%s2528_s2] ss:$0 sm:$0xff]  ;;  %v646_v36 = vlaneseq }
  0x26   : > { %503 = vadd.xlane.f32.xlu0 %v502_v3  ;;  %v509_v9 = vadd.f32 %v1876_v5, %v508_v8  ;;  %v647_v37 = vshrl.u32 %v646_v36, 7  ;;  %v650_v38 = vand.u32 127, %v646_v36 }
  0x28   : > { %v2153_v10 = vsel %vm510_vm1, %v1876_v5, %v509_v9  ;;  %625 = vmatpush.bf16.msra.mxu0 %v1613_v43  ;;  %639 = vmatpush.bf16.msra.mxu1 %v1617_v46  ;;  %vm651_vm9 = vcmp.gt.s32.totalorder %v650_v38, %v647_v37  ;;  %vm653_vm10 = vcmp.ge.s32.totalorder %v650_v38, 16  ;;  %v648_v39 = vadd.s32 8, %v647_v37 }
  0x29   : > { %vm654_vm11 = vmor %vm651_vm9, %vm653_vm10 }
  0x2a   : > { %v2237_v41 = vsel %vm654_vm11, -1e+30, %v2003_v40  ;;  %vm652_vm12 = vcmp.gt.s32.totalorder %v650_v38, %v648_v39 }
  0x2b   : > { %vm655_vm13 = vmor %vm652_vm12, %vm653_vm10 }
  0x91   : > { %v501_v11 = vpop.xlane.xlu0 %500 }
  0x92   : > { %v512_v12 = vmul.f32 %v2153_v10, %v501_v11 }
  0x94   : > { %v2157_v13 = vsub.f32 %v2145_v0, %v512_v12 }
  0x96   : > { %v516_v14 = vmul.f32 %v2157_v13, %v2157_v13 }
  0x98   : > { %v518_v15 = vsel %vm498_vm0, %v516_v14, 0.0 }
  0x99   : > { %519 = vadd.xlane.f32.xlu1 %v518_v15  ;;  %v504_v16 = vpop.xlane.xlu0 %503 }
  0x9a   : > { %v513_v17 = vmul.f32 %v2153_v10, %v504_v16 }
  0x9c   : > { %v2164_v18 = vsub.f32 %v2149_v2, %v513_v17 }
  0x9e   : > { %v517_v19 = vmul.f32 %v2164_v18, %v2164_v18 }
  0xa0   : > { %v521_v20 = vsel %vm498_vm0, %v517_v19, 0.0 }
  0xa1   : > { %522 = vadd.xlane.f32.xlu1 %v521_v20 }
 0x10c   : > { %v520_v42 = vpop.xlane.xlu1 %519 }
 0x10d   : > { %v524_v45 = vmul.f32 %v520_v42, %v2153_v10 }
 0x10f   : > { %v526_v47 = vadd.f32 1e-05, %v524_v45  ;;  %v2241_v45 = vsel %vm655_vm13, -1e+30, %v2003_v40 }
 0x111   : > { %1877 = vrsqrt.f32 %v526_v47  ;;  %vm534_vm3 = vweird.f32 %v526_v47 }
 0x114   : > { %v523_v48 = vpop.xlane.xlu1 %522 }
 0x115   : > { %v525_v49 = vmul.f32 %v523_v48, %v2153_v10 }
 0x117   : > { %v1878_v50 = vpop.eup %1877  ;;  %v527_v51 = vadd.f32 1e-05, %v525_v49 }
 0x118   : > { %v529_v52 = vmul.f32 %v1878_v50, %v526_v47  ;;  %vm535_vm2 = vweird.f32 %v1878_v50 }
 0x119   : > { %1879 = vrsqrt.f32 %v527_v51  ;;  %vm536_vm4 = vmor %vm534_vm3, %vm535_vm2  ;;  %vm544_vm6 = vweird.f32 %v527_v51 }
 0x11a   : > { %v530_v53 = vmul.f32 %v1878_v50, %v529_v52 }
 0x11c   : > { %v531_v54 = vmul.f32 0.5, %v530_v53 }
 0x11e   : > { %v532_v55 = vsub.f32 1.5, %v531_v54 }
 0x11f   : > { %v1880_v56 = vpop.eup %1879 }
 0x120   : > { %v533_v57 = vmul.f32 %v1878_v50, %v532_v55  ;;  %v539_v58 = vmul.f32 %v1880_v56, %v527_v51  ;;  %vm545_vm5 = vweird.f32 %v1880_v56 }
 0x121   : > { %vm546_vm7 = vmor %vm544_vm6, %vm545_vm5 }
 0x122   : > { %v540_v59 = vmul.f32 %v1880_v56, %v539_v58  ;;  %v537_v60 = vsel %vm536_vm4, %v1878_v50, %v533_v57 }
 0x123   : > { %v548_v63 = vmul.f32 %v537_v60, %v2157_v13  ;;  %v569_v13 = vld [vmem:[%s2530_s4] sm:$0x3] }
 0x124   : > { %v541_v61 = vmul.f32 0.5, %v540_v59  ;;  %v571_v16 = vperm.slane %v569_v13, 0  ;;  %v572_v17 = vperm.slane %v569_v13, 1  ;;  %v1788_v59 = vld [vmem:[%s2531_s5] sm:$0xff] }
 0x125   : > { %v553_v6 = vmul.f32 %v1867_v1, %v548_v63 }
 0x126   : > { %v542_v62 = vsub.f32 1.5, %v541_v61 }
 0x127   : > { %v558_v9 = vadd.f32 %v1868_v7, %v553_v6 }
 0x128   : > { %v543_v3 = vmul.f32 %v1880_v56, %v542_v62 }
 0x12a   : > { %v547_v4 = vsel %vm546_vm7, %v1880_v56, %v543_v3 }
 0x12b   : > { %v549_v5 = vmul.f32 %v547_v4, %v2164_v18 }
 0x12d   : > { %v554_v8 = vmul.f32 %v1867_v1, %v549_v5 }
 0x12f   : > { %v559_v11 = vadd.f32 %v1868_v7, %v554_v8 }
 0x131   : > { %v560_v12 = vpack.c.bf16 %v559_v11, %v558_v9 }
 0x133   : > { %1642 = vmatmul.msk.bf16.vlgmr.msra.gmra.mxu0 %vm498_vm0, %v560_v12  ;;  %1643 = vmatmul.msk.bf16.vlgmr.msra.gmra.mxu1 %vm498_vm0, %v560_v12 }
 0x1b0   : > { %v627_v14 = vpop.f32.mrf.mxu0  ;;  %v641_v15 = vpop.f32.mrf.mxu1 }
 0x1b1   : > { %v628_v18 = vadd.f32 %v627_v14, %v571_v16  ;;  %v642_v19 = vadd.f32 %v641_v15, %v572_v17 }
 0x1b3   : > { %v658_v22 = vpack.c.bf16 %v628_v18, %v628_v18  ;;  %v660_v23 = vpack.c.bf16 %v642_v19, %v642_v19 }
 0x1b5   : > { %v664_v28 = vunpack.c.l.b16 %v658_v22  ;;  %v721_v29 = vunpack.c.l.b16 %v660_v23 }
 0x1b8   : > { %v629_v20 = vpop.f32.mrf.mxu0  ;;  %v643_v21 = vpop.f32.mrf.mxu1 }
 0x1b9   : > { %v630_v24 = vadd.f32 %v629_v20, %v571_v16  ;;  %v644_v25 = vadd.f32 %v643_v21, %v572_v17 }
 0x1bb   : > { %v659_v26 = vpack.c.bf16 %v630_v24, %v630_v24  ;;  %v661_v27 = vpack.c.bf16 %v644_v25, %v644_v25 }
 0x1bd   : > { %v665_v30 = vunpack.c.l.b16 %v659_v26  ;;  %v722_v31 = vunpack.c.l.b16 %v661_v27 }
 0x1bf   : > { %v666_v32 = vpack.c.b16 %v665_v30, %v664_v28  ;;  %v2232_v33 = vpack.c.b16 %v722_v31, %v721_v29 }
 0x1c1   : > { %735 = vmatpush.bf16.msrb.mxu1 %v2232_v33  ;;  %667 = vrot.lane.b32.xlu2 %v666_v32, %s2002_s20 }
 0x1c5   : > { %860 = vmatpush.bf16.msra.mxu1 %v1788_v59 }
 0x21b   : > { %v668_v34 = vpop.permute.xlu2 %667 }
 0x21c   : > { %v674_v35 = vsel %vm669_vm8, %v668_v34, 0 }
 0x21d   : > { %683 = vmatpush.bf16.xpose.msrb.mxu0 %v674_v35 }
 0x224   : > { %1644 = vmatmul.msk.bf16.vlgmr.msrb.gmra.mxu0 %vm669_vm8, %v666_v32 }
 0x2a1   : > { %v685_v42 = vpop.f32.mrf.mxu0 }
 0x2a2   : > { %v686_v43 = vadd.f32 %v685_v42, %v2237_v41 }
 0x2a4   : > { %v690_v44 = vsel %vm669_vm8, %v686_v43, -inf }
 0x2a5   : > { %691 = vmax.xlane.f32.xlu2 %v690_v44 }
 0x2a9   : > { %v687_v46 = vpop.f32.mrf.mxu0 }
 0x2aa   : > { %v688_v47 = vadd.f32 %v687_v46, %v2241_v45 }
 0x2ac   : > { %v693_v48 = vsel %vm669_vm8, %v688_v47, -inf }
 0x2ad   : > { %694 = vmax.xlane.f32.xlu0 %v693_v48 }
 0x2bd   : > { %970 = vrot.lane.b32.xlu2 %v666_v32, %s2004_s24 }
 0x318   : > { %v692_v49 = vpop.xlane.xlu2 %691 }
 0x319   : > { %v696_v50 = vsub.f32 %v686_v43, %v692_v49 }
 0x31b   : > { %v698_v51 = vmul.f32 1.442695, %v696_v50 }
 0x31d   : > { %1881 = vpow2.f32 %v698_v51 }
 0x320   : > { %v695_v52 = vpop.xlane.xlu0 %694  ;;  %v971_v8 = vpop.permute.xlu2 %970 }
 0x321   : > { %v697_v53 = vsub.f32 %v688_v47, %v695_v52  ;;  %v976_v11 = vsel %vm669_vm8, %v971_v8, 0 }
 0x323   : > { %v1882_v54 = vpop.eup %1881  ;;  %v700_v55 = vmul.f32 1.442695, %v697_v53 }
 0x324   : > { %v702_v56 = vsel %vm669_vm8, %v1882_v54, 0.0 }
 0x325   : > { %1883 = vpow2.f32 %v700_v55  ;;  %703 = vadd.xlane.f32.xlu1 %v702_v56 }
 0x32b   : > { %v1884_v57 = vpop.eup %1883 }
 0x32c   : > { %v705_v58 = vsel %vm669_vm8, %v1884_v57, 0.0 }
 0x32d   : > { %706 = vadd.xlane.f32.xlu0 %v705_v58 }
 0x33e   : > { %747 = vrot.lane.b32.xlu1 %v666_v32, %s2005_s26 }
 0x341   : > { %745 = vrot.lane.b32.xlu0 %v666_v32, %s2006_s30 }
 0x346   : > { %869 = vrot.lane.b32.xlu1 %v666_v32, %s2007_s16  ;;  %s1607_s16 = sshll.u32 %s485_s27, 4 }
 0x347   : > { %s487_s20 = scalar_lea.vmem [#allocation2], %s1607_s16 }
 0x348   : > { %s1538_s24 = sshll.u32 %s487_s20, 4  ;;  %s1539_s24 = int_to_ptr.vmem [resolvable:$true] %s1538_s24 }
 0x349   : > { %867 = vrot.lane.b32.xlu0 %v666_v32, %s2008_s17 }
 0x34e   : > { %968 = vrot.lane.b32.xlu1 %v666_v32, %s2009_s23 }
 0x398   : > { %v704_v60 = vpop.xlane.xlu1 %703 }
 0x399   : > { %1885 = vrcp.f32 %v704_v60 }
 0x39f   : > { %v1886_v62 = vpop.eup %1885 }
 0x3a0   : > { %v707_v61 = vpop.xlane.xlu0 %706  ;;  %v710_v63 = vmul.f32 %v1886_v62, %v1882_v54 }
 0x3a1   : > { %1887 = vrcp.f32 %v707_v61 }
 0x3a2   : > { %v712_v3 = vpack.c.bf16 %v710_v63, %v710_v63 }
 0x3a4   : > { %v716_v6 = vunpack.c.l.b16 %v712_v3 }
 0x3a7   : > { %v1888_v1 = vpop.eup %1887 }
 0x3a8   : > { %v711_v4 = vmul.f32 %v1888_v1, %v1884_v57 }
 0x3aa   : > { %v713_v5 = vpack.c.bf16 %v711_v4, %v711_v4 }
 0x3ac   : > { %v717_v7 = vunpack.c.l.b16 %v713_v5 }
 0x3ae   : > { %v718_v9 = vpack.c.b16 %v717_v7, %v716_v6 }
 0x3b0   : > { %1645 = vmatmul.msk.bf16.vlgmr.msrb.gmra.mxu1 %vm669_vm8, %v718_v9  ;;  %v748_v12 = vpop.permute.xlu1 %747 }
 0x3b1   : > { %985 = vmatpush.bf16.xpose.msrb.mxu1 %v976_v11  ;;  %v753_v13 = vsel %vm669_vm8, %v748_v12, 0 }
 0x3b2   : > { %762 = vmatpush.bf16.xpose.msra.mxu3 %v753_v13 }
 0x3b3   : > { %v746_v14 = vpop.permute.xlu0 %745 }
 0x3b8   : > { %v870_v15 = vpop.permute.xlu1 %869 }
 0x3b9   : > { %1646 = vmatmul.msk.bf16.vlgmr.msra.gmra.mxu3 %vm669_vm8, %v746_v14  ;;  %v875_v16 = vsel %vm669_vm8, %v870_v15, 0 }
 0x3ba   : > { %884 = vmatpush.bf16.xpose.msrb.mxu3 %v875_v16 }
 0x3bb   : > { %v868_v17 = vpop.permute.xlu0 %867 }
 0x3c0   : > { %v969_v26 = vpop.permute.xlu1 %968 }
 0x3c9   : > { %1658 = vmatmul.msk.bf16.vlgmr.msrb.gmra.mxu3 %vm669_vm8, %v868_v17 }
 0x42d   : > { %v737_v18 = vpop.f32.mrf.mxu1 }
 0x435   : > { %v739_v19 = vpop.f32.mrf.mxu1 }
 0x436   : > { %v742_v20 = vpack.c.bf16 %v739_v19, %v737_v18 }
 0x438   : > { %1657 = vmatmul.msk.bf16.vlgmr.msra.gmra.mxu1 %vm669_vm8, %v742_v20 }
 0x43c   : > { %v764_v21 = vpop.f32.mrf.mxu3 }
 0x43d   : > { %v765_v22 = vadd.f32 %v764_v21, %v2237_v41 }
 0x43f   : > { %v769_v23 = vsel %vm669_vm8, %v765_v22, -inf }
 0x440   : > { %770 = vmax.xlane.f32.xlu0 %v769_v23 }
 0x444   : > { %v766_v24 = vpop.f32.mrf.mxu3 }
 0x445   : > { %v767_v25 = vadd.f32 %v766_v24, %v2241_v45 }
 0x447   : > { %v772_v27 = vsel %vm669_vm8, %v767_v25, -inf }
 0x448   : > { %773 = vmax.xlane.f32.xlu1 %v772_v27  ;;  %1665 = vmatmul.msk.bf16.vlgmr.msrb.gmra.mxu1 %vm669_vm8, %v969_v26 }
 0x44c   : > { %v886_v28 = vpop.f32.mrf.mxu3 }
 0x44d   : > { %v887_v29 = vadd.f32 %v886_v28, %v2237_v41 }
 0x44f   : > { %v891_v30 = vsel %vm669_vm8, %v887_v29, -inf }
 0x450   : > { %892 = vmax.xlane.f32.xlu1 %v891_v30 }
 0x454   : > { %v888_v54 = vpop.f32.mrf.mxu3 }
 0x455   : > { %v889_v55 = vadd.f32 %v888_v54, %v2241_v45 }
 0x457   : > { %v894_v56 = vsel %vm669_vm8, %v889_v55, -inf }
 0x4b3   : > { %v771_v34 = vpop.xlane.xlu0 %770 }
 0x4b4   : > { %v775_v38 = vsub.f32 %v765_v22, %v771_v34 }
 0x4b5   : > { %v2267_v31 = vpop.f32.mrf.mxu1 }
 0x4b6   : > { %v777_v39 = vmul.f32 1.442695, %v775_v38 }
 0x4bb   : > { %v774_v32 = vpop.xlane.xlu1 %773 }
 0x4bc   : > { %v776_v35 = vsub.f32 %v767_v25, %v774_v32  ;;  %v1789_v25 = vld [vmem:[%s2531_s5 + $0x8] sm:$0xff] }
 0x4bd   : > { %v2269_v36 = vpop.f32.mrf.mxu1  ;;  %837 = vmatpush.bf16.msra.mxu0 %v1789_v25 }
 0x4be   : > { %v779_v37 = vmul.f32 1.442695, %v776_v35 }
 0x4c0   : > { %1889 = vpow2.f32 %v779_v37 }
 0x4c1   : > { %1891 = vpow2.f32 %v777_v39 }
 0x4c3   : > { %v893_v47 = vpop.xlane.xlu1 %892 }
 0x4c4   : > { %v897_v51 = vsub.f32 %v887_v29, %v893_v47 }
 0x4c5   : > { %v987_v40 = vpop.f32.mrf.mxu1 }
 0x4c6   : > { %v1890_v42 = vpop.eup %1889  ;;  %v988_v43 = vadd.f32 %v987_v40, %v2237_v41  ;;  %v899_v41 = vmul.f32 1.442695, %v897_v51 }
 0x4c7   : > { %v784_v44 = vsel %vm669_vm8, %v1890_v42, 0.0  ;;  %v1892_v48 = vpop.eup %1891 }
 0x4c8   : > { %785 = vadd.xlane.f32.xlu1 %v784_v44  ;;  %v992_v46 = vsel %vm669_vm8, %v988_v43, -inf  ;;  %v781_v53 = vsel %vm669_vm8, %v1892_v48, 0.0  ;;  %1893 = vpow2.f32 %v899_v41 }
 0x4c9   : > { %993 = vmax.xlane.f32.xlu2 %v992_v46 }
 0x4cd   : > { %v989_v49 = vpop.f32.mrf.mxu1 }
 0x4ce   : > { %v990_v50 = vadd.f32 %v989_v49, %v2241_v45  ;;  %v1894_v57 = vpop.eup %1893 }
 0x4cf   : > { %v903_v58 = vsel %vm669_vm8, %v1894_v57, 0.0 }
 0x4d0   : > { %v995_v52 = vsel %vm669_vm8, %v990_v50, -inf }
 0x4d1   : > { %996 = vmax.xlane.f32.xlu0 %v995_v52  ;;  %782 = vadd.xlane.f32.xlu2 %v781_v53 }
 0x4d9   : > { %895 = vmax.xlane.f32.xlu0 %v894_v56  ;;  %v1791_v56 = vld [vmem:[%s2531_s5 + $0x18] sm:$0xff] }
 0x4e1   : > { %798 = vrot.lane.b32.xlu1 %v2232_v33, %s2006_s30  ;;  %904 = vadd.xlane.f32.xlu0 %v903_v58 }
 0x53b   : > { %v786_v61 = vpop.xlane.xlu1 %785 }
 0x53c   : > { %v994_v59 = vpop.xlane.xlu2 %993 }
 0x53d   : > { %v998_v60 = vsub.f32 %v988_v43, %v994_v59 }
 0x53f   : > { %v1000_v62 = vmul.f32 1.442695, %v998_v60 }
 0x541   : > { %1895 = vpow2.f32 %v1000_v62 }
 0x542   : > { %1897 = vrcp.f32 %v786_v61 }
 0x544   : > { %v997_v63 = vpop.xlane.xlu0 %996  ;;  %v783_v1 = vpop.xlane.xlu2 %782 }
 0x545   : > { %1899 = vrcp.f32 %v783_v1  ;;  %v999_v12 = vsub.f32 %v990_v50, %v997_v63 }
 0x547   : > { %v1896_v45 = vpop.eup %1895  ;;  %v1002_v16 = vmul.f32 1.442695, %v999_v12 }
 0x548   : > { %v1898_v3 = vpop.eup %1897  ;;  %v1004_v4 = vsel %vm669_vm8, %v1896_v45, 0.0 }
 0x549   : > { %1005 = vadd.xlane.f32.xlu0 %v1004_v4  ;;  %v790_v6 = vmul.f32 %v1898_v3, %v1890_v42 }
 0x54b   : > { %v1900_v5 = vpop.eup %1899  ;;  %v792_v14 = vpack.c.bf16 %v790_v6, %v790_v6 }
 0x54c   : > { %v896_v7 = vpop.xlane.xlu0 %895  ;;  %v789_v8 = vmul.f32 %v1900_v5, %v1892_v48  ;;  %v1869_v5 = vld [vmem:[%s2532_s6] ss:$0 sm:$0xff] }
 0x54d   : > { %v898_v9 = vsub.f32 %v889_v55, %v896_v7  ;;  %v796_v18 = vunpack.c.l.b16 %v792_v14  ;;  %v1790_v55 = vld [vmem:[%s2531_s5 + $0x10] sm:$0xff] }
 0x54e   : > { %v791_v11 = vpack.c.bf16 %v789_v8, %v789_v8  ;;  %959 = vmatpush.bf16.msrb.mxu0 %v1790_v55 }
 0x54f   : > { %v901_v13 = vmul.f32 1.442695, %v898_v9 }
 0x550   : > { %v795_v15 = vunpack.c.l.b16 %v791_v11 }
 0x551   : > { %1901 = vpow2.f32 %v901_v13 }
 0x552   : > { %v797_v19 = vpack.c.b16 %v796_v18, %v795_v15  ;;  %1903 = vpow2.f32 %v1002_v16 }
 0x553   : > { %v799_v17 = vpop.permute.xlu1 %798 }
 0x554   : > { %811 = vmatpush.bf16.msra.mxu2 %v799_v17  ;;  %v905_v24 = vpop.xlane.xlu0 %904 }
 0x555   : > { %1905 = vrcp.f32 %v905_v24 }
 0x557   : > { %v1902_v20 = vpop.eup %1901  ;;  %1647 = vmatmul.msk.bf16.vlgmr.msra.gmra.mxu2 %vm669_vm8, %v797_v19 }
 0x558   : > { %v906_v21 = vsel %vm669_vm8, %v1902_v20, 0.0  ;;  %v1904_v22 = vpop.eup %1903 }
 0x559   : > { %907 = vadd.xlane.f32.xlu2 %v906_v21  ;;  %v1007_v23 = vsel %vm669_vm8, %v1904_v22, 0.0 }
 0x55b   : > { %v1906_v29 = vpop.eup %1905 }
 0x55c   : > { %v911_v32 = vmul.f32 %v1906_v29, %v1894_v57 }
 0x55d   : > { %1021 = vrot.lane.b32.xlu0 %v2232_v33, %s2009_s23 }
 0x55e   : > { %v913_v38 = vpack.c.bf16 %v911_v32, %v911_v32 }
 0x560   : > { %v917_v44 = vunpack.c.l.b16 %v913_v38  ;;  %v1692_v38 = vld [vmem:[%s2535_s9 + $0x28] sm:$0xf0] }
 0x561   : > { %1008 = vadd.xlane.f32.xlu2 %v1007_v23 }
 0x579   : > { %920 = vrot.lane.b32.xlu2 %v2232_v33, %s2008_s17  ;;  %s1816_s17 = sshll.u32 %s2113_s22, 4  ;;  %s1526_s22 = scalar_lea.sflag [#allocation3], %s485_s27 }
 0x57a   : > { %s1537_s0 = scalar_lea.hbm %s2541_s15, %s1816_s17 }
 0x57b   : > { %s1540_s26 = sshll.u32 %s1537_s0, 4  ;;  %s1541_s26 = int_to_ptr.hbm [resolvable:$true] %s1540_s26 }
 0x57c   : > { %s1951_s30 = sshra.s32 %s1541_s26, 4  ;;  %s1952_s30 = int_to_ptr.hbm [resolvable:$true] %s1951_s30 }
 0x57d   : > { %s1953_s23 = scalar_lea.hbm %s1952_s30, 16  ;;  %p1958_p0 = scmp.lt.s32.totalorder %s1952_s30, %s2541_s15 }
 0x57e   : > { %p1954_p11 = scmp.ne.s32.totalorder %s1952_s30, %s1953_s23  ;;  %p1959_p1 = scmp.lt.s32.totalorder %s1957_s25, %s1953_s23 }
 0x580   : > { %p1955_p12 = pnand %p1954_p11, %p2130_p5  ;;  %p1960_p2 = por %p1959_p1, %p1958_p0 }
 0x582   : > { %p1956_p13 = pneg %p1955_p12 }
 0x584   : > { %p1961_p3 = pnand %p1960_p2, %p1956_p13 }
 0x5bc   : > { %v1006_v26 = vpop.xlane.xlu0 %1005 }
 0x5cc   : > { %v908_v27 = vpop.xlane.xlu2 %907 }
 0x5cd   : > { %1907 = vrcp.f32 %v908_v27  ;;  %v1799_v27 = vld [vmem:[%s2535_s9 + $0x34] sm:$0xf0] }
 0x5ce   : > { %1909 = vrcp.f32 %v1006_v26  ;;  %v1698_v26 = vld [vmem:[%s2535_s9 + $0x30] sm:$0xf] }
 0x5cf   : > { %v1022_v28 = vpop.permute.xlu0 %1021  ;;  %v1699_v29 = vor.u32 %v1799_v27, %v1698_v26  ;;  %v1812_v26 = vld [vmem:[%s2537_s11 + $0x60] sm:$0xff] }
 0x5d0   : > { %1034 = vmatpush.bf16.msra.mxu3 %v1022_v28  ;;  %v1798_v28 = vld [vmem:[%s2535_s9 + $0x34] sm:$0xf] }
 0x5d3   : > { %v1908_v30 = vpop.eup %1907 }
 0x5d4   : > { %v912_v34 = vmul.f32 %v1908_v30, %v1902_v20  ;;  %v1009_v35 = vpop.xlane.xlu2 %1008  ;;  %v1910_v37 = vpop.eup %1909  ;;  %v1700_v30 = vld [vmem:[%s2535_s9 + $0x38] sm:$0xf0] }
 0x5d5   : > { %1911 = vrcp.f32 %v1009_v35  ;;  %v1012_v39 = vmul.f32 %v1910_v37, %v1896_v45  ;;  %v1703_v32 = vor.u32 %v1798_v28, %v1700_v30  ;;  %v1797_v35 = vld [vmem:[%s2535_s9 + $0x24] sm:$0xf0]  ;;  %v1796_v37 = vld [vmem:[%s2535_s9 + $0x24] sm:$0xf] }
 0x5d6   : > { %v914_v33 = vpack.c.bf16 %v912_v34, %v912_v34  ;;  %v1690_v34 = vld [vmem:[%s2535_s9 + $0x20] sm:$0xf] }
 0x5d7   : > { %v1014_v46 = vpack.c.bf16 %v1012_v39, %v1012_v39  ;;  %1209 = vmatpush.bf16.msra.mxu1 %v1703_v32  ;;  %v1695_v39 = vor.u32 %v1796_v37, %v1692_v38  ;;  %v1803_v32 = vld [vmem:[%s2537_s11 + $0x18] sm:$0xff] }
 0x5d8   : > { %v918_v40 = vunpack.c.l.b16 %v914_v33  ;;  %v1691_v33 = vor.u32 %v1797_v35, %v1690_v34  ;;  %v1811_v34 = vld [vmem:[%s2537_s11 + $0x58] sm:$0xff] }
 0x5d9   : > { %v1018_v51 = vunpack.c.l.b16 %v1014_v46  ;;  %v1684_v46 = vld [vmem:[%s2535_s9 + $0x18] sm:$0xf0] }
 0x5da   : > { %v813_v42 = vpop.f32.mrf.mxu2  ;;  %v919_v50 = vpack.c.b16 %v918_v40, %v917_v44  ;;  %v1682_v40 = vld [vmem:[%s2535_s9 + $0x10] sm:$0xf] }
 0x5db   : > { %v1912_v43 = vpop.eup %1911  ;;  %1210 = vmatpush.bf16.msra.mxu1 %v1695_v39  ;;  %v1802_v39 = vld [vmem:[%s2537_s11 + $0x10] sm:$0xff] }
 0x5dc   : > { %v1013_v47 = vmul.f32 %v1912_v43, %v1904_v22  ;;  %v921_v48 = vpop.permute.xlu2 %920  ;;  %v1794_v43 = vld [vmem:[%s2535_s9 + $0x14] sm:$0xf] }
 0x5dd   : > { %933 = vmatpush.bf16.msrb.mxu2 %v921_v48  ;;  %v1687_v48 = vor.u32 %v1794_v43, %v1684_v46 }
 0x5de   : > { %v1015_v49 = vpack.c.bf16 %v1013_v47, %v1013_v47 }
 0x5df   : > { %1211 = vmatpush.bf16.msra.mxu1 %v1687_v48  ;;  %v1809_v48 = vld [vmem:[%s2537_s11 + $0x48] sm:$0xff] }
 0x5e0   : > { %v1019_v52 = vunpack.c.l.b16 %v1015_v49  ;;  %1659 = vmatmul.msk.bf16.vlgmr.msrb.gmra.mxu2 %vm669_vm8, %v919_v50  ;;  %v1674_v50 = vld [vmem:[%s2535_s9] sm:$0xf] }
 0x5e1   : > { %1060 = vmatpush.bf16.msra.mxu2 %v1791_v56 }
 0x5e2   : > { %v1020_v53 = vpack.c.b16 %v1019_v52, %v1018_v51  ;;  %v815_v54 = vpop.f32.mrf.mxu2  ;;  %v1793_v51 = vld [vmem:[%s2535_s9 + $0x4] sm:$0xf0]  ;;  %v1792_v52 = vld [vmem:[%s2535_s9 + $0x4] sm:$0xf] }
 0x5e3   : > { %v818_v41 = vpack.c.bf16 %v815_v54, %v813_v42  ;;  %v1795_v42 = vld [vmem:[%s2535_s9 + $0x14] sm:$0xf0]  ;;  %v1675_v54 = vor.u32 %v1793_v51, %v1674_v50 }
 0x5e4   : > { %1666 = vmatmul.msk.bf16.vlgmr.msra.gmra.mxu3 %vm669_vm8, %v1020_v53  ;;  %v1683_v44 = vor.u32 %v1795_v42, %v1682_v40  ;;  %v1810_v40 = vld [vmem:[%s2537_s11 + $0x50] sm:$0xff] }
 0x5e5   : > { %1652 = vmatmul.msk.bf16.vlgmr.msra.gmra.mxu0 %vm669_vm8, %v818_v41  ;;  %v1676_v41 = vld [vmem:[%s2535_s9 + $0x8] sm:$0xf0] }
 0x5e6   : > { %1195 = vmatpush.bf16.msra.mxu0 %v1699_v29  ;;  %v1679_v55 = vor.u32 %v1792_v52, %v1676_v41 }
 0x5e8   : > { %1212 = vmatpush.bf16.msra.mxu1 %v1679_v55 }
 0x5ea   : > { %1196 = vmatpush.bf16.msra.mxu0 %v1691_v33 }
 0x5ee   : > { %1197 = vmatpush.bf16.msra.mxu0 %v1683_v44 }
 0x5f2   : > { %1198 = vmatpush.bf16.msra.mxu0 %v1675_v54  ;;  %v1808_v54 = vld [vmem:[%s2537_s11 + $0x40] sm:$0xff] }
 0x662   : > { %v839_v63 = vpop.f32.mrf.mxu0 }
 0x663   : > { %v935_v57 = vpop.f32.mrf.mxu2  ;;  %v863_v3 = vadd.f32 %v2267_v31, %v839_v63 }
 0x667   : > { %v1036_v58 = vpop.f32.mrf.mxu3 }
 0x66a   : > { %v841_v1 = vpop.f32.mrf.mxu0 }
 0x66b   : > { %v937_v59 = vpop.f32.mrf.mxu2  ;;  %v865_v11 = vadd.f32 %v2269_v36, %v841_v1 }
 0x66c   : > { %v940_v60 = vpack.c.bf16 %v937_v59, %v935_v57 }
 0x66e   : > { %1664 = vmatmul.msk.bf16.vlgmr.msrb.gmra.mxu0 %vm669_vm8, %v940_v60 }
 0x66f   : > { %v1038_v61 = vpop.f32.mrf.mxu3 }
 0x670   : > { %v1041_v62 = vpack.c.bf16 %v1038_v61, %v1036_v58 }
 0x672   : > { %1671 = vmatmul.msk.bf16.vlgmr.msra.gmra.mxu2 %vm669_vm8, %v1041_v62 }
 0x6eb   : > { %v961_v45 = vpop.f32.mrf.mxu0 }
 0x6ec   : > { %v966_v4 = vadd.f32 %v961_v45, %v863_v3 }
 0x6f3   : > { %v963_v9 = vpop.f32.mrf.mxu0 }
 0x6f4   : > { %v967_v13 = vadd.f32 %v963_v9, %v865_v11 }
 0x6f5   : > { %v1062_v6 = vpop.f32.mrf.mxu2 }
 0x6f6   : > { %v1067_v7 = vadd.f32 %v1062_v6, %v966_v4 }
 0x6f8   : > { %v1073_v8 = vadd.f32 %v1869_v5, %v1067_v7 }
 0x6fa   : > { %v2310_v12 = vadd.f32 %v1073_v8, %v2145_v0  ;;  %v1870_v8 = vld [vmem:[%s2533_s7] ss:$0 sm:$0xff] }
 0x6fc   : > { %v1079_v14 = vsel %vm498_vm0, %v2310_v12, 0.0 }
 0x6fd   : > { %v1064_v15 = vpop.f32.mrf.mxu2  ;;  %1080 = vadd.xlane.f32.xlu1 %v1079_v14  ;;  %v1871_v14 = vld [vmem:[%s2534_s8] ss:$0 sm:$0xff] }
 0x6fe   : > { %v1068_v31 = vadd.f32 %v1064_v15, %v967_v13 }
 0x700   : > { %v1074_v16 = vadd.f32 %v1869_v5, %v1068_v31 }
 0x702   : > { %v2315_v17 = vadd.f32 %v1074_v16, %v2149_v2 }
 0x704   : > { %v1082_v18 = vsel %vm498_vm0, %v2315_v17, 0.0 }
 0x705   : > { %1083 = vadd.xlane.f32.xlu0 %v1082_v18 }
 0x770   : > { %v1081_v19 = vpop.xlane.xlu1 %1080 }
 0x771   : > { %v1085_v36 = vmul.f32 %v1081_v19, %v2153_v10 }
 0x773   : > { %v2321_v0 = vsub.f32 %v2310_v12, %v1085_v36 }
 0x775   : > { %v1089_v20 = vmul.f32 %v2321_v0, %v2321_v0 }
 0x777   : > { %v1091_v21 = vsel %vm498_vm0, %v1089_v20, 0.0  ;;  %v1815_v20 = vld [vmem:[%s2537_s11 + $0x78] sm:$0xff] }
 0x778   : > { %1092 = vadd.xlane.f32.xlu2 %v1091_v21  ;;  %v1084_v22 = vpop.xlane.xlu0 %1083  ;;  %1451 = vmatpush.bf16.msrb.mxu2 %v1815_v20  ;;  %v1806_v21 = vld [vmem:[%s2537_s11 + $0x30] sm:$0xff] }
 0x779   : > { %v1086_v2 = vmul.f32 %v1084_v22, %v2153_v10  ;;  %v1814_v22 = vld [vmem:[%s2537_s11 + $0x70] sm:$0xff] }
 0x77b   : > { %v2328_v23 = vsub.f32 %v2315_v17, %v1086_v2  ;;  %v1805_v2 = vld [vmem:[%s2537_s11 + $0x28] sm:$0xff] }
 0x77c   : > { %1452 = vmatpush.bf16.msrb.mxu2 %v1814_v22 }
 0x77d   : > { %v1090_v24 = vmul.f32 %v2328_v23, %v2328_v23 }
 0x77f   : > { %v1094_v25 = vsel %vm498_vm0, %v1090_v24, 0.0  ;;  %v1134_v24 = vld [vmem:[%s2536_s10] sm:$0x3] }
 0x780   : > { %1095 = vadd.xlane.f32.xlu1 %v1094_v25  ;;  %v1804_v25 = vld [vmem:[%s2537_s11 + $0x20] sm:$0xff]  ;;  %v1144_v27 = vperm.slane %v1134_v24, 0  ;;  %v1145_v28 = vperm.slane %v1134_v24, 1 }
 0x7eb   : > { %v1093_v47 = vpop.xlane.xlu2 %1092 }
 0x7ec   : > { %v1097_v49 = vmul.f32 %v1093_v47, %v2153_v10  ;;  %v1801_v47 = vld [vmem:[%s2537_s11 + $0x8] sm:$0xff] }
 0x7ee   : > { %v1099_v53 = vadd.f32 1e-05, %v1097_v49 }
 0x7f0   : > { %1913 = vrsqrt.f32 %v1099_v53  ;;  %vm1107_vm15 = vweird.f32 %v1099_v53 }
 0x7f3   : > { %v1096_v56 = vpop.xlane.xlu1 %1095 }
 0x7f4   : > { %v1098_v57 = vmul.f32 %v1096_v56, %v2153_v10 }
 0x7f6   : > { %v1914_v58 = vpop.eup %1913  ;;  %v1100_v59 = vadd.f32 1e-05, %v1098_v57 }
 0x7f7   : > { %v1102_v60 = vmul.f32 %v1914_v58, %v1099_v53  ;;  %vm1108_vm14 = vweird.f32 %v1914_v58  ;;  %v1800_v53 = vld [vmem:[%s2537_s11] sm:$0xff] }
 0x7f8   : > { %1915 = vrsqrt.f32 %v1100_v59  ;;  %vm1109_vm1 = vmor %vm1107_vm15, %vm1108_vm14  ;;  %vm1117_vm3 = vweird.f32 %v1100_v59 }
 0x7f9   : > { %v1103_v61 = vmul.f32 %v1914_v58, %v1102_v60 }
 0x7fb   : > { %v1104_v62 = vmul.f32 0.5, %v1103_v61 }
 0x7fd   : > { %v1105_v63 = vsub.f32 1.5, %v1104_v62 }
 0x7fe   : > { %v1916_v1 = vpop.eup %1915 }
 0x7ff   : > { %v1106_v45 = vmul.f32 %v1914_v58, %v1105_v63  ;;  %v1112_v3 = vmul.f32 %v1916_v1, %v1100_v59  ;;  %vm1118_vm2 = vweird.f32 %v1916_v1 }
 0x800   : > { %vm1119_vm4 = vmor %vm1117_vm3, %vm1118_vm2 }
 0x801   : > { %v1113_v4 = vmul.f32 %v1916_v1, %v1112_v3  ;;  %v1110_v5 = vsel %vm1109_vm1, %v1914_v58, %v1106_v45 }
 0x802   : > { %v1121_v9 = vmul.f32 %v1110_v5, %v2321_v0  ;;  %v1807_v0 = vld [vmem:[%s2537_s11 + $0x38] sm:$0xff] }
 0x803   : > { %v1114_v6 = vmul.f32 0.5, %v1113_v4  ;;  %1437 = vmatpush.bf16.msrb.mxu3 %v1807_v0 }
 0x804   : > { %v1126_v15 = vmul.f32 %v1870_v8, %v1121_v9 }
 0x805   : > { %v1115_v7 = vsub.f32 1.5, %v1114_v6 }
 0x806   : > { %v1131_v18 = vadd.f32 %v1871_v14, %v1126_v15 }
 0x807   : > { %v1116_v11 = vmul.f32 %v1916_v1, %v1115_v7  ;;  %1438 = vmatpush.bf16.msrb.mxu3 %v1806_v21 }
 0x809   : > { %v1120_v13 = vsel %vm1119_vm4, %v1916_v1, %v1116_v11 }
 0x80a   : > { %v1122_v31 = vmul.f32 %v1120_v13, %v2328_v23  ;;  %v1813_v23 = vld [vmem:[%s2537_s11 + $0x68] sm:$0xff] }
 0x80b   : > { %1439 = vmatpush.bf16.msrb.mxu3 %v1805_v2  ;;  %1453 = vmatpush.bf16.msrb.mxu2 %v1813_v23 }
 0x80c   : > { %v1127_v16 = vmul.f32 %v1870_v8, %v1122_v31 }
 0x80e   : > { %v1132_v19 = vadd.f32 %v1871_v14, %v1127_v16 }
 0x80f   : > { %1440 = vmatpush.bf16.msrb.mxu3 %v1804_v25  ;;  %1454 = vmatpush.bf16.msrb.mxu2 %v1812_v26 }
 0x810   : > { %v1133_v36 = vpack.c.bf16 %v1132_v19, %v1131_v18 }
 0x812   : > { %1704 = vmatmul.msk.bf16.vlgmr.msra.gmra.mxu0 %vm498_vm0, %v1133_v36  ;;  %1705 = vmatmul.msk.bf16.vlgmr.msra.gmra.mxu1 %vm498_vm0, %v1133_v36 }
 0x813   : > { %1441 = vmatpush.bf16.msrb.mxu3 %v1803_v32  ;;  %1455 = vmatpush.bf16.msrb.mxu2 %v1811_v34 }
 0x817   : > { %1442 = vmatpush.bf16.msrb.mxu3 %v1802_v39  ;;  %1456 = vmatpush.bf16.msrb.mxu2 %v1810_v40 }
 0x81b   : > { %1443 = vmatpush.bf16.msrb.mxu3 %v1801_v47  ;;  %1457 = vmatpush.bf16.msrb.mxu2 %v1809_v48 }
 0x81f   : > { %1444 = vmatpush.bf16.msrb.mxu3 %v1800_v53  ;;  %1458 = vmatpush.bf16.msrb.mxu2 %v1808_v54 }
 0x88f   : > { %v1200_v29 = vpop.f32.mrf.mxu0  ;;  %v1214_v30 = vpop.f32.mrf.mxu1 }
 0x890   : > { %v2426_v35 = vadd.f32 %v1200_v29, %v1144_v27  ;;  %v2428_v37 = vadd.f32 %v1214_v30, %v1145_v28 }
 0x892   : > { %v1706_v33 = vmul.f32 -1.702, %v2426_v35  ;;  %v1707_v38 = vmul.f32 -1.702, %v2428_v37 }
 0x894   : > { %v1227_v42 = vmul.f32 1.442695, %v1706_v33  ;;  %v1229_v43 = vmul.f32 1.442695, %v1707_v38 }
 0x896   : > { %1917 = vpow2.f32 %v1227_v42 }
 0x897   : > { %1919 = vpow2.f32 %v1229_v43  ;;  %v1202_v44 = vpop.f32.mrf.mxu0  ;;  %v1216_v46 = vpop.f32.mrf.mxu1 }
 0x898   : > { %v2444_v49 = vadd.f32 %v1202_v44, %v1144_v27  ;;  %v2446_v50 = vadd.f32 %v1216_v46, %v1145_v28 }
 0x89a   : > { %v1708_v51 = vmul.f32 -1.702, %v2444_v49  ;;  %v1709_v52 = vmul.f32 -1.702, %v2446_v50 }
 0x89c   : > { %v1918_v41 = vpop.eup %1917  ;;  %v1231_v55 = vmul.f32 1.442695, %v1708_v51  ;;  %v1233_v58 = vmul.f32 1.442695, %v1709_v52 }
 0x89d   : > { %v1920_v56 = vpop.eup %1919  ;;  %v1235_v57 = vadd.f32 1.0, %v1918_v41 }
 0x89e   : > { %v1236_v59 = vadd.f32 1.0, %v1920_v56  ;;  %1921 = vpow2.f32 %v1231_v55 }
 0x89f   : > { %1923 = vrcp.f32 %v1235_v57  ;;  %vm1244_vm6 = vweird.f32 %v1235_v57  ;;  %v1248_v14 = vand.u32 2147483647, %v1235_v57  ;;  %v1250_v15 = vand.u32 2147483648, %v1235_v57 }
 0x8a0   : > { %1925 = vrcp.f32 %v1236_v59  ;;  %vm1259_vm7 = vweird.f32 %v1236_v59  ;;  %v1263_v16 = vand.u32 2147483647, %v1236_v59  ;;  %v1265_v20 = vand.u32 2147483648, %v1236_v59 }
 0x8a1   : > { %1927 = vpow2.f32 %v1233_v58  ;;  %vm1249_vm11 = vcmp.eq.f32.partialorder %v1248_v14, 8.507059e+37  ;;  %v1251_v24 = vor.u32 1.1754944e-38, %v1250_v15 }
 0x8a2   : > { %v1266_v38 = vor.u32 1.1754944e-38, %v1265_v20  ;;  %vm1264_vm2 = vcmp.eq.f32.partialorder %v1263_v16, 8.507059e+37 }
 0x8a4   : > { %v1922_v60 = vpop.eup %1921 }
 0x8a5   : > { %v1924_v61 = vpop.eup %1923  ;;  %v1237_v62 = vadd.f32 1.0, %v1922_v60 }
 0x8a6   : > { %v1926_v63 = vpop.eup %1925  ;;  %v1240_v1 = vmul.f32 %v1924_v61, %v1235_v57  ;;  %vm1245_vm5 = vweird.f32 %v1924_v61 }
 0x8a7   : > { %v1928_v45 = vpop.eup %1927  ;;  %v1255_v3 = vmul.f32 %v1926_v63, %v1236_v59  ;;  %1929 = vrcp.f32 %v1237_v62  ;;  %v1280_v19 = vand.u32 2147483648, %v1237_v62  ;;  %vm2456_vm8 = vmor %vm1244_vm6, %vm1245_vm5  ;;  %vm1260_vm9 = vweird.f32 %v1926_v63 }
 0x8a8   : > { %v1241_v4 = vsub.f32 1.0, %v1240_v1  ;;  %v1238_v5 = vadd.f32 1.0, %v1928_v45  ;;  %v1278_v23 = vand.u32 2147483647, %v1237_v62  ;;  %vm1274_vm12 = vweird.f32 %v1237_v62  ;;  %vm2463_vm13 = vmor %vm1259_vm7, %vm1260_vm9 }
 0x8a9   : > { %v1256_v6 = vsub.f32 1.0, %v1255_v3  ;;  %v1281_v28 = vor.u32 1.1754944e-38, %v1280_v19 }
 0x8aa   : > { %v1242_v7 = vmul.f32 %v1924_v61, %v1241_v4  ;;  %1931 = vrcp.f32 %v1238_v5  ;;  %v1293_v29 = vand.u32 2147483647, %v1238_v5  ;;  %v1295_v30 = vand.u32 2147483648, %v1238_v5 }
 0x8ab   : > { %v1257_v9 = vmul.f32 %v1926_v63, %v1256_v6  ;;  %vm1279_vm1 = vcmp.eq.f32.partialorder %v1278_v23, 8.507059e+37  ;;  %vm1289_vm3 = vweird.f32 %v1238_v5 }
 0x8ac   : > { %v1243_v11 = vadd.f32 %v1924_v61, %v1242_v7  ;;  %v1296_v47 = vor.u32 1.1754944e-38, %v1295_v30  ;;  %vm1294_vm5 = vcmp.eq.f32.partialorder %v1293_v29, 8.507059e+37 }
 0x8ad   : > { %v1930_v8 = vpop.eup %1929  ;;  %v1258_v0 = vadd.f32 %v1926_v63, %v1257_v9 }
 0x8ae   : > { %v1270_v13 = vmul.f32 %v1930_v8, %v1237_v62  ;;  %v1247_v22 = vsel %vm2456_vm8, %v1924_v61, %v1243_v11  ;;  %vm1275_vm10 = vweird.f32 %v1930_v8 }
 0x8af   : > { %v1252_v32 = vsel %vm1249_vm11, %v1251_v24, %v1247_v22  ;;  %v1262_v34 = vsel %vm2463_vm13, %v1926_v63, %v1258_v0  ;;  %vm1276_vm14 = vmor %vm1274_vm12, %vm1275_vm10  ;;  %v1874_v24 = vld [vmem:[%s2540_s14] ss:$0 sm:$0xff] }
 0x8b0   : > { %v1932_v31 = vpop.eup %1931  ;;  %v1271_v18 = vsub.f32 1.0, %v1270_v13  ;;  %v1299_v43 = vmul.f32 %v1252_v32, %v2426_v35  ;;  %v1267_v44 = vsel %vm1264_vm2, %v1266_v38, %v1262_v34  ;;  %v1872_v35 = vld [vmem:[%s2538_s12] ss:$0 sm:$0xff] }
 0x8b1   : > { %v1285_v21 = vmul.f32 %v1932_v31, %v1238_v5  ;;  %vm1290_vm15 = vweird.f32 %v1932_v31  ;;  %v1300_v53 = vmul.f32 %v1267_v44, %v2428_v37 }
 0x8b2   : > { %v1272_v2 = vmul.f32 %v1930_v8, %v1271_v18  ;;  %vm1291_vm4 = vmor %vm1289_vm3, %vm1290_vm15 }
 0x8b3   : > { %v1286_v25 = vsub.f32 1.0, %v1285_v21 }
 0x8b4   : > { %v1273_v27 = vadd.f32 %v1930_v8, %v1272_v2  ;;  %v1873_v2 = vld [vmem:[%s2539_s13] ss:$0 sm:$0xff] }
 0x8b5   : > { %v1287_v33 = vmul.f32 %v1932_v31, %v1286_v25 }
 0x8b6   : > { %v1277_v39 = vsel %vm1276_vm14, %v1930_v8, %v1273_v27 }
 0x8b7   : > { %v1282_v40 = vsel %vm1279_vm1, %v1281_v28, %v1277_v39  ;;  %v1288_v42 = vadd.f32 %v1932_v31, %v1287_v33 }
 0x8b8   : > { %v1301_v46 = vmul.f32 %v1282_v40, %v2444_v49 }
 0x8b9   : > { %v1292_v48 = vsel %vm1291_vm4, %v1932_v31, %v1288_v42 }
 0x8ba   : > { %v1303_v51 = vpack.c.bf16 %v1301_v46, %v1299_v43  ;;  %v1297_v52 = vsel %vm1294_vm5, %v1296_v47, %v1292_v48 }
 0x8bb   : > { %v1302_v54 = vmul.f32 %v1297_v52, %v2446_v50 }
 0x8bc   : > { %1445 = vmatmul.bf16.vlgmr.msrb.gmra.mxu3 %v1303_v51 }
 0x8bd   : > { %v1304_v41 = vpack.c.bf16 %v1302_v54, %v1300_v53 }
 0x8bf   : > { %1459 = vmatmul.bf16.vlgmr.msrb.gmra.mxu2 %v1304_v41 }
 0x93f   : > { %v1446_v55 = vpop.f32.mrf.mxu3 }
 0x940   : > { %v1447_v56 = vadd.f32 %v1872_v35, %v1446_v55 }
 0x942   : > { %v1460_v49 = vpop.f32.mrf.mxu2 }
 0x943   : > { %v1461_v57 = vadd.f32 %v1460_v49, %v1447_v56 }
 0x945   : > { %v1465_v58 = vadd.f32 %v1461_v57, %v2310_v12 }
 0x947   : > { %v1448_v59 = vpop.f32.mrf.mxu3  ;;  %v1469_v60 = vsel %vm498_vm0, %v1465_v58, 0.0 }
 0x948   : > { %v1449_v61 = vadd.f32 %v1872_v35, %v1448_v59  ;;  %1470 = vadd.xlane.f32.xlu0 %v1469_v60 }
 0x94a   : > { %v1462_v37 = vpop.f32.mrf.mxu2 }
 0x94b   : > { %v1463_v50 = vadd.f32 %v1462_v37, %v1449_v61 }
 0x94d   : > { %v1466_v62 = vadd.f32 %v1463_v50, %v2315_v17 }
 0x94f   : > { %v1472_v63 = vsel %vm498_vm0, %v1466_v62, 0.0 }
 0x950   : > { %1473 = vadd.xlane.f32.xlu1 %v1472_v63 }
 0x9bb   : > { %v1471_v1 = vpop.xlane.xlu0 %1470 }
 0x9bc   : > { %v1475_v45 = vmul.f32 %v1471_v1, %v2153_v10 }
 0x9be   : > { %v1477_v3 = vsub.f32 %v1465_v58, %v1475_v45 }
 0x9c0   : > { %v1479_v4 = vmul.f32 %v1477_v3, %v1477_v3 }
 0x9c2   : > { %v1481_v5 = vsel %vm498_vm0, %v1479_v4, 0.0 }
 0x9c3   : > { %v1474_v12 = vpop.xlane.xlu1 %1473  ;;  %1482 = vadd.xlane.f32.xlu2 %v1481_v5 }
 0x9c4   : > { %v1476_v6 = vmul.f32 %v1474_v12, %v2153_v10 }
 0x9c6   : > { %v1478_v7 = vsub.f32 %v1466_v62, %v1476_v6 }
 0x9c8   : > { %v1480_v8 = vmul.f32 %v1478_v7, %v1478_v7 }
 0x9ca   : > { %v1484_v9 = vsel %vm498_vm0, %v1480_v8, 0.0 }
 0x9cb   : > { %1485 = vadd.xlane.f32.xlu0 %v1484_v9 }
 0xa36   : > { %v1483_v17 = vpop.xlane.xlu2 %1482 }
 0xa37   : > { %v1487_v11 = vmul.f32 %v1483_v17, %v2153_v10 }
 0xa39   : > { %v1489_v13 = vadd.f32 1e-05, %v1487_v11 }
 0xa3b   : > { %1933 = vrsqrt.f32 %v1489_v13  ;;  %vm1497_vm7 = vweird.f32 %v1489_v13 }
 0xa3e   : > { %v1486_v14 = vpop.xlane.xlu0 %1485 }
 0xa3f   : > { %v1488_v15 = vmul.f32 %v1486_v14, %v2153_v10 }
 0xa41   : > { %v1934_v31 = vpop.eup %1933  ;;  %v1490_v16 = vadd.f32 1e-05, %v1488_v15 }
 0xa42   : > { %v1492_v18 = vmul.f32 %v1934_v31, %v1489_v13  ;;  %vm1498_vm6 = vweird.f32 %v1934_v31 }
 0xa43   : > { %1935 = vrsqrt.f32 %v1490_v16  ;;  %vm1499_vm8 = vmor %vm1497_vm7, %vm1498_vm6  ;;  %vm1507_vm10 = vweird.f32 %v1490_v16 }
 0xa44   : > { %v1493_v19 = vmul.f32 %v1934_v31, %v1492_v18 }
 0xa46   : > { %v1494_v36 = vmul.f32 0.5, %v1493_v19 }
 0xa48   : > { %v1495_v0 = vsub.f32 1.5, %v1494_v36 }
 0xa49   : > { %v1936_v20 = vpop.eup %1935 }
 0xa4a   : > { %v1496_v21 = vmul.f32 %v1934_v31, %v1495_v0  ;;  %v1502_v22 = vmul.f32 %v1936_v20, %v1490_v16  ;;  %vm1508_vm9 = vweird.f32 %v1936_v20 }
 0xa4b   : > { %vm1509_vm11 = vmor %vm1507_vm10, %vm1508_vm9 }
 0xa4c   : > { %v1500_v10 = vsel %vm1499_vm8, %v1934_v31, %v1496_v21  ;;  %v1503_v23 = vmul.f32 %v1936_v20, %v1502_v22 }
 0xa4d   : > { %v1511_v25 = vmul.f32 %v1500_v10, %v1477_v3 }
 0xa4e   : > { %v1504_v26 = vmul.f32 0.5, %v1503_v23 }
 0xa4f   : > { %v1516_v27 = vmul.f32 %v1873_v2, %v1511_v25 }
 0xa50   : > { %v1505_v28 = vsub.f32 1.5, %v1504_v26 }
 0xa51   : > { %v1521_v29 = vadd.f32 %v1874_v24, %v1516_v27 }
 0xa52   : > { %v1506_v30 = vmul.f32 %v1936_v20, %v1505_v28 }
 0xa53   : > { %1523 = vst.msk [vmem:[%s487_s20] sm:$0xff] %vm498_vm0, %v1521_v29 }
 0xa54   : > { %v1510_v32 = vsel %vm1509_vm11, %v1936_v20, %v1506_v30 }
 0xa55   : > { %v1512_v34 = vmul.f32 %v1510_v32, %v1478_v7 }
 0xa57   : > { %v1517_v33 = vmul.f32 %v1873_v2, %v1512_v34 }
 0xa59   : > { %v1522_v38 = vadd.f32 %v1874_v24, %v1517_v33 }
 0xa5b   : > { %1524 = vst.msk [vmem:[%s487_s20 + $0x8] sm:$0xff] %vm498_vm0, %v1522_v38 }
 0xa5c   : > { %1964 = shalt.err (!%p1961_p3)
}
 0xa5d   : > { %s2010_s27 = smov 128   ;;  %s2011_s20 = smov 8  }
 0xa5e   : > { %1817 = dma.vmem_to_hbm [thread:$0]  (%p2130_p5), %s1539_s24, 256, %s1541_s26, %s1526_s22, %s2010_s27, %s2010_s27, %s2011_s20  }
 0xa5f PF: > { %p1823_p4 = scmp.ge.s32.totalorder %s1999_s21, 2  ;;  %s1555_s16 = sand.u32 1, %s1987_s18  }
 0xa60   : > { %s1556_s1 = scalar_lea.sflag [#allocation3], %s1555_s16 }
 0xa61   : > { %p1820_p7 = pnand %p1823_p4, %p2134_p6 }
 0xa63   : > { %p1821_p8 = pneg %p1820_p7 }
 0xa65   : > { %1982 = dma.done.wait (%p1821_p8), %s1556_s1, 256  }
 0xa66   : > { %1984 = vsyncadd (%p1821_p8), %s1556_s1, 4294967040  ;;  %s2558_s21 = sld [smem:[#allocation6_spill]]  ;;  %s2561_s18 = smov %s1991_s19 }
 0xa67   : > { %s2559_s30 = sld [smem:[#allocation5_spill]] }
 0xa68   : > { %s2560_s20 = sld [smem:[#allocation7_spill]] }
 0xa6c   : > { %p25_p9 = scmp.ge.s32.totalorder %s2558_s21, 4  }
 0xa6d   : > { %s2562_s19 = smov %s2559_s30 }
 0xa6e   :  { %27 = sbr.rel (!%p25_p9) target bundleno = 6 (0x6), region = 115 }
 0xa73   :  { %1562 = vsyncpa [#allocation3], 1 }
 0xa74   :  { %1564 = vsyncpa [#allocation3 + $0x1], 1 }

</bundles_post_ra>
